<compile_context>
chip_gen: v7x
topology: tpu7x:2x2x1
jax: 0.10.0
libtpu: 0.0.40
codegen_flags: <defaults>
</compile_context>

<pallas_src>
import functools

import numpy as np
import jax
import jax.numpy as jnp
from jax.experimental import pallas as pl
from jax.experimental.pallas import tpu as pltpu


NEG_SLOPE = 0.2
BN_EPS = 1e-5
KSIZE = 4


def _leaky_relu(x, slope):
    return jnp.where(x >= 0, x, slope * x)


# -----------------------------------------------------------------------------
# Pallas kernels
# -----------------------------------------------------------------------------
def _conv_bias_act_kernel(x_ref, wt_ref, b_ref, o_ref, *, taps, ho, apply_act,
                          compute_dtype):
    """Fused conv (block-Toeplitz taps) + bias (+ LeakyReLU) for one batch element.

    x_ref : (Hr, L)         flattened, spatially padded input rows
    wt_ref: (taps, L, Wc)   precomputed block-Toeplitz weights
    b_ref : (1, Wc)         bias tiled into the (Wo, Cout) lane layout
    o_ref : (Ho, Wc)
    """
    acc = None
    for t in range(taps):                       # static, <= 4 iterations
        xs = x_ref[pl.ds(t, ho), :].astype(compute_dtype)
        wk = wt_ref[t].astype(compute_dtype)
        d = jnp.dot(xs, wk, preferred_element_type=jnp.float32)
        acc = d if acc is None else acc + d
    acc = acc + b_ref[...]
    if apply_act:
        acc = _leaky_relu(acc, NEG_SLOPE)
    o_ref[...] = acc.astype(o_ref.dtype)


def _conv_bn_act_kernel(x_ref, wt_ref, g_ref, gt_ref, gamma_ref, beta_ref, o_ref, *,
                        n_batch, taps, ho, wo, compute_dtype):
    """Fused conv + BatchNorm(batch stats, biased var) + LeakyReLU, whole batch.

    The conv bias is folded away (BN mean-subtraction cancels it exactly).
    x_ref : (N, Hr, L)
    wt_ref: (taps, L, Wc)
    g_ref : (Wc, Cout)   channel-grouping matrix (sums the Wo lane groups)
    gt_ref: (Cout, Wc)   its transpose (broadcasts per-channel scale/shift to lanes)
    o_ref : (N, Ho, Wc)
    """
    ys = []
    rowsum = None
    sqsum = None
    for n in range(n_batch):                    # static, tiny batch
        acc = None
        for t in range(taps):
            xs = x_ref[n, pl.ds(t, ho), :].astype(compute_dtype)
            wk = wt_ref[t].astype(compute_dtype)
            d = jnp.dot(xs, wk, preferred_element_type=jnp.float32)
            acc = d if acc is None else acc + d
        ys.append(acc)
        rs = jnp.sum(acc, axis=0, keepdims=True)
        ss = jnp.sum(acc * acc, axis=0, keepdims=True)
        rowsum = rs if rowsum is None else rowsum + rs
        sqsum = ss if sqsum is None else sqsum + ss

    # Per-channel batch statistics (single pass: E[x^2] - E[x]^2, no masking).
    g = g_ref[...]
    cnt = float(n_batch * ho * wo)
    ch_sum = jnp.dot(rowsum, g, preferred_element_type=jnp.float32)   # (1, Cout)
    ch_sq = jnp.dot(sqsum, g, preferred_element_type=jnp.float32)     # (1, Cout)
    mean = ch_sum / cnt
    var = ch_sq / cnt - mean * mean
    inv = jax.lax.rsqrt(var + BN_EPS)
    scale_c = gamma_ref[...] * inv
    shift_c = beta_ref[...] - mean * scale_c
    gt = gt_ref[...]
    scale = jnp.dot(scale_c, gt, preferred_element_type=jnp.float32)  # (1, Wc)
    shift = jnp.dot(shift_c, gt, preferred_element_type=jnp.float32)  # (1, Wc)

    for n in range(n_batch):
        y = _leaky_relu(ys[n] * scale + shift, NEG_SLOPE)
        o_ref[n] = y.astype(o_ref.dtype)


# -----------------------------------------------------------------------------
# One-time parameter preparation (hoisted out of the forward pass)
# -----------------------------------------------------------------------------
def _make_toeplitz(w_oihw, stride, wp, wo):
    """Block-Toeplitz weights: (taps, stride*Wp*Cin, Wo*Cout).

    For tap t, the matmul  x_rows[t : t+Ho]  @  wt[t]  accumulates the
    contribution of kernel rows kh with kh // stride == t; the W dimension,
    the stride along W and the H-parity (for stride 2) are all baked into the
    band structure of wt, so the kernel only needs contiguous row slices.
    """
    cout, cin, k, _ = w_oihw.shape
    taps = k // stride
    big = np.zeros((taps, stride * wp * cin, wo * cout), np.float32)
    w = np.asarray(w_oihw, np.float32)
    for kh in range(k):
        t, b = kh // stride, kh % stride
        for kw in range(k):
            wci = w[:, :, kh, kw].T                       # (Cin, Cout)
            for woi in range(wo):
                w_in = stride * woi + kw                  # padded input column
                r0 = (b * wp + w_in) * cin
                c0 = woi * cout
                big[t, r0:r0 + cin, c0:c0 + cout] = wci
    return big


def prepare_discriminator(params, height, width, compute_dtype=jnp.float32):
    """Precompute per-layer Toeplitz weights, tiled bias and BN grouping matrices."""
    layers = []
    h, w = height, width
    for p in params:
        s = int(p["stride"])
        cout, cin = p["w"].shape[0], p["w"].shape[1]
        hp, wp = h + 2, w + 2
        ho = (hp - KSIZE) // s + 1
        wo = (wp - KSIZE) // s + 1
        wt = _make_toeplitz(np.asarray(p["w"]), s, wp, wo)
        layer = {
            "stride": s, "cin": cin, "cout": cout, "ho": ho, "wo": wo,
            "bn": p["bn"], "act": p["act"], "compute_dtype": compute_dtype,
            "wt": jnp.asarray(wt, compute_dtype),
        }
        if p["bn"]:
            eye = np.eye(cout, dtype=np.float32)
            layer["G"] = jnp.asarray(np.tile(eye, (wo, 1)))    # (Wo*Cout, Cout)
            layer["GT"] = jnp.asarray(np.tile(eye, (1, wo)))   # (Cout, Wo*Cout)
            layer["gamma2d"] = jnp.asarray(p["gamma"], jnp.float32).reshape(1, cout)
            layer["beta2d"] = jnp.asarray(p["beta"], jnp.float32).reshape(1, cout)
            # conv bias folded away: BN mean-subtraction cancels it exactly.
        else:
            bias = np.tile(np.asarray(p["b"], np.float32), wo).reshape(1, wo * cout)
            layer["bias_tiled"] = jnp.asarray(bias)
        layers.append(layer)
        h, w = ho, wo
    return layers


# -----------------------------------------------------------------------------
# Per-layer fused forward
# -----------------------------------------------------------------------------
def _fused_conv_layer(x_nhwc, layer):
    compute_dtype = layer["compute_dtype"]
    s = layer["stride"]
    ho, wo, cout = layer["ho"], layer["wo"], layer["cout"]
    wc = wo * cout
    taps = KSIZE // s

    # Spatial zero-pad (padding=1), then FREE reshapes only:
    #   (N, Hp, Wp, C) -> (N, Hp/s, s*Wp*C)   (row-major consistent)
    xp = jnp.pad(x_nhwc, ((0, 0), (1, 1), (1, 1), (0, 0)))
    n, hp, wp, cin = xp.shape
    pad_h = (-hp) % s
    if pad_h:
        xp = jnp.pad(xp, ((0, 0), (0, pad_h), (0, 0), (0, 0)))
        hp += pad_h
    hr = hp // s
    lanes = s * wp * cin
    x3d = xp.reshape(n, hr, lanes)

    wt = layer["wt"]
    assert wt.shape == (taps, lanes, wc), (wt.shape, (taps, lanes, wc))
    assert (taps - 1) + ho <= hr

    if not layer["bn"]:
        # grid over batch, "parallel" so both v7x TensorCores get work.
        out = pl.pallas_call(
            functools.partial(_conv_bias_act_kernel, taps=taps, ho=ho,
                              apply_act=layer["act"], compute_dtype=compute_dtype),
            out_shape=jax.ShapeDtypeStruct((n, ho, wc), jnp.float32),
            grid=(n,),
            in_specs=[
                pl.BlockSpec((None, hr, lanes), lambda i: (i, 0, 0)),
                pl.BlockSpec((taps, lanes, wc), lambda i: (0, 0, 0)),
                pl.BlockSpec((1, wc), lambda i: (0, 0)),
            ],
            out_specs=pl.BlockSpec((None, ho, wc), lambda i: (i, 0, 0)),
            compiler_params=pltpu.CompilerParams(
                dimension_semantics=("parallel",)),
        )(x3d, wt, layer["bias_tiled"])
    else:
        # Whole batch in one step: BN needs cross-batch statistics.
        out = pl.pallas_call(
            functools.partial(_conv_bn_act_kernel, n_batch=n, taps=taps, ho=ho,
                              wo=wo, compute_dtype=compute_dtype),
            out_shape=jax.ShapeDtypeStruct((n, ho, wc), jnp.float32),
            grid=(1,),
            in_specs=[
                pl.BlockSpec((n, hr, lanes), lambda i: (0, 0, 0)),
                pl.BlockSpec((taps, lanes, wc), lambda i: (0, 0, 0)),
                pl.BlockSpec((wc, cout), lambda i: (0, 0)),
                pl.BlockSpec((cout, wc), lambda i: (0, 0)),
                pl.BlockSpec((1, cout), lambda i: (0, 0)),
                pl.BlockSpec((1, cout), lambda i: (0, 0)),
            ],
            out_specs=pl.BlockSpec((n, ho, wc), lambda i: (0, 0, 0)),
            compiler_params=pltpu.CompilerParams(
                dimension_semantics=("arbitrary",)),
        )(x3d, wt, layer["G"], layer["GT"], layer["gamma2d"], layer["beta2d"])

    # Free reshape: (N, Ho, Wo*Cout) -> (N, Ho, Wo, Cout)
    return out.reshape(n, ho, wo, cout)


def discriminator_forward(x_nchw, layers):
    # Accept NCHW (PyTorch), compute in NHWC, return NCHW.
    x = jnp.transpose(x_nchw, (0, 2, 3, 1)).astype(jnp.float32)
    for layer in layers:
        x = _fused_conv_layer(x, layer)
    return jnp.transpose(x, (0, 3, 1, 2))


# -----------------------------------------------------------------------------
# Raw (PyTorch-shaped) parameters and pure-JAX reference
# -----------------------------------------------------------------------------
def init_params(key, input_nc=8, ndf=16, n_layers=3):
    """Deterministic synthetic parameters, shapes matching the PyTorch module."""
    cfgs = [(input_nc, ndf, 2, False, True)]
    nf_mult = 1
    for layer in range(1, n_layers):
        nf_prev, nf_mult = nf_mult, min(2 ** layer, 8)
        cfgs.append((ndf * nf_prev, ndf * nf_mult, 2, True, True))
    nf_prev, nf_mult = nf_mult, min(2 ** n_layers, 8)
    cfgs.append((ndf * nf_prev, ndf * nf_mult, 1, True, True))
    cfgs.append((ndf * nf_mult, 1, 1, False, False))

    params = []
    for (cin, cout, stride, use_bn, use_act) in cfgs:
        key, k1, k2, k3, k4 = jax.random.split(key, 5)
        p = {
            "w": 0.05 * jax.random.normal(k1, (cout, cin, 4, 4), jnp.float32),
            "b": 0.05 * jax.random.normal(k2, (cout,), jnp.float32),
            "gamma": None, "beta": None,
            "stride": stride, "bn": use_bn, "act": use_act,
        }
        if use_bn:
            p["gamma"] = 1.0 + 0.1 * jax.random.normal(k3, (cout,), jnp.float32)
            p["beta"] = 0.1 * jax.random.normal(k4, (cout,), jnp.float32)
        params.append(p)
    return params


def reference_forward(x_nchw, params):
    x = jnp.transpose(x_nchw, (0, 2, 3, 1))
    for p in params:
        w_hwio = jnp.transpose(p["w"], (2, 3, 1, 0))
        x = jax.lax.conv_general_dilated(
            x, w_hwio, (p["stride"], p["stride"]), ((1, 1), (1, 1)),
            dimension_numbers=("NHWC", "HWIO", "NHWC")) + p["b"]
        if p["bn"]:
            mean = jnp.mean(x, axis=(0, 1, 2), keepdims=True)
            var = jnp.mean((x - mean) ** 2, axis=(0, 1, 2), keepdims=True)
            x = (x - mean) * jax.lax.rsqrt(var + BN_EPS) * p["gamma"] + p["beta"]
        if p["act"]:
            x = jnp.where(x >= 0, x, NEG_SLOPE * x)
    return jnp.transpose(x, (0, 3, 1, 2))


if __name__ == "__main__":
    key = jax.random.PRNGKey(0)
    kx, kp = jax.random.split(key)

    # Small shapes consistent with the module (input_nc=8, ndf=16, n_layers=3);
    # spatial 32 is the smallest size keeping all 5 convs valid.
    N, C, H, W = 2, 8, 32, 32
    x = jax.random.normal(kx, (N, C, H, W), jnp.float32)
    params = init_params(kp, input_nc=8, ndf=16, n_layers=3)
    ref = reference_forward(x, params)

    # f32 MXU operands: parity with the PyTorch module's f32 forward.
    layers_f32 = prepare_discriminator(params, H, W, compute_dtype=jnp.float32)
    out = jax.block_until_ready(
        jax.jit(lambda inp: discriminator_forward(inp, layers_f32))(x))
    assert out.shape == (2, 1, 2, 2), out.shape
    assert jnp.allclose(out, ref, rtol=5e-4, atol=5e-4), float(jnp.max(jnp.abs(out - ref)))

    # bf16 MXU operands (recommended on v6e/v7x): f32 accumulation + f32 epilogue.
    layers_bf16 = prepare_discriminator(params, H, W, compute_dtype=jnp.bfloat16)
    out_bf16 = jax.block_until_ready(
        jax.jit(lambda inp: discriminator_forward(inp, layers_bf16))(x))
    assert jnp.allclose(out_bf16, ref, rtol=0.1, atol=0.1), \
        float(jnp.max(jnp.abs(out_bf16 - ref)))

    print("KERNEL_OK")
</pallas_src>

<mosaic_0001>
module attributes {stable_mosaic.version = 11 : i64} {
  func.func @_conv_bias_act_kernel(%arg0: i32, %arg1: memref<1x17x544xf32, #tpu.memory_space<vmem>>, %arg2: memref<2x544x256xf32, #tpu.memory_space<vmem>>, %arg3: memref<1x256xf32, #tpu.memory_space<vmem>>, %arg4: memref<1x16x256xf32, #tpu.memory_space<vmem>>) attributes {dimension_semantics = [#tpu.dimension_semantics<parallel>], iteration_bounds = array<i64: 2>, scalar_prefetch = 0 : i64, scratch_operands = 0 : i64, tpu.core_type = #tpu.core_type<tc>, window_params = [{transform_indices = @transform_0, window_bounds = array<i64: 1, 17, 544>}, {pipeline_mode = #tpu.pipeline_mode<synchronous>, transform_indices = @transform_1, window_bounds = array<i64: 2, 544, 256>}, {pipeline_mode = #tpu.pipeline_mode<synchronous>, transform_indices = @transform_2, window_bounds = array<i64: 1, 256>}, {transform_indices = @transform_3, window_bounds = array<i64: 1, 16, 256>}]} {
    %c0 = arith.constant 0 : index
    %c0_0 = arith.constant 0 : index
    %c0_1 = arith.constant 0 : index
    %0 = vector.load %arg1[%c0, %c0_0, %c0_1] : memref<1x17x544xf32, #tpu.memory_space<vmem>>, vector<1x16x544xf32>
    %1 = vector.shape_cast %0 : vector<1x16x544xf32> to vector<16x544xf32>
    %c0_2 = arith.constant 0 : index
    %c0_3 = arith.constant 0 : index
    %c0_4 = arith.constant 0 : index
    %2 = vector.load %arg2[%c0_2, %c0_3, %c0_4] : memref<2x544x256xf32, #tpu.memory_space<vmem>>, vector<1x544x256xf32>
    %3 = vector.shape_cast %2 : vector<1x544x256xf32> to vector<544x256xf32>
    %cst = arith.constant dense<0.000000e+00> : vector<16x256xf32>
    %4 = tpu.matmul %1, %3, %cst {dimension_numbers = #tpu.dot_dimension_numbers<[1], [0], [0], [1], [0, 0, 1, 1], [], []>} : vector<16x544xf32>, vector<544x256xf32>, vector<16x256xf32> -> vector<16x256xf32>
    %c0_5 = arith.constant 0 : index
    %c1 = arith.constant 1 : index
    %c0_6 = arith.constant 0 : index
    %5 = vector.load %arg1[%c0_5, %c1, %c0_6] : memref<1x17x544xf32, #tpu.memory_space<vmem>>, vector<1x16x544xf32>
    %6 = vector.shape_cast %5 : vector<1x16x544xf32> to vector<16x544xf32>
    %c1_7 = arith.constant 1 : index
    %c0_8 = arith.constant 0 : index
    %c0_9 = arith.constant 0 : index
    %7 = vector.load %arg2[%c1_7, %c0_8, %c0_9] : memref<2x544x256xf32, #tpu.memory_space<vmem>>, vector<1x544x256xf32>
    %8 = vector.shape_cast %7 : vector<1x544x256xf32> to vector<544x256xf32>
    %cst_10 = arith.constant dense<0.000000e+00> : vector<16x256xf32>
    %9 = tpu.matmul %6, %8, %cst_10 {dimension_numbers = #tpu.dot_dimension_numbers<[1], [0], [0], [1], [0, 0, 1, 1], [], []>} : vector<16x544xf32>, vector<544x256xf32>, vector<16x256xf32> -> vector<16x256xf32>
    %10 = arith.addf %4, %9 : vector<16x256xf32>
    %c0_11 = arith.constant 0 : index
    %c0_12 = arith.constant 0 : index
    %11 = vector.load %arg3[%c0_11, %c0_12] : memref<1x256xf32, #tpu.memory_space<vmem>>, vector<1x256xf32>
    %12 = vector.broadcast %11 : vector<1x256xf32> to vector<16x256xf32>
    %13 = arith.addf %10, %12 : vector<16x256xf32>
    %cst_13 = arith.constant 0.000000e+00 : f32
    %14 = vector.broadcast %cst_13 : f32 to vector<16x256xf32>
    %15 = arith.cmpf oge, %13, %14 : vector<16x256xf32>
    %cst_14 = arith.constant 2.000000e-01 : f32
    %16 = vector.broadcast %cst_14 : f32 to vector<16x256xf32>
    %17 = arith.mulf %16, %13 : vector<16x256xf32>
    %18 = arith.select %15, %13, %17 : vector<16x256xi1>, vector<16x256xf32>
    %c0_15 = arith.constant 0 : index
    %c0_16 = arith.constant 0 : index
    %c0_17 = arith.constant 0 : index
    %19 = vector.load %arg4[%c0_15, %c0_16, %c0_17] : memref<1x16x256xf32, #tpu.memory_space<vmem>>, vector<1x16x256xf32>
    %20 = vector.shape_cast %19 : vector<1x16x256xf32> to vector<16x256xf32>
    %21 = vector.shape_cast %18 : vector<16x256xf32> to vector<1x16x256xf32>
    tpu.vector_store %arg4[%c0_15, %c0_16, %c0_17], %21 {strides = array<i32>} : memref<1x16x256xf32, #tpu.memory_space<vmem>>, vector<1x16x256xf32>,
    return
  }
  func.func @transform_0(%arg0: i32) -> (i32, i32, i32) {
    %c0_i32 = arith.constant 0 : i32
    %c0_i32_0 = arith.constant 0 : i32
    %c0_i32_1 = arith.constant 0 : i32
    return %arg0, %c0_i32, %c0_i32_0 : i32, i32, i32
  }
  func.func @transform_1(%arg0: i32) -> (i32, i32, i32) {
    %c0_i32 = arith.constant 0 : i32
    %c0_i32_0 = arith.constant 0 : i32
    %c0_i32_1 = arith.constant 0 : i32
    %c0_i32_2 = arith.constant 0 : i32
    return %c0_i32, %c0_i32_0, %c0_i32_1 : i32, i32, i32
  }
  func.func @transform_2(%arg0: i32) -> (i32, i32) {
    %c0_i32 = arith.constant 0 : i32
    %c0_i32_0 = arith.constant 0 : i32
    %c0_i32_1 = arith.constant 0 : i32
    return %c0_i32, %c0_i32_0 : i32, i32
  }
  func.func @transform_3(%arg0: i32) -> (i32, i32, i32) {
    %c0_i32 = arith.constant 0 : i32
    %c0_i32_0 = arith.constant 0 : i32
    %c0_i32_1 = arith.constant 0 : i32
    return %arg0, %c0_i32, %c0_i32_0 : i32, i32, i32
  }
}

module attributes {stable_mosaic.version = 11 : i64} {
  func.func @_conv_bn_act_kernel(%arg0: i32, %arg1: memref<2x9x576xf32, #tpu.memory_space<vmem>>, %arg2: memref<2x576x256xf32, #tpu.memory_space<vmem>>, %arg3: memref<256x32xf32, #tpu.memory_space<vmem>>, %arg4: memref<32x256xf32, #tpu.memory_space<vmem>>, %arg5: memref<1x32xf32, #tpu.memory_space<vmem>>, %arg6: memref<1x32xf32, #tpu.memory_space<vmem>>, %arg7: memref<2x8x256xf32, #tpu.memory_space<vmem>>) attributes {dimension_semantics = [#tpu.dimension_semantics<arbitrary>], iteration_bounds = array<i64: 1>, scalar_prefetch = 0 : i64, scratch_operands = 0 : i64, tpu.core_type = #tpu.core_type<tc>, window_params = [{pipeline_mode = #tpu.pipeline_mode<synchronous>, transform_indices = @transform_0, window_bounds = array<i64: 2, 9, 576>}, {pipeline_mode = #tpu.pipeline_mode<synchronous>, transform_indices = @transform_1, window_bounds = array<i64: 2, 576, 256>}, {pipeline_mode = #tpu.pipeline_mode<synchronous>, transform_indices = @transform_2, window_bounds = array<i64: 256, 32>}, {pipeline_mode = #tpu.pipeline_mode<synchronous>, transform_indices = @transform_3, window_bounds = array<i64: 32, 256>}, {pipeline_mode = #tpu.pipeline_mode<synchronous>, transform_indices = @transform_4, window_bounds = array<i64: 1, 32>}, {pipeline_mode = #tpu.pipeline_mode<synchronous>, transform_indices = @transform_5, window_bounds = array<i64: 1, 32>}, {pipeline_mode = #tpu.pipeline_mode<synchronous>, transform_indices = @transform_6, window_bounds = array<i64: 2, 8, 256>}]} {
    %c0 = arith.constant 0 : index
    %c0_0 = arith.constant 0 : index
    %c0_1 = arith.constant 0 : index
    %0 = vector.load %arg1[%c0, %c0_0, %c0_1] : memref<2x9x576xf32, #tpu.memory_space<vmem>>, vector<1x8x576xf32>
    %1 = vector.shape_cast %0 : vector<1x8x576xf32> to vector<8x576xf32>
    %c0_2 = arith.constant 0 : index
    %c0_3 = arith.constant 0 : index
    %c0_4 = arith.constant 0 : index
    %2 = vector.load %arg2[%c0_2, %c0_3, %c0_4] : memref<2x576x256xf32, #tpu.memory_space<vmem>>, vector<1x576x256xf32>
    %3 = vector.shape_cast %2 : vector<1x576x256xf32> to vector<576x256xf32>
    %cst = arith.constant dense<0.000000e+00> : vector<8x256xf32>
    %4 = tpu.matmul %1, %3, %cst {dimension_numbers = #tpu.dot_dimension_numbers<[1], [0], [0], [1], [0, 0, 1, 1], [], []>} : vector<8x576xf32>, vector<576x256xf32>, vector<8x256xf32> -> vector<8x256xf32>
    %c0_5 = arith.constant 0 : index
    %c1 = arith.constant 1 : index
    %c0_6 = arith.constant 0 : index
    %5 = vector.load %arg1[%c0_5, %c1, %c0_6] : memref<2x9x576xf32, #tpu.memory_space<vmem>>, vector<1x8x576xf32>
    %6 = vector.shape_cast %5 : vector<1x8x576xf32> to vector<8x576xf32>
    %c1_7 = arith.constant 1 : index
    %c0_8 = arith.constant 0 : index
    %c0_9 = arith.constant 0 : index
    %7 = vector.load %arg2[%c1_7, %c0_8, %c0_9] : memref<2x576x256xf32, #tpu.memory_space<vmem>>, vector<1x576x256xf32>
    %8 = vector.shape_cast %7 : vector<1x576x256xf32> to vector<576x256xf32>
    %cst_10 = arith.constant dense<0.000000e+00> : vector<8x256xf32>
    %9 = tpu.matmul %6, %8, %cst_10 {dimension_numbers = #tpu.dot_dimension_numbers<[1], [0], [0], [1], [0, 0, 1, 1], [], []>} : vector<8x576xf32>, vector<576x256xf32>, vector<8x256xf32> -> vector<8x256xf32>
    %10 = arith.addf %4, %9 : vector<8x256xf32>
    %cst_11 = arith.constant dense<0.000000e+00> : vector<256xf32>
    %11 = vector.multi_reduction <add>, %10, %cst_11 [0] : vector<8x256xf32> to vector<256xf32>
    %12 = vector.shape_cast %11 : vector<256xf32> to vector<1x256xf32>
    %13 = arith.mulf %10, %10 : vector<8x256xf32>
    %cst_12 = arith.constant dense<0.000000e+00> : vector<256xf32>
    %14 = vector.multi_reduction <add>, %13, %cst_12 [0] : vector<8x256xf32> to vector<256xf32>
    %15 = vector.shape_cast %14 : vector<256xf32> to vector<1x256xf32>
    %c1_13 = arith.constant 1 : index
    %c0_14 = arith.constant 0 : index
    %c0_15 = arith.constant 0 : index
    %16 = vector.load %arg1[%c1_13, %c0_14, %c0_15] : memref<2x9x576xf32, #tpu.memory_space<vmem>>, vector<1x8x576xf32>
    %17 = vector.shape_cast %16 : vector<1x8x576xf32> to vector<8x576xf32>
    %c0_16 = arith.constant 0 : index
    %c0_17 = arith.constant 0 : index
    %c0_18 = arith.constant 0 : index
    %18 = vector.load %arg2[%c0_16, %c0_17, %c0_18] : memref<2x576x256xf32, #tpu.memory_space<vmem>>, vector<1x576x256xf32>
    %19 = vector.shape_cast %18 : vector<1x576x256xf32> to vector<576x256xf32>
    %cst_19 = arith.constant dense<0.000000e+00> : vector<8x256xf32>
    %20 = tpu.matmul %17, %19, %cst_19 {dimension_numbers = #tpu.dot_dimension_numbers<[1], [0], [0], [1], [0, 0, 1, 1], [], []>} : vector<8x576xf32>, vector<576x256xf32>, vector<8x256xf32> -> vector<8x256xf32>
    %c1_20 = arith.constant 1 : index
    %c1_21 = arith.constant 1 : index
    %c0_22 = arith.constant 0 : index
    %21 = vector.load %arg1[%c1_20, %c1_21, %c0_22] : memref<2x9x576xf32, #tpu.memory_space<vmem>>, vector<1x8x576xf32>
    %22 = vector.shape_cast %21 : vector<1x8x576xf32> to vector<8x576xf32>
    %c1_23 = arith.constant 1 : index
    %c0_24 = arith.constant 0 : index
    %c0_25 = arith.constant 0 : index
    %23 = vector.load %arg2[%c1_23, %c0_24, %c0_25] : memref<2x576x256xf32, #tpu.memory_space<vmem>>, vector<1x576x256xf32>
    %24 = vector.shape_cast %23 : vector<1x576x256xf32> to vector<576x256xf32>
    %cst_26 = arith.constant dense<0.000000e+00> : vector<8x256xf32>
    %25 = tpu.matmul %22, %24, %cst_26 {dimension_numbers = #tpu.dot_dimension_numbers<[1], [0], [0], [1], [0, 0, 1, 1], [], []>} : vector<8x576xf32>, vector<576x256xf32>, vector<8x256xf32> -> vector<8x256xf32>
    %26 = arith.addf %20, %25 : vector<8x256xf32>
    %cst_27 = arith.constant dense<0.000000e+00> : vector<256xf32>
    %27 = vector.multi_reduction <add>, %26, %cst_27 [0] : vector<8x256xf32> to vector<256xf32>
    %28 = vector.shape_cast %27 : vector<256xf32> to vector<1x256xf32>
    %29 = arith.mulf %26, %26 : vector<8x256xf32>
    %cst_28 = arith.constant dense<0.000000e+00> : vector<256xf32>
    %30 = vector.multi_reduction <add>, %29, %cst_28 [0] : vector<8x256xf32> to vector<256xf32>
    %31 = vector.shape_cast %30 : vector<256xf32> to vector<1x256xf32>
    %32 = arith.addf %12, %28 : vector<1x256xf32>
    %33 = arith.addf %15, %31 : vector<1x256xf32>
    %c0_29 = arith.constant 0 : index
    %c0_30 = arith.constant 0 : index
    %34 = vector.load %arg3[%c0_29, %c0_30] : memref<256x32xf32, #tpu.memory_space<vmem>>, vector<256x32xf32>
    %cst_31 = arith.constant dense<0.000000e+00> : vector<1x32xf32>
    %35 = tpu.matmul %32, %34, %cst_31 {dimension_numbers = #tpu.dot_dimension_numbers<[1], [0], [0], [1], [0, 0, 1, 1], [], []>} : vector<1x256xf32>, vector<256x32xf32>, vector<1x32xf32> -> vector<1x32xf32>
    %cst_32 = arith.constant dense<0.000000e+00> : vector<1x32xf32>
    %36 = tpu.matmul %33, %34, %cst_32 {dimension_numbers = #tpu.dot_dimension_numbers<[1], [0], [0], [1], [0, 0, 1, 1], [], []>} : vector<1x256xf32>, vector<256x32xf32>, vector<1x32xf32> -> vector<1x32xf32>
    %cst_33 = arith.constant 1.280000e+02 : f32
    %37 = vector.broadcast %cst_33 : f32 to vector<1x32xf32>
    %38 = arith.divf %35, %37 : vector<1x32xf32>
    %cst_34 = arith.constant 1.280000e+02 : f32
    %39 = vector.broadcast %cst_34 : f32 to vector<1x32xf32>
    %40 = arith.divf %36, %39 : vector<1x32xf32>
    %41 = arith.mulf %38, %38 : vector<1x32xf32>
    %42 = arith.subf %40, %41 : vector<1x32xf32>
    %cst_35 = arith.constant 9.99999974E-6 : f32
    %43 = vector.broadcast %cst_35 : f32 to vector<1x32xf32>
    %44 = arith.addf %42, %43 : vector<1x32xf32>
    %45 = math.rsqrt %44 : vector<1x32xf32>
    %c0_36 = arith.constant 0 : index
    %c0_37 = arith.constant 0 : index
    %46 = vector.load %arg5[%c0_36, %c0_37] : memref<1x32xf32, #tpu.memory_space<vmem>>, vector<1x32xf32>
    %47 = arith.mulf %46, %45 : vector<1x32xf32>
    %c0_38 = arith.constant 0 : index
    %c0_39 = arith.constant 0 : index
    %48 = vector.load %arg6[%c0_38, %c0_39] : memref<1x32xf32, #tpu.memory_space<vmem>>, vector<1x32xf32>
    %49 = arith.mulf %38, %47 : vector<1x32xf32>
    %50 = arith.subf %48, %49 : vector<1x32xf32>
    %c0_40 = arith.constant 0 : index
    %c0_41 = arith.constant 0 : index
    %51 = vector.load %arg4[%c0_40, %c0_41] : memref<32x256xf32, #tpu.memory_space<vmem>>, vector<32x256xf32>
    %cst_42 = arith.constant dense<0.000000e+00> : vector<1x256xf32>
    %52 = tpu.matmul %47, %51, %cst_42 {dimension_numbers = #tpu.dot_dimension_numbers<[1], [0], [0], [1], [0, 0, 1, 1], [], []>} : vector<1x32xf32>, vector<32x256xf32>, vector<1x256xf32> -> vector<1x256xf32>
    %cst_43 = arith.constant dense<0.000000e+00> : vector<1x256xf32>
    %53 = tpu.matmul %50, %51, %cst_43 {dimension_numbers = #tpu.dot_dimension_numbers<[1], [0], [0], [1], [0, 0, 1, 1], [], []>} : vector<1x32xf32>, vector<32x256xf32>, vector<1x256xf32> -> vector<1x256xf32>
    %54 = vector.broadcast %52 : vector<1x256xf32> to vector<8x256xf32>
    %55 = arith.mulf %10, %54 : vector<8x256xf32>
    %56 = vector.broadcast %53 : vector<1x256xf32> to vector<8x256xf32>
    %57 = arith.addf %55, %56 : vector<8x256xf32>
    %cst_44 = arith.constant 0.000000e+00 : f32
    %58 = vector.broadcast %cst_44 : f32 to vector<8x256xf32>
    %59 = arith.cmpf oge, %57, %58 : vector<8x256xf32>
    %cst_45 = arith.constant 2.000000e-01 : f32
    %60 = vector.broadcast %cst_45 : f32 to vector<8x256xf32>
    %61 = arith.mulf %60, %57 : vector<8x256xf32>
    %62 = arith.select %59, %57, %61 : vector<8x256xi1>, vector<8x256xf32>
    %c0_46 = arith.constant 0 : index
    %c0_47 = arith.constant 0 : index
    %c0_48 = arith.constant 0 : index
    %63 = vector.load %arg7[%c0_46, %c0_47, %c0_48] : memref<2x8x256xf32, #tpu.memory_space<vmem>>, vector<1x8x256xf32>
    %64 = vector.shape_cast %63 : vector<1x8x256xf32> to vector<8x256xf32>
    %65 = vector.shape_cast %62 : vector<8x256xf32> to vector<1x8x256xf32>
    tpu.vector_store %arg7[%c0_46, %c0_47, %c0_48], %65 {strides = array<i32>} : memref<2x8x256xf32, #tpu.memory_space<vmem>>, vector<1x8x256xf32>,
    %66 = vector.broadcast %52 : vector<1x256xf32> to vector<8x256xf32>
    %67 = arith.mulf %26, %66 : vector<8x256xf32>
    %68 = vector.broadcast %53 : vector<1x256xf32> to vector<8x256xf32>
    %69 = arith.addf %67, %68 : vector<8x256xf32>
    %cst_49 = arith.constant 0.000000e+00 : f32
    %70 = vector.broadcast %cst_49 : f32 to vector<8x256xf32>
    %71 = arith.cmpf oge, %69, %70 : vector<8x256xf32>
    %cst_50 = arith.constant 2.000000e-01 : f32
    %72 = vector.broadcast %cst_50 : f32 to vector<8x256xf32>
    %73 = arith.mulf %72, %69 : vector<8x256xf32>
    %74 = arith.select %71, %69, %73 : vector<8x256xi1>, vector<8x256xf32>
    %c1_51 = arith.constant 1 : index
    %c0_52 = arith.constant 0 : index
    %c0_53 = arith.constant 0 : index
    %75 = vector.load %arg7[%c1_51, %c0_52, %c0_53] : memref<2x8x256xf32, #tpu.memory_space<vmem>>, vector<1x8x256xf32>
    %76 = vector.shape_cast %75 : vector<1x8x256xf32> to vector<8x256xf32>
    %77 = vector.shape_cast %74 : vector<8x256xf32> to vector<1x8x256xf32>
    tpu.vector_store %arg7[%c1_51, %c0_52, %c0_53], %77 {strides = array<i32>} : memref<2x8x256xf32, #tpu.memory_space<vmem>>, vector<1x8x256xf32>,
    return
  }
  func.func @transform_0(%arg0: i32) -> (i32, i32, i32) {
    %c0_i32 = arith.constant 0 : i32
    %c0_i32_0 = arith.constant 0 : i32
    %c0_i32_1 = arith.constant 0 : i32
    %c0_i32_2 = arith.constant 0 : i32
    return %c0_i32, %c0_i32_0, %c0_i32_1 : i32, i32, i32
  }
  func.func @transform_1(%arg0: i32) -> (i32, i32, i32) {
    %c0_i32 = arith.constant 0 : i32
    %c0_i32_0 = arith.constant 0 : i32
    %c0_i32_1 = arith.constant 0 : i32
    %c0_i32_2 = arith.constant 0 : i32
    return %c0_i32, %c0_i32_0, %c0_i32_1 : i32, i32, i32
  }
  func.func @transform_2(%arg0: i32) -> (i32, i32) {
    %c0_i32 = arith.constant 0 : i32
    %c0_i32_0 = arith.constant 0 : i32
    %c0_i32_1 = arith.constant 0 : i32
    return %c0_i32, %c0_i32_0 : i32, i32
  }
  func.func @transform_3(%arg0: i32) -> (i32, i32) {
    %c0_i32 = arith.constant 0 : i32
    %c0_i32_0 = arith.constant 0 : i32
    %c0_i32_1 = arith.constant 0 : i32
    return %c0_i32, %c0_i32_0 : i32, i32
  }
  func.func @transform_4(%arg0: i32) -> (i32, i32) {
    %c0_i32 = arith.constant 0 : i32
    %c0_i32_0 = arith.constant 0 : i32
    %c0_i32_1 = arith.constant 0 : i32
    return %c0_i32, %c0_i32_0 : i32, i32
  }
  func.func @transform_5(%arg0: i32) -> (i32, i32) {
    %c0_i32 = arith.constant 0 : i32
    %c0_i32_0 = arith.constant 0 : i32
    %c0_i32_1 = arith.constant 0 : i32
    return %c0_i32, %c0_i32_0 : i32, i32
  }
  func.func @transform_6(%arg0: i32) -> (i32, i32, i32) {
    %c0_i32 = arith.constant 0 : i32
    %c0_i32_0 = arith.constant 0 : i32
    %c0_i32_1 = arith.constant 0 : i32
    %c0_i32_2 = arith.constant 0 : i32
    return %c0_i32, %c0_i32_0, %c0_i32_1 : i32, i32, i32
  }
}

module attributes {stable_mosaic.version = 11 : i64} {
  func.func @_conv_bn_act_kernel(%arg0: i32, %arg1: memref<2x5x640xf32, #tpu.memory_space<vmem>>, %arg2: memref<2x640x256xf32, #tpu.memory_space<vmem>>, %arg3: memref<256x64xf32, #tpu.memory_space<vmem>>, %arg4: memref<64x256xf32, #tpu.memory_space<vmem>>, %arg5: memref<1x64xf32, #tpu.memory_space<vmem>>, %arg6: memref<1x64xf32, #tpu.memory_space<vmem>>, %arg7: memref<2x4x256xf32, #tpu.memory_space<vmem>>) attributes {dimension_semantics = [#tpu.dimension_semantics<arbitrary>], iteration_bounds = array<i64: 1>, scalar_prefetch = 0 : i64, scratch_operands = 0 : i64, tpu.core_type = #tpu.core_type<tc>, window_params = [{pipeline_mode = #tpu.pipeline_mode<synchronous>, transform_indices = @transform_0, window_bounds = array<i64: 2, 5, 640>}, {pipeline_mode = #tpu.pipeline_mode<synchronous>, transform_indices = @transform_1, window_bounds = array<i64: 2, 640, 256>}, {pipeline_mode = #tpu.pipeline_mode<synchronous>, transform_indices = @transform_2, window_bounds = array<i64: 256, 64>}, {pipeline_mode = #tpu.pipeline_mode<synchronous>, transform_indices = @transform_3, window_bounds = array<i64: 64, 256>}, {pipeline_mode = #tpu.pipeline_mode<synchronous>, transform_indices = @transform_4, window_bounds = array<i64: 1, 64>}, {pipeline_mode = #tpu.pipeline_mode<synchronous>, transform_indices = @transform_5, window_bounds = array<i64: 1, 64>}, {pipeline_mode = #tpu.pipeline_mode<synchronous>, transform_indices = @transform_6, window_bounds = array<i64: 2, 4, 256>}]} {
    %c0 = arith.constant 0 : index
    %c0_0 = arith.constant 0 : index
    %c0_1 = arith.constant 0 : index
    %0 = vector.load %arg1[%c0, %c0_0, %c0_1] : memref<2x5x640xf32, #tpu.memory_space<vmem>>, vector<1x4x640xf32>
    %1 = vector.shape_cast %0 : vector<1x4x640xf32> to vector<4x640xf32>
    %c0_2 = arith.constant 0 : index
    %c0_3 = arith.constant 0 : index
    %c0_4 = arith.constant 0 : index
    %2 = vector.load %arg2[%c0_2, %c0_3, %c0_4] : memref<2x640x256xf32, #tpu.memory_space<vmem>>, vector<1x640x256xf32>
    %3 = vector.shape_cast %2 : vector<1x640x256xf32> to vector<640x256xf32>
    %cst = arith.constant dense<0.000000e+00> : vector<4x256xf32>
    %4 = tpu.matmul %1, %3, %cst {dimension_numbers = #tpu.dot_dimension_numbers<[1], [0], [0], [1], [0, 0, 1, 1], [], []>} : vector<4x640xf32>, vector<640x256xf32>, vector<4x256xf32> -> vector<4x256xf32>
    %c0_5 = arith.constant 0 : index
    %c1 = arith.constant 1 : index
    %c0_6 = arith.constant 0 : index
    %5 = vector.load %arg1[%c0_5, %c1, %c0_6] : memref<2x5x640xf32, #tpu.memory_space<vmem>>, vector<1x4x640xf32>
    %6 = vector.shape_cast %5 : vector<1x4x640xf32> to vector<4x640xf32>
    %c1_7 = arith.constant 1 : index
    %c0_8 = arith.constant 0 : index
    %c0_9 = arith.constant 0 : index
    %7 = vector.load %arg2[%c1_7, %c0_8, %c0_9] : memref<2x640x256xf32, #tpu.memory_space<vmem>>, vector<1x640x256xf32>
    %8 = vector.shape_cast %7 : vector<1x640x256xf32> to vector<640x256xf32>
    %cst_10 = arith.constant dense<0.000000e+00> : vector<4x256xf32>
    %9 = tpu.matmul %6, %8, %cst_10 {dimension_numbers = #tpu.dot_dimension_numbers<[1], [0], [0], [1], [0, 0, 1, 1], [], []>} : vector<4x640xf32>, vector<640x256xf32>, vector<4x256xf32> -> vector<4x256xf32>
    %10 = arith.addf %4, %9 : vector<4x256xf32>
    %cst_11 = arith.constant dense<0.000000e+00> : vector<256xf32>
    %11 = vector.multi_reduction <add>, %10, %cst_11 [0] : vector<4x256xf32> to vector<256xf32>
    %12 = vector.shape_cast %11 : vector<256xf32> to vector<1x256xf32>
    %13 = arith.mulf %10, %10 : vector<4x256xf32>
    %cst_12 = arith.constant dense<0.000000e+00> : vector<256xf32>
    %14 = vector.multi_reduction <add>, %13, %cst_12 [0] : vector<4x256xf32> to vector<256xf32>
    %15 = vector.shape_cast %14 : vector<256xf32> to vector<1x256xf32>
    %c1_13 = arith.constant 1 : index
    %c0_14 = arith.constant 0 : index
    %c0_15 = arith.constant 0 : index
    %16 = vector.load %arg1[%c1_13, %c0_14, %c0_15] : memref<2x5x640xf32, #tpu.memory_space<vmem>>, vector<1x4x640xf32>
    %17 = vector.shape_cast %16 : vector<1x4x640xf32> to vector<4x640xf32>
    %c0_16 = arith.constant 0 : index
    %c0_17 = arith.constant 0 : index
    %c0_18 = arith.constant 0 : index
    %18 = vector.load %arg2[%c0_16, %c0_17, %c0_18] : memref<2x640x256xf32, #tpu.memory_space<vmem>>, vector<1x640x256xf32>
    %19 = vector.shape_cast %18 : vector<1x640x256xf32> to vector<640x256xf32>
    %cst_19 = arith.constant dense<0.000000e+00> : vector<4x256xf32>
    %20 = tpu.matmul %17, %19, %cst_19 {dimension_numbers = #tpu.dot_dimension_numbers<[1], [0], [0], [1], [0, 0, 1, 1], [], []>} : vector<4x640xf32>, vector<640x256xf32>, vector<4x256xf32> -> vector<4x256xf32>
    %c1_20 = arith.constant 1 : index
    %c1_21 = arith.constant 1 : index
    %c0_22 = arith.constant 0 : index
    %21 = vector.load %arg1[%c1_20, %c1_21, %c0_22] : memref<2x5x640xf32, #tpu.memory_space<vmem>>, vector<1x4x640xf32>
    %22 = vector.shape_cast %21 : vector<1x4x640xf32> to vector<4x640xf32>
    %c1_23 = arith.constant 1 : index
    %c0_24 = arith.constant 0 : index
    %c0_25 = arith.constant 0 : index
    %23 = vector.load %arg2[%c1_23, %c0_24, %c0_25] : memref<2x640x256xf32, #tpu.memory_space<vmem>>, vector<1x640x256xf32>
    %24 = vector.shape_cast %23 : vector<1x640x256xf32> to vector<640x256xf32>
    %cst_26 = arith.constant dense<0.000000e+00> : vector<4x256xf32>
    %25 = tpu.matmul %22, %24, %cst_26 {dimension_numbers = #tpu.dot_dimension_numbers<[1], [0], [0], [1], [0, 0, 1, 1], [], []>} : vector<4x640xf32>, vector<640x256xf32>, vector<4x256xf32> -> vector<4x256xf32>
    %26 = arith.addf %20, %25 : vector<4x256xf32>
    %cst_27 = arith.constant dense<0.000000e+00> : vector<256xf32>
    %27 = vector.multi_reduction <add>, %26, %cst_27 [0] : vector<4x256xf32> to vector<256xf32>
    %28 = vector.shape_cast %27 : vector<256xf32> to vector<1x256xf32>
    %29 = arith.mulf %26, %26 : vector<4x256xf32>
    %cst_28 = arith.constant dense<0.000000e+00> : vector<256xf32>
    %30 = vector.multi_reduction <add>, %29, %cst_28 [0] : vector<4x256xf32> to vector<256xf32>
    %31 = vector.shape_cast %30 : vector<256xf32> to vector<1x256xf32>
    %32 = arith.addf %12, %28 : vector<1x256xf32>
    %33 = arith.addf %15, %31 : vector<1x256xf32>
    %c0_29 = arith.constant 0 : index
    %c0_30 = arith.constant 0 : index
    %34 = vector.load %arg3[%c0_29, %c0_30] : memref<256x64xf32, #tpu.memory_space<vmem>>, vector<256x64xf32>
    %cst_31 = arith.constant dense<0.000000e+00> : vector<1x64xf32>
    %35 = tpu.matmul %32, %34, %cst_31 {dimension_numbers = #tpu.dot_dimension_numbers<[1], [0], [0], [1], [0, 0, 1, 1], [], []>} : vector<1x256xf32>, vector<256x64xf32>, vector<1x64xf32> -> vector<1x64xf32>
    %cst_32 = arith.constant dense<0.000000e+00> : vector<1x64xf32>
    %36 = tpu.matmul %33, %34, %cst_32 {dimension_numbers = #tpu.dot_dimension_numbers<[1], [0], [0], [1], [0, 0, 1, 1], [], []>} : vector<1x256xf32>, vector<256x64xf32>, vector<1x64xf32> -> vector<1x64xf32>
    %cst_33 = arith.constant 3.200000e+01 : f32
    %37 = vector.broadcast %cst_33 : f32 to vector<1x64xf32>
    %38 = arith.divf %35, %37 : vector<1x64xf32>
    %cst_34 = arith.constant 3.200000e+01 : f32
    %39 = vector.broadcast %cst_34 : f32 to vector<1x64xf32>
    %40 = arith.divf %36, %39 : vector<1x64xf32>
    %41 = arith.mulf %38, %38 : vector<1x64xf32>
    %42 = arith.subf %40, %41 : vector<1x64xf32>
    %cst_35 = arith.constant 9.99999974E-6 : f32
    %43 = vector.broadcast %cst_35 : f32 to vector<1x64xf32>
    %44 = arith.addf %42, %43 : vector<1x64xf32>
    %45 = math.rsqrt %44 : vector<1x64xf32>
    %c0_36 = arith.constant 0 : index
    %c0_37 = arith.constant 0 : index
    %46 = vector.load %arg5[%c0_36, %c0_37] : memref<1x64xf32, #tpu.memory_space<vmem>>, vector<1x64xf32>
    %47 = arith.mulf %46, %45 : vector<1x64xf32>
    %c0_38 = arith.constant 0 : index
    %c0_39 = arith.constant 0 : index
    %48 = vector.load %arg6[%c0_38, %c0_39] : memref<1x64xf32, #tpu.memory_space<vmem>>, vector<1x64xf32>
    %49 = arith.mulf %38, %47 : vector<1x64xf32>
    %50 = arith.subf %48, %49 : vector<1x64xf32>
    %c0_40 = arith.constant 0 : index
    %c0_41 = arith.constant 0 : index
    %51 = vector.load %arg4[%c0_40, %c0_41] : memref<64x256xf32, #tpu.memory_space<vmem>>, vector<64x256xf32>
    %cst_42 = arith.constant dense<0.000000e+00> : vector<1x256xf32>
    %52 = tpu.matmul %47, %51, %cst_42 {dimension_numbers = #tpu.dot_dimension_numbers<[1], [0], [0], [1], [0, 0, 1, 1], [], []>} : vector<1x64xf32>, vector<64x256xf32>, vector<1x256xf32> -> vector<1x256xf32>
    %cst_43 = arith.constant dense<0.000000e+00> : vector<1x256xf32>
    %53 = tpu.matmul %50, %51, %cst_43 {dimension_numbers = #tpu.dot_dimension_numbers<[1], [0], [0], [1], [0, 0, 1, 1], [], []>} : vector<1x64xf32>, vector<64x256xf32>, vector<1x256xf32> -> vector<1x256xf32>
    %54 = vector.broadcast %52 : vector<1x256xf32> to vector<4x256xf32>
    %55 = arith.mulf %10, %54 : vector<4x256xf32>
    %56 = vector.broadcast %53 : vector<1x256xf32> to vector<4x256xf32>
    %57 = arith.addf %55, %56 : vector<4x256xf32>
    %cst_44 = arith.constant 0.000000e+00 : f32
    %58 = vector.broadcast %cst_44 : f32 to vector<4x256xf32>
    %59 = arith.cmpf oge, %57, %58 : vector<4x256xf32>
    %cst_45 = arith.constant 2.000000e-01 : f32
    %60 = vector.broadcast %cst_45 : f32 to vector<4x256xf32>
    %61 = arith.mulf %60, %57 : vector<4x256xf32>
    %62 = arith.select %59, %57, %61 : vector<4x256xi1>, vector<4x256xf32>
    %c0_46 = arith.constant 0 : index
    %c0_47 = arith.constant 0 : index
    %c0_48 = arith.constant 0 : index
    %63 = vector.load %arg7[%c0_46, %c0_47, %c0_48] : memref<2x4x256xf32, #tpu.memory_space<vmem>>, vector<1x4x256xf32>
    %64 = vector.shape_cast %63 : vector<1x4x256xf32> to vector<4x256xf32>
    %65 = vector.shape_cast %62 : vector<4x256xf32> to vector<1x4x256xf32>
    tpu.vector_store %arg7[%c0_46, %c0_47, %c0_48], %65 {strides = array<i32>} : memref<2x4x256xf32, #tpu.memory_space<vmem>>, vector<1x4x256xf32>,
    %66 = vector.broadcast %52 : vector<1x256xf32> to vector<4x256xf32>
    %67 = arith.mulf %26, %66 : vector<4x256xf32>
    %68 = vector.broadcast %53 : vector<1x256xf32> to vector<4x256xf32>
    %69 = arith.addf %67, %68 : vector<4x256xf32>
    %cst_49 = arith.constant 0.000000e+00 : f32
    %70 = vector.broadcast %cst_49 : f32 to vector<4x256xf32>
    %71 = arith.cmpf oge, %69, %70 : vector<4x256xf32>
    %cst_50 = arith.constant 2.000000e-01 : f32
    %72 = vector.broadcast %cst_50 : f32 to vector<4x256xf32>
    %73 = arith.mulf %72, %69 : vector<4x256xf32>
    %74 = arith.select %71, %69, %73 : vector<4x256xi1>, vector<4x256xf32>
    %c1_51 = arith.constant 1 : index
    %c0_52 = arith.constant 0 : index
    %c0_53 = arith.constant 0 : index
    %75 = vector.load %arg7[%c1_51, %c0_52, %c0_53] : memref<2x4x256xf32, #tpu.memory_space<vmem>>, vector<1x4x256xf32>
    %76 = vector.shape_cast %75 : vector<1x4x256xf32> to vector<4x256xf32>
    %77 = vector.shape_cast %74 : vector<4x256xf32> to vector<1x4x256xf32>
    tpu.vector_store %arg7[%c1_51, %c0_52, %c0_53], %77 {strides = array<i32>} : memref<2x4x256xf32, #tpu.memory_space<vmem>>, vector<1x4x256xf32>,
    return
  }
  func.func @transform_0(%arg0: i32) -> (i32, i32, i32) {
    %c0_i32 = arith.constant 0 : i32
    %c0_i32_0 = arith.constant 0 : i32
    %c0_i32_1 = arith.constant 0 : i32
    %c0_i32_2 = arith.constant 0 : i32
    return %c0_i32, %c0_i32_0, %c0_i32_1 : i32, i32, i32
  }
  func.func @transform_1(%arg0: i32) -> (i32, i32, i32) {
    %c0_i32 = arith.constant 0 : i32
    %c0_i32_0 = arith.constant 0 : i32
    %c0_i32_1 = arith.constant 0 : i32
    %c0_i32_2 = arith.constant 0 : i32
    return %c0_i32, %c0_i32_0, %c0_i32_1 : i32, i32, i32
  }
  func.func @transform_2(%arg0: i32) -> (i32, i32) {
    %c0_i32 = arith.constant 0 : i32
    %c0_i32_0 = arith.constant 0 : i32
    %c0_i32_1 = arith.constant 0 : i32
    return %c0_i32, %c0_i32_0 : i32, i32
  }
  func.func @transform_3(%arg0: i32) -> (i32, i32) {
    %c0_i32 = arith.constant 0 : i32
    %c0_i32_0 = arith.constant 0 : i32
    %c0_i32_1 = arith.constant 0 : i32
    return %c0_i32, %c0_i32_0 : i32, i32
  }
  func.func @transform_4(%arg0: i32) -> (i32, i32) {
    %c0_i32 = arith.constant 0 : i32
    %c0_i32_0 = arith.constant 0 : i32
    %c0_i32_1 = arith.constant 0 : i32
    return %c0_i32, %c0_i32_0 : i32, i32
  }
  func.func @transform_5(%arg0: i32) -> (i32, i32) {
    %c0_i32 = arith.constant 0 : i32
    %c0_i32_0 = arith.constant 0 : i32
    %c0_i32_1 = arith.constant 0 : i32
    return %c0_i32, %c0_i32_0 : i32, i32
  }
  func.func @transform_6(%arg0: i32) -> (i32, i32, i32) {
    %c0_i32 = arith.constant 0 : i32
    %c0_i32_0 = arith.constant 0 : i32
    %c0_i32_1 = arith.constant 0 : i32
    %c0_i32_2 = arith.constant 0 : i32
    return %c0_i32, %c0_i32_0, %c0_i32_1 : i32, i32, i32
  }
}

module attributes {stable_mosaic.version = 11 : i64} {
  func.func @_conv_bias_act_kernel(%arg0: i32, %arg1: memref<1x5x640xf32, #tpu.memory_space<vmem>>, %arg2: memref<4x640x2xf32, #tpu.memory_space<vmem>>, %arg3: memref<1x2xf32, #tpu.memory_space<vmem>>, %arg4: memref<1x2x2xf32, #tpu.memory_space<vmem>>) attributes {dimension_semantics = [#tpu.dimension_semantics<parallel>], iteration_bounds = array<i64: 2>, scalar_prefetch = 0 : i64, scratch_operands = 0 : i64, tpu.core_type = #tpu.core_type<tc>, window_params = [{transform_indices = @transform_0, window_bounds = array<i64: 1, 5, 640>}, {pipeline_mode = #tpu.pipeline_mode<synchronous>, transform_indices = @transform_1, window_bounds = array<i64: 4, 640, 2>}, {pipeline_mode = #tpu.pipeline_mode<synchronous>, transform_indices = @transform_2, window_bounds = array<i64: 1, 2>}, {transform_indices = @transform_3, window_bounds = array<i64: 1, 2, 2>}]} {
    %c0 = arith.constant 0 : index
    %c0_0 = arith.constant 0 : index
    %c0_1 = arith.constant 0 : index
    %0 = vector.load %arg1[%c0, %c0_0, %c0_1] : memref<1x5x640xf32, #tpu.memory_space<vmem>>, vector<1x2x640xf32>
    %1 = vector.shape_cast %0 : vector<1x2x640xf32> to vector<2x640xf32>
    %c0_2 = arith.constant 0 : index
    %c0_3 = arith.constant 0 : index
    %c0_4 = arith.constant 0 : index
    %2 = vector.load %arg2[%c0_2, %c0_3, %c0_4] : memref<4x640x2xf32, #tpu.memory_space<vmem>>, vector<1x640x2xf32>
    %3 = vector.shape_cast %2 : vector<1x640x2xf32> to vector<640x2xf32>
    %cst = arith.constant dense<0.000000e+00> : vector<2x2xf32>
    %4 = tpu.matmul %1, %3, %cst {dimension_numbers = #tpu.dot_dimension_numbers<[1], [0], [0], [1], [0, 0, 1, 1], [], []>} : vector<2x640xf32>, vector<640x2xf32>, vector<2x2xf32> -> vector<2x2xf32>
    %c0_5 = arith.constant 0 : index
    %c1 = arith.constant 1 : index
    %c0_6 = arith.constant 0 : index
    %5 = vector.load %arg1[%c0_5, %c1, %c0_6] : memref<1x5x640xf32, #tpu.memory_space<vmem>>, vector<1x2x640xf32>
    %6 = vector.shape_cast %5 : vector<1x2x640xf32> to vector<2x640xf32>
    %c1_7 = arith.constant 1 : index
    %c0_8 = arith.constant 0 : index
    %c0_9 = arith.constant 0 : index
    %7 = vector.load %arg2[%c1_7, %c0_8, %c0_9] : memref<4x640x2xf32, #tpu.memory_space<vmem>>, vector<1x640x2xf32>
    %8 = vector.shape_cast %7 : vector<1x640x2xf32> to vector<640x2xf32>
    %cst_10 = arith.constant dense<0.000000e+00> : vector<2x2xf32>
    %9 = tpu.matmul %6, %8, %cst_10 {dimension_numbers = #tpu.dot_dimension_numbers<[1], [0], [0], [1], [0, 0, 1, 1], [], []>} : vector<2x640xf32>, vector<640x2xf32>, vector<2x2xf32> -> vector<2x2xf32>
    %10 = arith.addf %4, %9 : vector<2x2xf32>
    %c0_11 = arith.constant 0 : index
    %c2 = arith.constant 2 : index
    %c0_12 = arith.constant 0 : index
    %11 = vector.load %arg1[%c0_11, %c2, %c0_12] : memref<1x5x640xf32, #tpu.memory_space<vmem>>, vector<1x2x640xf32>
    %12 = vector.shape_cast %11 : vector<1x2x640xf32> to vector<2x640xf32>
    %c2_13 = arith.constant 2 : index
    %c0_14 = arith.constant 0 : index
    %c0_15 = arith.constant 0 : index
    %13 = vector.load %arg2[%c2_13, %c0_14, %c0_15] : memref<4x640x2xf32, #tpu.memory_space<vmem>>, vector<1x640x2xf32>
    %14 = vector.shape_cast %13 : vector<1x640x2xf32> to vector<640x2xf32>
    %cst_16 = arith.constant dense<0.000000e+00> : vector<2x2xf32>
    %15 = tpu.matmul %12, %14, %cst_16 {dimension_numbers = #tpu.dot_dimension_numbers<[1], [0], [0], [1], [0, 0, 1, 1], [], []>} : vector<2x640xf32>, vector<640x2xf32>, vector<2x2xf32> -> vector<2x2xf32>
    %16 = arith.addf %10, %15 : vector<2x2xf32>
    %c0_17 = arith.constant 0 : index
    %c3 = arith.constant 3 : index
    %c0_18 = arith.constant 0 : index
    %17 = vector.load %arg1[%c0_17, %c3, %c0_18] : memref<1x5x640xf32, #tpu.memory_space<vmem>>, vector<1x2x640xf32>
    %18 = vector.shape_cast %17 : vector<1x2x640xf32> to vector<2x640xf32>
    %c3_19 = arith.constant 3 : index
    %c0_20 = arith.constant 0 : index
    %c0_21 = arith.constant 0 : index
    %19 = vector.load %arg2[%c3_19, %c0_20, %c0_21] : memref<4x640x2xf32, #tpu.memory_space<vmem>>, vector<1x640x2xf32>
    %20 = vector.shape_cast %19 : vector<1x640x2xf32> to vector<640x2xf32>
    %cst_22 = arith.constant dense<0.000000e+00> : vector<2x2xf32>
    %21 = tpu.matmul %18, %20, %cst_22 {dimension_numbers = #tpu.dot_dimension_numbers<[1], [0], [0], [1], [0, 0, 1, 1], [], []>} : vector<2x640xf32>, vector<640x2xf32>, vector<2x2xf32> -> vector<2x2xf32>
    %22 = arith.addf %16, %21 : vector<2x2xf32>
    %c0_23 = arith.constant 0 : index
    %c0_24 = arith.constant 0 : index
    %23 = vector.load %arg3[%c0_23, %c0_24] : memref<1x2xf32, #tpu.memory_space<vmem>>, vector<1x2xf32>
    %24 = vector.broadcast %23 : vector<1x2xf32> to vector<2x2xf32>
    %25 = arith.addf %22, %24 : vector<2x2xf32>
    %c0_25 = arith.constant 0 : index
    %c0_26 = arith.constant 0 : index
    %c0_27 = arith.constant 0 : index
    %26 = vector.load %arg4[%c0_25, %c0_26, %c0_27] : memref<1x2x2xf32, #tpu.memory_space<vmem>>, vector<1x2x2xf32>
    %27 = vector.shape_cast %26 : vector<1x2x2xf32> to vector<2x2xf32>
    %28 = vector.shape_cast %25 : vector<2x2xf32> to vector<1x2x2xf32>
    tpu.vector_store %arg4[%c0_25, %c0_26, %c0_27], %28 {strides = array<i32>} : memref<1x2x2xf32, #tpu.memory_space<vmem>>, vector<1x2x2xf32>,
    return
  }
  func.func @transform_0(%arg0: i32) -> (i32, i32, i32) {
    %c0_i32 = arith.constant 0 : i32
    %c0_i32_0 = arith.constant 0 : i32
    %c0_i32_1 = arith.constant 0 : i32
    return %arg0, %c0_i32, %c0_i32_0 : i32, i32, i32
  }
  func.func @transform_1(%arg0: i32) -> (i32, i32, i32) {
    %c0_i32 = arith.constant 0 : i32
    %c0_i32_0 = arith.constant 0 : i32
    %c0_i32_1 = arith.constant 0 : i32
    %c0_i32_2 = arith.constant 0 : i32
    return %c0_i32, %c0_i32_0, %c0_i32_1 : i32, i32, i32
  }
  func.func @transform_2(%arg0: i32) -> (i32, i32) {
    %c0_i32 = arith.constant 0 : i32
    %c0_i32_0 = arith.constant 0 : i32
    %c0_i32_1 = arith.constant 0 : i32
    return %c0_i32, %c0_i32_0 : i32, i32
  }
  func.func @transform_3(%arg0: i32) -> (i32, i32, i32) {
    %c0_i32 = arith.constant 0 : i32
    %c0_i32_0 = arith.constant 0 : i32
    %c0_i32_1 = arith.constant 0 : i32
    return %arg0, %c0_i32, %c0_i32_0 : i32, i32, i32
  }
}

module attributes {stable_mosaic.version = 11 : i64} {
  func.func @_conv_bn_act_kernel(%arg0: i32, %arg1: memref<2x6x384xf32, #tpu.memory_space<vmem>>, %arg2: memref<4x384x384xf32, #tpu.memory_space<vmem>>, %arg3: memref<384x128xf32, #tpu.memory_space<vmem>>, %arg4: memref<128x384xf32, #tpu.memory_space<vmem>>, %arg5: memref<1x128xf32, #tpu.memory_space<vmem>>, %arg6: memref<1x128xf32, #tpu.memory_space<vmem>>, %arg7: memref<2x3x384xf32, #tpu.memory_space<vmem>>) attributes {dimension_semantics = [#tpu.dimension_semantics<arbitrary>], iteration_bounds = array<i64: 1>, scalar_prefetch = 0 : i64, scratch_operands = 0 : i64, tpu.core_type = #tpu.core_type<tc>, window_params = [{pipeline_mode = #tpu.pipeline_mode<synchronous>, transform_indices = @transform_0, window_bounds = array<i64: 2, 6, 384>}, {pipeline_mode = #tpu.pipeline_mode<synchronous>, transform_indices = @transform_1, window_bounds = array<i64: 4, 384, 384>}, {pipeline_mode = #tpu.pipeline_mode<synchronous>, transform_indices = @transform_2, window_bounds = array<i64: 384, 128>}, {pipeline_mode = #tpu.pipeline_mode<synchronous>, transform_indices = @transform_3, window_bounds = array<i64: 128, 384>}, {pipeline_mode = #tpu.pipeline_mode<synchronous>, transform_indices = @transform_4, window_bounds = array<i64: 1, 128>}, {pipeline_mode = #tpu.pipeline_mode<synchronous>, transform_indices = @transform_5, window_bounds = array<i64: 1, 128>}, {pipeline_mode = #tpu.pipeline_mode<synchronous>, transform_indices = @transform_6, window_bounds = array<i64: 2, 3, 384>}]} {
    %c0 = arith.constant 0 : index
    %c0_0 = arith.constant 0 : index
    %c0_1 = arith.constant 0 : index
    %0 = vector.load %arg1[%c0, %c0_0, %c0_1] : memref<2x6x384xf32, #tpu.memory_space<vmem>>, vector<1x3x384xf32>
    %1 = vector.shape_cast %0 : vector<1x3x384xf32> to vector<3x384xf32>
    %c0_2 = arith.constant 0 : index
    %c0_3 = arith.constant 0 : index
    %c0_4 = arith.constant 0 : index
    %2 = vector.load %arg2[%c0_2, %c0_3, %c0_4] : memref<4x384x384xf32, #tpu.memory_space<vmem>>, vector<1x384x384xf32>
    %3 = vector.shape_cast %2 : vector<1x384x384xf32> to vector<384x384xf32>
    %cst = arith.constant dense<0.000000e+00> : vector<3x384xf32>
    %4 = tpu.matmul %1, %3, %cst {dimension_numbers = #tpu.dot_dimension_numbers<[1], [0], [0], [1], [0, 0, 1, 1], [], []>} : vector<3x384xf32>, vector<384x384xf32>, vector<3x384xf32> -> vector<3x384xf32>
    %c0_5 = arith.constant 0 : index
    %c1 = arith.constant 1 : index
    %c0_6 = arith.constant 0 : index
    %5 = vector.load %arg1[%c0_5, %c1, %c0_6] : memref<2x6x384xf32, #tpu.memory_space<vmem>>, vector<1x3x384xf32>
    %6 = vector.shape_cast %5 : vector<1x3x384xf32> to vector<3x384xf32>
    %c1_7 = arith.constant 1 : index
    %c0_8 = arith.constant 0 : index
    %c0_9 = arith.constant 0 : index
    %7 = vector.load %arg2[%c1_7, %c0_8, %c0_9] : memref<4x384x384xf32, #tpu.memory_space<vmem>>, vector<1x384x384xf32>
    %8 = vector.shape_cast %7 : vector<1x384x384xf32> to vector<384x384xf32>
    %cst_10 = arith.constant dense<0.000000e+00> : vector<3x384xf32>
    %9 = tpu.matmul %6, %8, %cst_10 {dimension_numbers = #tpu.dot_dimension_numbers<[1], [0], [0], [1], [0, 0, 1, 1], [], []>} : vector<3x384xf32>, vector<384x384xf32>, vector<3x384xf32> -> vector<3x384xf32>
    %10 = arith.addf %4, %9 : vector<3x384xf32>
    %c0_11 = arith.constant 0 : index
    %c2 = arith.constant 2 : index
    %c0_12 = arith.constant 0 : index
    %11 = vector.load %arg1[%c0_11, %c2, %c0_12] : memref<2x6x384xf32, #tpu.memory_space<vmem>>, vector<1x3x384xf32>
    %12 = vector.shape_cast %11 : vector<1x3x384xf32> to vector<3x384xf32>
    %c2_13 = arith.constant 2 : index
    %c0_14 = arith.constant 0 : index
    %c0_15 = arith.constant 0 : index
    %13 = vector.load %arg2[%c2_13, %c0_14, %c0_15] : memref<4x384x384xf32, #tpu.memory_space<vmem>>, vector<1x384x384xf32>
    %14 = vector.shape_cast %13 : vector<1x384x384xf32> to vector<384x384xf32>
    %cst_16 = arith.constant dense<0.000000e+00> : vector<3x384xf32>
    %15 = tpu.matmul %12, %14, %cst_16 {dimension_numbers = #tpu.dot_dimension_numbers<[1], [0], [0], [1], [0, 0, 1, 1], [], []>} : vector<3x384xf32>, vector<384x384xf32>, vector<3x384xf32> -> vector<3x384xf32>
    %16 = arith.addf %10, %15 : vector<3x384xf32>
    %c0_17 = arith.constant 0 : index
    %c3 = arith.constant 3 : index
    %c0_18 = arith.constant 0 : index
    %17 = vector.load %arg1[%c0_17, %c3, %c0_18] : memref<2x6x384xf32, #tpu.memory_space<vmem>>, vector<1x3x384xf32>
    %18 = vector.shape_cast %17 : vector<1x3x384xf32> to vector<3x384xf32>
    %c3_19 = arith.constant 3 : index
    %c0_20 = arith.constant 0 : index
    %c0_21 = arith.constant 0 : index
    %19 = vector.load %arg2[%c3_19, %c0_20, %c0_21] : memref<4x384x384xf32, #tpu.memory_space<vmem>>, vector<1x384x384xf32>
    %20 = vector.shape_cast %19 : vector<1x384x384xf32> to vector<384x384xf32>
    %cst_22 = arith.constant dense<0.000000e+00> : vector<3x384xf32>
    %21 = tpu.matmul %18, %20, %cst_22 {dimension_numbers = #tpu.dot_dimension_numbers<[1], [0], [0], [1], [0, 0, 1, 1], [], []>} : vector<3x384xf32>, vector<384x384xf32>, vector<3x384xf32> -> vector<3x384xf32>
    %22 = arith.addf %16, %21 : vector<3x384xf32>
    %cst_23 = arith.constant dense<0.000000e+00> : vector<384xf32>
    %23 = vector.multi_reduction <add>, %22, %cst_23 [0] : vector<3x384xf32> to vector<384xf32>
    %24 = vector.shape_cast %23 : vector<384xf32> to vector<1x384xf32>
    %25 = arith.mulf %22, %22 : vector<3x384xf32>
    %cst_24 = arith.constant dense<0.000000e+00> : vector<384xf32>
    %26 = vector.multi_reduction <add>, %25, %cst_24 [0] : vector<3x384xf32> to vector<384xf32>
    %27 = vector.shape_cast %26 : vector<384xf32> to vector<1x384xf32>
    %c1_25 = arith.constant 1 : index
    %c0_26 = arith.constant 0 : index
    %c0_27 = arith.constant 0 : index
    %28 = vector.load %arg1[%c1_25, %c0_26, %c0_27] : memref<2x6x384xf32, #tpu.memory_space<vmem>>, vector<1x3x384xf32>
    %29 = vector.shape_cast %28 : vector<1x3x384xf32> to vector<3x384xf32>
    %c0_28 = arith.constant 0 : index
    %c0_29 = arith.constant 0 : index
    %c0_30 = arith.constant 0 : index
    %30 = vector.load %arg2[%c0_28, %c0_29, %c0_30] : memref<4x384x384xf32, #tpu.memory_space<vmem>>, vector<1x384x384xf32>
    %31 = vector.shape_cast %30 : vector<1x384x384xf32> to vector<384x384xf32>
    %cst_31 = arith.constant dense<0.000000e+00> : vector<3x384xf32>
    %32 = tpu.matmul %29, %31, %cst_31 {dimension_numbers = #tpu.dot_dimension_numbers<[1], [0], [0], [1], [0, 0, 1, 1], [], []>} : vector<3x384xf32>, vector<384x384xf32>, vector<3x384xf32> -> vector<3x384xf32>
    %c1_32 = arith.constant 1 : index
    %c1_33 = arith.constant 1 : index
    %c0_34 = arith.constant 0 : index
    %33 = vector.load %arg1[%c1_32, %c1_33, %c0_34] : memref<2x6x384xf32, #tpu.memory_space<vmem>>, vector<1x3x384xf32>
    %34 = vector.shape_cast %33 : vector<1x3x384xf32> to vector<3x384xf32>
    %c1_35 = arith.constant 1 : index
    %c0_36 = arith.constant 0 : index
    %c0_37 = arith.constant 0 : index
    %35 = vector.load %arg2[%c1_35, %c0_36, %c0_37] : memref<4x384x384xf32, #tpu.memory_space<vmem>>, vector<1x384x384xf32>
    %36 = vector.shape_cast %35 : vector<1x384x384xf32> to vector<384x384xf32>
    %cst_38 = arith.constant dense<0.000000e+00> : vector<3x384xf32>
    %37 = tpu.matmul %34, %36, %cst_38 {dimension_numbers = #tpu.dot_dimension_numbers<[1], [0], [0], [1], [0, 0, 1, 1], [], []>} : vector<3x384xf32>, vector<384x384xf32>, vector<3x384xf32> -> vector<3x384xf32>
    %38 = arith.addf %32, %37 : vector<3x384xf32>
    %c1_39 = arith.constant 1 : index
    %c2_40 = arith.constant 2 : index
    %c0_41 = arith.constant 0 : index
    %39 = vector.load %arg1[%c1_39, %c2_40, %c0_41] : memref<2x6x384xf32, #tpu.memory_space<vmem>>, vector<1x3x384xf32>
    %40 = vector.shape_cast %39 : vector<1x3x384xf32> to vector<3x384xf32>
    %c2_42 = arith.constant 2 : index
    %c0_43 = arith.constant 0 : index
    %c0_44 = arith.constant 0 : index
    %41 = vector.load %arg2[%c2_42, %c0_43, %c0_44] : memref<4x384x384xf32, #tpu.memory_space<vmem>>, vector<1x384x384xf32>
    %42 = vector.shape_cast %41 : vector<1x384x384xf32> to vector<384x384xf32>
    %cst_45 = arith.constant dense<0.000000e+00> : vector<3x384xf32>
    %43 = tpu.matmul %40, %42, %cst_45 {dimension_numbers = #tpu.dot_dimension_numbers<[1], [0], [0], [1], [0, 0, 1, 1], [], []>} : vector<3x384xf32>, vector<384x384xf32>, vector<3x384xf32> -> vector<3x384xf32>
    %44 = arith.addf %38, %43 : vector<3x384xf32>
    %c1_46 = arith.constant 1 : index
    %c3_47 = arith.constant 3 : index
    %c0_48 = arith.constant 0 : index
    %45 = vector.load %arg1[%c1_46, %c3_47, %c0_48] : memref<2x6x384xf32, #tpu.memory_space<vmem>>, vector<1x3x384xf32>
    %46 = vector.shape_cast %45 : vector<1x3x384xf32> to vector<3x384xf32>
    %c3_49 = arith.constant 3 : index
    %c0_50 = arith.constant 0 : index
    %c0_51 = arith.constant 0 : index
    %47 = vector.load %arg2[%c3_49, %c0_50, %c0_51] : memref<4x384x384xf32, #tpu.memory_space<vmem>>, vector<1x384x384xf32>
    %48 = vector.shape_cast %47 : vector<1x384x384xf32> to vector<384x384xf32>
    %cst_52 = arith.constant dense<0.000000e+00> : vector<3x384xf32>
    %49 = tpu.matmul %46, %48, %cst_52 {dimension_numbers = #tpu.dot_dimension_numbers<[1], [0], [0], [1], [0, 0, 1, 1], [], []>} : vector<3x384xf32>, vector<384x384xf32>, vector<3x384xf32> -> vector<3x384xf32>
    %50 = arith.addf %44, %49 : vector<3x384xf32>
    %cst_53 = arith.constant dense<0.000000e+00> : vector<384xf32>
    %51 = vector.multi_reduction <add>, %50, %cst_53 [0] : vector<3x384xf32> to vector<384xf32>
    %52 = vector.shape_cast %51 : vector<384xf32> to vector<1x384xf32>
    %53 = arith.mulf %50, %50 : vector<3x384xf32>
    %cst_54 = arith.constant dense<0.000000e+00> : vector<384xf32>
    %54 = vector.multi_reduction <add>, %53, %cst_54 [0] : vector<3x384xf32> to vector<384xf32>
    %55 = vector.shape_cast %54 : vector<384xf32> to vector<1x384xf32>
    %56 = arith.addf %24, %52 : vector<1x384xf32>
    %57 = arith.addf %27, %55 : vector<1x384xf32>
    %c0_55 = arith.constant 0 : index
    %c0_56 = arith.constant 0 : index
    %58 = vector.load %arg3[%c0_55, %c0_56] : memref<384x128xf32, #tpu.memory_space<vmem>>, vector<384x128xf32>
    %cst_57 = arith.constant dense<0.000000e+00> : vector<1x128xf32>
    %59 = tpu.matmul %56, %58, %cst_57 {dimension_numbers = #tpu.dot_dimension_numbers<[1], [0], [0], [1], [0, 0, 1, 1], [], []>} : vector<1x384xf32>, vector<384x128xf32>, vector<1x128xf32> -> vector<1x128xf32>
    %cst_58 = arith.constant dense<0.000000e+00> : vector<1x128xf32>
    %60 = tpu.matmul %57, %58, %cst_58 {dimension_numbers = #tpu.dot_dimension_numbers<[1], [0], [0], [1], [0, 0, 1, 1], [], []>} : vector<1x384xf32>, vector<384x128xf32>, vector<1x128xf32> -> vector<1x128xf32>
    %cst_59 = arith.constant 1.800000e+01 : f32
    %61 = vector.broadcast %cst_59 : f32 to vector<1x128xf32>
    %62 = arith.divf %59, %61 : vector<1x128xf32>
    %cst_60 = arith.constant 1.800000e+01 : f32
    %63 = vector.broadcast %cst_60 : f32 to vector<1x128xf32>
    %64 = arith.divf %60, %63 : vector<1x128xf32>
    %65 = arith.mulf %62, %62 : vector<1x128xf32>
    %66 = arith.subf %64, %65 : vector<1x128xf32>
    %cst_61 = arith.constant 9.99999974E-6 : f32
    %67 = vector.broadcast %cst_61 : f32 to vector<1x128xf32>
    %68 = arith.addf %66, %67 : vector<1x128xf32>
    %69 = math.rsqrt %68 : vector<1x128xf32>
    %c0_62 = arith.constant 0 : index
    %c0_63 = arith.constant 0 : index
    %70 = vector.load %arg5[%c0_62, %c0_63] : memref<1x128xf32, #tpu.memory_space<vmem>>, vector<1x128xf32>
    %71 = arith.mulf %70, %69 : vector<1x128xf32>
    %c0_64 = arith.constant 0 : index
    %c0_65 = arith.constant 0 : index
    %72 = vector.load %arg6[%c0_64, %c0_65] : memref<1x128xf32, #tpu.memory_space<vmem>>, vector<1x128xf32>
    %73 = arith.mulf %62, %71 : vector<1x128xf32>
    %74 = arith.subf %72, %73 : vector<1x128xf32>
    %c0_66 = arith.constant 0 : index
    %c0_67 = arith.constant 0 : index
    %75 = vector.load %arg4[%c0_66, %c0_67] : memref<128x384xf32, #tpu.memory_space<vmem>>, vector<128x384xf32>
    %cst_68 = arith.constant dense<0.000000e+00> : vector<1x384xf32>
    %76 = tpu.matmul %71, %75, %cst_68 {dimension_numbers = #tpu.dot_dimension_numbers<[1], [0], [0], [1], [0, 0, 1, 1], [], []>} : vector<1x128xf32>, vector<128x384xf32>, vector<1x384xf32> -> vector<1x384xf32>
    %cst_69 = arith.constant dense<0.000000e+00> : vector<1x384xf32>
    %77 = tpu.matmul %74, %75, %cst_69 {dimension_numbers = #tpu.dot_dimension_numbers<[1], [0], [0], [1], [0, 0, 1, 1], [], []>} : vector<1x128xf32>, vector<128x384xf32>, vector<1x384xf32> -> vector<1x384xf32>
    %78 = vector.broadcast %76 : vector<1x384xf32> to vector<3x384xf32>
    %79 = arith.mulf %22, %78 : vector<3x384xf32>
    %80 = vector.broadcast %77 : vector<1x384xf32> to vector<3x384xf32>
    %81 = arith.addf %79, %80 : vector<3x384xf32>
    %cst_70 = arith.constant 0.000000e+00 : f32
    %82 = vector.broadcast %cst_70 : f32 to vector<3x384xf32>
    %83 = arith.cmpf oge, %81, %82 : vector<3x384xf32>
    %cst_71 = arith.constant 2.000000e-01 : f32
    %84 = vector.broadcast %cst_71 : f32 to vector<3x384xf32>
    %85 = arith.mulf %84, %81 : vector<3x384xf32>
    %86 = arith.select %83, %81, %85 : vector<3x384xi1>, vector<3x384xf32>
    %c0_72 = arith.constant 0 : index
    %c0_73 = arith.constant 0 : index
    %c0_74 = arith.constant 0 : index
    %87 = vector.load %arg7[%c0_72, %c0_73, %c0_74] : memref<2x3x384xf32, #tpu.memory_space<vmem>>, vector<1x3x384xf32>
    %88 = vector.shape_cast %87 : vector<1x3x384xf32> to vector<3x384xf32>
    %89 = vector.shape_cast %86 : vector<3x384xf32> to vector<1x3x384xf32>
    tpu.vector_store %arg7[%c0_72, %c0_73, %c0_74], %89 {strides = array<i32>} : memref<2x3x384xf32, #tpu.memory_space<vmem>>, vector<1x3x384xf32>,
    %90 = vector.broadcast %76 : vector<1x384xf32> to vector<3x384xf32>
    %91 = arith.mulf %50, %90 : vector<3x384xf32>
    %92 = vector.broadcast %77 : vector<1x384xf32> to vector<3x384xf32>
    %93 = arith.addf %91, %92 : vector<3x384xf32>
    %cst_75 = arith.constant 0.000000e+00 : f32
    %94 = vector.broadcast %cst_75 : f32 to vector<3x384xf32>
    %95 = arith.cmpf oge, %93, %94 : vector<3x384xf32>
    %cst_76 = arith.constant 2.000000e-01 : f32
    %96 = vector.broadcast %cst_76 : f32 to vector<3x384xf32>
    %97 = arith.mulf %96, %93 : vector<3x384xf32>
    %98 = arith.select %95, %93, %97 : vector<3x384xi1>, vector<3x384xf32>
    %c1_77 = arith.constant 1 : index
    %c0_78 = arith.constant 0 : index
    %c0_79 = arith.constant 0 : index
    %99 = vector.load %arg7[%c1_77, %c0_78, %c0_79] : memref<2x3x384xf32, #tpu.memory_space<vmem>>, vector<1x3x384xf32>
    %100 = vector.shape_cast %99 : vector<1x3x384xf32> to vector<3x384xf32>
    %101 = vector.shape_cast %98 : vector<3x384xf32> to vector<1x3x384xf32>
    tpu.vector_store %arg7[%c1_77, %c0_78, %c0_79], %101 {strides = array<i32>} : memref<2x3x384xf32, #tpu.memory_space<vmem>>, vector<1x3x384xf32>,
    return
  }
  func.func @transform_0(%arg0: i32) -> (i32, i32, i32) {
    %c0_i32 = arith.constant 0 : i32
    %c0_i32_0 = arith.constant 0 : i32
    %c0_i32_1 = arith.constant 0 : i32
    %c0_i32_2 = arith.constant 0 : i32
    return %c0_i32, %c0_i32_0, %c0_i32_1 : i32, i32, i32
  }
  func.func @transform_1(%arg0: i32) -> (i32, i32, i32) {
    %c0_i32 = arith.constant 0 : i32
    %c0_i32_0 = arith.constant 0 : i32
    %c0_i32_1 = arith.constant 0 : i32
    %c0_i32_2 = arith.constant 0 : i32
    return %c0_i32, %c0_i32_0, %c0_i32_1 : i32, i32, i32
  }
  func.func @transform_2(%arg0: i32) -> (i32, i32) {
    %c0_i32 = arith.constant 0 : i32
    %c0_i32_0 = arith.constant 0 : i32
    %c0_i32_1 = arith.constant 0 : i32
    return %c0_i32, %c0_i32_0 : i32, i32
  }
  func.func @transform_3(%arg0: i32) -> (i32, i32) {
    %c0_i32 = arith.constant 0 : i32
    %c0_i32_0 = arith.constant 0 : i32
    %c0_i32_1 = arith.constant 0 : i32
    return %c0_i32, %c0_i32_0 : i32, i32
  }
  func.func @transform_4(%arg0: i32) -> (i32, i32) {
    %c0_i32 = arith.constant 0 : i32
    %c0_i32_0 = arith.constant 0 : i32
    %c0_i32_1 = arith.constant 0 : i32
    return %c0_i32, %c0_i32_0 : i32, i32
  }
  func.func @transform_5(%arg0: i32) -> (i32, i32) {
    %c0_i32 = arith.constant 0 : i32
    %c0_i32_0 = arith.constant 0 : i32
    %c0_i32_1 = arith.constant 0 : i32
    return %c0_i32, %c0_i32_0 : i32, i32
  }
  func.func @transform_6(%arg0: i32) -> (i32, i32, i32) {
    %c0_i32 = arith.constant 0 : i32
    %c0_i32_0 = arith.constant 0 : i32
    %c0_i32_1 = arith.constant 0 : i32
    %c0_i32_2 = arith.constant 0 : i32
    return %c0_i32, %c0_i32_0, %c0_i32_1 : i32, i32, i32
  }
}

</mosaic_0001>

<bundles_post_ra>
// kernel: _lambda_.5
= control target key start
LH: loop header
LB: loop body
LE: loop exit
PB: predicated region body
PF: predicated region fallthrough
CT: control target
= control target key end

     0   :  { %s1554_s12 = smov 0   ;;  %s2479_s0 = inlined_call_operand.vmem [shape: f32[2,17,544], index: 0, kind: input, shape index: {}]   ;;  %s2480_s1 = inlined_call_operand.vmem [shape: f32[2,544,256], index: 1, kind: input, shape index: {}]   ;;  %s2481_s2 = inlined_call_operand.vmem [shape: f32[1,256], index: 2, kind: input, shape index: {}]   ;;  %s2482_s3 = inlined_call_operand.vmem [shape: f32[2,16,256], index: 3, kind: output, shape index: {}]  }
   0x1 LB: > { %s1072_s13 = sadd.s32 4294967295, %s1531_s12   ;;  %p1076_p0 = scmp.ge.s32.totalorder %s1531_s12, 1  ;;  %s1531_s12 = sphi %s1554_s12, %s13_s12  }
   0x2   : > { %p137_p1 = scmp.lt.s32.totalorder %s1531_s12, 3 }
   0x4   : > { %p138_p2 = pnand %p1076_p0, %p137_p1 }
   0x5   : > { %v1081_v0 = vld [vmem:[%s2480_s1 + $0x448] sm:$0xff] (!%p138_p2)  ;;  %v1083_v1 = vld [vmem:[%s2480_s1 + $0x458] sm:$0xff] (!%p138_p2)  ;;  %v1080_v5 = vld [vmem:[%s2480_s1 + $0x440] sm:$0xff] (!%p138_p2)  ;;  %p1768_p3 = scmp.lt.s32.totalorder (!%p138_p2), %s1072_s13, 1  ;;  %vm479_vm0 = vcmask (!%p138_p2), 1046528   ;;  %vm513_vm1 = vcmask (!%p138_p2), 261120  }
   0x6   : > { %141 = sbr.rel (%p138_p2) target bundleno = 370 (0x172), region = 32  ;;  %v182_v2 = vld [vmem:[%s2480_s1 + $0x8] sm:$0xff] (!%p138_p2)  ;;  %v1223_v3 = vpack.c.bf16 (!%p138_p2), %v1083_v1, %v1081_v0  ;;  %v184_v4 = vld [vmem:[%s2480_s1 + $0x18] sm:$0xff] (!%p138_p2)  ;;  %v1082_v6 = vld [vmem:[%s2480_s1 + $0x450] sm:$0xff] (!%p138_p2) }
   0x7   : > { %v1359_v7 = vpack.c.bf16 (!%p138_p2), %v184_v4, %v182_v2  ;;  %v1225_v8 = vpack.c.bf16 (!%p138_p2), %v1082_v6, %v1080_v5  ;;  %v181_v9 = vld [vmem:[%s2480_s1] sm:$0xff] (!%p138_p2)  ;;  %v183_v10 = vld [vmem:[%s2480_s1 + $0x10] sm:$0xff] (!%p138_p2)  ;;  %v1085_v11 = vld [vmem:[%s2480_s1 + $0x468] sm:$0xff] (!%p138_p2) }
   0x8   : > { %1224 = vmatprep.subr.bf16.mxu1 (!%p138_p2), %v1223_v3  ;;  %v1361_v12 = vpack.c.bf16 (!%p138_p2), %v183_v10, %v181_v9  ;;  %v1087_v13 = vld [vmem:[%s2480_s1 + $0x478] sm:$0xff] (!%p138_p2)  ;;  %v186_v14 = vld [vmem:[%s2480_s1 + $0x28] sm:$0xff] (!%p138_p2)  ;;  %v1084_v18 = vld [vmem:[%s2480_s1 + $0x460] sm:$0xff] (!%p138_p2) }
   0x9   : > { %v188_v15 = vld [vmem:[%s2480_s1 + $0x38] sm:$0xff] (!%p138_p2)  ;;  %1360 = vmatprep.subr.bf16.mxu0 (!%p138_p2), %v1359_v7  ;;  %1226 = vmatpush1.bf16.msra.mxu1 (!%p138_p2), %v1225_v8  ;;  %v1227_v16 = vpack.c.bf16 (!%p138_p2), %v1087_v13, %v1085_v11  ;;  %v1086_v19 = vld [vmem:[%s2480_s1 + $0x470] sm:$0xff] (!%p138_p2)  ;;  %v185_v20 = vld [vmem:[%s2480_s1 + $0x20] sm:$0xff] (!%p138_p2) }
   0xa   : > { %v1363_v17 = vpack.c.bf16 (!%p138_p2), %v188_v15, %v186_v14  ;;  %1362 = vmatpush1.bf16.msra.mxu0 (!%p138_p2), %v1361_v12  ;;  %v1229_v21 = vpack.c.bf16 (!%p138_p2), %v1086_v19, %v1084_v18  ;;  %v187_v22 = vld [vmem:[%s2480_s1 + $0x30] sm:$0xff] (!%p138_p2)  ;;  %v1089_v23 = vld [vmem:[%s2480_s1 + $0x488] sm:$0xff] (!%p138_p2)  ;;  %v1091_v24 = vld [vmem:[%s2480_s1 + $0x498] sm:$0xff] (!%p138_p2) }
   0xb   : > { %1228 = vmatprep.subr.bf16.mxu1 (!%p138_p2), %v1227_v16  ;;  %v1365_v25 = vpack.c.bf16 (!%p138_p2), %v187_v22, %v185_v20  ;;  %v1231_v26 = vpack.c.bf16 (!%p138_p2), %v1091_v24, %v1089_v23  ;;  %v190_v27 = vld [vmem:[%s2480_s1 + $0x48] sm:$0xff] (!%p138_p2)  ;;  %v192_v28 = vld [vmem:[%s2480_s1 + $0x58] sm:$0xff] (!%p138_p2)  ;;  %v1088_v29 = vld [vmem:[%s2480_s1 + $0x480] sm:$0xff] (!%p138_p2) }
   0xc   : > { %1364 = vmatprep.subr.bf16.mxu0 (!%p138_p2), %v1363_v17  ;;  %v1367_v30 = vpack.c.bf16 (!%p138_p2), %v192_v28, %v190_v27  ;;  %v1090_v31 = vld [vmem:[%s2480_s1 + $0x490] sm:$0xff] (!%p138_p2)  ;;  %v189_v32 = vld [vmem:[%s2480_s1 + $0x40] sm:$0xff] (!%p138_p2)  ;;  %v1093_v35 = vld [vmem:[%s2480_s1 + $0x4a8] sm:$0xff] (!%p138_p2) }
   0xd   : > { %v191_v33 = vld [vmem:[%s2480_s1 + $0x50] sm:$0xff]  ;;  %1230 = vmatpush1.bf16.msra.mxu1 %v1229_v21  ;;  %v1233_v34 = vpack.c.bf16 %v1090_v31, %v1088_v29  ;;  %v1095_v36 = vld [vmem:[%s2480_s1 + $0x4b8] sm:$0xff]  ;;  %v194_v37 = vld [vmem:[%s2480_s1 + $0x68] sm:$0xff]  ;;  %s2485_s13 = smov (!%p1768_p3, %s1072_s13), 1 }
   0xe   : > { %1366 = vmatpush1.bf16.msra.mxu0 %v1365_v25  ;;  %1232 = vmatprep.subr.bf16.mxu1 %v1231_v26  ;;  %v1369_v38 = vpack.c.bf16 %v191_v33, %v189_v32  ;;  %v1235_v39 = vpack.c.bf16 %v1095_v36, %v1093_v35  ;;  %v196_v40 = vld [vmem:[%s2480_s1 + $0x78] sm:$0xff]  ;;  %v1092_v41 = vld [vmem:[%s2480_s1 + $0x4a0] sm:$0xff]  ;;  %v1094_v42 = vld [vmem:[%s2480_s1 + $0x4b0] sm:$0xff]  ;;  %s1515_s6 = smul.u32 120, %s2485_s13 }
   0xf   : > { %1368 = vmatprep.subr.bf16.mxu0 %v1367_v30  ;;  %v1371_v43 = vpack.c.bf16 %v196_v40, %v194_v37  ;;  %v193_v44 = vld [vmem:[%s2480_s1 + $0x60] sm:$0xff]  ;;  %v195_v45 = vld [vmem:[%s2480_s1 + $0x70] sm:$0xff]  ;;  %v1097_v46 = vld [vmem:[%s2480_s1 + $0x4c8] sm:$0xff]  ;;  %v1237_v50 = vpack.c.bf16 %v1094_v42, %v1092_v41 }
  0x10   : > { %v1099_v47 = vld [vmem:[%s2480_s1 + $0x4d8] sm:$0xff]  ;;  %v198_v48 = vld [vmem:[%s2480_s1 + $0x88] sm:$0xff]  ;;  %v1373_v51 = vpack.c.bf16 %v195_v45, %v193_v44  ;;  %v1096_v53 = vld [vmem:[%s2480_s1 + $0x4c0] sm:$0xff]  ;;  %s1854_s27 = scalar_lea.vmem %s2479_s0, %s1515_s6 }
  0x11   : > { %v200_v49 = vld [vmem:[%s2480_s1 + $0x98] sm:$0xff]  ;;  %1234 = vmatpush1.bf16.msra.mxu1 %v1233_v34  ;;  %v1239_v52 = vpack.c.bf16 %v1099_v47, %v1097_v46  ;;  %v1098_v54 = vld [vmem:[%s2480_s1 + $0x4d0] sm:$0xff]  ;;  %v197_v55 = vld [vmem:[%s2480_s1 + $0x80] sm:$0xff] }
  0x12   : > { %1370 = vmatpush1.bf16.msra.mxu0 %v1369_v38  ;;  %1236 = vmatprep.subr.bf16.mxu1 %v1235_v39  ;;  %v1375_v56 = vpack.c.bf16 %v200_v49, %v198_v48  ;;  %v199_v57 = vld [vmem:[%s2480_s1 + $0x90] sm:$0xff]  ;;  %v1101_v58 = vld [vmem:[%s2480_s1 + $0x4e8] sm:$0xff]  ;;  %v1103_v59 = vld [vmem:[%s2480_s1 + $0x4f8] sm:$0xff]  ;;  %v1241_v62 = vpack.c.bf16 %v1098_v54, %v1096_v53 }
  0x13   : > { %1372 = vmatprep.subr.bf16.mxu0 %v1371_v43  ;;  %v202_v60 = vld [vmem:[%s2480_s1 + $0xa8] sm:$0xff]  ;;  %v204_v61 = vld [vmem:[%s2480_s1 + $0xb8] sm:$0xff]  ;;  %v1377_v63 = vpack.c.bf16 %v199_v57, %v197_v55  ;;  %v1243_v0 = vpack.c.bf16 %v1103_v59, %v1101_v58  ;;  %v1100_v1 = vld [vmem:[%s2480_s1 + $0x4e0] sm:$0xff] }
  0x14   : > { %v1102_v2 = vld [vmem:[%s2480_s1 + $0x4f0] sm:$0xff]  ;;  %v201_v3 = vld [vmem:[%s2480_s1 + $0xa0] sm:$0xff]  ;;  %v1379_v4 = vpack.c.bf16 %v204_v61, %v202_v60  ;;  %v1105_v6 = vld [vmem:[%s2480_s1 + $0x508] sm:$0xff] }
  0x15   : > { %1238 = vmatpush1.bf16.msra.mxu1 %v1237_v50  ;;  %v203_v5 = vld [vmem:[%s2480_s1 + $0xb0] sm:$0xff]  ;;  %v1107_v7 = vld [vmem:[%s2480_s1 + $0x518] sm:$0xff]  ;;  %v206_v8 = vld [vmem:[%s2480_s1 + $0xc8] sm:$0xff]  ;;  %v1245_v10 = vpack.c.bf16 %v1102_v2, %v1100_v1 }
  0x16   : > { %1374 = vmatpush1.bf16.msra.mxu0 %v1373_v51  ;;  %1240 = vmatprep.subr.bf16.mxu1 %v1239_v52  ;;  %v208_v9 = vld [vmem:[%s2480_s1 + $0xd8] sm:$0xff]  ;;  %v1381_v11 = vpack.c.bf16 %v203_v5, %v201_v3  ;;  %v1247_v12 = vpack.c.bf16 %v1107_v7, %v1105_v6  ;;  %v1104_v13 = vld [vmem:[%s2480_s1 + $0x500] sm:$0xff]  ;;  %v1106_v14 = vld [vmem:[%s2480_s1 + $0x510] sm:$0xff] }
  0x17   : > { %1376 = vmatprep.subr.bf16.mxu0 %v1375_v56  ;;  %v205_v15 = vld [vmem:[%s2480_s1 + $0xc0] sm:$0xff]  ;;  %v1383_v16 = vpack.c.bf16 %v208_v9, %v206_v8  ;;  %v207_v17 = vld [vmem:[%s2480_s1 + $0xd0] sm:$0xff]  ;;  %v1109_v18 = vld [vmem:[%s2480_s1 + $0x528] sm:$0xff]  ;;  %v1249_v22 = vpack.c.bf16 %v1106_v14, %v1104_v13 }
  0x18   : > { %v1111_v19 = vld [vmem:[%s2480_s1 + $0x538] sm:$0xff]  ;;  %v210_v20 = vld [vmem:[%s2480_s1 + $0xe8] sm:$0xff]  ;;  %v1385_v23 = vpack.c.bf16 %v207_v17, %v205_v15  ;;  %v1108_v25 = vld [vmem:[%s2480_s1 + $0x520] sm:$0xff] }
  0x19   : > { %1242 = vmatpush1.bf16.msra.mxu1 %v1241_v62  ;;  %v212_v21 = vld [vmem:[%s2480_s1 + $0xf8] sm:$0xff]  ;;  %v1251_v24 = vpack.c.bf16 %v1111_v19, %v1109_v18  ;;  %v1110_v26 = vld [vmem:[%s2480_s1 + $0x530] sm:$0xff]  ;;  %v209_v27 = vld [vmem:[%s2480_s1 + $0xe0] sm:$0xff] }
  0x1a   : > { %1378 = vmatpush1.bf16.msra.mxu0 %v1377_v63  ;;  %1244 = vmatprep.subr.bf16.mxu1 %v1243_v0  ;;  %v1387_v28 = vpack.c.bf16 %v212_v21, %v210_v20  ;;  %v211_v29 = vld [vmem:[%s2480_s1 + $0xf0] sm:$0xff]  ;;  %v1113_v30 = vld [vmem:[%s2480_s1 + $0x548] sm:$0xff]  ;;  %v1115_v31 = vld [vmem:[%s2480_s1 + $0x558] sm:$0xff]  ;;  %v1253_v34 = vpack.c.bf16 %v1110_v26, %v1108_v25 }
  0x1b   : > { %1380 = vmatprep.subr.bf16.mxu0 %v1379_v4  ;;  %v214_v32 = vld [vmem:[%s2480_s1 + $0x108] sm:$0xff]  ;;  %v216_v33 = vld [vmem:[%s2480_s1 + $0x118] sm:$0xff]  ;;  %v1389_v35 = vpack.c.bf16 %v211_v29, %v209_v27  ;;  %v1255_v36 = vpack.c.bf16 %v1115_v31, %v1113_v30  ;;  %v1112_v37 = vld [vmem:[%s2480_s1 + $0x540] sm:$0xff] }
  0x1c   : > { %v1114_v38 = vld [vmem:[%s2480_s1 + $0x550] sm:$0xff]  ;;  %v213_v39 = vld [vmem:[%s2480_s1 + $0x100] sm:$0xff]  ;;  %v1391_v40 = vpack.c.bf16 %v216_v33, %v214_v32  ;;  %v1117_v42 = vld [vmem:[%s2480_s1 + $0x568] sm:$0xff] }
  0x1d   : > { %1246 = vmatpush1.bf16.msra.mxu1 %v1245_v10  ;;  %v215_v41 = vld [vmem:[%s2480_s1 + $0x110] sm:$0xff]  ;;  %v1119_v43 = vld [vmem:[%s2480_s1 + $0x578] sm:$0xff]  ;;  %v218_v44 = vld [vmem:[%s2480_s1 + $0x128] sm:$0xff]  ;;  %v1257_v46 = vpack.c.bf16 %v1114_v38, %v1112_v37 }
  0x1e   : > { %1382 = vmatpush1.bf16.msra.mxu0 %v1381_v11  ;;  %1248 = vmatprep.subr.bf16.mxu1 %v1247_v12  ;;  %v220_v45 = vld [vmem:[%s2480_s1 + $0x138] sm:$0xff]  ;;  %v1393_v47 = vpack.c.bf16 %v215_v41, %v213_v39  ;;  %v1259_v48 = vpack.c.bf16 %v1119_v43, %v1117_v42  ;;  %v1116_v49 = vld [vmem:[%s2480_s1 + $0x560] sm:$0xff]  ;;  %v1118_v50 = vld [vmem:[%s2480_s1 + $0x570] sm:$0xff] }
  0x1f   : > { %1384 = vmatprep.subr.bf16.mxu0 %v1383_v16  ;;  %v217_v51 = vld [vmem:[%s2480_s1 + $0x120] sm:$0xff]  ;;  %v1395_v52 = vpack.c.bf16 %v220_v45, %v218_v44  ;;  %v219_v53 = vld [vmem:[%s2480_s1 + $0x130] sm:$0xff]  ;;  %v1121_v54 = vld [vmem:[%s2480_s1 + $0x588] sm:$0xff]  ;;  %v1261_v58 = vpack.c.bf16 %v1118_v50, %v1116_v49 }
  0x20   : > { %v1123_v55 = vld [vmem:[%s2480_s1 + $0x598] sm:$0xff]  ;;  %v222_v56 = vld [vmem:[%s2480_s1 + $0x148] sm:$0xff]  ;;  %v1397_v59 = vpack.c.bf16 %v219_v53, %v217_v51  ;;  %v1120_v61 = vld [vmem:[%s2480_s1 + $0x580] sm:$0xff] }
  0x21   : > { %1250 = vmatpush1.bf16.msra.mxu1 %v1249_v22  ;;  %v224_v57 = vld [vmem:[%s2480_s1 + $0x158] sm:$0xff]  ;;  %v1263_v60 = vpack.c.bf16 %v1123_v55, %v1121_v54  ;;  %v1122_v62 = vld [vmem:[%s2480_s1 + $0x590] sm:$0xff]  ;;  %v221_v63 = vld [vmem:[%s2480_s1 + $0x140] sm:$0xff] }
  0x22   : > { %1386 = vmatpush1.bf16.msra.mxu0 %v1385_v23  ;;  %1252 = vmatprep.subr.bf16.mxu1 %v1251_v24  ;;  %v1399_v0 = vpack.c.bf16 %v224_v57, %v222_v56  ;;  %v223_v1 = vld [vmem:[%s2480_s1 + $0x150] sm:$0xff]  ;;  %v1125_v2 = vld [vmem:[%s2480_s1 + $0x5a8] sm:$0xff]  ;;  %v1127_v3 = vld [vmem:[%s2480_s1 + $0x5b8] sm:$0xff]  ;;  %v1265_v6 = vpack.c.bf16 %v1122_v62, %v1120_v61 }
  0x23   : > { %1388 = vmatprep.subr.bf16.mxu0 %v1387_v28  ;;  %v226_v4 = vld [vmem:[%s2480_s1 + $0x168] sm:$0xff]  ;;  %v228_v5 = vld [vmem:[%s2480_s1 + $0x178] sm:$0xff]  ;;  %v1124_v7 = vld [vmem:[%s2480_s1 + $0x5a0] sm:$0xff]  ;;  %v1401_v8 = vpack.c.bf16 %v223_v1, %v221_v63  ;;  %v1267_v9 = vpack.c.bf16 %v1127_v3, %v1125_v2 }
  0x24   : > { %v1126_v10 = vld [vmem:[%s2480_s1 + $0x5b0] sm:$0xff]  ;;  %v225_v11 = vld [vmem:[%s2480_s1 + $0x160] sm:$0xff]  ;;  %v1403_v13 = vpack.c.bf16 %v228_v5, %v226_v4  ;;  %v1129_v14 = vld [vmem:[%s2480_s1 + $0x5c8] sm:$0xff] }
  0x25   : > { %1254 = vmatpush1.bf16.msra.mxu1 %v1253_v34  ;;  %v227_v12 = vld [vmem:[%s2480_s1 + $0x170] sm:$0xff]  ;;  %v1131_v15 = vld [vmem:[%s2480_s1 + $0x5d8] sm:$0xff]  ;;  %v230_v17 = vld [vmem:[%s2480_s1 + $0x188] sm:$0xff]  ;;  %v1269_v21 = vpack.c.bf16 %v1126_v10, %v1124_v7 }
  0x26   : > { %1390 = vmatpush1.bf16.msra.mxu0 %v1389_v35  ;;  %1256 = vmatprep.subr.bf16.mxu1 %v1255_v36  ;;  %v1875_v16 = vld [vmem:[%s1854_s27 + $0x30] sm:$0xff]  ;;  %v232_v18 = vld [vmem:[%s2480_s1 + $0x198] sm:$0xff]  ;;  %v318_v19 = vld [vmem:[%s1854_s27 + $0x8] sm:$0xfe]  ;;  %v1405_v24 = vpack.c.bf16 %v227_v12, %v225_v11  ;;  %v1271_v25 = vpack.c.bf16 %v1131_v15, %v1129_v14 }
  0x27   : > { %1392 = vmatprep.subr.bf16.mxu0 %v1391_v40  ;;  %v484_v20 = vrot.slane %v1875_v16, 1  ;;  %v483_v22 = vrot.slane %v318_v19, 1  ;;  %v172_v23 = vld [vmem:[%s1854_s27 + $0x8] sm:$0xff]  ;;  %v1128_v26 = vld [vmem:[%s2480_s1 + $0x5c0] sm:$0xff]  ;;  %v1130_v27 = vld [vmem:[%s2480_s1 + $0x5d0] sm:$0xff]  ;;  %v1407_v29 = vpack.c.bf16 %v232_v18, %v230_v17 }
  0x28   : > { %v229_v28 = vld [vmem:[%s2480_s1 + $0x180] sm:$0xff]  ;;  %v231_v30 = vld [vmem:[%s2480_s1 + $0x190] sm:$0xff]  ;;  %v1133_v31 = vld [vmem:[%s2480_s1 + $0x5e8] sm:$0xff]  ;;  %818 = vmatprep.mubr.f32.mxu0 %v172_v23  ;;  %v1273_v36 = vpack.c.bf16 %v1130_v27, %v1128_v26 }
  0x29   : > { %1258 = vmatpush1.bf16.msra.mxu1 %v1257_v46  ;;  %v1135_v32 = vld [vmem:[%s2480_s1 + $0x5f8] sm:$0xff]  ;;  %v485_v33 = vsel %vm479_vm0, %v483_v22, %v484_v20  ;;  %v234_v34 = vld [vmem:[%s2480_s1 + $0x1a8] sm:$0xff]  ;;  %v1409_v37 = vpack.c.bf16 %v231_v30, %v229_v28  ;;  %v1132_v39 = vld [vmem:[%s2480_s1 + $0x5e0] sm:$0xff] }
  0x2a   : > { %1394 = vmatpush1.bf16.msra.mxu0 %v1393_v47  ;;  %1260 = vmatprep.subr.bf16.mxu1 %v1259_v48  ;;  %v236_v35 = vld [vmem:[%s2480_s1 + $0x1b8] sm:$0xff]  ;;  %v1275_v38 = vpack.c.bf16 %v1135_v32, %v1133_v31  ;;  %v1134_v40 = vld [vmem:[%s2480_s1 + $0x5f0] sm:$0xff]  ;;  %v233_v41 = vld [vmem:[%s2480_s1 + $0x1a0] sm:$0xff] }
  0x2b   : > { %1396 = vmatprep.subr.bf16.mxu0 %v1395_v52  ;;  %582 = vmatprep.mubr.f32.mxu1 %v485_v33  ;;  %v1411_v42 = vpack.c.bf16 %v236_v35, %v234_v34  ;;  %v235_v43 = vld [vmem:[%s2480_s1 + $0x1b0] sm:$0xff]  ;;  %v1137_v44 = vld [vmem:[%s2480_s1 + $0x608] sm:$0xff]  ;;  %v1139_v45 = vld [vmem:[%s2480_s1 + $0x618] sm:$0xff]  ;;  %v1277_v48 = vpack.c.bf16 %v1134_v40, %v1132_v39 }
  0x2c   : > { %v238_v46 = vld [vmem:[%s2480_s1 + $0x1c8] sm:$0xff]  ;;  %v240_v47 = vld [vmem:[%s2480_s1 + $0x1d8] sm:$0xff]  ;;  %v1413_v49 = vpack.c.bf16 %v235_v43, %v233_v41  ;;  %v1279_v50 = vpack.c.bf16 %v1139_v45, %v1137_v44  ;;  %v1136_v51 = vld [vmem:[%s2480_s1 + $0x600] sm:$0xff] }
  0x2d   : > { %1262 = vmatpush1.bf16.msra.mxu1 %v1261_v58  ;;  %v1138_v52 = vld [vmem:[%s2480_s1 + $0x610] sm:$0xff]  ;;  %v237_v53 = vld [vmem:[%s2480_s1 + $0x1c0] sm:$0xff]  ;;  %v1415_v54 = vpack.c.bf16 %v240_v47, %v238_v46  ;;  %v1141_v56 = vld [vmem:[%s2480_s1 + $0x628] sm:$0xff] }
  0x2e   : > { %1398 = vmatpush1.bf16.msra.mxu0 %v1397_v59  ;;  %1264 = vmatprep.subr.bf16.mxu1 %v1263_v60  ;;  %v239_v55 = vld [vmem:[%s2480_s1 + $0x1d0] sm:$0xff]  ;;  %v1143_v57 = vld [vmem:[%s2480_s1 + $0x638] sm:$0xff]  ;;  %v242_v58 = vld [vmem:[%s2480_s1 + $0x1e8] sm:$0xff]  ;;  %v1281_v60 = vpack.c.bf16 %v1138_v52, %v1136_v51 }
  0x2f   : > { %1400 = vmatprep.subr.bf16.mxu0 %v1399_v0  ;;  %v244_v59 = vld [vmem:[%s2480_s1 + $0x1f8] sm:$0xff]  ;;  %v1140_v61 = vld [vmem:[%s2480_s1 + $0x620] sm:$0xff]  ;;  %v1142_v62 = vld [vmem:[%s2480_s1 + $0x630] sm:$0xff]  ;;  %v1417_v63 = vpack.c.bf16 %v239_v55, %v237_v53  ;;  %v1283_v0 = vpack.c.bf16 %v1143_v57, %v1141_v56 }
  0x30   : > { %v241_v1 = vld [vmem:[%s2480_s1 + $0x1e0] sm:$0xff]  ;;  %v1971_v2 = vld [vmem:[%s1854_s27 + $0x28] sm:$0xff]  ;;  %v1419_v4 = vpack.c.bf16 %v244_v59, %v242_v58  ;;  %v243_v5 = vld [vmem:[%s2480_s1 + $0x1f0] sm:$0xff]  ;;  %v1285_v10 = vpack.c.bf16 %v1142_v62, %v1140_v61 }
  0x31   : > { %1266 = vmatpush1.bf16.msra.mxu1 %v1265_v6  ;;  %v317_v3 = vld [vmem:[%s1854_s27] sm:$0xfe]  ;;  %v1145_v6 = vld [vmem:[%s2480_s1 + $0x648] sm:$0xff]  ;;  %v1147_v7 = vld [vmem:[%s2480_s1 + $0x658] sm:$0xff]  ;;  %v481_v12 = vrot.slane %v1971_v2, 1 }
  0x32   : > { %1402 = vmatpush1.bf16.msra.mxu0 %v1401_v8  ;;  %1268 = vmatprep.subr.bf16.mxu1 %v1267_v9  ;;  %v246_v8 = vld [vmem:[%s2480_s1 + $0x208] sm:$0xff]  ;;  %v248_v9 = vld [vmem:[%s2480_s1 + $0x218] sm:$0xff]  ;;  %v480_v11 = vrot.slane %v317_v3, 1  ;;  %v1287_v14 = vpack.c.bf16 %v1147_v7, %v1145_v6  ;;  %v1144_v15 = vld [vmem:[%s2480_s1 + $0x640] sm:$0xff] }
  0x33   : > { %1404 = vmatprep.subr.bf16.mxu0 %v1403_v13  ;;  %v1421_v13 = vpack.c.bf16 %v243_v5, %v241_v1  ;;  %v1146_v17 = vld [vmem:[%s2480_s1 + $0x650] sm:$0xff]  ;;  %v245_v18 = vld [vmem:[%s2480_s1 + $0x200] sm:$0xff]  ;;  %v1423_v19 = vpack.c.bf16 %v248_v9, %v246_v8  ;;  %v1149_v22 = vld [vmem:[%s2480_s1 + $0x668] sm:$0xff] }
  0x34   : > { %v1151_v23 = vld [vmem:[%s2480_s1 + $0x678] sm:$0xff]  ;;  %v482_v26 = vsel %vm479_vm0, %v480_v11, %v481_v12  ;;  %v1289_v27 = vpack.c.bf16 %v1146_v17, %v1144_v15  ;;  %v171_v28 = vld [vmem:[%s1854_s27] sm:$0xff]  ;;  %v1150_v32 = vld [vmem:[%s2480_s1 + $0x670] sm:$0xff] }
  0x35   : > { %1270 = vmatpush1.bf16.msra.mxu1 %v1269_v21  ;;  %v247_v21 = vld [vmem:[%s2480_s1 + $0x210] sm:$0xff]  ;;  %v1291_v30 = vpack.c.bf16 %v1151_v23, %v1149_v22  ;;  %v1148_v31 = vld [vmem:[%s2480_s1 + $0x660] sm:$0xff]  ;;  %v256_v39 = vld [vmem:[%s2480_s1 + $0x258] sm:$0xff] }
  0x36   : > { %1406 = vmatpush1.bf16.msra.mxu0 %v1405_v24  ;;  %1272 = vmatprep.subr.bf16.mxu1 %v1271_v25  ;;  %v250_v24 = vld [vmem:[%s2480_s1 + $0x228] sm:$0xff]  ;;  %v252_v25 = vld [vmem:[%s2480_s1 + $0x238] sm:$0xff]  ;;  %v249_v33 = vld [vmem:[%s2480_s1 + $0x220] sm:$0xff]  ;;  %v1293_v40 = vpack.c.bf16 %v1150_v32, %v1148_v31 }
  0x37   : > { %1408 = vmatprep.subr.bf16.mxu0 %v1407_v29  ;;  %v1425_v29 = vpack.c.bf16 %v247_v21, %v245_v18  ;;  %v1427_v34 = vpack.c.bf16 %v252_v25, %v250_v24  ;;  %v251_v35 = vld [vmem:[%s2480_s1 + $0x230] sm:$0xff]  ;;  %v1152_v43 = vld [vmem:[%s2480_s1 + $0x680] sm:$0xff]  ;;  %v260_v51 = vld [vmem:[%s2480_s1 + $0x278] sm:$0xff] }
  0x38   : > { %v1429_v41 = vpack.c.bf16 %v251_v35, %v249_v33  ;;  %v1154_v44 = vld [vmem:[%s2480_s1 + $0x690] sm:$0xff]  ;;  %v253_v45 = vld [vmem:[%s2480_s1 + $0x240] sm:$0xff]  ;;  %v1163_v61 = vld [vmem:[%s2480_s1 + $0x6d8] sm:$0xff] }
  0x39   : > { %1274 = vmatpush1.bf16.msra.mxu1 %v1273_v36  ;;  %v1153_v36 = vld [vmem:[%s2480_s1 + $0x688] sm:$0xff]  ;;  %v255_v47 = vld [vmem:[%s2480_s1 + $0x250] sm:$0xff]  ;;  %v1297_v52 = vpack.c.bf16 %v1154_v44, %v1152_v43  ;;  %v1156_v55 = vld [vmem:[%s2480_s1 + $0x6a0] sm:$0xff] }
  0x3a   : > { %1410 = vmatpush1.bf16.msra.mxu0 %v1409_v37  ;;  %1276 = vmatprep.subr.bf16.mxu1 %v1275_v38  ;;  %v1155_v37 = vld [vmem:[%s2480_s1 + $0x698] sm:$0xff]  ;;  %v254_v38 = vld [vmem:[%s2480_s1 + $0x248] sm:$0xff]  ;;  %v1433_v53 = vpack.c.bf16 %v255_v47, %v253_v45  ;;  %v1158_v56 = vld [vmem:[%s2480_s1 + $0x6b0] sm:$0xff] }
  0x3b   : > { %1412 = vmatprep.subr.bf16.mxu0 %v1411_v42  ;;  %v1295_v42 = vpack.c.bf16 %v1155_v37, %v1153_v36  ;;  %v1431_v46 = vpack.c.bf16 %v256_v39, %v254_v38  ;;  %v257_v57 = vld [vmem:[%s2480_s1 + $0x260] sm:$0xff]  ;;  %v259_v59 = vld [vmem:[%s2480_s1 + $0x270] sm:$0xff]  ;;  %v262_v62 = vld [vmem:[%s2480_s1 + $0x288] sm:$0xff] }
  0x3c   : > { %v1437_v1 = vpack.c.bf16 %v259_v59, %v257_v57  ;;  %v1162_v5 = vld [vmem:[%s2480_s1 + $0x6d0] sm:$0xff]  ;;  %v261_v6 = vld [vmem:[%s2480_s1 + $0x280] sm:$0xff]  ;;  %v1165_v9 = vld [vmem:[%s2480_s1 + $0x6e8] sm:$0xff] }
  0x3d   : > { %1278 = vmatpush1.bf16.msra.mxu1 %v1277_v48  ;;  %v1157_v48 = vld [vmem:[%s2480_s1 + $0x6a8] sm:$0xff]  ;;  %v263_v8 = vld [vmem:[%s2480_s1 + $0x290] sm:$0xff]  ;;  %v1164_v18 = vld [vmem:[%s2480_s1 + $0x6e0] sm:$0xff] }
  0x3e   : > { %1414 = vmatpush1.bf16.msra.mxu0 %v1413_v49  ;;  %1280 = vmatprep.subr.bf16.mxu1 %v1279_v50  ;;  %v1159_v49 = vld [vmem:[%s2480_s1 + $0x6b8] sm:$0xff]  ;;  %v258_v50 = vld [vmem:[%s2480_s1 + $0x268] sm:$0xff]  ;;  %v1441_v15 = vpack.c.bf16 %v263_v8, %v261_v6  ;;  %v265_v21 = vld [vmem:[%s2480_s1 + $0x2a0] sm:$0xff] }
  0x3f   : > { %1416 = vmatprep.subr.bf16.mxu0 %v1415_v54  ;;  %v1299_v54 = vpack.c.bf16 %v1159_v49, %v1157_v48  ;;  %v1435_v58 = vpack.c.bf16 %v260_v51, %v258_v50  ;;  %v266_v11 = vld [vmem:[%s2480_s1 + $0x2a8] sm:$0xff]  ;;  %v267_v23 = vld [vmem:[%s2480_s1 + $0x2b0] sm:$0xff]  ;;  %v1171_v25 = vld [vmem:[%s2480_s1 + $0x718] sm:$0xff] }
  0x40   : > { %v1169_v24 = vld [vmem:[%s2480_s1 + $0x708] sm:$0xff]  ;;  %v323_v31 = vld [vmem:[%s1854_s27 + $0x58] sm:$0x1]  ;;  %v1445_v32 = vpack.c.bf16 %v267_v23, %v265_v21  ;;  %v271_v35 = vld [vmem:[%s2480_s1 + $0x2d0] sm:$0xff] }
  0x41   : > { %1282 = vmatpush1.bf16.msra.mxu1 %v1281_v60  ;;  %v1161_v60 = vld [vmem:[%s2480_s1 + $0x6c8] sm:$0xff]  ;;  %v1311_v33 = vpack.c.bf16 %v1171_v25, %v1169_v24  ;;  %v497_v36 = vrot.slane %v323_v31, 1  ;;  %v322_v37 = vld [vmem:[%s1854_s27 + $0x50] sm:$0x1]  ;;  %v276_v43 = vld [vmem:[%s2480_s1 + $0x2f8] sm:$0xff] }
  0x42   : > { %1418 = vmatpush1.bf16.msra.mxu0 %v1417_v63  ;;  %1284 = vmatprep.subr.bf16.mxu1 %v1283_v0  ;;  %v264_v63 = vld [vmem:[%s2480_s1 + $0x298] sm:$0xff]  ;;  %v1301_v0 = vpack.c.bf16 %v1158_v56, %v1156_v55  ;;  %v1303_v3 = vpack.c.bf16 %v1163_v61, %v1161_v60  ;;  %v1173_v39 = vld [vmem:[%s2480_s1 + $0x728] sm:$0xff]  ;;  %v1172_v44 = vld [vmem:[%s2480_s1 + $0x720] sm:$0xff] }
  0x43   : > { %1420 = vmatprep.subr.bf16.mxu0 %v1419_v4  ;;  %v1160_v4 = vld [vmem:[%s2480_s1 + $0x6c0] sm:$0xff]  ;;  %v1439_v7 = vpack.c.bf16 %v264_v63, %v262_v62  ;;  %v1174_v45 = vld [vmem:[%s2480_s1 + $0x730] sm:$0xff]  ;;  %v320_v50 = vld [vmem:[%s1854_s27 + $0x18] sm:$0xfe] }
  0x44   : > { %v2179_v49 = vld [vmem:[%s1854_s27 + $0x40] sm:$0xff]  ;;  %v174_v51 = vld [vmem:[%s1854_s27 + $0x18] sm:$0xff]  ;;  %v275_v56 = vld [vmem:[%s2480_s1 + $0x2f0] sm:$0xff] }
  0x45   : > { %1286 = vmatpush1.bf16.msra.mxu1 %v1285_v10  ;;  %v1167_v10 = vld [vmem:[%s2480_s1 + $0x6f8] sm:$0xff]  ;;  %v1177_v57 = vld [vmem:[%s2480_s1 + $0x748] sm:$0xff]  ;;  %v277_v8 = vld [vmem:[%s2480_s1 + $0x300] sm:$0xff] }
  0x46   : > { %1422 = vmatpush1.bf16.msra.mxu0 %v1421_v13  ;;  %1288 = vmatprep.subr.bf16.mxu1 %v1287_v14  ;;  %v268_v13 = vld [vmem:[%s2480_s1 + $0x2b8] sm:$0xff]  ;;  %v1305_v14 = vpack.c.bf16 %v1162_v5, %v1160_v4  ;;  %v1307_v17 = vpack.c.bf16 %v1167_v10, %v1165_v9  ;;  %v278_v61 = vld [vmem:[%s2480_s1 + $0x308] sm:$0xff]  ;;  %v324_v10 = vld [vmem:[%s1854_s27 + $0x60] sm:$0x1] }
  0x47   : > { %1424 = vmatprep.subr.bf16.mxu0 %v1423_v19  ;;  %v1166_v19 = vld [vmem:[%s2480_s1 + $0x6f0] sm:$0xff]  ;;  %v1443_v22 = vpack.c.bf16 %v268_v13, %v266_v11  ;;  %v2188_v55 = vld [vmem:[%s1854_s27 + $0x38] sm:$0xff]  ;;  %v325_v4 = vld [vmem:[%s1854_s27 + $0x68] sm:$0x1] }
  0x48   : > { %583 = vmatmul.mubr.f32.vlgmr.msra.gmra.mrb[0].mxu1 %v482_v26  ;;  %v270_v26 = vld [vmem:[%s2480_s1 + $0x2c8] sm:$0xff]  ;;  %v487_v60 = vrot.slane %v2188_v55, 1  ;;  %v280_v62 = vld [vmem:[%s2480_s1 + $0x318] sm:$0xff]  ;;  %v501_v9 = vrot.slane %v325_v4, 1  ;;  %v279_v13 = vld [vmem:[%s2480_s1 + $0x310] sm:$0xff] }
  0x49   : > { %1290 = vmatpush1.bf16.msra.mxu1 %v1289_v27  ;;  %819 = vmatmul.mubr.f32.vlgmr.msra.gmra.mrb[0].mxu0 %v171_v28  ;;  %v272_v27 = vld [vmem:[%s2480_s1 + $0x2d8] sm:$0xff]  ;;  %v1309_v28 = vpack.c.bf16 %v1166_v19, %v1164_v18  ;;  %v1455_v11 = vpack.c.bf16 %v280_v62, %v278_v61  ;;  %v282_v18 = vld [vmem:[%s2480_s1 + $0x328] sm:$0xff]  ;;  %v1180_v23 = vld [vmem:[%s2480_s1 + $0x760] sm:$0xff] }
  0x4a   : > { %1426 = vmatpush1.bf16.msra.mxu0 %v1425_v29  ;;  %1292 = vmatprep.subr.bf16.mxu1 %v1291_v30  ;;  %v1168_v29 = vld [vmem:[%s2480_s1 + $0x700] sm:$0xff]  ;;  %v1170_v30 = vld [vmem:[%s2480_s1 + $0x710] sm:$0xff]  ;;  %v1447_v38 = vpack.c.bf16 %v272_v27, %v270_v26  ;;  %v284_v19 = vld [vmem:[%s2480_s1 + $0x338] sm:$0xff]  ;;  %v1457_v27 = vpack.c.bf16 %v279_v13, %v277_v8 }
  0x4b   : > { %1428 = vmatprep.subr.bf16.mxu0 %v1427_v34  ;;  %824 = vmatprep.mubr.f32.mxu0 %v1875_v16  ;;  %v269_v34 = vld [vmem:[%s2480_s1 + $0x2c0] sm:$0xff]  ;;  %v1313_v47 = vpack.c.bf16 %v1170_v30, %v1168_v29  ;;  %v2247_v25 = vld [vmem:[%s1854_s27 + $0x48] sm:$0xff]  ;;  %v1182_v29 = vld [vmem:[%s2480_s1 + $0x770] sm:$0xff] }
  0x4c   : > { %v273_v16 = vld [vmem:[%s2480_s1 + $0x2e0] sm:$0xff]  ;;  %v1193_v61 = vld [vmem:[%s2480_s1 + $0x7c8] sm:$0xff]  ;;  %v1195_v62 = vld [vmem:[%s2480_s1 + $0x7d8] sm:$0xff] }
  0x4d   : > { %1294 = vmatpush1.bf16.msra.mxu1 %v1293_v40  ;;  %825 = vmatmul.mubr.f32.gmra.mrb[2].mxu0 %v1971_v2  ;;  %v1175_v40 = vld [vmem:[%s2480_s1 + $0x738] sm:$0xff]  ;;  %v319_v2 = vld [vmem:[%s1854_s27 + $0x10] sm:$0xfe]  ;;  %v1453_v5 = vpack.c.bf16 %v275_v56, %v273_v16  ;;  %v321_v26 = vld [vmem:[%s1854_s27 + $0x20] sm:$0xfe] }
  0x4e   : > { %1430 = vmatpush1.bf16.msra.mxu0 %v1429_v41  ;;  %1296 = vmatprep.subr.bf16.mxu1 %v1295_v42  ;;  %v274_v41 = vld [vmem:[%s2480_s1 + $0x2e8] sm:$0xff]  ;;  %v495_v42 = vrot.slane %v322_v37, 1  ;;  %v486_v59 = vrot.slane %v319_v2, 1  ;;  %v281_v30 = vld [vmem:[%s2480_s1 + $0x320] sm:$0xff]  ;;  %v492_v31 = vrot.slane %v321_v26, 1  ;;  %v1187_v37 = vld [vmem:[%s2480_s1 + $0x798] sm:$0xff] }
  0x4f   : > { %1432 = vmatprep.subr.bf16.mxu0 %v1431_v46  ;;  %v498_v46 = vsel %vm479_vm0, %v484_v20, %v497_v36  ;;  %v489_v20 = vrot.slane %v320_v50, 1  ;;  %895 = vmatprep.mubr.f32.mxu0 %v174_v51  ;;  %v1185_v36 = vld [vmem:[%s2480_s1 + $0x788] sm:$0xff]  ;;  %v287_v51 = vld [vmem:[%s2480_s1 + $0x350] sm:$0xff]  ;;  %v1188_v56 = vld [vmem:[%s2480_s1 + $0x7a0] sm:$0xff] }
  0x50   : > { %588 = vmatprep.mubr.f32.mxu1 %v498_v46  ;;  %v496_v48 = vsel %vm479_vm0, %v481_v12, %v495_v42  ;;  %v1451_v12 = vpack.c.bf16 %v276_v43, %v274_v41  ;;  %v1325_v42 = vpack.c.bf16 %v1182_v29, %v1180_v23  ;;  %v1184_v46 = vld [vmem:[%s2480_s1 + $0x780] sm:$0xff]  ;;  %v290_v16 = vld [vmem:[%s2480_s1 + $0x368] sm:$0xff]  ;;  %v1199_v13 = vld [vmem:[%s2480_s1 + $0x7f8] sm:$0xff] }
  0x51   : > { %1298 = vmatpush1.bf16.msra.mxu1 %v1297_v52  ;;  %v1449_v52 = vpack.c.bf16 %v271_v35, %v269_v34  ;;  %v1459_v34 = vpack.c.bf16 %v284_v19, %v282_v18  ;;  %v283_v35 = vld [vmem:[%s2480_s1 + $0x330] sm:$0xff]  ;;  %v293_v8 = vld [vmem:[%s2480_s1 + $0x380] sm:$0xff]  ;;  %v1201_v29 = vld [vmem:[%s2480_s1 + $0x808] sm:$0xff] }
  0x52   : > { %1434 = vmatpush1.bf16.msra.mxu0 %v1433_v53  ;;  %1300 = vmatprep.subr.bf16.mxu1 %v1299_v54  ;;  %v1315_v53 = vpack.c.bf16 %v1175_v40, %v1173_v39  ;;  %v490_v54 = vrot.slane %v2179_v49, 1  ;;  %v286_v39 = vld [vmem:[%s2480_s1 + $0x348] sm:$0xff]  ;;  %v288_v40 = vld [vmem:[%s2480_s1 + $0x358] sm:$0xff]  ;;  %v1198_v23 = vld [vmem:[%s2480_s1 + $0x7f0] sm:$0xff] }
  0x53   : > { %1436 = vmatprep.subr.bf16.mxu0 %v1435_v58  ;;  %v1179_v58 = vld [vmem:[%s2480_s1 + $0x758] sm:$0xff]  ;;  %589 = vmatmul.mubr.f32.gmra.mrb[2].mxu1 %v496_v48  ;;  %v285_v48 = vld [vmem:[%s2480_s1 + $0x340] sm:$0xff]  ;;  %v1463_v50 = vpack.c.bf16 %v288_v40, %v286_v39  ;;  %v303_v40 = vld [vmem:[%s2480_s1 + $0x3d0] sm:$0xff] }
  0x54   : > { %v491_v63 = vsel %vm479_vm0, %v489_v20, %v490_v54  ;;  %v1319_v6 = vpack.c.bf16 %v1179_v58, %v1177_v57  ;;  %v2238_v21 = vsel %vm479_vm0, %v490_v54, %v501_v9  ;;  %v292_v20 = vld [vmem:[%s2480_s1 + $0x378] sm:$0xff]  ;;  %v1465_v2 = vpack.c.bf16 %v287_v51, %v285_v48  ;;  %v1190_v57 = vld [vmem:[%s2480_s1 + $0x7b0] sm:$0xff]  ;;  %v289_v58 = vld [vmem:[%s2480_s1 + $0x360] sm:$0xff] }
  0x55   : > { %1302 = vmatpush1.bf16.msra.mxu1 %v1301_v0  ;;  %v1317_v0 = vpack.c.bf16 %v1174_v45, %v1172_v44  ;;  %659 = vmatprep.mubr.f32.mxu1 %v491_v63  ;;  %v1461_v44 = vpack.c.bf16 %v283_v35, %v281_v30  ;;  %v1327_v45 = vpack.c.bf16 %v1187_v37, %v1185_v36  ;;  %v294_v63 = vld [vmem:[%s2480_s1 + $0x388] sm:$0xff]  ;;  %v297_v26 = vld [vmem:[%s2480_s1 + $0x3a0] sm:$0xff]  ;;  %v1203_v30 = vld [vmem:[%s2480_s1 + $0x818] sm:$0xff] }
  0x56   : > { %1438 = vmatpush1.bf16.msra.mxu0 %v1437_v1  ;;  %1304 = vmatprep.subr.bf16.mxu1 %v1303_v3  ;;  %v1176_v1 = vld [vmem:[%s2480_s1 + $0x740] sm:$0xff]  ;;  %v2212_v3 = vsel %vm479_vm0, %v486_v59, %v487_v60  ;;  %v1467_v59 = vpack.c.bf16 %v292_v20, %v290_v16  ;;  %v1343_v35 = vpack.c.bf16 %v1203_v30, %v1201_v29  ;;  %v1202_v37 = vld [vmem:[%s2480_s1 + $0x810] sm:$0xff] }
  0x57   : > { %1440 = vmatprep.subr.bf16.mxu0 %v1439_v7  ;;  %v1178_v7 = vld [vmem:[%s2480_s1 + $0x750] sm:$0xff]  ;;  %v1200_v36 = vld [vmem:[%s2480_s1 + $0x800] sm:$0xff] }
  0x58   : > { %v1204_v51 = vld [vmem:[%s2480_s1 + $0x820] sm:$0xff]  ;;  %v307_v20 = vld [vmem:[%s2480_s1 + $0x3f0] sm:$0xff] }
  0x59   : > { %1306 = vmatpush1.bf16.msra.mxu1 %v1305_v14  ;;  %v1181_v14 = vld [vmem:[%s2480_s1 + $0x768] sm:$0xff] }
  0x5a   : > { %1442 = vmatpush1.bf16.msra.mxu0 %v1441_v15  ;;  %1308 = vmatprep.subr.bf16.mxu1 %v1307_v17  ;;  %v1183_v15 = vld [vmem:[%s2480_s1 + $0x778] sm:$0xff]  ;;  %v499_v17 = vrot.slane %v324_v10, 1  ;;  %v295_v10 = vld [vmem:[%s2480_s1 + $0x390] sm:$0xff] }
  0x5b   : > { %1444 = vmatprep.subr.bf16.mxu0 %v1443_v22  ;;  %v1321_v22 = vpack.c.bf16 %v1178_v7, %v1176_v1  ;;  %v1333_v1 = vpack.c.bf16 %v1190_v57, %v1188_v56  ;;  %v1194_v7 = vld [vmem:[%s2480_s1 + $0x7d0] sm:$0xff]  ;;  %v1473_v18 = vpack.c.bf16 %v295_v10, %v293_v8  ;;  %v312_v56 = vld [vmem:[%s2480_s1 + $0x418] sm:$0xff]  ;;  %v1212_v10 = vld [vmem:[%s2480_s1 + $0x860] sm:$0xff] }
  0x5c   : > { %v2244_v24 = vsel %vm479_vm0, %v487_v60, %v499_v17  ;;  %v291_v60 = vld [vmem:[%s2480_s1 + $0x370] sm:$0xff] }
  0x5d   : > { %1310 = vmatpush1.bf16.msra.mxu1 %v1309_v28  ;;  %v1323_v28 = vpack.c.bf16 %v1183_v15, %v1181_v14  ;;  %v1469_v4 = vpack.c.bf16 %v291_v60, %v289_v58  ;;  %v298_v14 = vld [vmem:[%s2480_s1 + $0x3a8] sm:$0xff]  ;;  %v300_v15 = vld [vmem:[%s2480_s1 + $0x3b8] sm:$0xff]  ;;  %v1208_v60 = vld [vmem:[%s2480_s1 + $0x840] sm:$0xff] }
  0x5e   : > { %1446 = vmatpush1.bf16.msra.mxu0 %v1445_v32  ;;  %1312 = vmatprep.subr.bf16.mxu1 %v1311_v33  ;;  %v493_v32 = vrot.slane %v2247_v25, 1  ;;  %v326_v33 = vld [vmem:[%s1854_s27 + $0x70] sm:$0x1] }
  0x5f   : > { %1448 = vmatprep.subr.bf16.mxu0 %v1447_v38  ;;  %v503_v38 = vrot.slane %v326_v33, 1  ;;  %v173_v8 = vld [vmem:[%s1854_s27 + $0x10] sm:$0xff] }
  0x60   : > { %v2274_v41 = vsel %vm479_vm0, %v492_v31, %v493_v32  ;;  %v302_v31 = vld [vmem:[%s2480_s1 + $0x3c8] sm:$0xff] }
  0x61   : > { %1314 = vmatpush1.bf16.msra.mxu1 %v1313_v47  ;;  %v2277_v43 = vsel %vm479_vm0, %v493_v32, %v503_v38  ;;  %v1186_v47 = vld [vmem:[%s2480_s1 + $0x790] sm:$0xff]  ;;  %v304_v32 = vld [vmem:[%s2480_s1 + $0x3d8] sm:$0xff]  ;;  %v301_v38 = vld [vmem:[%s2480_s1 + $0x3c0] sm:$0xff] }
  0x62   : > { %1450 = vmatpush1.bf16.msra.mxu0 %v1449_v52  ;;  %1316 = vmatprep.subr.bf16.mxu1 %v1315_v53  ;;  %v1189_v52 = vld [vmem:[%s2480_s1 + $0x7a8] sm:$0xff]  ;;  %v1191_v53 = vld [vmem:[%s2480_s1 + $0x7b8] sm:$0xff]  ;;  %v1329_v54 = vpack.c.bf16 %v1186_v47, %v1184_v46  ;;  %v1479_v39 = vpack.c.bf16 %v304_v32, %v302_v31  ;;  %v1345_v47 = vpack.c.bf16 %v1202_v37, %v1200_v36 }
  0x63   : > { %1452 = vmatprep.subr.bf16.mxu0 %v1451_v12  ;;  %v1331_v12 = vpack.c.bf16 %v1191_v53, %v1189_v52  ;;  %v308_v46 = vld [vmem:[%s2480_s1 + $0x3f8] sm:$0xff]  ;;  %v1481_v48 = vpack.c.bf16 %v303_v40, %v301_v38  ;;  %v1206_v52 = vld [vmem:[%s2480_s1 + $0x830] sm:$0xff]  ;;  %v305_v53 = vld [vmem:[%s2480_s1 + $0x3e0] sm:$0xff] }
  0x64   : > { %v1349_v57 = vpack.c.bf16 %v1206_v52, %v1204_v51  ;;  %v1485_v58 = vpack.c.bf16 %v307_v20, %v305_v53 }
  0x65   : > { %1318 = vmatpush1.bf16.msra.mxu1 %v1317_v0  ;;  %v296_v0 = vld [vmem:[%s2480_s1 + $0x398] sm:$0xff] }
  0x66   : > { %1454 = vmatpush1.bf16.msra.mxu0 %v1453_v5  ;;  %1320 = vmatprep.subr.bf16.mxu1 %v1319_v6  ;;  %v1335_v5 = vpack.c.bf16 %v1195_v62, %v1193_v61  ;;  %v1192_v6 = vld [vmem:[%s2480_s1 + $0x7c0] sm:$0xff]  ;;  %v1471_v9 = vpack.c.bf16 %v296_v0, %v294_v63  ;;  %v1210_v61 = vld [vmem:[%s2480_s1 + $0x850] sm:$0xff] }
  0x67   : > { %1456 = vmatprep.subr.bf16.mxu0 %v1455_v11  ;;  %v1197_v11 = vld [vmem:[%s2480_s1 + $0x7e8] sm:$0xff]  ;;  %v1337_v17 = vpack.c.bf16 %v1194_v7, %v1192_v6  ;;  %v309_v63 = vld [vmem:[%s2480_s1 + $0x400] sm:$0xff]  ;;  %v311_v0 = vld [vmem:[%s2480_s1 + $0x410] sm:$0xff] }
  0x68   : > { %v1339_v19 = vpack.c.bf16 %v1199_v13, %v1197_v11  ;;  %v314_v6 = vld [vmem:[%s2480_s1 + $0x428] sm:$0xff]  ;;  %v316_v7 = vld [vmem:[%s2480_s1 + $0x438] sm:$0xff]  ;;  %v1214_v11 = vld [vmem:[%s2480_s1 + $0x870] sm:$0xff] }
  0x69   : > { %1322 = vmatpush1.bf16.msra.mxu1 %v1321_v22  ;;  %v1196_v22 = vld [vmem:[%s2480_s1 + $0x7e0] sm:$0xff] }
  0x6a   : > { %1458 = vmatpush1.bf16.msra.mxu0 %v1457_v27  ;;  %1324 = vmatprep.subr.bf16.mxu1 %v1323_v28  ;;  %v1475_v27 = vpack.c.bf16 %v300_v15, %v298_v14  ;;  %v299_v28 = vld [vmem:[%s2480_s1 + $0x3b0] sm:$0xff]  ;;  %v1341_v33 = vpack.c.bf16 %v1198_v23, %v1196_v22  ;;  %v313_v14 = vld [vmem:[%s2480_s1 + $0x420] sm:$0xff] }
  0x6b   : > { %1460 = vmatprep.subr.bf16.mxu0 %v1459_v34  ;;  %v1477_v34 = vpack.c.bf16 %v299_v28, %v297_v26  ;;  %v315_v15 = vld [vmem:[%s2480_s1 + $0x430] sm:$0xff]  ;;  %v175_v22 = vld [vmem:[%s1854_s27 + $0x20] sm:$0xff]  ;;  %s1222_s27 = sshll.u32 %s2485_s13, 5 }
  0x6c   : > { %s170_s5 = scalar_lea.vmem %s2482_s3, %s1222_s27 }
  0x6d   : > { %1326 = vmatpush1.bf16.msra.mxu1 %v1325_v42  ;;  %v1205_v42 = vld [vmem:[%s2480_s1 + $0x828] sm:$0xff] }
  0x6e   : > { %1462 = vmatpush1.bf16.msra.mxu0 %v1461_v44  ;;  %1328 = vmatprep.subr.bf16.mxu1 %v1327_v45  ;;  %v1207_v44 = vld [vmem:[%s2480_s1 + $0x838] sm:$0xff]  ;;  %v306_v45 = vld [vmem:[%s2480_s1 + $0x3e8] sm:$0xff] }
  0x6f   : > { %1464 = vmatprep.subr.bf16.mxu0 %v1463_v50  ;;  %v1347_v50 = vpack.c.bf16 %v1207_v44, %v1205_v42  ;;  %v1483_v16 = vpack.c.bf16 %v308_v46, %v306_v45 }
  0x71   : > { %1330 = vmatpush1.bf16.msra.mxu1 %v1329_v54  ;;  %v1209_v54 = vld [vmem:[%s2480_s1 + $0x848] sm:$0xff] }
  0x72   : > { %1466 = vmatpush1.bf16.msra.mxu0 %v1465_v2  ;;  %1332 = vmatprep.subr.bf16.mxu1 %v1331_v12  ;;  %v1211_v2 = vld [vmem:[%s2480_s1 + $0x858] sm:$0xff]  ;;  %v310_v12 = vld [vmem:[%s2480_s1 + $0x408] sm:$0xff] }
  0x73   : > { %1468 = vmatprep.subr.bf16.mxu0 %v1467_v59  ;;  %v1351_v59 = vpack.c.bf16 %v1211_v2, %v1209_v54  ;;  %v1487_v62 = vpack.c.bf16 %v312_v56, %v310_v12 }
  0x75   : > { %1334 = vmatpush1.bf16.msra.mxu1 %v1333_v1  ;;  %v1213_v1 = vld [vmem:[%s2480_s1 + $0x868] sm:$0xff] }
  0x76   : > { %1470 = vmatpush1.bf16.msra.mxu0 %v1469_v4  ;;  %1336 = vmatprep.subr.bf16.mxu1 %v1335_v5  ;;  %v1215_v4 = vld [vmem:[%s2480_s1 + $0x878] sm:$0xff]  ;;  %v1353_v5 = vpack.c.bf16 %v1210_v61, %v1208_v60 }
  0x77   : > { %1472 = vmatprep.subr.bf16.mxu0 %v1471_v9  ;;  %v1489_v9 = vpack.c.bf16 %v311_v0, %v309_v63  ;;  %v1355_v13 = vpack.c.bf16 %v1215_v4, %v1213_v1 }
  0x79   : > { %1338 = vmatpush1.bf16.msra.mxu1 %v1337_v17  ;;  %v1491_v17 = vpack.c.bf16 %v316_v7, %v314_v6 }
  0x7a   : > { %1474 = vmatpush1.bf16.msra.mxu0 %v1473_v18  ;;  %1340 = vmatprep.subr.bf16.mxu1 %v1339_v19  ;;  %v1357_v18 = vpack.c.bf16 %v1214_v11, %v1212_v10  ;;  %v1493_v19 = vpack.c.bf16 %v315_v15, %v313_v14 }
  0x7b   : > { %1476 = vmatprep.subr.bf16.mxu0 %v1475_v27 }
  0x7d   : > { %1342 = vmatpush1.bf16.msra.mxu1 %v1341_v33 }
  0x7e   : > { %1478 = vmatpush1.bf16.msra.mxu0 %v1477_v34  ;;  %1344 = vmatprep.subr.bf16.mxu1 %v1343_v35 }
  0x7f   : > { %1480 = vmatprep.subr.bf16.mxu0 %v1479_v39 }
  0x81   : > { %1346 = vmatpush1.bf16.msra.mxu1 %v1345_v47 }
  0x82   : > { %1482 = vmatpush1.bf16.msra.mxu0 %v1481_v48  ;;  %1348 = vmatprep.subr.bf16.mxu1 %v1347_v50 }
  0x83   : > { %1484 = vmatprep.subr.bf16.mxu0 %v1483_v16 }
  0x85   : > { %1350 = vmatpush1.bf16.msra.mxu1 %v1349_v57 }
  0x86   : > { %1486 = vmatpush1.bf16.msra.mxu0 %v1485_v58  ;;  %1352 = vmatprep.subr.bf16.mxu1 %v1351_v59 }
  0x87   : > { %1488 = vmatprep.subr.bf16.mxu0 %v1487_v62 }
  0x88   : > { %660 = vmatmul.mubr.f32.vlgmr.msra.gmra.mrb[0].mxu1 %v2212_v3  ;;  %v1533_v3 = vmov 0.0  }
  0x89   : > { %896 = vmatmul.mubr.f32.vlgmr.msra.gmra.mrb[0].mxu0 %v173_v8  ;;  %1354 = vmatpush1.bf16.msra.mxu1 %v1353_v5 }
  0x8a   : > { %1490 = vmatpush1.bf16.msra.mxu0 %v1489_v9  ;;  %665 = vmatprep.mubr.f32.mxu1 %v2238_v21 }
  0x8b   : > { %901 = vmatprep.mubr.f32.mxu0 %v2179_v49  ;;  %1356 = vmatprep.subr.bf16.mxu1 %v1355_v13  ;;  %v987_v49 = vlaneseq }
  0x8c   : > { %666 = vmatmul.mubr.f32.gmra.mrb[2].mxu1 %v2244_v24  ;;  %1492 = vmatprep.subr.bf16.mxu0 %v1491_v17  ;;  %v985_v24 = vld [vmem:[%s2481_s2] sm:$0x3] }
  0x8d   : > { %902 = vmatmul.mubr.f32.gmra.mrb[2].mxu0 %v2188_v55  ;;  %1358 = vmatpush1.bf16.msra.mxu1 %v1357_v18  ;;  %v988_v21 = vshrl.u32 %v987_v49, 7 }
  0x8e   : > { %1494 = vmatpush1.bf16.msra.mxu0 %v1493_v19  ;;  %736 = vmatprep.mubr.f32.mxu1 %v1533_v3 }
  0x8f   : > { %972 = vmatprep.mubr.f32.mxu0 %v1533_v3  ;;  %v989_v55 = vsub.s32 0, %v988_v21  ;;  %v993_v23 = vsub.s32 1, %v988_v21 }
  0x90   : > { %1216 = vmatmul.mubr.msk.f32.vlgmr.msra.gmra.mrb[0].mxu1 %vm513_vm1, %v2274_v41 }
  0x91   : > { %1218 = vmatmul.mubr.msk.f32.vlgmr.msra.gmra.mrb[0].mxu0 %vm513_vm1, %v175_v22  ;;  %742 = vmatprep.mubr.f32.mxu1 %v1533_v3  ;;  %v990_v27 = vrot.slane %v985_v24, %v989_v55  ;;  %v994_v29 = vrot.slane %v985_v24, %v993_v23 }
  0x92   : > { %978 = vmatprep.mubr.f32.mxu0 %v1533_v3 }
  0x94   : > { %1217 = vmatmul.mubr.msk.f32.gmra.mrb[2].mxu1 %vm513_vm1, %v2277_v43 }
  0x95   : > { %1219 = vmatmul.mubr.msk.f32.gmra.mrb[2].mxu0 %vm513_vm1, %v2247_v25 }
 0x163   : > { %v738_v26 = vpop.f32.mrb[0].mxu1 }
 0x164   : > { %v974_v28 = vpop.f32.mrb[0].mxu0  ;;  %v740_v41 = vpop.f32.mrb[1].mxu1 }
 0x165   : > { %v1495_v30 = vadd.f32 %v974_v28, %v738_v26  ;;  %v976_v31 = vpop.f32.mrb[1].mxu0 }
 0x166   : > { %v1496_v32 = vadd.f32 %v976_v31, %v740_v41 }
 0x167   : > { %v997_v43 = vadd.f32 %v1495_v30, %v990_v27  ;;  %v744_v33 = vpop.f32.mrb[2].mxu1 }
 0x168   : > { %v998_v25 = vadd.f32 %v1496_v32, %v994_v29  ;;  %v980_v34 = vpop.f32.mrb[2].mxu0  ;;  %v746_v35 = vpop.f32.mrb[3].mxu1 }
 0x169   : > { %vm1001_vm2 = vcmp.ge.f32.partialorder %v997_v43, 0.0  ;;  %v1005_v36 = vmul.f32 0.2, %v997_v43  ;;  %v1497_v37 = vadd.f32 %v980_v34, %v744_v33  ;;  %v982_v38 = vpop.f32.mrb[3].mxu0 }
 0x16a   : > { %vm1002_vm3 = vcmp.ge.f32.partialorder %v998_v25, 0.0  ;;  %v1006_v39 = vmul.f32 0.2, %v998_v25  ;;  %v1498_v40 = vadd.f32 %v982_v38, %v746_v35 }
 0x16b   : > { %v1009_v42 = vsel %vm1001_vm2, %v997_v43, %v1005_v36  ;;  %v999_v44 = vadd.f32 %v1497_v37, %v990_v27 }
 0x16c   : > { %1013 = vst [vmem:[%s170_s5] sm:$0xff] %v1009_v42  ;;  %v1010_v45 = vsel %vm1002_vm3, %v998_v25, %v1006_v39  ;;  %v1000_v46 = vadd.f32 %v1498_v40, %v994_v29 }
 0x16d   : > { %1014 = vst [vmem:[%s170_s5 + $0x8] sm:$0xff] %v1010_v45  ;;  %vm1003_vm4 = vcmp.ge.f32.partialorder %v999_v44, 0.0  ;;  %v1007_v47 = vmul.f32 0.2, %v999_v44 }
 0x16e   : > { %vm1004_vm5 = vcmp.ge.f32.partialorder %v1000_v46, 0.0  ;;  %v1008_v48 = vmul.f32 0.2, %v1000_v46 }
 0x16f   : > { %v1011_v50 = vsel %vm1003_vm4, %v999_v44, %v1007_v47 }
 0x170   : > { %1015 = vst [vmem:[%s170_s5 + $0x10] sm:$0xff] %v1011_v50  ;;  %v1012_v51 = vsel %vm1004_vm5, %v1000_v46, %v1008_v48 }
 0x171   : > { %1016 = vst [vmem:[%s170_s5 + $0x18] sm:$0xff] %v1012_v51 }
 0x172 PF: > { %s13_s12 = sadd.s32 1, %s1531_s12  }
 0x173   : > { %p10_p4 = scmp.ge.s32.totalorder %s13_s12, 4  }
 0x175   :  { %12 = sbr.rel (!%p10_p4) target bundleno = 1 (0x1), region = 63 }

// kernel: _lambda_.6
= control target key start
LH: loop header
LB: loop body
LE: loop exit
PB: predicated region body
PF: predicated region fallthrough
CT: control target
= control target key end

     0   :  { %vm337_vm0 = vcmask 1046528   ;;  %vm357_vm1 = vcmask 523264   ;;  %vm1513_vm2 = vcmask 261120   ;;  %s3799_s1 = inlined_call_operand.vmem [shape: f32[2,576,256], index: 1, kind: input, shape index: {}]   ;;  %s3800_s0 = inlined_call_operand.vmem [shape: f32[2,9,576], index: 0, kind: input, shape index: {}]   ;;  %s3801_s2 = inlined_call_operand.vmem [shape: f32[256,32], index: 2, kind: input, shape index: {}]   ;;  %s3802_s3 = inlined_call_operand.vmem [shape: f32[32,256], index: 3, kind: input, shape index: {}]   ;;  %s3803_s4 = inlined_call_operand.vmem [shape: f32[1,32], index: 4, kind: input, shape index: {}]   ;;  %s3804_s5 = inlined_call_operand.vmem [shape: f32[1,32], index: 5, kind: input, shape index: {}]   ;;  %s3805_s6 = inlined_call_operand.vmem [shape: f32[2,8,256], index: 6, kind: output, shape index: {}]  }
   0x1   :  { %v1708_v0 = vld [vmem:[%s3799_s1 + $0x488] sm:$0xff]  ;;  %v1710_v1 = vld [vmem:[%s3799_s1 + $0x498] sm:$0xff]  ;;  %v1707_v2 = vld [vmem:[%s3799_s1 + $0x480] sm:$0xff] }
   0x2   :  { %v1944_v3 = vpack.c.bf16 %v1710_v1, %v1708_v0  ;;  %v1709_v4 = vld [vmem:[%s3799_s1 + $0x490] sm:$0xff]  ;;  %v1712_v5 = vld [vmem:[%s3799_s1 + $0x4a8] sm:$0xff]  ;;  %v1714_v6 = vld [vmem:[%s3799_s1 + $0x4b8] sm:$0xff] }
   0x3   :  { %v1946_v7 = vpack.c.bf16 %v1709_v4, %v1707_v2  ;;  %v1948_v8 = vpack.c.bf16 %v1714_v6, %v1712_v5  ;;  %v1711_v9 = vld [vmem:[%s3799_s1 + $0x4a0] sm:$0xff]  ;;  %v1713_v10 = vld [vmem:[%s3799_s1 + $0x4b0] sm:$0xff]  ;;  %v1716_v11 = vld [vmem:[%s3799_s1 + $0x4c8] sm:$0xff] }
   0x4   :  { %1945 = vmatprep.subr.bf16.mxu0 %v1944_v3  ;;  %2233 = vmatprep.subr.bf16.mxu1 %v1944_v3  ;;  %v1718_v12 = vld [vmem:[%s3799_s1 + $0x4d8] sm:$0xff]  ;;  %v1950_v13 = vpack.c.bf16 %v1713_v10, %v1711_v9  ;;  %v1715_v15 = vld [vmem:[%s3799_s1 + $0x4c0] sm:$0xff]  ;;  %v1717_v16 = vld [vmem:[%s3799_s1 + $0x4d0] sm:$0xff] }
   0x5   :  { %1947 = vmatpush1.bf16.msra.mxu0 %v1946_v7  ;;  %2235 = vmatpush1.bf16.msra.mxu1 %v1946_v7  ;;  %v1952_v14 = vpack.c.bf16 %v1718_v12, %v1716_v11  ;;  %v1720_v17 = vld [vmem:[%s3799_s1 + $0x4e8] sm:$0xff]  ;;  %v1722_v18 = vld [vmem:[%s3799_s1 + $0x4f8] sm:$0xff]  ;;  %v1954_v19 = vpack.c.bf16 %v1717_v16, %v1715_v15  ;;  %v1719_v21 = vld [vmem:[%s3799_s1 + $0x4e0] sm:$0xff] }
   0x6   :  { %1949 = vmatprep.subr.bf16.mxu0 %v1948_v8  ;;  %2237 = vmatprep.subr.bf16.mxu1 %v1948_v8  ;;  %v1956_v20 = vpack.c.bf16 %v1722_v18, %v1720_v17  ;;  %v1721_v22 = vld [vmem:[%s3799_s1 + $0x4f0] sm:$0xff]  ;;  %v1724_v23 = vld [vmem:[%s3799_s1 + $0x508] sm:$0xff]  ;;  %v1726_v24 = vld [vmem:[%s3799_s1 + $0x518] sm:$0xff] }
   0x7   :  { %v1958_v25 = vpack.c.bf16 %v1721_v22, %v1719_v21  ;;  %v1960_v26 = vpack.c.bf16 %v1726_v24, %v1724_v23  ;;  %v1723_v27 = vld [vmem:[%s3799_s1 + $0x500] sm:$0xff]  ;;  %v1725_v28 = vld [vmem:[%s3799_s1 + $0x510] sm:$0xff]  ;;  %v1728_v29 = vld [vmem:[%s3799_s1 + $0x528] sm:$0xff] }
   0x8   :  { %v1730_v30 = vld [vmem:[%s3799_s1 + $0x538] sm:$0xff]  ;;  %v1962_v31 = vpack.c.bf16 %v1725_v28, %v1723_v27  ;;  %v1727_v33 = vld [vmem:[%s3799_s1 + $0x520] sm:$0xff]  ;;  %v1729_v34 = vld [vmem:[%s3799_s1 + $0x530] sm:$0xff] }
   0x9   :  { %1951 = vmatpush1.bf16.msra.mxu0 %v1950_v13  ;;  %2239 = vmatpush1.bf16.msra.mxu1 %v1950_v13  ;;  %v1964_v32 = vpack.c.bf16 %v1730_v30, %v1728_v29  ;;  %v1732_v35 = vld [vmem:[%s3799_s1 + $0x548] sm:$0xff]  ;;  %v1734_v36 = vld [vmem:[%s3799_s1 + $0x558] sm:$0xff]  ;;  %v1966_v37 = vpack.c.bf16 %v1729_v34, %v1727_v33  ;;  %v1731_v38 = vld [vmem:[%s3799_s1 + $0x540] sm:$0xff] }
   0xa   :  { %1953 = vmatprep.subr.bf16.mxu0 %v1952_v14  ;;  %2241 = vmatprep.subr.bf16.mxu1 %v1952_v14  ;;  %v1968_v39 = vpack.c.bf16 %v1734_v36, %v1732_v35  ;;  %v1733_v40 = vld [vmem:[%s3799_s1 + $0x550] sm:$0xff]  ;;  %v173_v41 = vld [vmem:[%s3800_s0 + $0x8] sm:$0xfe]  ;;  %v1738_v44 = vld [vmem:[%s3799_s1 + $0x578] sm:$0xff] }
   0xb   :  { %v178_v42 = vld [vmem:[%s3800_s0 + $0x30] sm:$0x1]  ;;  %v1736_v43 = vld [vmem:[%s3799_s1 + $0x568] sm:$0xff]  ;;  %v341_v45 = vrot.slane %v173_v41, 1  ;;  %v1859_v47 = vld [vmem:[%s3800_s0 + $0x58] sm:$0xfe]  ;;  %v1970_v50 = vpack.c.bf16 %v1733_v40, %v1731_v38 }
   0xc   :  { %v342_v46 = vrot.slane %v178_v42, 1  ;;  %v1864_v48 = vld [vmem:[%s3800_s0 + $0x80] sm:$0x1]  ;;  %v844_v49 = vrot.slane %v1859_v47, 1  ;;  %v1972_v53 = vpack.c.bf16 %v1738_v44, %v1736_v43  ;;  %v1737_v55 = vld [vmem:[%s3799_s1 + $0x570] sm:$0xff]  ;;  %v1740_v56 = vld [vmem:[%s3799_s1 + $0x588] sm:$0xff] }
   0xd   :  { %1955 = vmatpush1.bf16.msra.mxu0 %v1954_v19  ;;  %2243 = vmatpush1.bf16.msra.mxu1 %v1954_v19  ;;  %v845_v52 = vrot.slane %v1864_v48, 1  ;;  %v1735_v54 = vld [vmem:[%s3799_s1 + $0x560] sm:$0xff]  ;;  %v1742_v57 = vld [vmem:[%s3799_s1 + $0x598] sm:$0xff]  ;;  %v1741_v62 = vld [vmem:[%s3799_s1 + $0x590] sm:$0xff] }
   0xe   :  { %1957 = vmatprep.subr.bf16.mxu0 %v1956_v20  ;;  %2245 = vmatprep.subr.bf16.mxu1 %v1956_v20  ;;  %v343_v51 = vsel %vm337_vm0, %v341_v45, %v342_v46  ;;  %v1974_v59 = vpack.c.bf16 %v1737_v55, %v1735_v54  ;;  %v1976_v60 = vpack.c.bf16 %v1742_v57, %v1740_v56  ;;  %v1739_v61 = vld [vmem:[%s3799_s1 + $0x580] sm:$0xff]  ;;  %v1744_v63 = vld [vmem:[%s3799_s1 + $0x5a8] sm:$0xff]  ;;  %v1746_v0 = vld [vmem:[%s3799_s1 + $0x5b8] sm:$0xff] }
   0xf   :  { %424 = vmatprep.mubr.f32.mxu0 %v343_v51  ;;  %v846_v58 = vsel %vm337_vm0, %v844_v49, %v845_v52  ;;  %v1978_v1 = vpack.c.bf16 %v1741_v62, %v1739_v61  ;;  %v1980_v2 = vpack.c.bf16 %v1746_v0, %v1744_v63  ;;  %v1743_v3 = vld [vmem:[%s3799_s1 + $0x5a0] sm:$0xff]  ;;  %v1745_v4 = vld [vmem:[%s3799_s1 + $0x5b0] sm:$0xff]  ;;  %v1748_v5 = vld [vmem:[%s3799_s1 + $0x5c8] sm:$0xff] }
  0x10   :  { %926 = vmatprep.mubr.f32.mxu1 %v846_v58  ;;  %v1750_v6 = vld [vmem:[%s3799_s1 + $0x5d8] sm:$0xff]  ;;  %v1982_v7 = vpack.c.bf16 %v1745_v4, %v1743_v3  ;;  %v1747_v9 = vld [vmem:[%s3799_s1 + $0x5c0] sm:$0xff]  ;;  %v1749_v10 = vld [vmem:[%s3799_s1 + $0x5d0] sm:$0xff] }
  0x11   :  { %1959 = vmatpush1.bf16.msra.mxu0 %v1958_v25  ;;  %2247 = vmatpush1.bf16.msra.mxu1 %v1958_v25  ;;  %v1984_v8 = vpack.c.bf16 %v1750_v6, %v1748_v5  ;;  %v1752_v11 = vld [vmem:[%s3799_s1 + $0x5e8] sm:$0xff]  ;;  %v1754_v12 = vld [vmem:[%s3799_s1 + $0x5f8] sm:$0xff]  ;;  %v1986_v13 = vpack.c.bf16 %v1749_v10, %v1747_v9  ;;  %v1751_v15 = vld [vmem:[%s3799_s1 + $0x5e0] sm:$0xff] }
  0x12   :  { %1961 = vmatprep.subr.bf16.mxu0 %v1960_v26  ;;  %2249 = vmatprep.subr.bf16.mxu1 %v1960_v26  ;;  %v1988_v14 = vpack.c.bf16 %v1754_v12, %v1752_v11  ;;  %v1753_v16 = vld [vmem:[%s3799_s1 + $0x5f0] sm:$0xff]  ;;  %v1756_v17 = vld [vmem:[%s3799_s1 + $0x608] sm:$0xff]  ;;  %v1758_v18 = vld [vmem:[%s3799_s1 + $0x618] sm:$0xff] }
  0x13   :  { %v1990_v19 = vpack.c.bf16 %v1753_v16, %v1751_v15  ;;  %v1992_v20 = vpack.c.bf16 %v1758_v18, %v1756_v17  ;;  %v1755_v21 = vld [vmem:[%s3799_s1 + $0x600] sm:$0xff]  ;;  %v1757_v22 = vld [vmem:[%s3799_s1 + $0x610] sm:$0xff]  ;;  %v1760_v23 = vld [vmem:[%s3799_s1 + $0x628] sm:$0xff] }
  0x14   :  { %v1762_v24 = vld [vmem:[%s3799_s1 + $0x638] sm:$0xff]  ;;  %v1994_v25 = vpack.c.bf16 %v1757_v22, %v1755_v21  ;;  %v1759_v27 = vld [vmem:[%s3799_s1 + $0x620] sm:$0xff]  ;;  %v1761_v28 = vld [vmem:[%s3799_s1 + $0x630] sm:$0xff] }
  0x15   :  { %1963 = vmatpush1.bf16.msra.mxu0 %v1962_v31  ;;  %2251 = vmatpush1.bf16.msra.mxu1 %v1962_v31  ;;  %v1996_v26 = vpack.c.bf16 %v1762_v24, %v1760_v23  ;;  %v1764_v29 = vld [vmem:[%s3799_s1 + $0x648] sm:$0xff]  ;;  %v1766_v30 = vld [vmem:[%s3799_s1 + $0x658] sm:$0xff]  ;;  %v1998_v31 = vpack.c.bf16 %v1761_v28, %v1759_v27  ;;  %v1763_v33 = vld [vmem:[%s3799_s1 + $0x640] sm:$0xff] }
  0x16   :  { %1965 = vmatprep.subr.bf16.mxu0 %v1964_v32  ;;  %2253 = vmatprep.subr.bf16.mxu1 %v1964_v32  ;;  %v2000_v32 = vpack.c.bf16 %v1766_v30, %v1764_v29  ;;  %v1765_v34 = vld [vmem:[%s3799_s1 + $0x650] sm:$0xff]  ;;  %v1768_v35 = vld [vmem:[%s3799_s1 + $0x668] sm:$0xff]  ;;  %v1770_v36 = vld [vmem:[%s3799_s1 + $0x678] sm:$0xff] }
  0x17   :  { %v2002_v38 = vpack.c.bf16 %v1765_v34, %v1763_v33  ;;  %v1858_v40 = vld [vmem:[%s3800_s0 + $0x50] sm:$0xfe]  ;;  %v1863_v41 = vld [vmem:[%s3800_s0 + $0x78] sm:$0x1]  ;;  %v2004_v42 = vpack.c.bf16 %v1770_v36, %v1768_v35  ;;  %v1767_v43 = vld [vmem:[%s3799_s1 + $0x660] sm:$0xff] }
  0x18   :  { %v1769_v44 = vld [vmem:[%s3799_s1 + $0x670] sm:$0xff]  ;;  %v1772_v45 = vld [vmem:[%s3799_s1 + $0x688] sm:$0xff]  ;;  %v1774_v46 = vld [vmem:[%s3799_s1 + $0x698] sm:$0xff]  ;;  %v841_v49 = vrot.slane %v1858_v40, 1 }
  0x19   :  { %1967 = vmatpush1.bf16.msra.mxu0 %v1966_v37  ;;  %2255 = vmatpush1.bf16.msra.mxu1 %v1966_v37  ;;  %v172_v37 = vld [vmem:[%s3800_s0] sm:$0xfe]  ;;  %v175_v51 = vld [vmem:[%s3800_s0 + $0x18] sm:$0xfe]  ;;  %v2006_v52 = vpack.c.bf16 %v1769_v44, %v1767_v43  ;;  %v1861_v54 = vld [vmem:[%s3800_s0 + $0x68] sm:$0xfe]  ;;  %v2008_v56 = vpack.c.bf16 %v1774_v46, %v1772_v45 }
  0x1a   :  { %1969 = vmatprep.subr.bf16.mxu0 %v1968_v39  ;;  %2257 = vmatprep.subr.bf16.mxu1 %v1968_v39  ;;  %v177_v39 = vld [vmem:[%s3800_s0 + $0x28] sm:$0x1]  ;;  %v338_v47 = vrot.slane %v172_v37, 1  ;;  %v1866_v55 = vld [vmem:[%s3800_s0 + $0x90] sm:$0x1]  ;;  %v1771_v57 = vld [vmem:[%s3799_s1 + $0x680] sm:$0xff] }
  0x1b   :  { %v339_v48 = vrot.slane %v177_v39, 1  ;;  %v1773_v58 = vld [vmem:[%s3799_s1 + $0x690] sm:$0xff]  ;;  %v347_v61 = vrot.slane %v175_v51, 1  ;;  %v850_v63 = vrot.slane %v1861_v54, 1  ;;  %v851_v0 = vrot.slane %v1866_v55, 1  ;;  %v1775_v5 = vld [vmem:[%s3799_s1 + $0x6a0] sm:$0xff] }
  0x1c   :  { %v1777_v6 = vld [vmem:[%s3799_s1 + $0x6b0] sm:$0xff]  ;;  %v1784_v15 = vld [vmem:[%s3799_s1 + $0x6e8] sm:$0xff]  ;;  %v1786_v16 = vld [vmem:[%s3799_s1 + $0x6f8] sm:$0xff] }
  0x1d   :  { %1971 = vmatpush1.bf16.msra.mxu0 %v1970_v50  ;;  %2259 = vmatpush1.bf16.msra.mxu1 %v1970_v50  ;;  %v842_v50 = vrot.slane %v1863_v41, 1  ;;  %v852_v10 = vsel %vm337_vm0, %v850_v63, %v851_v0  ;;  %v2014_v11 = vpack.c.bf16 %v1777_v6, %v1775_v5  ;;  %v2020_v18 = vpack.c.bf16 %v1786_v16, %v1784_v15  ;;  %v1788_v21 = vld [vmem:[%s3799_s1 + $0x708] sm:$0xff]  ;;  %v1790_v22 = vld [vmem:[%s3799_s1 + $0x718] sm:$0xff]  ;;  %v1795_v37 = vld [vmem:[%s3799_s1 + $0x740] sm:$0xff] }
  0x1e   :  { %1973 = vmatprep.subr.bf16.mxu0 %v1972_v53  ;;  %2261 = vmatprep.subr.bf16.mxu1 %v1972_v53  ;;  %v180_v53 = vld [vmem:[%s3800_s0 + $0x40] sm:$0x1]  ;;  %v2024_v24 = vpack.c.bf16 %v1790_v22, %v1788_v21  ;;  %v1792_v27 = vld [vmem:[%s3799_s1 + $0x728] sm:$0xff]  ;;  %v1794_v28 = vld [vmem:[%s3799_s1 + $0x738] sm:$0xff] }
  0x1f   :  { %v348_v62 = vrot.slane %v180_v53, 1  ;;  %v843_v3 = vsel %vm337_vm0, %v841_v49, %v842_v50  ;;  %v2028_v30 = vpack.c.bf16 %v1794_v28, %v1792_v27  ;;  %v1796_v33 = vld [vmem:[%s3799_s1 + $0x748] sm:$0xff]  ;;  %v1798_v34 = vld [vmem:[%s3799_s1 + $0x758] sm:$0xff]  ;;  %v1799_v43 = vld [vmem:[%s3799_s1 + $0x760] sm:$0xff] }
  0x20   :  { %v2032_v36 = vpack.c.bf16 %v1798_v34, %v1796_v33  ;;  %v1800_v39 = vld [vmem:[%s3799_s1 + $0x768] sm:$0xff]  ;;  %v1802_v40 = vld [vmem:[%s3799_s1 + $0x778] sm:$0xff]  ;;  %v1801_v44 = vld [vmem:[%s3799_s1 + $0x770] sm:$0xff] }
  0x21   :  { %1975 = vmatpush1.bf16.msra.mxu0 %v1974_v59  ;;  %2263 = vmatpush1.bf16.msra.mxu1 %v1974_v59  ;;  %v1776_v59 = vld [vmem:[%s3799_s1 + $0x6a8] sm:$0xff]  ;;  %v349_v9 = vsel %vm337_vm0, %v347_v61, %v348_v62  ;;  %v1806_v46 = vld [vmem:[%s3799_s1 + $0x798] sm:$0xff]  ;;  %v1803_v49 = vld [vmem:[%s3799_s1 + $0x780] sm:$0xff] }
  0x22   :  { %1977 = vmatprep.subr.bf16.mxu0 %v1976_v60  ;;  %2265 = vmatprep.subr.bf16.mxu1 %v1976_v60  ;;  %v1778_v60 = vld [vmem:[%s3799_s1 + $0x6b8] sm:$0xff]  ;;  %v1804_v45 = vld [vmem:[%s3799_s1 + $0x788] sm:$0xff]  ;;  %v1805_v50 = vld [vmem:[%s3799_s1 + $0x790] sm:$0xff] }
  0x23   :  { %v2012_v4 = vpack.c.bf16 %v1778_v60, %v1776_v59  ;;  %v1808_v51 = vld [vmem:[%s3799_s1 + $0x7a8] sm:$0xff]  ;;  %v2042_v53 = vpack.c.bf16 %v1805_v50, %v1803_v49  ;;  %v1807_v55 = vld [vmem:[%s3799_s1 + $0x7a0] sm:$0xff]  ;;  %v1813_v62 = vld [vmem:[%s3799_s1 + $0x7d0] sm:$0xff] }
  0x24   :  { %v1811_v61 = vld [vmem:[%s3799_s1 + $0x7c0] sm:$0xff]  ;;  %v1816_v63 = vld [vmem:[%s3799_s1 + $0x7e8] sm:$0xff]  ;;  %v1818_v0 = vld [vmem:[%s3799_s1 + $0x7f8] sm:$0xff] }
  0x25   :  { %1979 = vmatpush1.bf16.msra.mxu0 %v1978_v1  ;;  %2267 = vmatpush1.bf16.msra.mxu1 %v1978_v1  ;;  %v340_v1 = vsel %vm337_vm0, %v338_v47, %v339_v48  ;;  %v2038_v47 = vpack.c.bf16 %v1801_v44, %v1799_v43  ;;  %v2040_v48 = vpack.c.bf16 %v1806_v46, %v1804_v45  ;;  %v1820_v5 = vld [vmem:[%s3799_s1 + $0x808] sm:$0xff]  ;;  %v1822_v6 = vld [vmem:[%s3799_s1 + $0x818] sm:$0xff]  ;;  %v1823_v15 = vld [vmem:[%s3799_s1 + $0x820] sm:$0xff] }
  0x26   :  { %1981 = vmatprep.subr.bf16.mxu0 %v1980_v2  ;;  %2269 = vmatprep.subr.bf16.mxu1 %v1980_v2  ;;  %v2010_v2 = vpack.c.bf16 %v1773_v58, %v1771_v57  ;;  %v1812_v57 = vld [vmem:[%s3799_s1 + $0x7c8] sm:$0xff]  ;;  %v1814_v58 = vld [vmem:[%s3799_s1 + $0x7d8] sm:$0xff]  ;;  %v1825_v16 = vld [vmem:[%s3799_s1 + $0x830] sm:$0xff] }
  0x27   :  { %v2048_v60 = vpack.c.bf16 %v1814_v58, %v1812_v57  ;;  %v1827_v21 = vld [vmem:[%s3799_s1 + $0x840] sm:$0xff]  ;;  %v1829_v22 = vld [vmem:[%s3799_s1 + $0x850] sm:$0xff]  ;;  %v1836_v33 = vld [vmem:[%s3799_s1 + $0x888] sm:$0xff] }
  0x28   :  { %v1833_v27 = vld [vmem:[%s3799_s1 + $0x870] sm:$0xff]  ;;  %v1838_v34 = vld [vmem:[%s3799_s1 + $0x898] sm:$0xff]  ;;  %v1840_v43 = vld [vmem:[%s3799_s1 + $0x8a8] sm:$0xff] }
  0x29   :  { %1983 = vmatpush1.bf16.msra.mxu0 %v1982_v7  ;;  %2271 = vmatpush1.bf16.msra.mxu1 %v1982_v7  ;;  %v1780_v7 = vld [vmem:[%s3799_s1 + $0x6c8] sm:$0xff]  ;;  %v174_v28 = vld [vmem:[%s3800_s0 + $0x10] sm:$0xfe]  ;;  %v1842_v44 = vld [vmem:[%s3799_s1 + $0x8b8] sm:$0xff] }
  0x2a   :  { %1985 = vmatprep.subr.bf16.mxu0 %v1984_v8  ;;  %2273 = vmatprep.subr.bf16.mxu1 %v1984_v8  ;;  %v1782_v8 = vld [vmem:[%s3799_s1 + $0x6d8] sm:$0xff]  ;;  %v1839_v49 = vld [vmem:[%s3799_s1 + $0x8a0] sm:$0xff]  ;;  %v1841_v50 = vld [vmem:[%s3799_s1 + $0x8b0] sm:$0xff] }
  0x2b   :  { %v2016_v12 = vpack.c.bf16 %v1782_v8, %v1780_v7  ;;  %v2056_v8 = vpack.c.bf16 %v1822_v6, %v1820_v5  ;;  %v1848_v57 = vld [vmem:[%s3799_s1 + $0x8e8] sm:$0xff]  ;;  %v1850_v58 = vld [vmem:[%s3799_s1 + $0x8f8] sm:$0xff] }
  0x2c   :  { %v31_v5 = vld [vmem:[%s3799_s1 + $0x18] sm:$0xff] }
  0x2d   :  { %1987 = vmatpush1.bf16.msra.mxu0 %v1986_v13  ;;  %2275 = vmatpush1.bf16.msra.mxu1 %v1986_v13  ;;  %v1779_v13 = vld [vmem:[%s3799_s1 + $0x6c0] sm:$0xff] }
  0x2e   :  { %1989 = vmatprep.subr.bf16.mxu0 %v1988_v14  ;;  %2277 = vmatprep.subr.bf16.mxu1 %v1988_v14  ;;  %v1781_v14 = vld [vmem:[%s3799_s1 + $0x6d0] sm:$0xff] }
  0x2f   :  { %v2018_v17 = vpack.c.bf16 %v1781_v14, %v1779_v13 }
  0x31   :  { %1991 = vmatpush1.bf16.msra.mxu0 %v1990_v19  ;;  %2279 = vmatpush1.bf16.msra.mxu1 %v1990_v19  ;;  %v1783_v19 = vld [vmem:[%s3799_s1 + $0x6e0] sm:$0xff] }
  0x32   :  { %1993 = vmatprep.subr.bf16.mxu0 %v1992_v20  ;;  %2281 = vmatprep.subr.bf16.mxu1 %v1992_v20  ;;  %v1785_v20 = vld [vmem:[%s3799_s1 + $0x6f0] sm:$0xff] }
  0x33   :  { %v2022_v23 = vpack.c.bf16 %v1785_v20, %v1783_v19  ;;  %v2062_v19 = vpack.c.bf16 %v1825_v16, %v1823_v15  ;;  %v35_v15 = vld [vmem:[%s3799_s1 + $0x38] sm:$0xff] }
  0x35   :  { %1995 = vmatpush1.bf16.msra.mxu0 %v1994_v25  ;;  %2283 = vmatpush1.bf16.msra.mxu1 %v1994_v25  ;;  %v1787_v25 = vld [vmem:[%s3799_s1 + $0x700] sm:$0xff] }
  0x36   :  { %1997 = vmatprep.subr.bf16.mxu0 %v1996_v26  ;;  %2285 = vmatprep.subr.bf16.mxu1 %v1996_v26  ;;  %v1789_v26 = vld [vmem:[%s3799_s1 + $0x710] sm:$0xff] }
  0x37   :  { %v2026_v29 = vpack.c.bf16 %v1789_v26, %v1787_v25  ;;  %v2066_v25 = vpack.c.bf16 %v1829_v22, %v1827_v21  ;;  %v1831_v26 = vld [vmem:[%s3799_s1 + $0x860] sm:$0xff]  ;;  %v34_v21 = vld [vmem:[%s3799_s1 + $0x30] sm:$0xff]  ;;  %v37_v22 = vld [vmem:[%s3799_s1 + $0x48] sm:$0xff] }
  0x39   :  { %1999 = vmatpush1.bf16.msra.mxu0 %v1998_v31  ;;  %2287 = vmatpush1.bf16.msra.mxu1 %v1998_v31  ;;  %v1791_v31 = vld [vmem:[%s3799_s1 + $0x720] sm:$0xff] }
  0x3a   :  { %2001 = vmatprep.subr.bf16.mxu0 %v2000_v32  ;;  %2289 = vmatprep.subr.bf16.mxu1 %v2000_v32  ;;  %v1793_v32 = vld [vmem:[%s3799_s1 + $0x730] sm:$0xff] }
  0x3b   :  { %v2030_v35 = vpack.c.bf16 %v1793_v32, %v1791_v31  ;;  %v1860_v31 = vld [vmem:[%s3800_s0 + $0x60] sm:$0xfe]  ;;  %v1865_v32 = vld [vmem:[%s3800_s0 + $0x88] sm:$0x1] }
  0x3d   :  { %2003 = vmatpush1.bf16.msra.mxu0 %v2002_v38  ;;  %2291 = vmatpush1.bf16.msra.mxu1 %v2002_v38  ;;  %v1797_v38 = vld [vmem:[%s3799_s1 + $0x750] sm:$0xff] }
  0x3e   :  { %2005 = vmatprep.subr.bf16.mxu0 %v2004_v42  ;;  %2293 = vmatprep.subr.bf16.mxu1 %v2004_v42  ;;  %v2034_v41 = vpack.c.bf16 %v1797_v38, %v1795_v37  ;;  %v2036_v42 = vpack.c.bf16 %v1802_v40, %v1800_v39  ;;  %v847_v38 = vrot.slane %v1860_v31, 1  ;;  %v848_v39 = vrot.slane %v1865_v32, 1  ;;  %v43_v31 = vld [vmem:[%s3799_s1 + $0x78] sm:$0xff] }
  0x3f   :  { %v2072_v40 = vpack.c.bf16 %v1838_v34, %v1836_v33  ;;  %v40_v34 = vld [vmem:[%s3799_s1 + $0x60] sm:$0xff] }
  0x41   :  { %2007 = vmatpush1.bf16.msra.mxu0 %v2006_v52  ;;  %2295 = vmatpush1.bf16.msra.mxu1 %v2006_v52  ;;  %v1810_v52 = vld [vmem:[%s3799_s1 + $0x7b8] sm:$0xff] }
  0x42   :  { %2009 = vmatprep.subr.bf16.mxu0 %v2008_v56  ;;  %2297 = vmatprep.subr.bf16.mxu1 %v2008_v56  ;;  %v2044_v54 = vpack.c.bf16 %v1810_v52, %v1808_v51  ;;  %v1809_v56 = vld [vmem:[%s3799_s1 + $0x7b0] sm:$0xff]  ;;  %v1844_v51 = vld [vmem:[%s3799_s1 + $0x8c8] sm:$0xff]  ;;  %v1846_v52 = vld [vmem:[%s3799_s1 + $0x8d8] sm:$0xff] }
  0x43   :  { %v2046_v59 = vpack.c.bf16 %v1809_v56, %v1807_v55  ;;  %v1843_v55 = vld [vmem:[%s3799_s1 + $0x8c0] sm:$0xff]  ;;  %v1845_v56 = vld [vmem:[%s3799_s1 + $0x8d0] sm:$0xff] }
  0x44   :  { %425 = vmatmul.mubr.f32.vlgmr.msra.gmra.mrb[0].mxu0 %v340_v1  ;;  %927 = vmatmul.mubr.f32.vlgmr.msra.gmra.mrb[0].mxu1 %v843_v3  ;;  %v2050_v1 = vpack.c.bf16 %v1813_v62, %v1811_v61  ;;  %v1815_v3 = vld [vmem:[%s3799_s1 + $0x7e0] sm:$0xff]  ;;  %v1849_v62 = vld [vmem:[%s3799_s1 + $0x8f0] sm:$0xff] }
  0x45   :  { %2011 = vmatpush1.bf16.msra.mxu0 %v2010_v2  ;;  %2299 = vmatpush1.bf16.msra.mxu1 %v2010_v2  ;;  %v2052_v2 = vpack.c.bf16 %v1818_v0, %v1816_v63  ;;  %v1847_v61 = vld [vmem:[%s3799_s1 + $0x8e0] sm:$0xff]  ;;  %v2084_v0 = vpack.c.bf16 %v1850_v58, %v1848_v57 }
  0x46   :  { %2013 = vmatprep.subr.bf16.mxu0 %v2012_v4  ;;  %2301 = vmatprep.subr.bf16.mxu1 %v2012_v4  ;;  %v1817_v4 = vld [vmem:[%s3799_s1 + $0x7f0] sm:$0xff]  ;;  %v176_v63 = vld [vmem:[%s3800_s0 + $0x20] sm:$0xfe]  ;;  %v2086_v6 = vpack.c.bf16 %v1849_v62, %v1847_v61  ;;  %v61_v61 = vld [vmem:[%s3799_s1 + $0x108] sm:$0xff] }
  0x47   :  { %495 = vmatprep.mubr.f32.mxu0 %v349_v9  ;;  %997 = vmatprep.mubr.f32.mxu1 %v852_v10  ;;  %v2054_v7 = vpack.c.bf16 %v1817_v4, %v1815_v3  ;;  %v1819_v9 = vld [vmem:[%s3799_s1 + $0x800] sm:$0xff]  ;;  %v1821_v10 = vld [vmem:[%s3799_s1 + $0x810] sm:$0xff]  ;;  %v1867_v3 = vld [vmem:[%s3800_s0 + $0x98] sm:$0x1] }
  0x48   :  { %v2058_v13 = vpack.c.bf16 %v1821_v10, %v1819_v9  ;;  %v29_v4 = vld [vmem:[%s3799_s1 + $0x8] sm:$0xff]  ;;  %v854_v10 = vrot.slane %v1867_v3, 1  ;;  %v56_v58 = vld [vmem:[%s3799_s1 + $0xe0] sm:$0xff]  ;;  %v63_v62 = vld [vmem:[%s3799_s1 + $0x118] sm:$0xff] }
  0x49   :  { %2015 = vmatpush1.bf16.msra.mxu0 %v2014_v11  ;;  %2303 = vmatpush1.bf16.msra.mxu1 %v2014_v11  ;;  %v1824_v11 = vld [vmem:[%s3799_s1 + $0x828] sm:$0xff] }
  0x4a   :  { %2017 = vmatprep.subr.bf16.mxu0 %v2016_v12  ;;  %2305 = vmatprep.subr.bf16.mxu1 %v2016_v12  ;;  %v1826_v12 = vld [vmem:[%s3799_s1 + $0x838] sm:$0xff]  ;;  %v65_v3 = vld [vmem:[%s3799_s1 + $0x128] sm:$0xff] }
  0x4b   :  { %v2060_v14 = vpack.c.bf16 %v1826_v12, %v1824_v11  ;;  %v2088_v11 = vpack.c.bf16 %v31_v5, %v29_v4  ;;  %v28_v12 = vld [vmem:[%s3799_s1] sm:$0xff]  ;;  %v67_v4 = vld [vmem:[%s3799_s1 + $0x138] sm:$0xff] }
  0x4d   :  { %2019 = vmatpush1.bf16.msra.mxu0 %v2018_v17  ;;  %2307 = vmatpush1.bf16.msra.mxu1 %v2018_v17  ;;  %v1828_v17 = vld [vmem:[%s3799_s1 + $0x848] sm:$0xff] }
  0x4e   :  { %2021 = vmatprep.subr.bf16.mxu0 %v2020_v18  ;;  %2309 = vmatprep.subr.bf16.mxu1 %v2020_v18  ;;  %v1830_v18 = vld [vmem:[%s3799_s1 + $0x858] sm:$0xff] }
  0x4f   :  { %v2064_v20 = vpack.c.bf16 %v1830_v18, %v1828_v17 }
  0x51   :  { %2023 = vmatpush1.bf16.msra.mxu0 %v2022_v23  ;;  %2311 = vmatpush1.bf16.msra.mxu1 %v2022_v23  ;;  %v1832_v23 = vld [vmem:[%s3799_s1 + $0x868] sm:$0xff] }
  0x52   :  { %2025 = vmatprep.subr.bf16.mxu0 %v2024_v24  ;;  %2313 = vmatprep.subr.bf16.mxu1 %v2024_v24  ;;  %v1834_v24 = vld [vmem:[%s3799_s1 + $0x878] sm:$0xff] }
  0x55   :  { %2027 = vmatpush1.bf16.msra.mxu0 %v2026_v29  ;;  %2315 = vmatpush1.bf16.msra.mxu1 %v2026_v29  ;;  %v2068_v29 = vpack.c.bf16 %v1834_v24, %v1832_v23  ;;  %v39_v23 = vld [vmem:[%s3799_s1 + $0x58] sm:$0xff]  ;;  %v24_v24 = vld [vmem:[%s3800_s0 + $0x8] sm:$0xff] }
  0x56   :  { %2029 = vmatprep.subr.bf16.mxu0 %v2028_v30  ;;  %2317 = vmatprep.subr.bf16.mxu1 %v2028_v30  ;;  %v179_v30 = vld [vmem:[%s3800_s0 + $0x38] sm:$0x1] }
  0x57   :  { %v345_v37 = vrot.slane %v179_v30, 1  ;;  %v41_v30 = vld [vmem:[%s3799_s1 + $0x68] sm:$0xff] }
  0x58   :  { %v2100_v33 = vpack.c.bf16 %v43_v31, %v41_v30  ;;  %v80_v31 = vld [vmem:[%s3799_s1 + $0x1a0] sm:$0xff] }
  0x59   :  { %2031 = vmatpush1.bf16.msra.mxu0 %v2030_v35  ;;  %2319 = vmatpush1.bf16.msra.mxu1 %v2030_v35  ;;  %v2070_v35 = vpack.c.bf16 %v1833_v27, %v1831_v26  ;;  %v2096_v27 = vpack.c.bf16 %v39_v23, %v37_v22  ;;  %v79_v22 = vld [vmem:[%s3799_s1 + $0x198] sm:$0xff] }
  0x5a   :  { %2033 = vmatprep.subr.bf16.mxu0 %v2032_v36  ;;  %2321 = vmatprep.subr.bf16.mxu1 %v2032_v36  ;;  %v344_v36 = vrot.slane %v174_v28, 1  ;;  %v36_v28 = vld [vmem:[%s3799_s1 + $0x40] sm:$0xff] }
  0x5c   :  { %v346_v45 = vsel %vm337_vm0, %v344_v36, %v345_v37  ;;  %v45_v36 = vld [vmem:[%s3799_s1 + $0x88] sm:$0xff]  ;;  %v47_v37 = vld [vmem:[%s3799_s1 + $0x98] sm:$0xff] }
  0x5d   :  { %2035 = vmatpush1.bf16.msra.mxu0 %v2034_v41  ;;  %2323 = vmatpush1.bf16.msra.mxu1 %v2034_v41  ;;  %v1835_v41 = vld [vmem:[%s3799_s1 + $0x880] sm:$0xff] }
  0x5e   :  { %2037 = vmatprep.subr.bf16.mxu0 %v2036_v42  ;;  %2325 = vmatprep.subr.bf16.mxu1 %v2036_v42  ;;  %v1837_v42 = vld [vmem:[%s3799_s1 + $0x890] sm:$0xff] }
  0x5f   :  { %v2074_v46 = vpack.c.bf16 %v1837_v42, %v1835_v41  ;;  %v46_v41 = vld [vmem:[%s3799_s1 + $0x90] sm:$0xff]  ;;  %v49_v42 = vld [vmem:[%s3799_s1 + $0xa8] sm:$0xff] }
  0x61   :  { %2039 = vmatpush1.bf16.msra.mxu0 %v2038_v47  ;;  %2327 = vmatpush1.bf16.msra.mxu1 %v2038_v47  ;;  %v849_v47 = vsel %vm337_vm0, %v847_v38, %v848_v39  ;;  %v2104_v39 = vpack.c.bf16 %v47_v37, %v45_v36  ;;  %v84_v37 = vld [vmem:[%s3799_s1 + $0x1c0] sm:$0xff] }
  0x62   :  { %2041 = vmatprep.subr.bf16.mxu0 %v2040_v48  ;;  %2329 = vmatprep.subr.bf16.mxu1 %v2040_v48  ;;  %v2076_v48 = vpack.c.bf16 %v1842_v44, %v1840_v43  ;;  %v51_v43 = vld [vmem:[%s3799_s1 + $0xb8] sm:$0xff] }
  0x65   :  { %2043 = vmatpush1.bf16.msra.mxu0 %v2042_v53  ;;  %2331 = vmatpush1.bf16.msra.mxu1 %v2042_v53  ;;  %v2078_v53 = vpack.c.bf16 %v1841_v50, %v1839_v49  ;;  %v55_v49 = vld [vmem:[%s3799_s1 + $0xd8] sm:$0xff] }
  0x66   :  { %2045 = vmatprep.subr.bf16.mxu0 %v2044_v54  ;;  %2333 = vmatprep.subr.bf16.mxu1 %v2044_v54  ;;  %v2080_v54 = vpack.c.bf16 %v1846_v52, %v1844_v51  ;;  %v52_v52 = vld [vmem:[%s3799_s1 + $0xc0] sm:$0xff] }
  0x69   :  { %2047 = vmatpush1.bf16.msra.mxu0 %v2046_v59  ;;  %2335 = vmatpush1.bf16.msra.mxu1 %v2046_v59  ;;  %v2623_v59 = vmov 0.0  }
  0x6a   :  { %2049 = vmatprep.subr.bf16.mxu0 %v2048_v60  ;;  %2337 = vmatprep.subr.bf16.mxu1 %v2048_v60  ;;  %v2082_v60 = vpack.c.bf16 %v1845_v56, %v1843_v55  ;;  %v59_v55 = vld [vmem:[%s3799_s1 + $0xf8] sm:$0xff] }
  0x6d   :  { %2051 = vmatpush1.bf16.msra.mxu0 %v2050_v1  ;;  %2339 = vmatpush1.bf16.msra.mxu1 %v2050_v1  ;;  %v181_v1 = vld [vmem:[%s3800_s0 + $0x48] sm:$0x1] }
  0x6e   :  { %2053 = vmatprep.subr.bf16.mxu0 %v2052_v2  ;;  %2341 = vmatprep.subr.bf16.mxu1 %v2052_v2  ;;  %v1862_v2 = vld [vmem:[%s3800_s0 + $0x70] sm:$0xfe] }
  0x6f   :  { %v853_v9 = vrot.slane %v1862_v2, 1  ;;  %v62_v2 = vld [vmem:[%s3799_s1 + $0x110] sm:$0xff] }
  0x71   :  { %2055 = vmatpush1.bf16.msra.mxu0 %v2054_v7  ;;  %2343 = vmatpush1.bf16.msra.mxu1 %v2054_v7  ;;  %v350_v7 = vrot.slane %v176_v63, 1  ;;  %v855_v18 = vsel %vm337_vm0, %v853_v9, %v854_v10  ;;  %v69_v9 = vld [vmem:[%s3799_s1 + $0x148] sm:$0xff]  ;;  %v71_v10 = vld [vmem:[%s3799_s1 + $0x158] sm:$0xff] }
  0x72   :  { %2057 = vmatprep.subr.bf16.mxu0 %v2056_v8  ;;  %2345 = vmatprep.subr.bf16.mxu1 %v2056_v8  ;;  %v351_v8 = vrot.slane %v181_v1, 1  ;;  %v60_v1 = vld [vmem:[%s3799_s1 + $0x100] sm:$0xff] }
  0x73   :  { %v2122_v5 = vpack.c.bf16 %v62_v2, %v60_v1  ;;  %v100_v2 = vld [vmem:[%s3799_s1 + $0x240] sm:$0xff] }
  0x74   :  { %v352_v16 = vsel %vm337_vm0, %v350_v7, %v351_v8  ;;  %v64_v7 = vld [vmem:[%s3799_s1 + $0x120] sm:$0xff]  ;;  %v66_v8 = vld [vmem:[%s3799_s1 + $0x130] sm:$0xff] }
  0x75   :  { %2059 = vmatpush1.bf16.msra.mxu0 %v2058_v13  ;;  %2347 = vmatpush1.bf16.msra.mxu1 %v2058_v13  ;;  %v30_v13 = vld [vmem:[%s3799_s1 + $0x10] sm:$0xff] }
  0x76   :  { %2061 = vmatprep.subr.bf16.mxu0 %v2060_v14  ;;  %2349 = vmatprep.subr.bf16.mxu1 %v2060_v14  ;;  %v33_v14 = vld [vmem:[%s3799_s1 + $0x28] sm:$0xff]  ;;  %v2090_v17 = vpack.c.bf16 %v30_v13, %v28_v12  ;;  %v2128_v12 = vpack.c.bf16 %v71_v10, %v69_v9  ;;  %v68_v13 = vld [vmem:[%s3799_s1 + $0x140] sm:$0xff]  ;;  %v106_v9 = vld [vmem:[%s3799_s1 + $0x270] sm:$0xff] }
  0x77   :  { %v109_v10 = vld [vmem:[%s3799_s1 + $0x288] sm:$0xff] }
  0x79   :  { %2063 = vmatpush1.bf16.msra.mxu0 %v2062_v19  ;;  %2351 = vmatpush1.bf16.msra.mxu1 %v2062_v19  ;;  %v2092_v19 = vpack.c.bf16 %v35_v15, %v33_v14  ;;  %v70_v14 = vld [vmem:[%s3799_s1 + $0x150] sm:$0xff]  ;;  %v73_v15 = vld [vmem:[%s3799_s1 + $0x168] sm:$0xff] }
  0x7a   :  { %2065 = vmatprep.subr.bf16.mxu0 %v2064_v20  ;;  %2353 = vmatprep.subr.bf16.mxu1 %v2064_v20  ;;  %v32_v20 = vld [vmem:[%s3799_s1 + $0x20] sm:$0xff] }
  0x7b   :  { %v2094_v26 = vpack.c.bf16 %v34_v21, %v32_v20  ;;  %v74_v20 = vld [vmem:[%s3799_s1 + $0x170] sm:$0xff]  ;;  %v77_v21 = vld [vmem:[%s3799_s1 + $0x188] sm:$0xff] }
  0x7d   :  { %2067 = vmatpush1.bf16.msra.mxu0 %v2066_v25  ;;  %2355 = vmatpush1.bf16.msra.mxu1 %v2066_v25  ;;  %v1854_v25 = vld [vmem:[%s3800_s0 + $0x58] sm:$0xff] }
  0x7e   :  { %2069 = vmatprep.subr.bf16.mxu0 %v2068_v29  ;;  %2357 = vmatprep.subr.bf16.mxu1 %v2068_v29  ;;  %v38_v29 = vld [vmem:[%s3799_s1 + $0x50] sm:$0xff] }
  0x7f   :  { %v2098_v32 = vpack.c.bf16 %v38_v29, %v36_v28  ;;  %v83_v28 = vld [vmem:[%s3799_s1 + $0x1b8] sm:$0xff] }
  0x81   :  { %2071 = vmatpush1.bf16.msra.mxu0 %v2070_v35  ;;  %2359 = vmatpush1.bf16.msra.mxu1 %v2070_v35  ;;  %v42_v35 = vld [vmem:[%s3799_s1 + $0x70] sm:$0xff] }
  0x82   :  { %2073 = vmatprep.subr.bf16.mxu0 %v2072_v40  ;;  %2361 = vmatprep.subr.bf16.mxu1 %v2072_v40  ;;  %v2102_v38 = vpack.c.bf16 %v42_v35, %v40_v34  ;;  %v44_v40 = vld [vmem:[%s3799_s1 + $0x80] sm:$0xff]  ;;  %v87_v34 = vld [vmem:[%s3799_s1 + $0x1d8] sm:$0xff] }
  0x83   :  { %v2106_v44 = vpack.c.bf16 %v46_v41, %v44_v40  ;;  %v91_v40 = vld [vmem:[%s3799_s1 + $0x1f8] sm:$0xff] }
  0x84   :  { %496 = vmatmul.mubr.f32.vlgmr.msra.gmra.mrb[0].mxu0 %v346_v45  ;;  %998 = vmatmul.mubr.f32.vlgmr.msra.gmra.mrb[0].mxu1 %v849_v47  ;;  %v2108_v45 = vpack.c.bf16 %v51_v43, %v49_v42  ;;  %v50_v47 = vld [vmem:[%s3799_s1 + $0xb0] sm:$0xff]  ;;  %v88_v43 = vld [vmem:[%s3799_s1 + $0x1e0] sm:$0xff] }
  0x85   :  { %2075 = vmatpush1.bf16.msra.mxu0 %v2074_v46  ;;  %2363 = vmatpush1.bf16.msra.mxu1 %v2074_v46  ;;  %v48_v46 = vld [vmem:[%s3799_s1 + $0xa0] sm:$0xff] }
  0x86   :  { %2077 = vmatprep.subr.bf16.mxu0 %v2076_v48  ;;  %2365 = vmatprep.subr.bf16.mxu1 %v2076_v48  ;;  %v53_v48 = vld [vmem:[%s3799_s1 + $0xc8] sm:$0xff]  ;;  %v2110_v50 = vpack.c.bf16 %v50_v47, %v48_v46  ;;  %v95_v46 = vld [vmem:[%s3799_s1 + $0x218] sm:$0xff] }
  0x87   :  { %566 = vmatprep.mubr.f32.mxu0 %v2623_v59  ;;  %1068 = vmatprep.mubr.f32.mxu1 %v2623_v59  ;;  %v2112_v51 = vpack.c.bf16 %v55_v49, %v53_v48  ;;  %v92_v49 = vld [vmem:[%s3799_s1 + $0x200] sm:$0xff] }
  0x89   :  { %2079 = vmatpush1.bf16.msra.mxu0 %v2078_v53  ;;  %2367 = vmatpush1.bf16.msra.mxu1 %v2078_v53  ;;  %v54_v53 = vld [vmem:[%s3799_s1 + $0xd0] sm:$0xff] }
  0x8a   :  { %2081 = vmatprep.subr.bf16.mxu0 %v2080_v54  ;;  %2369 = vmatprep.subr.bf16.mxu1 %v2080_v54  ;;  %v57_v54 = vld [vmem:[%s3799_s1 + $0xe8] sm:$0xff]  ;;  %v2114_v56 = vpack.c.bf16 %v54_v53, %v52_v52  ;;  %v99_v52 = vld [vmem:[%s3799_s1 + $0x238] sm:$0xff]  ;;  %v23_v53 = vld [vmem:[%s3800_s0] sm:$0xff] }
  0x8b   :  { %v2116_v57 = vpack.c.bf16 %v59_v55, %v57_v54  ;;  %v1853_v55 = vld [vmem:[%s3800_s0 + $0x50] sm:$0xff] }
  0x8d   :  { %2083 = vmatpush1.bf16.msra.mxu0 %v2082_v60  ;;  %2371 = vmatpush1.bf16.msra.mxu1 %v2082_v60  ;;  %v58_v60 = vld [vmem:[%s3799_s1 + $0xf0] sm:$0xff] }
  0x8e   :  { %2085 = vmatprep.subr.bf16.mxu0 %v2084_v0  ;;  %2373 = vmatprep.subr.bf16.mxu1 %v2084_v0  ;;  %v2118_v63 = vpack.c.bf16 %v58_v60, %v56_v58  ;;  %v2120_v0 = vpack.c.bf16 %v63_v62, %v61_v61  ;;  %v98_v58 = vld [vmem:[%s3799_s1 + $0x230] sm:$0xff]  ;;  %v101_v60 = vld [vmem:[%s3799_s1 + $0x248] sm:$0xff]  ;;  %v103_v61 = vld [vmem:[%s3799_s1 + $0x258] sm:$0xff] }
  0x8f   :  { %v26_v62 = vld [vmem:[%s3800_s0 + $0x18] sm:$0xff]  ;;  %v2160_v1 = vpack.c.bf16 %v103_v61, %v101_v60 }
  0x90   :  { %v143_v60 = vld [vmem:[%s3799_s1 + $0x398] sm:$0xff] }
  0x91   :  { %2087 = vmatpush1.bf16.msra.mxu0 %v2086_v6  ;;  %2375 = vmatpush1.bf16.msra.mxu1 %v2086_v6  ;;  %v2124_v6 = vpack.c.bf16 %v67_v4, %v65_v3  ;;  %v102_v3 = vld [vmem:[%s3799_s1 + $0x250] sm:$0xff]  ;;  %v105_v4 = vld [vmem:[%s3799_s1 + $0x268] sm:$0xff] }
  0x92   :  { %2089 = vmatprep.subr.bf16.mxu0 %v2088_v11  ;;  %2377 = vmatprep.subr.bf16.mxu1 %v2088_v11  ;;  %v2126_v11 = vpack.c.bf16 %v66_v8, %v64_v7  ;;  %v104_v8 = vld [vmem:[%s3799_s1 + $0x260] sm:$0xff] }
  0x94   :  { %1851 = vmatmul.mubr.msk.f32.vlgmr.msra.gmra.mrb[0].mxu0 %vm357_vm1, %v352_v16  ;;  %1868 = vmatmul.mubr.msk.f32.vlgmr.msra.gmra.mrb[0].mxu1 %vm357_vm1, %v855_v18  ;;  %v75_v16 = vld [vmem:[%s3799_s1 + $0x178] sm:$0xff] }
  0x95   :  { %2091 = vmatpush1.bf16.msra.mxu0 %v2090_v17  ;;  %2379 = vmatpush1.bf16.msra.mxu1 %v2090_v17  ;;  %v2130_v17 = vpack.c.bf16 %v70_v14, %v68_v13  ;;  %v2132_v18 = vpack.c.bf16 %v75_v16, %v73_v15  ;;  %v108_v14 = vld [vmem:[%s3799_s1 + $0x280] sm:$0xff]  ;;  %v110_v15 = vld [vmem:[%s3799_s1 + $0x290] sm:$0xff]  ;;  %v113_v16 = vld [vmem:[%s3799_s1 + $0x2a8] sm:$0xff] }
  0x96   :  { %2093 = vmatprep.subr.bf16.mxu0 %v2092_v19  ;;  %2381 = vmatprep.subr.bf16.mxu1 %v2092_v19  ;;  %v72_v19 = vld [vmem:[%s3799_s1 + $0x160] sm:$0xff] }
  0x97   :  { %640 = vmatprep.mubr.f32.mxu0 %v24_v24  ;;  %1142 = vmatprep.mubr.f32.mxu1 %v1854_v25  ;;  %v2134_v23 = vpack.c.bf16 %v74_v20, %v72_v19  ;;  %v2136_v24 = vpack.c.bf16 %v79_v22, %v77_v21  ;;  %v76_v25 = vld [vmem:[%s3799_s1 + $0x180] sm:$0xff]  ;;  %v114_v21 = vld [vmem:[%s3799_s1 + $0x2b0] sm:$0xff]  ;;  %v117_v22 = vld [vmem:[%s3799_s1 + $0x2c8] sm:$0xff] }
  0x98   :  { %v112_v20 = vld [vmem:[%s3799_s1 + $0x2a0] sm:$0xff] }
  0x99   :  { %2095 = vmatpush1.bf16.msra.mxu0 %v2094_v26  ;;  %2383 = vmatpush1.bf16.msra.mxu1 %v2094_v26  ;;  %v78_v26 = vld [vmem:[%s3799_s1 + $0x190] sm:$0xff] }
  0x9a   :  { %2097 = vmatprep.subr.bf16.mxu0 %v2096_v27  ;;  %2385 = vmatprep.subr.bf16.mxu1 %v2096_v27  ;;  %v81_v27 = vld [vmem:[%s3799_s1 + $0x1a8] sm:$0xff]  ;;  %v2138_v29 = vpack.c.bf16 %v78_v26, %v76_v25  ;;  %v116_v26 = vld [vmem:[%s3799_s1 + $0x2c0] sm:$0xff] }
  0x9b   :  { %v2140_v30 = vpack.c.bf16 %v83_v28, %v81_v27  ;;  %v118_v27 = vld [vmem:[%s3799_s1 + $0x2d0] sm:$0xff]  ;;  %v121_v28 = vld [vmem:[%s3799_s1 + $0x2e8] sm:$0xff] }
  0x9d   :  { %2099 = vmatpush1.bf16.msra.mxu0 %v2098_v32  ;;  %2387 = vmatpush1.bf16.msra.mxu1 %v2098_v32  ;;  %v82_v32 = vld [vmem:[%s3799_s1 + $0x1b0] sm:$0xff] }
  0x9e   :  { %2101 = vmatprep.subr.bf16.mxu0 %v2100_v33  ;;  %2389 = vmatprep.subr.bf16.mxu1 %v2100_v33  ;;  %v85_v33 = vld [vmem:[%s3799_s1 + $0x1c8] sm:$0xff]  ;;  %v2142_v35 = vpack.c.bf16 %v82_v32, %v80_v31  ;;  %v120_v32 = vld [vmem:[%s3799_s1 + $0x2e0] sm:$0xff] }
  0x9f   :  { %v2144_v36 = vpack.c.bf16 %v87_v34, %v85_v33  ;;  %v122_v33 = vld [vmem:[%s3799_s1 + $0x2f0] sm:$0xff]  ;;  %v125_v34 = vld [vmem:[%s3799_s1 + $0x308] sm:$0xff] }
  0xa1   :  { %2103 = vmatpush1.bf16.msra.mxu0 %v2102_v38  ;;  %2391 = vmatpush1.bf16.msra.mxu1 %v2102_v38  ;;  %v86_v38 = vld [vmem:[%s3799_s1 + $0x1d0] sm:$0xff] }
  0xa2   :  { %2105 = vmatprep.subr.bf16.mxu0 %v2104_v39  ;;  %2393 = vmatprep.subr.bf16.mxu1 %v2104_v39  ;;  %v89_v39 = vld [vmem:[%s3799_s1 + $0x1e8] sm:$0xff]  ;;  %v2146_v41 = vpack.c.bf16 %v86_v38, %v84_v37  ;;  %v124_v38 = vld [vmem:[%s3799_s1 + $0x300] sm:$0xff] }
  0xa3   :  { %v2148_v42 = vpack.c.bf16 %v91_v40, %v89_v39  ;;  %v126_v39 = vld [vmem:[%s3799_s1 + $0x310] sm:$0xff]  ;;  %v129_v40 = vld [vmem:[%s3799_s1 + $0x328] sm:$0xff] }
  0xa5   :  { %2107 = vmatpush1.bf16.msra.mxu0 %v2106_v44  ;;  %2395 = vmatpush1.bf16.msra.mxu1 %v2106_v44  ;;  %v90_v44 = vld [vmem:[%s3799_s1 + $0x1f0] sm:$0xff] }
  0xa6   :  { %2109 = vmatprep.subr.bf16.mxu0 %v2108_v45  ;;  %2397 = vmatprep.subr.bf16.mxu1 %v2108_v45  ;;  %v93_v45 = vld [vmem:[%s3799_s1 + $0x208] sm:$0xff]  ;;  %v2150_v47 = vpack.c.bf16 %v90_v44, %v88_v43  ;;  %v128_v44 = vld [vmem:[%s3799_s1 + $0x320] sm:$0xff] }
  0xa7   :  { %v2152_v48 = vpack.c.bf16 %v95_v46, %v93_v45  ;;  %v130_v45 = vld [vmem:[%s3799_s1 + $0x330] sm:$0xff]  ;;  %v133_v46 = vld [vmem:[%s3799_s1 + $0x348] sm:$0xff] }
  0xa9   :  { %2111 = vmatpush1.bf16.msra.mxu0 %v2110_v50  ;;  %2399 = vmatpush1.bf16.msra.mxu1 %v2110_v50  ;;  %v94_v50 = vld [vmem:[%s3799_s1 + $0x210] sm:$0xff] }
  0xaa   :  { %2113 = vmatprep.subr.bf16.mxu0 %v2112_v51  ;;  %2401 = vmatprep.subr.bf16.mxu1 %v2112_v51  ;;  %v97_v51 = vld [vmem:[%s3799_s1 + $0x228] sm:$0xff]  ;;  %v2154_v54 = vpack.c.bf16 %v94_v50, %v92_v49  ;;  %v132_v50 = vld [vmem:[%s3799_s1 + $0x340] sm:$0xff] }
  0xad   :  { %2115 = vmatpush1.bf16.msra.mxu0 %v2114_v56  ;;  %2403 = vmatpush1.bf16.msra.mxu1 %v2114_v56  ;;  %v2156_v56 = vpack.c.bf16 %v99_v52, %v97_v51  ;;  %v134_v51 = vld [vmem:[%s3799_s1 + $0x350] sm:$0xff]  ;;  %v137_v52 = vld [vmem:[%s3799_s1 + $0x368] sm:$0xff] }
  0xae   :  { %2117 = vmatprep.subr.bf16.mxu0 %v2116_v57  ;;  %2405 = vmatprep.subr.bf16.mxu1 %v2116_v57  ;;  %v96_v57 = vld [vmem:[%s3799_s1 + $0x220] sm:$0xff] }
  0xb1   :  { %2119 = vmatpush1.bf16.msra.mxu0 %v2118_v63  ;;  %2407 = vmatpush1.bf16.msra.mxu1 %v2118_v63  ;;  %v1856_v63 = vld [vmem:[%s3800_s0 + $0x68] sm:$0xff] }
  0xb2   :  { %2121 = vmatprep.subr.bf16.mxu0 %v2120_v0  ;;  %2409 = vmatprep.subr.bf16.mxu1 %v2120_v0  ;;  %v2158_v0 = vpack.c.bf16 %v98_v58, %v96_v57  ;;  %v138_v57 = vld [vmem:[%s3799_s1 + $0x370] sm:$0xff]  ;;  %v141_v58 = vld [vmem:[%s3799_s1 + $0x388] sm:$0xff] }
  0xb5   :  { %2123 = vmatpush1.bf16.msra.mxu0 %v2122_v5  ;;  %2411 = vmatpush1.bf16.msra.mxu1 %v2122_v5  ;;  %v107_v5 = vld [vmem:[%s3799_s1 + $0x278] sm:$0xff] }
  0xb6   :  { %2125 = vmatprep.subr.bf16.mxu0 %v2124_v6  ;;  %2413 = vmatprep.subr.bf16.mxu1 %v2124_v6  ;;  %v2162_v6 = vpack.c.bf16 %v102_v3, %v100_v2  ;;  %v2164_v7 = vpack.c.bf16 %v107_v5, %v105_v4  ;;  %v147_v2 = vld [vmem:[%s3799_s1 + $0x3b8] sm:$0xff]  ;;  %v144_v5 = vld [vmem:[%s3799_s1 + $0x3a0] sm:$0xff] }
  0xb9   :  { %2127 = vmatpush1.bf16.msra.mxu0 %v2126_v11  ;;  %2415 = vmatpush1.bf16.msra.mxu1 %v2126_v11  ;;  %v111_v11 = vld [vmem:[%s3799_s1 + $0x298] sm:$0xff] }
  0xba   :  { %2129 = vmatprep.subr.bf16.mxu0 %v2128_v12  ;;  %2417 = vmatprep.subr.bf16.mxu1 %v2128_v12  ;;  %v2166_v12 = vpack.c.bf16 %v106_v9, %v104_v8  ;;  %v2168_v13 = vpack.c.bf16 %v111_v11, %v109_v10  ;;  %v151_v8 = vld [vmem:[%s3799_s1 + $0x3d8] sm:$0xff]  ;;  %v148_v11 = vld [vmem:[%s3799_s1 + $0x3c0] sm:$0xff] }
  0xbd   :  { %2131 = vmatpush1.bf16.msra.mxu0 %v2130_v17  ;;  %2419 = vmatpush1.bf16.msra.mxu1 %v2130_v17  ;;  %v115_v17 = vld [vmem:[%s3799_s1 + $0x2b8] sm:$0xff] }
  0xbe   :  { %2133 = vmatprep.subr.bf16.mxu0 %v2132_v18  ;;  %2421 = vmatprep.subr.bf16.mxu1 %v2132_v18  ;;  %v2170_v18 = vpack.c.bf16 %v110_v15, %v108_v14  ;;  %v2172_v19 = vpack.c.bf16 %v115_v17, %v113_v16  ;;  %v155_v14 = vld [vmem:[%s3799_s1 + $0x3f8] sm:$0xff]  ;;  %v152_v17 = vld [vmem:[%s3799_s1 + $0x3e0] sm:$0xff] }
  0xc1   :  { %2135 = vmatpush1.bf16.msra.mxu0 %v2134_v23  ;;  %2423 = vmatpush1.bf16.msra.mxu1 %v2134_v23  ;;  %v119_v23 = vld [vmem:[%s3799_s1 + $0x2d8] sm:$0xff] }
  0xc2   :  { %2137 = vmatprep.subr.bf16.mxu0 %v2136_v24  ;;  %2425 = vmatprep.subr.bf16.mxu1 %v2136_v24  ;;  %v2174_v24 = vpack.c.bf16 %v114_v21, %v112_v20  ;;  %v2176_v25 = vpack.c.bf16 %v119_v23, %v117_v22  ;;  %v159_v20 = vld [vmem:[%s3799_s1 + $0x418] sm:$0xff]  ;;  %v156_v23 = vld [vmem:[%s3799_s1 + $0x400] sm:$0xff] }
  0xc5   :  { %2139 = vmatpush1.bf16.msra.mxu0 %v2138_v29  ;;  %2427 = vmatpush1.bf16.msra.mxu1 %v2138_v29  ;;  %v123_v29 = vld [vmem:[%s3799_s1 + $0x2f8] sm:$0xff] }
  0xc6   :  { %2141 = vmatprep.subr.bf16.mxu0 %v2140_v30  ;;  %2429 = vmatprep.subr.bf16.mxu1 %v2140_v30  ;;  %v2178_v30 = vpack.c.bf16 %v118_v27, %v116_v26  ;;  %v2180_v31 = vpack.c.bf16 %v123_v29, %v121_v28  ;;  %v163_v26 = vld [vmem:[%s3799_s1 + $0x438] sm:$0xff]  ;;  %v25_v27 = vld [vmem:[%s3800_s0 + $0x10] sm:$0xff]  ;;  %v1855_v29 = vld [vmem:[%s3800_s0 + $0x60] sm:$0xff] }
  0xc9   :  { %2143 = vmatpush1.bf16.msra.mxu0 %v2142_v35  ;;  %2431 = vmatpush1.bf16.msra.mxu1 %v2142_v35  ;;  %v127_v35 = vld [vmem:[%s3799_s1 + $0x318] sm:$0xff] }
  0xca   :  { %2145 = vmatprep.subr.bf16.mxu0 %v2144_v36  ;;  %2433 = vmatprep.subr.bf16.mxu1 %v2144_v36  ;;  %v2182_v36 = vpack.c.bf16 %v122_v33, %v120_v32  ;;  %v2184_v37 = vpack.c.bf16 %v127_v35, %v125_v34  ;;  %v162_v32 = vld [vmem:[%s3799_s1 + $0x430] sm:$0xff]  ;;  %v165_v33 = vld [vmem:[%s3799_s1 + $0x448] sm:$0xff]  ;;  %v167_v34 = vld [vmem:[%s3799_s1 + $0x458] sm:$0xff] }
  0xcd   :  { %2147 = vmatpush1.bf16.msra.mxu0 %v2146_v41  ;;  %2435 = vmatpush1.bf16.msra.mxu1 %v2146_v41  ;;  %v131_v41 = vld [vmem:[%s3799_s1 + $0x338] sm:$0xff] }
  0xce   :  { %2149 = vmatprep.subr.bf16.mxu0 %v2148_v42  ;;  %2437 = vmatprep.subr.bf16.mxu1 %v2148_v42  ;;  %v2186_v42 = vpack.c.bf16 %v126_v39, %v124_v38  ;;  %v2188_v43 = vpack.c.bf16 %v131_v41, %v129_v40  ;;  %v166_v38 = vld [vmem:[%s3799_s1 + $0x450] sm:$0xff]  ;;  %v169_v39 = vld [vmem:[%s3799_s1 + $0x468] sm:$0xff]  ;;  %v171_v40 = vld [vmem:[%s3799_s1 + $0x478] sm:$0xff] }
  0xd1   :  { %2151 = vmatpush1.bf16.msra.mxu0 %v2150_v47  ;;  %2439 = vmatpush1.bf16.msra.mxu1 %v2150_v47  ;;  %v135_v47 = vld [vmem:[%s3799_s1 + $0x358] sm:$0xff] }
  0xd2   :  { %2153 = vmatprep.subr.bf16.mxu0 %v2152_v48  ;;  %2441 = vmatprep.subr.bf16.mxu1 %v2152_v48  ;;  %v2190_v48 = vpack.c.bf16 %v130_v45, %v128_v44  ;;  %v2192_v49 = vpack.c.bf16 %v135_v47, %v133_v46  ;;  %v170_v44 = vld [vmem:[%s3799_s1 + $0x470] sm:$0xff]  ;;  %v1337_v45 = vld [vmem:[%s3801_s2 + $0x80] sm:$0xff]  ;;  %v1338_v46 = vld [vmem:[%s3801_s2 + $0x88] sm:$0xff] }
  0xd4   :  { %641 = vmatmul.mubr.f32.vlgmr.msra.gmra.mrb[0].mxu0 %v23_v53  ;;  %1143 = vmatmul.mubr.f32.vlgmr.msra.gmra.mrb[0].mxu1 %v1853_v55  ;;  %v139_v53 = vld [vmem:[%s3799_s1 + $0x378] sm:$0xff] }
  0xd5   :  { %2155 = vmatpush1.bf16.msra.mxu0 %v2154_v54  ;;  %2443 = vmatpush1.bf16.msra.mxu1 %v2154_v54  ;;  %v2194_v54 = vpack.c.bf16 %v134_v51, %v132_v50  ;;  %v2196_v55 = vpack.c.bf16 %v139_v53, %v137_v52  ;;  %v1322_v50 = vld [vmem:[%s3801_s2 + $0x8] sm:$0xff]  ;;  %v1339_v51 = vld [vmem:[%s3801_s2 + $0x90] sm:$0xff]  ;;  %v1340_v52 = vld [vmem:[%s3801_s2 + $0x98] sm:$0xff] }
  0xd6   :  { %2157 = vmatprep.subr.bf16.mxu0 %v2156_v56  ;;  %2445 = vmatprep.subr.bf16.mxu1 %v2156_v56  ;;  %v136_v56 = vld [vmem:[%s3799_s1 + $0x360] sm:$0xff] }
  0xd7   :  { %711 = vmatprep.mubr.f32.mxu0 %v26_v62  ;;  %1213 = vmatprep.mubr.f32.mxu1 %v1856_v63  ;;  %v2198_v61 = vpack.c.bf16 %v138_v57, %v136_v56  ;;  %v2200_v62 = vpack.c.bf16 %v143_v60, %v141_v58  ;;  %v140_v63 = vld [vmem:[%s3799_s1 + $0x380] sm:$0xff]  ;;  %v2524_v56 = vpack.c.bf16 %v1340_v52, %v1339_v51  ;;  %v1323_v57 = vld [vmem:[%s3801_s2 + $0x10] sm:$0xff]  ;;  %v1324_v58 = vld [vmem:[%s3801_s2 + $0x18] sm:$0xff] }
  0xd8   :  { %v27_v53 = vld [vmem:[%s3800_s0 + $0x20] sm:$0xff] }
  0xd9   :  { %2159 = vmatpush1.bf16.msra.mxu0 %v2158_v0  ;;  %2447 = vmatpush1.bf16.msra.mxu1 %v2158_v0  ;;  %v142_v0 = vld [vmem:[%s3799_s1 + $0x390] sm:$0xff]  ;;  %v1341_v60 = vld [vmem:[%s3801_s2 + $0xa0] sm:$0xff] }
  0xda   :  { %2161 = vmatprep.subr.bf16.mxu0 %v2160_v1  ;;  %2449 = vmatprep.subr.bf16.mxu1 %v2160_v1  ;;  %v145_v1 = vld [vmem:[%s3799_s1 + $0x3a8] sm:$0xff]  ;;  %v2202_v3 = vpack.c.bf16 %v142_v0, %v140_v63  ;;  %v1325_v0 = vld [vmem:[%s3801_s2 + $0x20] sm:$0xff] }
  0xdb   :  { %v2204_v4 = vpack.c.bf16 %v147_v2, %v145_v1  ;;  %v1326_v1 = vld [vmem:[%s3801_s2 + $0x28] sm:$0xff]  ;;  %v1343_v2 = vld [vmem:[%s3801_s2 + $0xb0] sm:$0xff] }
  0xdd   :  { %2163 = vmatpush1.bf16.msra.mxu0 %v2162_v6  ;;  %2451 = vmatpush1.bf16.msra.mxu1 %v2162_v6  ;;  %v146_v6 = vld [vmem:[%s3799_s1 + $0x3b0] sm:$0xff] }
  0xde   :  { %2165 = vmatprep.subr.bf16.mxu0 %v2164_v7  ;;  %2453 = vmatprep.subr.bf16.mxu1 %v2164_v7  ;;  %v149_v7 = vld [vmem:[%s3799_s1 + $0x3c8] sm:$0xff]  ;;  %v2206_v9 = vpack.c.bf16 %v146_v6, %v144_v5  ;;  %v1327_v6 = vld [vmem:[%s3801_s2 + $0x30] sm:$0xff] }
  0xdf   :  { %v2208_v10 = vpack.c.bf16 %v151_v8, %v149_v7  ;;  %v1328_v7 = vld [vmem:[%s3801_s2 + $0x38] sm:$0xff] }
  0xe0   :  { %v2534_v8 = vpack.c.bf16 %v1328_v7, %v1327_v6 }
  0xe1   :  { %2167 = vmatpush1.bf16.msra.mxu0 %v2166_v12  ;;  %2455 = vmatpush1.bf16.msra.mxu1 %v2166_v12  ;;  %v150_v12 = vld [vmem:[%s3799_s1 + $0x3d0] sm:$0xff] }
  0xe2   :  { %2169 = vmatprep.subr.bf16.mxu0 %v2168_v13  ;;  %2457 = vmatprep.subr.bf16.mxu1 %v2168_v13  ;;  %v153_v13 = vld [vmem:[%s3799_s1 + $0x3e8] sm:$0xff]  ;;  %v2210_v15 = vpack.c.bf16 %v150_v12, %v148_v11  ;;  %v1329_v12 = vld [vmem:[%s3801_s2 + $0x40] sm:$0xff] }
  0xe3   :  { %v2212_v16 = vpack.c.bf16 %v155_v14, %v153_v13  ;;  %v1330_v13 = vld [vmem:[%s3801_s2 + $0x48] sm:$0xff] }
  0xe4   :  { %v2538_v14 = vpack.c.bf16 %v1330_v13, %v1329_v12 }
  0xe5   :  { %2171 = vmatpush1.bf16.msra.mxu0 %v2170_v18  ;;  %2459 = vmatpush1.bf16.msra.mxu1 %v2170_v18  ;;  %v154_v18 = vld [vmem:[%s3799_s1 + $0x3f0] sm:$0xff] }
  0xe6   :  { %2173 = vmatprep.subr.bf16.mxu0 %v2172_v19  ;;  %2461 = vmatprep.subr.bf16.mxu1 %v2172_v19  ;;  %v157_v19 = vld [vmem:[%s3799_s1 + $0x408] sm:$0xff]  ;;  %v2214_v21 = vpack.c.bf16 %v154_v18, %v152_v17  ;;  %v1331_v18 = vld [vmem:[%s3801_s2 + $0x50] sm:$0xff] }
  0xe7   :  { %v2216_v22 = vpack.c.bf16 %v159_v20, %v157_v19  ;;  %v1332_v19 = vld [vmem:[%s3801_s2 + $0x58] sm:$0xff] }
  0xe8   :  { %v2542_v20 = vpack.c.bf16 %v1332_v19, %v1331_v18 }
  0xe9   :  { %2175 = vmatpush1.bf16.msra.mxu0 %v2174_v24  ;;  %2463 = vmatpush1.bf16.msra.mxu1 %v2174_v24  ;;  %v158_v24 = vld [vmem:[%s3799_s1 + $0x410] sm:$0xff] }
  0xea   :  { %2177 = vmatprep.subr.bf16.mxu0 %v2176_v25  ;;  %2465 = vmatprep.subr.bf16.mxu1 %v2176_v25  ;;  %v161_v25 = vld [vmem:[%s3799_s1 + $0x428] sm:$0xff]  ;;  %v2218_v28 = vpack.c.bf16 %v158_v24, %v156_v23  ;;  %v1333_v24 = vld [vmem:[%s3801_s2 + $0x60] sm:$0xff] }
  0xed   :  { %2179 = vmatpush1.bf16.msra.mxu0 %v2178_v30  ;;  %2467 = vmatpush1.bf16.msra.mxu1 %v2178_v30  ;;  %v2220_v30 = vpack.c.bf16 %v163_v26, %v161_v25  ;;  %v1334_v25 = vld [vmem:[%s3801_s2 + $0x68] sm:$0xff] }
  0xee   :  { %2181 = vmatprep.subr.bf16.mxu0 %v2180_v31  ;;  %2469 = vmatprep.subr.bf16.mxu1 %v2180_v31  ;;  %v160_v31 = vld [vmem:[%s3799_s1 + $0x420] sm:$0xff]  ;;  %v2546_v26 = vpack.c.bf16 %v1334_v25, %v1333_v24 }
  0xef   :  { %v2222_v35 = vpack.c.bf16 %v162_v32, %v160_v31  ;;  %v1336_v31 = vld [vmem:[%s3801_s2 + $0x78] sm:$0xff] }
  0xf1   :  { %2183 = vmatpush1.bf16.msra.mxu0 %v2182_v36  ;;  %2471 = vmatpush1.bf16.msra.mxu1 %v2182_v36  ;;  %v2224_v36 = vpack.c.bf16 %v167_v34, %v165_v33 }
  0xf2   :  { %2185 = vmatprep.subr.bf16.mxu0 %v2184_v37  ;;  %2473 = vmatprep.subr.bf16.mxu1 %v2184_v37  ;;  %v164_v37 = vld [vmem:[%s3799_s1 + $0x440] sm:$0xff] }
  0xf3   :  { %v2226_v41 = vpack.c.bf16 %v166_v38, %v164_v37 }
  0xf5   :  { %2187 = vmatpush1.bf16.msra.mxu0 %v2186_v42  ;;  %2475 = vmatpush1.bf16.msra.mxu1 %v2186_v42  ;;  %v2228_v42 = vpack.c.bf16 %v171_v40, %v169_v39 }
  0xf6   :  { %2189 = vmatprep.subr.bf16.mxu0 %v2188_v43  ;;  %2477 = vmatprep.subr.bf16.mxu1 %v2188_v43  ;;  %v168_v43 = vld [vmem:[%s3799_s1 + $0x460] sm:$0xff] }
  0xf7   :  { %v2230_v47 = vpack.c.bf16 %v170_v44, %v168_v43 }
  0xf9   :  { %2191 = vmatpush1.bf16.msra.mxu0 %v2190_v48  ;;  %2479 = vmatpush1.bf16.msra.mxu1 %v2190_v48  ;;  %v2520_v48 = vpack.c.bf16 %v1338_v46, %v1337_v45 }
  0xfa   :  { %2193 = vmatprep.subr.bf16.mxu0 %v2192_v49  ;;  %2481 = vmatprep.subr.bf16.mxu1 %v2192_v49  ;;  %v1321_v49 = vld [vmem:[%s3801_s2] sm:$0xff] }
  0xfd   :  { %2195 = vmatpush1.bf16.msra.mxu0 %v2194_v54  ;;  %2483 = vmatpush1.bf16.msra.mxu1 %v2194_v54  ;;  %v1857_v54 = vld [vmem:[%s3800_s0 + $0x70] sm:$0xff] }
  0xfe   :  { %2197 = vmatprep.subr.bf16.mxu0 %v2196_v55  ;;  %2485 = vmatprep.subr.bf16.mxu1 %v2196_v55  ;;  %v2522_v55 = vpack.c.bf16 %v1322_v50, %v1321_v49 }
 0x101   :  { %2199 = vmatpush1.bf16.msra.mxu0 %v2198_v61  ;;  %2487 = vmatpush1.bf16.msra.mxu1 %v2198_v61  ;;  %v1342_v61 = vld [vmem:[%s3801_s2 + $0xa8] sm:$0xff] }
 0x102   :  { %2201 = vmatprep.subr.bf16.mxu0 %v2200_v62  ;;  %2489 = vmatprep.subr.bf16.mxu1 %v2200_v62  ;;  %v2526_v62 = vpack.c.bf16 %v1324_v58, %v1323_v57  ;;  %v2528_v63 = vpack.c.bf16 %v1342_v61, %v1341_v60 }
 0x105   :  { %2203 = vmatpush1.bf16.msra.mxu0 %v2202_v3  ;;  %2491 = vmatpush1.bf16.msra.mxu1 %v2202_v3  ;;  %v1344_v3 = vld [vmem:[%s3801_s2 + $0xb8] sm:$0xff] }
 0x106   :  { %2205 = vmatprep.subr.bf16.mxu0 %v2204_v4  ;;  %2493 = vmatprep.subr.bf16.mxu1 %v2204_v4  ;;  %v2530_v4 = vpack.c.bf16 %v1326_v1, %v1325_v0  ;;  %v2532_v5 = vpack.c.bf16 %v1344_v3, %v1343_v2 }
 0x109   :  { %2207 = vmatpush1.bf16.msra.mxu0 %v2206_v9  ;;  %2495 = vmatpush1.bf16.msra.mxu1 %v2206_v9  ;;  %v1345_v9 = vld [vmem:[%s3801_s2 + $0xc0] sm:$0xff] }
 0x10a   :  { %2209 = vmatprep.subr.bf16.mxu0 %v2208_v10  ;;  %2497 = vmatprep.subr.bf16.mxu1 %v2208_v10  ;;  %v1346_v10 = vld [vmem:[%s3801_s2 + $0xc8] sm:$0xff] }
 0x10b   :  { %v2536_v11 = vpack.c.bf16 %v1346_v10, %v1345_v9 }
 0x10d   :  { %2211 = vmatpush1.bf16.msra.mxu0 %v2210_v15  ;;  %2499 = vmatpush1.bf16.msra.mxu1 %v2210_v15  ;;  %v1347_v15 = vld [vmem:[%s3801_s2 + $0xd0] sm:$0xff] }
 0x10e   :  { %2213 = vmatprep.subr.bf16.mxu0 %v2212_v16  ;;  %2501 = vmatprep.subr.bf16.mxu1 %v2212_v16  ;;  %v1348_v16 = vld [vmem:[%s3801_s2 + $0xd8] sm:$0xff] }
 0x10f   :  { %v2540_v17 = vpack.c.bf16 %v1348_v16, %v1347_v15 }
 0x111   :  { %2215 = vmatpush1.bf16.msra.mxu0 %v2214_v21  ;;  %2503 = vmatpush1.bf16.msra.mxu1 %v2214_v21  ;;  %v1349_v21 = vld [vmem:[%s3801_s2 + $0xe0] sm:$0xff] }
 0x112   :  { %2217 = vmatprep.subr.bf16.mxu0 %v2216_v22  ;;  %2505 = vmatprep.subr.bf16.mxu1 %v2216_v22  ;;  %v1350_v22 = vld [vmem:[%s3801_s2 + $0xe8] sm:$0xff] }
 0x113   :  { %v2544_v23 = vpack.c.bf16 %v1350_v22, %v1349_v21 }
 0x114   :  { %712 = vmatmul.mubr.f32.vlgmr.msra.gmra.mrb[0].mxu0 %v25_v27  ;;  %1214 = vmatmul.mubr.f32.vlgmr.msra.gmra.mrb[0].mxu1 %v1855_v29  ;;  %v1351_v27 = vld [vmem:[%s3801_s2 + $0xf0] sm:$0xff] }
 0x115   :  { %2219 = vmatpush1.bf16.msra.mxu0 %v2218_v28  ;;  %2507 = vmatpush1.bf16.msra.mxu1 %v2218_v28  ;;  %v1352_v28 = vld [vmem:[%s3801_s2 + $0xf8] sm:$0xff]  ;;  %v1335_v29 = vld [vmem:[%s3801_s2 + $0x70] sm:$0xff] }
 0x116   :  { %2221 = vmatprep.subr.bf16.mxu0 %v2220_v30  ;;  %2509 = vmatprep.subr.bf16.mxu1 %v2220_v30  ;;  %v2548_v30 = vpack.c.bf16 %v1352_v28, %v1351_v27  ;;  %v2550_v32 = vpack.c.bf16 %v1336_v31, %v1335_v29  ;;  %v1508_v31 = vld [vmem:[%s3802_s3 + $0x18] sm:$0xff] }
 0x117   :  { %782 = vmatprep.mubr.f32.mxu0 %v2623_v59  ;;  %1284 = vmatprep.mubr.f32.mxu1 %v2623_v59 }
 0x119   :  { %2223 = vmatpush1.bf16.msra.mxu0 %v2222_v35  ;;  %2511 = vmatpush1.bf16.msra.mxu1 %v2222_v35 }
 0x11a   :  { %2225 = vmatprep.subr.bf16.mxu0 %v2224_v36  ;;  %2513 = vmatprep.subr.bf16.mxu1 %v2224_v36 }
 0x11d   :  { %2227 = vmatpush1.bf16.msra.mxu0 %v2226_v41  ;;  %2515 = vmatpush1.bf16.msra.mxu1 %v2226_v41 }
 0x11e   :  { %2229 = vmatprep.subr.bf16.mxu0 %v2228_v42  ;;  %2517 = vmatprep.subr.bf16.mxu1 %v2228_v42 }
 0x121   :  { %2231 = vmatpush1.bf16.msra.mxu0 %v2230_v47  ;;  %2519 = vmatpush1.bf16.msra.mxu1 %v2230_v47 }
 0x122   :  { %2521 = vmatprep.subr.bf16.mxu0 %v2520_v48  ;;  %2553 = vmatprep.subr.bf16.mxu1 %v2520_v48 }
 0x124   :  { %1852 = vmatmul.mubr.msk.f32.vlgmr.msra.gmra.mrb[0].mxu0 %vm357_vm1, %v27_v53  ;;  %1869 = vmatmul.mubr.msk.f32.vlgmr.msra.gmra.mrb[0].mxu1 %vm357_vm1, %v1857_v54 }
 0x125   :  { %2523 = vmatpush3.bf16.msra.mxu0 %v2522_v55  ;;  %2555 = vmatpush3.bf16.msra.mxu1 %v2522_v55 }
 0x126   :  { %2525 = vmatprep.subr.bf16.mxu0 %v2524_v56  ;;  %2557 = vmatprep.subr.bf16.mxu1 %v2524_v56 }
 0x129   :  { %2527 = vmatpush3.bf16.msra.mxu0 %v2526_v62  ;;  %2559 = vmatpush3.bf16.msra.mxu1 %v2526_v62 }
 0x12a   :  { %2529 = vmatprep.subr.bf16.mxu0 %v2528_v63  ;;  %2561 = vmatprep.subr.bf16.mxu1 %v2528_v63 }
 0x12d   :  { %2531 = vmatpush3.bf16.msra.mxu0 %v2530_v4  ;;  %2563 = vmatpush3.bf16.msra.mxu1 %v2530_v4 }
 0x12e   :  { %2533 = vmatprep.subr.bf16.mxu0 %v2532_v5  ;;  %2565 = vmatprep.subr.bf16.mxu1 %v2532_v5 }
 0x131   :  { %2535 = vmatpush3.bf16.msra.mxu0 %v2534_v8  ;;  %2567 = vmatpush3.bf16.msra.mxu1 %v2534_v8 }
 0x132   :  { %2537 = vmatprep.subr.bf16.mxu0 %v2536_v11  ;;  %2569 = vmatprep.subr.bf16.mxu1 %v2536_v11 }
 0x135   :  { %2539 = vmatpush3.bf16.msra.mxu0 %v2538_v14  ;;  %2571 = vmatpush3.bf16.msra.mxu1 %v2538_v14 }
 0x136   :  { %2541 = vmatprep.subr.bf16.mxu0 %v2540_v17  ;;  %2573 = vmatprep.subr.bf16.mxu1 %v2540_v17 }
 0x139   :  { %2543 = vmatpush3.bf16.msra.mxu0 %v2542_v20  ;;  %2575 = vmatpush3.bf16.msra.mxu1 %v2542_v20 }
 0x13a   :  { %2545 = vmatprep.subr.bf16.mxu0 %v2544_v23  ;;  %2577 = vmatprep.subr.bf16.mxu1 %v2544_v23 }
 0x13d   :  { %2547 = vmatpush3.bf16.msra.mxu0 %v2546_v26  ;;  %2579 = vmatpush3.bf16.msra.mxu1 %v2546_v26 }
 0x13e   :  { %2549 = vmatprep.subr.bf16.mxu0 %v2548_v30  ;;  %2581 = vmatprep.subr.bf16.mxu1 %v2548_v30  ;;  %v1506_v30 = vld [vmem:[%s3802_s3 + $0x8] sm:$0xff] }
 0x141   :  { %2551 = vmatpush3.bf16.msra.mxu0 %v2550_v32  ;;  %2583 = vmatpush3.bf16.msra.mxu1 %v2550_v32  ;;  %v1505_v32 = vld [vmem:[%s3802_s3] sm:$0xff] }
 0x1f7   :  { %v3727_v33 = vpop.f32.mrb[0].mxu0  ;;  %v3729_v34 = vpop.f32.mrb[0].mxu1 }
 0x1f8   :  { %v789_v35 = vrot.slane %v3727_v33, 4  ;;  %v801_v36 = vmul.f32 %v3727_v33, %v3727_v33  ;;  %v1291_v37 = vrot.slane %v3729_v34, 4  ;;  %v1303_v38 = vmul.f32 %v3729_v34, %v3729_v34  ;;  %v3737_v39 = vpop.f32.mrb[1].mxu0  ;;  %v3739_v40 = vpop.f32.mrb[1].mxu1 }
 0x1f9   :  { %v795_v41 = vrot.slane %v3737_v39, 4  ;;  %v802_v42 = vmul.f32 %v3737_v39, %v3737_v39  ;;  %v1297_v43 = vrot.slane %v3739_v40, 4  ;;  %v1304_v44 = vmul.f32 %v3739_v40, %v3739_v40 }
 0x1fa   :  { %v790_v45 = vadd.f32 %v789_v35, %v3727_v33  ;;  %v803_v46 = vrot.slane %v801_v36, 4  ;;  %v1292_v47 = vadd.f32 %v1291_v37, %v3729_v34  ;;  %v1305_v48 = vrot.slane %v1303_v38, 4  ;;  %v1512_v37 = vld [vmem:[%s3802_s3 + $0x38] sm:$0xff] }
 0x1fb   :  { %v796_v49 = vadd.f32 %v795_v41, %v3737_v39  ;;  %v809_v50 = vrot.slane %v802_v42, 4  ;;  %v1298_v51 = vadd.f32 %v1297_v43, %v3739_v40  ;;  %v1311_v52 = vrot.slane %v1304_v44, 4  ;;  %v1511_v43 = vld [vmem:[%s3802_s3 + $0x30] sm:$0xff] }
 0x1fc   :  { %v791_v53 = vrot.slane %v790_v45, 2  ;;  %v804_v54 = vadd.f32 %v803_v46, %v801_v36  ;;  %v1293_v55 = vrot.slane %v1292_v47, 2  ;;  %v1306_v56 = vadd.f32 %v1305_v48, %v1303_v38  ;;  %v1507_v36 = vld [vmem:[%s3802_s3 + $0x10] sm:$0xff] }
 0x1fd   :  { %v797_v57 = vrot.slane %v796_v49, 2  ;;  %v810_v58 = vadd.f32 %v809_v50, %v802_v42  ;;  %v1299_v60 = vrot.slane %v1298_v51, 2  ;;  %v1312_v61 = vadd.f32 %v1311_v52, %v1304_v44  ;;  %v1509_v42 = vld [vmem:[%s3802_s3 + $0x20] sm:$0xff] }
 0x1fe   :  { %v792_v62 = vadd.f32 %v791_v53, %v790_v45  ;;  %v805_v63 = vrot.slane %v804_v54, 2  ;;  %v1294_v0 = vadd.f32 %v1293_v55, %v1292_v47  ;;  %v1307_v1 = vrot.slane %v1306_v56, 2 }
 0x1ff   :  { %v798_v2 = vadd.f32 %v797_v57, %v796_v49  ;;  %v811_v3 = vrot.slane %v810_v58, 2  ;;  %v1300_v4 = vadd.f32 %v1299_v60, %v1298_v51  ;;  %v1313_v5 = vrot.slane %v1312_v61, 2  ;;  %v1502_v60 = vld [vmem:[%s3804_s5] sm:$0x1] }
 0x200   :  { %v793_v6 = vrot.slane %v792_v62, 1  ;;  %v806_v7 = vadd.f32 %v805_v63, %v804_v54  ;;  %v1295_v8 = vrot.slane %v1294_v0, 1  ;;  %v1308_v9 = vadd.f32 %v1307_v1, %v1306_v56  ;;  %v1500_v56 = vld [vmem:[%s3803_s4] sm:$0x1] }
 0x201   :  { %v799_v10 = vrot.slane %v798_v2, 1  ;;  %v1301_v11 = vrot.slane %v1300_v4, 1  ;;  %v812_v12 = vadd.f32 %v811_v3, %v810_v58  ;;  %v1314_v13 = vadd.f32 %v1313_v5, %v1312_v61 }
 0x202   :  { %v794_v14 = vadd.f32 %v793_v6, %v792_v62  ;;  %v1296_v15 = vadd.f32 %v1295_v8, %v1294_v0  ;;  %v807_v16 = vrot.slane %v806_v7, 1  ;;  %v1309_v17 = vrot.slane %v1308_v9, 1 }
 0x203   :  { %v800_v18 = vadd.f32 %v799_v10, %v798_v2  ;;  %v1302_v19 = vadd.f32 %v1301_v11, %v1300_v4  ;;  %v813_v20 = vrot.slane %v812_v12, 1  ;;  %v1315_v21 = vrot.slane %v1314_v13, 1 }
 0x204   :  { %v1317_v22 = vadd.f32 %v1296_v15, %v794_v14  ;;  %v808_v23 = vadd.f32 %v807_v16, %v806_v7  ;;  %v1310_v24 = vadd.f32 %v1309_v17, %v1308_v9  ;;  %v2584_v35 = vpack.c.bf16 %v1508_v31, %v1506_v30 }
 0x205   :  { %v1318_v25 = vadd.f32 %v1302_v19, %v800_v18  ;;  %v814_v26 = vadd.f32 %v813_v20, %v812_v12  ;;  %v1316_v27 = vadd.f32 %v1315_v21, %v1314_v13  ;;  %v2586_v38 = vpack.c.bf16 %v1507_v36, %v1505_v32 }
 0x206   :  { %v1319_v28 = vadd.f32 %v1310_v24, %v808_v23  ;;  %2585 = vmatprep.subr.bf16.mxu0 %v2584_v35  ;;  %2593 = vmatprep.subr.bf16.mxu1 %v2584_v35  ;;  %v2590_v44 = vpack.c.bf16 %v1511_v43, %v1509_v42  ;;  %v1662_v63 = vlaneseq }
 0x207   :  { %1417 = vmatprep.mubr.f32.mxu0 %v1318_v25  ;;  %v1320_v29 = vadd.f32 %v1316_v27, %v814_v26 }
 0x208   :  { %1418 = vmatmul.mubr.f32.vlgmr.msra.gmra.mrb[2].mxu0 %v1317_v22  ;;  %v1663_v0 = vshrl.u32 %v1662_v63, 7 }
 0x209   :  { %1487 = vmatprep.mubr.f32.mxu1 %v1320_v29  ;;  %1581 = vmatprep.mubr.f32.mxu0 %v2623_v59 }
 0x20a   :  { %1488 = vmatmul.mubr.f32.vlgmr.msra.gmra.mrb[2].mxu1 %v1319_v28  ;;  %2587 = vmatpush1.bf16.msra.mxu0 %v2586_v38  ;;  %v1664_v1 = vsub.s32 0, %v1663_v0 }
 0x20b   :  { %1655 = vmatprep.mubr.f32.mxu1 %v2623_v59  ;;  %v1510_v59 = vld [vmem:[%s3802_s3 + $0x28] sm:$0xff]  ;;  %2595 = vmatpush1.bf16.msra.mxu1 %v2586_v38 }
 0x20c   :  { %v2588_v41 = vpack.c.bf16 %v1512_v37, %v1510_v59 }
 0x20e   :  { %2589 = vmatprep.subr.bf16.mxu0 %v2588_v41  ;;  %2597 = vmatprep.subr.bf16.mxu1 %v2588_v41 }
 0x20f   :  { %2591 = vmatpush1.bf16.msra.mxu0 %v2590_v44  ;;  %2599 = vmatpush1.bf16.msra.mxu1 %v2590_v44 }
 0x2db   :  { %v1906_v45 = vpop.f32.mrb[2].mxu0 }
 0x2dc   :  { %v1907_v46 = vpop.f32.mrb[3].mxu0 }
 0x2dd   :  { %v1908_v47 = vadd.f32 %v1907_v46, %v1906_v45  ;;  %v1941_v48 = vpop.f32.mrb[2].mxu1 }
 0x2de   :  { %v1942_v49 = vpop.f32.mrb[3].mxu1 }
 0x2df   :  { %v1494_v50 = vmul.f32 0.0078125, %v1908_v47  ;;  %v1943_v51 = vadd.f32 %v1942_v49, %v1941_v48 }
 0x2e1   :  { %v1496_v52 = vmul.f32 %v1494_v50, %v1494_v50  ;;  %v1495_v53 = vmul.f32 0.0078125, %v1943_v51 }
 0x2e3   :  { %v1497_v54 = vsub.f32 %v1495_v53, %v1496_v52 }
 0x2e5   :  { %v1498_v55 = vadd.f32 1e-05, %v1497_v54 }
 0x2e7   :  { %2621 = vrsqrt.f32 %v1498_v55 }
 0x2f1   :  { %v2622_v57 = vpop.eup %2621 }
 0x2f2   :  { %v1501_v58 = vmul.f32 %v2622_v57, %v1500_v56 }
 0x2f4   :  { %1870 = vmatmul.mubr.msk.f32.vlgmr.msra.gmra.mrb[4].mxu0 %vm1513_vm2, %v1501_v58  ;;  %v1503_v61 = vmul.f32 %v1501_v58, %v1494_v50 }
 0x2f6   :  { %v1504_v62 = vsub.f32 %v1502_v60, %v1503_v61 }
 0x2f8   :  { %1871 = vmatmul.mubr.msk.f32.vlgmr.msra.gmra.mrb[4].mxu1 %vm1513_vm2, %v1504_v62 }
 0x3c7   :  { %v1583_v2 = vpop.f32.mrb[4].mxu0 }
 0x3c8   :  { %v1665_v3 = vrot.slane %v1583_v2, %v1664_v1  ;;  %v1585_v4 = vpop.f32.mrb[5].mxu0 }
 0x3c9   :  { %v1669_v5 = vrot.slane %v1585_v4, %v1664_v1 }
 0x3ca   :  { %v1670_v6 = vmul.f32 %v1665_v3, %v3727_v33  ;;  %v1690_v7 = vmul.f32 %v1665_v3, %v3729_v34 }
 0x3cb   :  { %v1671_v8 = vmul.f32 %v1669_v5, %v3737_v39  ;;  %v1691_v9 = vmul.f32 %v1669_v5, %v3739_v40  ;;  %v1657_v10 = vpop.f32.mrb[4].mxu1 }
 0x3cc   :  { %v1675_v11 = vrot.slane %v1657_v10, %v1664_v1  ;;  %v1659_v12 = vpop.f32.mrb[5].mxu1 }
 0x3cd   :  { %v1679_v13 = vrot.slane %v1659_v12, %v1664_v1 }
 0x3ce   :  { %v1680_v14 = vadd.f32 %v1675_v11, %v1670_v6  ;;  %v1692_v15 = vadd.f32 %v1690_v7, %v1675_v11 }
 0x3cf   :  { %v1681_v16 = vadd.f32 %v1679_v13, %v1671_v8  ;;  %v1693_v17 = vadd.f32 %v1691_v9, %v1679_v13 }
 0x3d0   :  { %vm1682_vm3 = vcmp.ge.f32.partialorder %v1680_v14, 0.0  ;;  %v1684_v18 = vmul.f32 0.2, %v1680_v14  ;;  %vm1694_vm4 = vcmp.ge.f32.partialorder %v1692_v15, 0.0  ;;  %v1696_v19 = vmul.f32 0.2, %v1692_v15 }
 0x3d1   :  { %vm1683_vm5 = vcmp.ge.f32.partialorder %v1681_v16, 0.0  ;;  %v1685_v33 = vmul.f32 0.2, %v1681_v16  ;;  %vm1695_vm6 = vcmp.ge.f32.partialorder %v1693_v17, 0.0  ;;  %v1697_v34 = vmul.f32 0.2, %v1693_v17 }
 0x3d2   :  { %v1686_v20 = vsel %vm1682_vm3, %v1680_v14, %v1684_v18  ;;  %v1698_v39 = vsel %vm1694_vm4, %v1692_v15, %v1696_v19 }
 0x3d3   :  { %1688 = vst [vmem:[%s3805_s6] sm:$0xff] %v1686_v20  ;;  %1872 = vst [vmem:[%s3805_s6 + $0x10] sm:$0xff] %v1698_v39  ;;  %v1687_v40 = vsel %vm1683_vm5, %v1681_v16, %v1685_v33  ;;  %v1699_v21 = vsel %vm1695_vm6, %v1693_v17, %v1697_v34 }
 0x3d4   :  { %1689 = vst [vmem:[%s3805_s6 + $0x8] sm:$0xff] %v1687_v40  ;;  %1873 = vst [vmem:[%s3805_s6 + $0x18] sm:$0xff] %v1699_v21 }

// kernel: _lambda_.7
= control target key start
LH: loop header
LB: loop body
LE: loop exit
PB: predicated region body
PF: predicated region fallthrough
CT: control target
= control target key end

     0   :  { %vm795_vm0 = vcmask 1043456   ;;  %vm1512_vm1 = vcmask 523264   ;;  %s3964_s1 = inlined_call_operand.vmem [shape: f32[2,640,256], index: 1, kind: input, shape index: {}]   ;;  %s3965_s0 = inlined_call_operand.vmem [shape: f32[2,5,640], index: 0, kind: input, shape index: {}]   ;;  %s3966_s2 = inlined_call_operand.vmem [shape: f32[256,64], index: 2, kind: input, shape index: {}]   ;;  %s3967_s3 = inlined_call_operand.vmem [shape: f32[64,256], index: 3, kind: input, shape index: {}]   ;;  %s3968_s4 = inlined_call_operand.vmem [shape: f32[1,64], index: 4, kind: input, shape index: {}]   ;;  %s3969_s5 = inlined_call_operand.vmem [shape: f32[1,64], index: 5, kind: input, shape index: {}]   ;;  %s3970_s6 = inlined_call_operand.vmem [shape: f32[2,4,256], index: 6, kind: output, shape index: {}]  }
   0x1   :  { %v1713_v0 = vld [vmem:[%s3964_s1 + $0x508] sm:$0xff]  ;;  %v1715_v1 = vld [vmem:[%s3964_s1 + $0x518] sm:$0xff]  ;;  %v1712_v2 = vld [vmem:[%s3964_s1 + $0x500] sm:$0xff] }
   0x2   :  { %v1955_v3 = vpack.c.bf16 %v1715_v1, %v1713_v0  ;;  %v1714_v4 = vld [vmem:[%s3964_s1 + $0x510] sm:$0xff]  ;;  %v1717_v5 = vld [vmem:[%s3964_s1 + $0x528] sm:$0xff]  ;;  %v1719_v6 = vld [vmem:[%s3964_s1 + $0x538] sm:$0xff] }
   0x3   :  { %v1957_v7 = vpack.c.bf16 %v1714_v4, %v1712_v2  ;;  %v1959_v8 = vpack.c.bf16 %v1719_v6, %v1717_v5  ;;  %v1716_v9 = vld [vmem:[%s3964_s1 + $0x520] sm:$0xff]  ;;  %v1718_v10 = vld [vmem:[%s3964_s1 + $0x530] sm:$0xff]  ;;  %v1721_v11 = vld [vmem:[%s3964_s1 + $0x548] sm:$0xff] }
   0x4   :  { %1956 = vmatprep.subr.bf16.mxu0 %v1955_v3  ;;  %2276 = vmatprep.subr.bf16.mxu1 %v1955_v3  ;;  %v1723_v12 = vld [vmem:[%s3964_s1 + $0x558] sm:$0xff]  ;;  %v1961_v13 = vpack.c.bf16 %v1718_v10, %v1716_v9  ;;  %v1720_v15 = vld [vmem:[%s3964_s1 + $0x540] sm:$0xff]  ;;  %v1722_v16 = vld [vmem:[%s3964_s1 + $0x550] sm:$0xff] }
   0x5   :  { %1958 = vmatpush1.bf16.msra.mxu0 %v1957_v7  ;;  %2278 = vmatpush1.bf16.msra.mxu1 %v1957_v7  ;;  %v1963_v14 = vpack.c.bf16 %v1723_v12, %v1721_v11  ;;  %v1725_v17 = vld [vmem:[%s3964_s1 + $0x568] sm:$0xff]  ;;  %v1727_v18 = vld [vmem:[%s3964_s1 + $0x578] sm:$0xff]  ;;  %v1965_v19 = vpack.c.bf16 %v1722_v16, %v1720_v15  ;;  %v1724_v21 = vld [vmem:[%s3964_s1 + $0x560] sm:$0xff] }
   0x6   :  { %1960 = vmatprep.subr.bf16.mxu0 %v1959_v8  ;;  %2280 = vmatprep.subr.bf16.mxu1 %v1959_v8  ;;  %v1967_v20 = vpack.c.bf16 %v1727_v18, %v1725_v17  ;;  %v1726_v22 = vld [vmem:[%s3964_s1 + $0x570] sm:$0xff]  ;;  %v1729_v23 = vld [vmem:[%s3964_s1 + $0x588] sm:$0xff]  ;;  %v1731_v24 = vld [vmem:[%s3964_s1 + $0x598] sm:$0xff] }
   0x7   :  { %v1969_v25 = vpack.c.bf16 %v1726_v22, %v1724_v21  ;;  %v1971_v26 = vpack.c.bf16 %v1731_v24, %v1729_v23  ;;  %v1728_v27 = vld [vmem:[%s3964_s1 + $0x580] sm:$0xff]  ;;  %v1730_v28 = vld [vmem:[%s3964_s1 + $0x590] sm:$0xff]  ;;  %v1733_v29 = vld [vmem:[%s3964_s1 + $0x5a8] sm:$0xff] }
   0x8   :  { %v1735_v30 = vld [vmem:[%s3964_s1 + $0x5b8] sm:$0xff]  ;;  %v1973_v31 = vpack.c.bf16 %v1730_v28, %v1728_v27  ;;  %v1732_v33 = vld [vmem:[%s3964_s1 + $0x5a0] sm:$0xff]  ;;  %v1734_v34 = vld [vmem:[%s3964_s1 + $0x5b0] sm:$0xff] }
   0x9   :  { %1962 = vmatpush1.bf16.msra.mxu0 %v1961_v13  ;;  %2282 = vmatpush1.bf16.msra.mxu1 %v1961_v13  ;;  %v1975_v32 = vpack.c.bf16 %v1735_v30, %v1733_v29  ;;  %v1737_v35 = vld [vmem:[%s3964_s1 + $0x5c8] sm:$0xff]  ;;  %v1739_v36 = vld [vmem:[%s3964_s1 + $0x5d8] sm:$0xff]  ;;  %v1977_v37 = vpack.c.bf16 %v1734_v34, %v1732_v33  ;;  %v1736_v39 = vld [vmem:[%s3964_s1 + $0x5c0] sm:$0xff] }
   0xa   :  { %1964 = vmatprep.subr.bf16.mxu0 %v1963_v14  ;;  %2284 = vmatprep.subr.bf16.mxu1 %v1963_v14  ;;  %v1979_v38 = vpack.c.bf16 %v1739_v36, %v1737_v35  ;;  %v1738_v40 = vld [vmem:[%s3964_s1 + $0x5d0] sm:$0xff]  ;;  %v189_v41 = vld [vmem:[%s3965_s0 + $0x8] sm:$0x1e]  ;;  %v1743_v43 = vld [vmem:[%s3964_s1 + $0x5f8] sm:$0xff] }
   0xb   :  { %v1741_v42 = vld [vmem:[%s3964_s1 + $0x5e8] sm:$0xff]  ;;  %v360_v44 = vrot.slane %v189_v41, 1  ;;  %v1878_v45 = vld [vmem:[%s3965_s0 + $0x30] sm:$0x1e]  ;;  %v1981_v47 = vpack.c.bf16 %v1738_v40, %v1736_v39  ;;  %v1740_v49 = vld [vmem:[%s3964_s1 + $0x5e0] sm:$0xff] }
   0xc   :  { %v843_v46 = vrot.slane %v1878_v45, 1  ;;  %v1983_v48 = vpack.c.bf16 %v1743_v43, %v1741_v42  ;;  %v1742_v50 = vld [vmem:[%s3964_s1 + $0x5f0] sm:$0xff]  ;;  %v1745_v51 = vld [vmem:[%s3964_s1 + $0x608] sm:$0xff]  ;;  %v1747_v52 = vld [vmem:[%s3964_s1 + $0x618] sm:$0xff] }
   0xd   :  { %1966 = vmatpush1.bf16.msra.mxu0 %v1965_v19  ;;  %2286 = vmatpush1.bf16.msra.mxu1 %v1965_v19  ;;  %v1985_v53 = vpack.c.bf16 %v1742_v50, %v1740_v49  ;;  %v1987_v54 = vpack.c.bf16 %v1747_v52, %v1745_v51  ;;  %v1744_v55 = vld [vmem:[%s3964_s1 + $0x600] sm:$0xff]  ;;  %v1746_v56 = vld [vmem:[%s3964_s1 + $0x610] sm:$0xff]  ;;  %v1749_v57 = vld [vmem:[%s3964_s1 + $0x628] sm:$0xff] }
   0xe   :  { %1968 = vmatprep.subr.bf16.mxu0 %v1967_v20  ;;  %2288 = vmatprep.subr.bf16.mxu1 %v1967_v20  ;;  %v1751_v58 = vld [vmem:[%s3964_s1 + $0x638] sm:$0xff]  ;;  %v1989_v59 = vpack.c.bf16 %v1746_v56, %v1744_v55  ;;  %v1748_v61 = vld [vmem:[%s3964_s1 + $0x620] sm:$0xff]  ;;  %v1750_v62 = vld [vmem:[%s3964_s1 + $0x630] sm:$0xff] }
   0xf   :  { %433 = vmatprep.mubr.f32.mxu0 %v360_v44  ;;  %916 = vmatprep.mubr.f32.mxu1 %v843_v46  ;;  %v1991_v60 = vpack.c.bf16 %v1751_v58, %v1749_v57  ;;  %v1753_v63 = vld [vmem:[%s3964_s1 + $0x648] sm:$0xff]  ;;  %v1755_v0 = vld [vmem:[%s3964_s1 + $0x658] sm:$0xff]  ;;  %v1993_v1 = vpack.c.bf16 %v1750_v62, %v1748_v61  ;;  %v1752_v3 = vld [vmem:[%s3964_s1 + $0x640] sm:$0xff] }
  0x10   :  { %v1995_v2 = vpack.c.bf16 %v1755_v0, %v1753_v63  ;;  %v1754_v4 = vld [vmem:[%s3964_s1 + $0x650] sm:$0xff]  ;;  %v1757_v5 = vld [vmem:[%s3964_s1 + $0x668] sm:$0xff]  ;;  %v1759_v6 = vld [vmem:[%s3964_s1 + $0x678] sm:$0xff] }
  0x11   :  { %1970 = vmatpush1.bf16.msra.mxu0 %v1969_v25  ;;  %2290 = vmatpush1.bf16.msra.mxu1 %v1969_v25  ;;  %v1997_v7 = vpack.c.bf16 %v1754_v4, %v1752_v3  ;;  %v1999_v8 = vpack.c.bf16 %v1759_v6, %v1757_v5  ;;  %v1756_v9 = vld [vmem:[%s3964_s1 + $0x660] sm:$0xff]  ;;  %v1758_v10 = vld [vmem:[%s3964_s1 + $0x670] sm:$0xff]  ;;  %v1761_v11 = vld [vmem:[%s3964_s1 + $0x688] sm:$0xff] }
  0x12   :  { %1972 = vmatprep.subr.bf16.mxu0 %v1971_v26  ;;  %2292 = vmatprep.subr.bf16.mxu1 %v1971_v26  ;;  %v1763_v12 = vld [vmem:[%s3964_s1 + $0x698] sm:$0xff]  ;;  %v2001_v13 = vpack.c.bf16 %v1758_v10, %v1756_v9  ;;  %v1760_v15 = vld [vmem:[%s3964_s1 + $0x680] sm:$0xff]  ;;  %v1762_v16 = vld [vmem:[%s3964_s1 + $0x690] sm:$0xff] }
  0x13   :  { %v2003_v14 = vpack.c.bf16 %v1763_v12, %v1761_v11  ;;  %v1765_v17 = vld [vmem:[%s3964_s1 + $0x6a8] sm:$0xff]  ;;  %v1767_v18 = vld [vmem:[%s3964_s1 + $0x6b8] sm:$0xff]  ;;  %v2005_v19 = vpack.c.bf16 %v1762_v16, %v1760_v15  ;;  %v1764_v21 = vld [vmem:[%s3964_s1 + $0x6a0] sm:$0xff] }
  0x14   :  { %v2007_v20 = vpack.c.bf16 %v1767_v18, %v1765_v17  ;;  %v1766_v22 = vld [vmem:[%s3964_s1 + $0x6b0] sm:$0xff]  ;;  %v1769_v23 = vld [vmem:[%s3964_s1 + $0x6c8] sm:$0xff]  ;;  %v1771_v24 = vld [vmem:[%s3964_s1 + $0x6d8] sm:$0xff] }
  0x15   :  { %1974 = vmatpush1.bf16.msra.mxu0 %v1973_v31  ;;  %2294 = vmatpush1.bf16.msra.mxu1 %v1973_v31  ;;  %v2009_v25 = vpack.c.bf16 %v1766_v22, %v1764_v21  ;;  %v2011_v26 = vpack.c.bf16 %v1771_v24, %v1769_v23  ;;  %v1768_v27 = vld [vmem:[%s3964_s1 + $0x6c0] sm:$0xff]  ;;  %v1770_v28 = vld [vmem:[%s3964_s1 + $0x6d0] sm:$0xff]  ;;  %v1773_v29 = vld [vmem:[%s3964_s1 + $0x6e8] sm:$0xff] }
  0x16   :  { %1976 = vmatprep.subr.bf16.mxu0 %v1975_v32  ;;  %2296 = vmatprep.subr.bf16.mxu1 %v1975_v32  ;;  %v1775_v30 = vld [vmem:[%s3964_s1 + $0x6f8] sm:$0xff]  ;;  %v2013_v31 = vpack.c.bf16 %v1770_v28, %v1768_v27  ;;  %v1772_v33 = vld [vmem:[%s3964_s1 + $0x6e0] sm:$0xff]  ;;  %v1774_v34 = vld [vmem:[%s3964_s1 + $0x6f0] sm:$0xff] }
  0x17   :  { %v2015_v32 = vpack.c.bf16 %v1775_v30, %v1773_v29  ;;  %v1777_v35 = vld [vmem:[%s3964_s1 + $0x708] sm:$0xff]  ;;  %v1779_v36 = vld [vmem:[%s3964_s1 + $0x718] sm:$0xff]  ;;  %v1776_v41 = vld [vmem:[%s3964_s1 + $0x700] sm:$0xff] }
  0x18   :  { %v1877_v39 = vld [vmem:[%s3965_s0 + $0x28] sm:$0x1e]  ;;  %v2019_v40 = vpack.c.bf16 %v1779_v36, %v1777_v35  ;;  %v1778_v42 = vld [vmem:[%s3964_s1 + $0x710] sm:$0xff]  ;;  %v1783_v44 = vld [vmem:[%s3964_s1 + $0x738] sm:$0xff] }
  0x19   :  { %1978 = vmatpush1.bf16.msra.mxu0 %v1977_v37  ;;  %2298 = vmatpush1.bf16.msra.mxu1 %v1977_v37  ;;  %v2017_v37 = vpack.c.bf16 %v1774_v34, %v1772_v33  ;;  %v1781_v43 = vld [vmem:[%s3964_s1 + $0x728] sm:$0xff]  ;;  %v842_v46 = vrot.slane %v1877_v39, 1  ;;  %v2021_v49 = vpack.c.bf16 %v1778_v42, %v1776_v41  ;;  %v1780_v51 = vld [vmem:[%s3964_s1 + $0x720] sm:$0xff]  ;;  %v1782_v52 = vld [vmem:[%s3964_s1 + $0x730] sm:$0xff] }
  0x1a   :  { %1980 = vmatprep.subr.bf16.mxu0 %v1979_v38  ;;  %2300 = vmatprep.subr.bf16.mxu1 %v1979_v38  ;;  %v188_v38 = vld [vmem:[%s3965_s0] sm:$0x1e]  ;;  %v2023_v50 = vpack.c.bf16 %v1783_v44, %v1781_v43  ;;  %v2025_v57 = vpack.c.bf16 %v1782_v52, %v1780_v51  ;;  %v1789_v61 = vld [vmem:[%s3964_s1 + $0x768] sm:$0xff]  ;;  %v1791_v62 = vld [vmem:[%s3964_s1 + $0x778] sm:$0xff] }
  0x1b   :  { %v359_v45 = vrot.slane %v188_v38, 1  ;;  %v2031_v0 = vpack.c.bf16 %v1791_v62, %v1789_v61  ;;  %v1793_v3 = vld [vmem:[%s3964_s1 + $0x788] sm:$0xff]  ;;  %v1795_v4 = vld [vmem:[%s3964_s1 + $0x798] sm:$0xff]  ;;  %v1814_v38 = vld [vmem:[%s3964_s1 + $0x830] sm:$0xff] }
  0x1c   :  { %v2035_v6 = vpack.c.bf16 %v1795_v4, %v1793_v3  ;;  %v1797_v9 = vld [vmem:[%s3964_s1 + $0x7a8] sm:$0xff]  ;;  %v1799_v10 = vld [vmem:[%s3964_s1 + $0x7b8] sm:$0xff]  ;;  %v1816_v43 = vld [vmem:[%s3964_s1 + $0x840] sm:$0xff] }
  0x1d   :  { %1982 = vmatpush1.bf16.msra.mxu0 %v1981_v47  ;;  %2302 = vmatpush1.bf16.msra.mxu1 %v1981_v47  ;;  %v191_v47 = vld [vmem:[%s3965_s0 + $0x18] sm:$0x1e]  ;;  %v2039_v12 = vpack.c.bf16 %v1799_v10, %v1797_v9  ;;  %v1801_v15 = vld [vmem:[%s3964_s1 + $0x7c8] sm:$0xff]  ;;  %v1818_v44 = vld [vmem:[%s3964_s1 + $0x850] sm:$0xff] }
  0x1e   :  { %1984 = vmatprep.subr.bf16.mxu0 %v1983_v48  ;;  %2304 = vmatprep.subr.bf16.mxu1 %v1983_v48  ;;  %v1880_v48 = vld [vmem:[%s3965_s0 + $0x40] sm:$0x1e]  ;;  %v362_v55 = vrot.slane %v191_v47, 1  ;;  %v1803_v16 = vld [vmem:[%s3964_s1 + $0x7d8] sm:$0xff]  ;;  %v1805_v21 = vld [vmem:[%s3964_s1 + $0x7e8] sm:$0xff]  ;;  %v2061_v47 = vpack.c.bf16 %v1818_v44, %v1816_v43 }
  0x1f   :  { %v845_v56 = vrot.slane %v1880_v48, 1  ;;  %v2043_v18 = vpack.c.bf16 %v1803_v16, %v1801_v15  ;;  %v1807_v22 = vld [vmem:[%s3964_s1 + $0x7f8] sm:$0xff]  ;;  %v1809_v27 = vld [vmem:[%s3964_s1 + $0x808] sm:$0xff]  ;;  %v1828_v61 = vld [vmem:[%s3964_s1 + $0x8a0] sm:$0xff] }
  0x20   :  { %v2047_v24 = vpack.c.bf16 %v1807_v22, %v1805_v21  ;;  %v1811_v28 = vld [vmem:[%s3964_s1 + $0x818] sm:$0xff]  ;;  %v1813_v33 = vld [vmem:[%s3964_s1 + $0x828] sm:$0xff]  ;;  %v1830_v62 = vld [vmem:[%s3964_s1 + $0x8b0] sm:$0xff] }
  0x21   :  { %1986 = vmatpush1.bf16.msra.mxu0 %v1985_v53  ;;  %2306 = vmatpush1.bf16.msra.mxu1 %v1985_v53  ;;  %v1785_v53 = vld [vmem:[%s3964_s1 + $0x748] sm:$0xff]  ;;  %v2051_v30 = vpack.c.bf16 %v1811_v28, %v1809_v27  ;;  %v1815_v34 = vld [vmem:[%s3964_s1 + $0x838] sm:$0xff]  ;;  %v1832_v3 = vld [vmem:[%s3964_s1 + $0x8c0] sm:$0xff] }
  0x22   :  { %1988 = vmatprep.subr.bf16.mxu0 %v1987_v54  ;;  %2308 = vmatprep.subr.bf16.mxu1 %v1987_v54  ;;  %v1787_v54 = vld [vmem:[%s3964_s1 + $0x758] sm:$0xff]  ;;  %v2055_v36 = vpack.c.bf16 %v1815_v34, %v1813_v33  ;;  %v1817_v39 = vld [vmem:[%s3964_s1 + $0x848] sm:$0xff]  ;;  %v1834_v4 = vld [vmem:[%s3964_s1 + $0x8d0] sm:$0xff] }
  0x23   :  { %v2027_v58 = vpack.c.bf16 %v1787_v54, %v1785_v53  ;;  %v1825_v51 = vld [vmem:[%s3964_s1 + $0x888] sm:$0xff]  ;;  %v1827_v52 = vld [vmem:[%s3964_s1 + $0x898] sm:$0xff]  ;;  %v1836_v9 = vld [vmem:[%s3964_s1 + $0x8e0] sm:$0xff] }
  0x24   :  { %v2067_v54 = vpack.c.bf16 %v1827_v52, %v1825_v51  ;;  %v1838_v10 = vld [vmem:[%s3964_s1 + $0x8f0] sm:$0xff]  ;;  %v1879_v15 = vld [vmem:[%s3965_s0 + $0x38] sm:$0x1e]  ;;  %v1849_v27 = vld [vmem:[%s3964_s1 + $0x948] sm:$0xff] }
  0x25   :  { %1990 = vmatpush1.bf16.msra.mxu0 %v1989_v59  ;;  %2310 = vmatpush1.bf16.msra.mxu1 %v1989_v59  ;;  %v1784_v59 = vld [vmem:[%s3964_s1 + $0x740] sm:$0xff]  ;;  %v844_v22 = vrot.slane %v1879_v15, 1  ;;  %v1851_v28 = vld [vmem:[%s3964_s1 + $0x958] sm:$0xff]  ;;  %v1853_v33 = vld [vmem:[%s3964_s1 + $0x968] sm:$0xff] }
  0x26   :  { %1992 = vmatprep.subr.bf16.mxu0 %v1991_v60  ;;  %2312 = vmatprep.subr.bf16.mxu1 %v1991_v60  ;;  %v1786_v60 = vld [vmem:[%s3964_s1 + $0x750] sm:$0xff]  ;;  %v1855_v34 = vld [vmem:[%s3964_s1 + $0x978] sm:$0xff]  ;;  %v1856_v44 = vld [vmem:[%s3964_s1 + $0x980] sm:$0xff] }
  0x27   :  { %v2029_v63 = vpack.c.bf16 %v1786_v60, %v1784_v59  ;;  %v1862_v51 = vld [vmem:[%s3964_s1 + $0x9b0] sm:$0xff]  ;;  %v1865_v52 = vld [vmem:[%s3964_s1 + $0x9c8] sm:$0xff] }
  0x28   :  { %v34_v15 = vld [vmem:[%s3964_s1 + $0x30] sm:$0xff] }
  0x29   :  { %1994 = vmatpush1.bf16.msra.mxu0 %v1993_v1  ;;  %2314 = vmatpush1.bf16.msra.mxu1 %v1993_v1  ;;  %v1788_v1 = vld [vmem:[%s3964_s1 + $0x760] sm:$0xff] }
  0x2a   :  { %1996 = vmatprep.subr.bf16.mxu0 %v1995_v2  ;;  %2316 = vmatprep.subr.bf16.mxu1 %v1995_v2  ;;  %v1790_v2 = vld [vmem:[%s3964_s1 + $0x770] sm:$0xff] }
  0x2b   :  { %v2033_v5 = vpack.c.bf16 %v1790_v2, %v1788_v1  ;;  %v2073_v1 = vpack.c.bf16 %v1830_v62, %v1828_v61  ;;  %v1868_v62 = vld [vmem:[%s3964_s1 + $0x9e0] sm:$0xff] }
  0x2d   :  { %1998 = vmatpush1.bf16.msra.mxu0 %v1997_v7  ;;  %2318 = vmatpush1.bf16.msra.mxu1 %v1997_v7  ;;  %v1792_v7 = vld [vmem:[%s3964_s1 + $0x780] sm:$0xff] }
  0x2e   :  { %2000 = vmatprep.subr.bf16.mxu0 %v1999_v8  ;;  %2320 = vmatprep.subr.bf16.mxu1 %v1999_v8  ;;  %v1794_v8 = vld [vmem:[%s3964_s1 + $0x790] sm:$0xff] }
  0x2f   :  { %v2037_v11 = vpack.c.bf16 %v1794_v8, %v1792_v7  ;;  %v2077_v7 = vpack.c.bf16 %v1834_v4, %v1832_v3  ;;  %v192_v3 = vld [vmem:[%s3965_s0 + $0x20] sm:$0x1e]  ;;  %v1881_v4 = vld [vmem:[%s3965_s0 + $0x48] sm:$0x1e] }
  0x31   :  { %2002 = vmatpush1.bf16.msra.mxu0 %v2001_v13  ;;  %2322 = vmatpush1.bf16.msra.mxu1 %v2001_v13  ;;  %v1796_v13 = vld [vmem:[%s3964_s1 + $0x7a0] sm:$0xff] }
  0x32   :  { %2004 = vmatprep.subr.bf16.mxu0 %v2003_v14  ;;  %2324 = vmatprep.subr.bf16.mxu1 %v2003_v14  ;;  %v1798_v14 = vld [vmem:[%s3964_s1 + $0x7b0] sm:$0xff] }
  0x33   :  { %v2041_v17 = vpack.c.bf16 %v1798_v14, %v1796_v13  ;;  %v2081_v13 = vpack.c.bf16 %v1838_v10, %v1836_v9  ;;  %v190_v14 = vld [vmem:[%s3965_s0 + $0x10] sm:$0x1e]  ;;  %v35_v9 = vld [vmem:[%s3964_s1 + $0x38] sm:$0xff]  ;;  %v363_v10 = vrot.slane %v192_v3, 1  ;;  %v69_v3 = vld [vmem:[%s3964_s1 + $0x148] sm:$0xff] }
  0x34   :  { %v361_v21 = vrot.slane %v190_v14, 1  ;;  %v32_v14 = vld [vmem:[%s3964_s1 + $0x20] sm:$0xff] }
  0x35   :  { %2006 = vmatpush1.bf16.msra.mxu0 %v2005_v19  ;;  %2326 = vmatpush1.bf16.msra.mxu1 %v2005_v19  ;;  %v1800_v19 = vld [vmem:[%s3964_s1 + $0x7c0] sm:$0xff] }
  0x36   :  { %2008 = vmatprep.subr.bf16.mxu0 %v2007_v20  ;;  %2328 = vmatprep.subr.bf16.mxu1 %v2007_v20  ;;  %v1802_v20 = vld [vmem:[%s3964_s1 + $0x7d0] sm:$0xff] }
  0x37   :  { %v2045_v23 = vpack.c.bf16 %v1802_v20, %v1800_v19  ;;  %v1845_v19 = vld [vmem:[%s3964_s1 + $0x928] sm:$0xff]  ;;  %v1847_v20 = vld [vmem:[%s3964_s1 + $0x938] sm:$0xff] }
  0x39   :  { %2010 = vmatpush1.bf16.msra.mxu0 %v2009_v25  ;;  %2330 = vmatpush1.bf16.msra.mxu1 %v2009_v25  ;;  %v1804_v25 = vld [vmem:[%s3964_s1 + $0x7e0] sm:$0xff] }
  0x3a   :  { %2012 = vmatprep.subr.bf16.mxu0 %v2011_v26  ;;  %2332 = vmatprep.subr.bf16.mxu1 %v2011_v26  ;;  %v1806_v26 = vld [vmem:[%s3964_s1 + $0x7f0] sm:$0xff] }
  0x3b   :  { %v2049_v29 = vpack.c.bf16 %v1806_v26, %v1804_v25  ;;  %v1844_v25 = vld [vmem:[%s3964_s1 + $0x920] sm:$0xff]  ;;  %v1846_v26 = vld [vmem:[%s3964_s1 + $0x930] sm:$0xff] }
  0x3d   :  { %2014 = vmatpush1.bf16.msra.mxu0 %v2013_v31  ;;  %2334 = vmatpush1.bf16.msra.mxu1 %v2013_v31  ;;  %v1808_v31 = vld [vmem:[%s3964_s1 + $0x800] sm:$0xff] }
  0x3e   :  { %2016 = vmatprep.subr.bf16.mxu0 %v2015_v32  ;;  %2336 = vmatprep.subr.bf16.mxu1 %v2015_v32  ;;  %v1810_v32 = vld [vmem:[%s3964_s1 + $0x810] sm:$0xff] }
  0x3f   :  { %v2053_v35 = vpack.c.bf16 %v1810_v32, %v1808_v31  ;;  %v1848_v31 = vld [vmem:[%s3964_s1 + $0x940] sm:$0xff]  ;;  %v1850_v32 = vld [vmem:[%s3964_s1 + $0x950] sm:$0xff] }
  0x41   :  { %2018 = vmatpush1.bf16.msra.mxu0 %v2017_v37  ;;  %2338 = vmatpush1.bf16.msra.mxu1 %v2017_v37  ;;  %v1812_v37 = vld [vmem:[%s3964_s1 + $0x820] sm:$0xff] }
  0x42   :  { %2020 = vmatprep.subr.bf16.mxu0 %v2019_v40  ;;  %2340 = vmatprep.subr.bf16.mxu1 %v2019_v40  ;;  %v1819_v40 = vld [vmem:[%s3964_s1 + $0x858] sm:$0xff]  ;;  %v2057_v41 = vpack.c.bf16 %v1814_v38, %v1812_v37  ;;  %v2095_v37 = vpack.c.bf16 %v1855_v34, %v1853_v33  ;;  %v1852_v38 = vld [vmem:[%s3964_s1 + $0x960] sm:$0xff] }
  0x43   :  { %v2059_v42 = vpack.c.bf16 %v1819_v40, %v1817_v39  ;;  %v1854_v39 = vld [vmem:[%s3964_s1 + $0x970] sm:$0xff]  ;;  %v1857_v40 = vld [vmem:[%s3964_s1 + $0x988] sm:$0xff]  ;;  %v44_v34 = vld [vmem:[%s3964_s1 + $0x80] sm:$0xff] }
  0x44   :  { %434 = vmatmul.mubr.f32.vlgmr.msra.gmra.mrb[0].mxu0 %v359_v45  ;;  %917 = vmatmul.mubr.f32.vlgmr.msra.gmra.mrb[0].mxu1 %v842_v46  ;;  %v1821_v45 = vld [vmem:[%s3964_s1 + $0x868] sm:$0xff]  ;;  %v1823_v46 = vld [vmem:[%s3964_s1 + $0x878] sm:$0xff] }
  0x45   :  { %2022 = vmatpush1.bf16.msra.mxu0 %v2021_v49  ;;  %2342 = vmatpush1.bf16.msra.mxu1 %v2021_v49  ;;  %v2063_v48 = vpack.c.bf16 %v1823_v46, %v1821_v45  ;;  %v1820_v49 = vld [vmem:[%s3964_s1 + $0x860] sm:$0xff]  ;;  %v1858_v45 = vld [vmem:[%s3964_s1 + $0x990] sm:$0xff]  ;;  %v1861_v46 = vld [vmem:[%s3964_s1 + $0x9a8] sm:$0xff] }
  0x46   :  { %2024 = vmatprep.subr.bf16.mxu0 %v2023_v50  ;;  %2344 = vmatprep.subr.bf16.mxu1 %v2023_v50  ;;  %v1822_v50 = vld [vmem:[%s3964_s1 + $0x870] sm:$0xff] }
  0x47   :  { %504 = vmatprep.mubr.f32.mxu0 %v362_v55  ;;  %987 = vmatprep.mubr.f32.mxu1 %v845_v56  ;;  %v2065_v53 = vpack.c.bf16 %v1822_v50, %v1820_v49  ;;  %v1824_v55 = vld [vmem:[%s3964_s1 + $0x880] sm:$0xff]  ;;  %v1826_v56 = vld [vmem:[%s3964_s1 + $0x890] sm:$0xff] }
  0x48   :  { %v2069_v59 = vpack.c.bf16 %v1826_v56, %v1824_v55  ;;  %v1860_v50 = vld [vmem:[%s3964_s1 + $0x9a0] sm:$0xff] }
  0x49   :  { %2026 = vmatpush1.bf16.msra.mxu0 %v2025_v57  ;;  %2346 = vmatpush1.bf16.msra.mxu1 %v2025_v57  ;;  %v1829_v57 = vld [vmem:[%s3964_s1 + $0x8a8] sm:$0xff]  ;;  %v1864_v56 = vld [vmem:[%s3964_s1 + $0x9c0] sm:$0xff] }
  0x4a   :  { %2028 = vmatprep.subr.bf16.mxu0 %v2027_v58  ;;  %2348 = vmatprep.subr.bf16.mxu1 %v2027_v58  ;;  %v1831_v58 = vld [vmem:[%s3964_s1 + $0x8b8] sm:$0xff] }
  0x4b   :  { %v2071_v60 = vpack.c.bf16 %v1831_v58, %v1829_v57  ;;  %v1866_v57 = vld [vmem:[%s3964_s1 + $0x9d0] sm:$0xff]  ;;  %v1869_v58 = vld [vmem:[%s3964_s1 + $0x9e8] sm:$0xff] }
  0x4d   :  { %2030 = vmatpush1.bf16.msra.mxu0 %v2029_v63  ;;  %2350 = vmatpush1.bf16.msra.mxu1 %v2029_v63  ;;  %v1833_v63 = vld [vmem:[%s3964_s1 + $0x8c8] sm:$0xff] }
  0x4e   :  { %2032 = vmatprep.subr.bf16.mxu0 %v2031_v0  ;;  %2352 = vmatprep.subr.bf16.mxu1 %v2031_v0  ;;  %v1835_v0 = vld [vmem:[%s3964_s1 + $0x8d8] sm:$0xff] }
  0x4f   :  { %v2075_v2 = vpack.c.bf16 %v1835_v0, %v1833_v63  ;;  %v1870_v63 = vld [vmem:[%s3964_s1 + $0x9f0] sm:$0xff]  ;;  %v29_v0 = vld [vmem:[%s3964_s1 + $0x8] sm:$0xff] }
  0x51   :  { %2034 = vmatpush1.bf16.msra.mxu0 %v2033_v5  ;;  %2354 = vmatpush1.bf16.msra.mxu1 %v2033_v5  ;;  %v1837_v5 = vld [vmem:[%s3964_s1 + $0x8e8] sm:$0xff] }
  0x52   :  { %2036 = vmatprep.subr.bf16.mxu0 %v2035_v6  ;;  %2356 = vmatprep.subr.bf16.mxu1 %v2035_v6  ;;  %v1839_v6 = vld [vmem:[%s3964_s1 + $0x8f8] sm:$0xff] }
  0x53   :  { %v2079_v8 = vpack.c.bf16 %v1839_v6, %v1837_v5  ;;  %v28_v6 = vld [vmem:[%s3964_s1] sm:$0xff] }
  0x55   :  { %2038 = vmatpush1.bf16.msra.mxu0 %v2037_v11  ;;  %2358 = vmatpush1.bf16.msra.mxu1 %v2037_v11  ;;  %v1841_v11 = vld [vmem:[%s3964_s1 + $0x908] sm:$0xff] }
  0x56   :  { %2040 = vmatprep.subr.bf16.mxu0 %v2039_v12  ;;  %2360 = vmatprep.subr.bf16.mxu1 %v2039_v12  ;;  %v1843_v12 = vld [vmem:[%s3964_s1 + $0x918] sm:$0xff] }
  0x57   :  { %v2083_v16 = vpack.c.bf16 %v1843_v12, %v1841_v11  ;;  %v846_v11 = vrot.slane %v1881_v4, 1  ;;  %v71_v4 = vld [vmem:[%s3964_s1 + $0x158] sm:$0xff] }
  0x59   :  { %2042 = vmatpush1.bf16.msra.mxu0 %v2041_v17  ;;  %2362 = vmatpush1.bf16.msra.mxu1 %v2041_v17  ;;  %v1840_v17 = vld [vmem:[%s3964_s1 + $0x900] sm:$0xff] }
  0x5a   :  { %2044 = vmatprep.subr.bf16.mxu0 %v2043_v18  ;;  %2364 = vmatprep.subr.bf16.mxu1 %v2043_v18  ;;  %v1842_v18 = vld [vmem:[%s3964_s1 + $0x910] sm:$0xff] }
  0x5d   :  { %2046 = vmatpush1.bf16.msra.mxu0 %v2045_v23  ;;  %2366 = vmatpush1.bf16.msra.mxu1 %v2045_v23  ;;  %v2085_v23 = vpack.c.bf16 %v1842_v18, %v1840_v17  ;;  %v39_v17 = vld [vmem:[%s3964_s1 + $0x58] sm:$0xff]  ;;  %v24_v18 = vld [vmem:[%s3965_s0 + $0x8] sm:$0xf] }
  0x5e   :  { %2048 = vmatprep.subr.bf16.mxu0 %v2047_v24  ;;  %2368 = vmatprep.subr.bf16.mxu1 %v2047_v24  ;;  %v2087_v24 = vpack.c.bf16 %v1847_v20, %v1845_v19  ;;  %v1873_v19 = vld [vmem:[%s3965_s0 + $0x30] sm:$0xf]  ;;  %v2121_v20 = vpack.c.bf16 %v34_v15, %v32_v14  ;;  %v77_v15 = vld [vmem:[%s3964_s1 + $0x188] sm:$0xff] }
  0x5f   :  { %v74_v14 = vld [vmem:[%s3964_s1 + $0x170] sm:$0xff] }
  0x61   :  { %2050 = vmatpush1.bf16.msra.mxu0 %v2049_v29  ;;  %2370 = vmatpush1.bf16.msra.mxu1 %v2049_v29  ;;  %v2089_v29 = vpack.c.bf16 %v1846_v26, %v1844_v25  ;;  %v43_v25 = vld [vmem:[%s3964_s1 + $0x78] sm:$0xff] }
  0x62   :  { %2052 = vmatprep.subr.bf16.mxu0 %v2051_v30  ;;  %2372 = vmatprep.subr.bf16.mxu1 %v2051_v30  ;;  %v2091_v30 = vpack.c.bf16 %v1851_v28, %v1849_v27  ;;  %v40_v28 = vld [vmem:[%s3964_s1 + $0x60] sm:$0xff] }
  0x65   :  { %2054 = vmatpush1.bf16.msra.mxu0 %v2053_v35  ;;  %2374 = vmatpush1.bf16.msra.mxu1 %v2053_v35  ;;  %v2714_v35 = vmov 0.0  }
  0x66   :  { %2056 = vmatprep.subr.bf16.mxu0 %v2055_v36  ;;  %2376 = vmatprep.subr.bf16.mxu1 %v2055_v36  ;;  %v2093_v36 = vpack.c.bf16 %v1850_v32, %v1848_v31  ;;  %v47_v31 = vld [vmem:[%s3964_s1 + $0x98] sm:$0xff] }
  0x69   :  { %2058 = vmatpush1.bf16.msra.mxu0 %v2057_v41  ;;  %2378 = vmatpush1.bf16.msra.mxu1 %v2057_v41  ;;  %v1859_v41 = vld [vmem:[%s3964_s1 + $0x998] sm:$0xff] }
  0x6a   :  { %2060 = vmatprep.subr.bf16.mxu0 %v2059_v42  ;;  %2380 = vmatprep.subr.bf16.mxu1 %v2059_v42  ;;  %v2097_v42 = vpack.c.bf16 %v1854_v39, %v1852_v38  ;;  %v2099_v43 = vpack.c.bf16 %v1859_v41, %v1857_v40  ;;  %v51_v38 = vld [vmem:[%s3964_s1 + $0xb8] sm:$0xff]  ;;  %v48_v41 = vld [vmem:[%s3964_s1 + $0xa0] sm:$0xff] }
  0x6d   :  { %2062 = vmatpush1.bf16.msra.mxu0 %v2061_v47  ;;  %2382 = vmatpush1.bf16.msra.mxu1 %v2061_v47  ;;  %v1863_v47 = vld [vmem:[%s3964_s1 + $0x9b8] sm:$0xff] }
  0x6e   :  { %2064 = vmatprep.subr.bf16.mxu0 %v2063_v48  ;;  %2384 = vmatprep.subr.bf16.mxu1 %v2063_v48  ;;  %v2101_v48 = vpack.c.bf16 %v1858_v45, %v1856_v44  ;;  %v2103_v49 = vpack.c.bf16 %v1863_v47, %v1861_v46  ;;  %v55_v44 = vld [vmem:[%s3964_s1 + $0xd8] sm:$0xff]  ;;  %v52_v47 = vld [vmem:[%s3964_s1 + $0xc0] sm:$0xff] }
  0x71   :  { %2066 = vmatpush1.bf16.msra.mxu0 %v2065_v53  ;;  %2386 = vmatpush1.bf16.msra.mxu1 %v2065_v53  ;;  %v1867_v53 = vld [vmem:[%s3964_s1 + $0x9d8] sm:$0xff] }
  0x72   :  { %2068 = vmatprep.subr.bf16.mxu0 %v2067_v54  ;;  %2388 = vmatprep.subr.bf16.mxu1 %v2067_v54  ;;  %v2105_v54 = vpack.c.bf16 %v1862_v51, %v1860_v50  ;;  %v2107_v55 = vpack.c.bf16 %v1867_v53, %v1865_v52  ;;  %v59_v50 = vld [vmem:[%s3964_s1 + $0xf8] sm:$0xff]  ;;  %v56_v53 = vld [vmem:[%s3964_s1 + $0xe0] sm:$0xff] }
  0x75   :  { %2070 = vmatpush1.bf16.msra.mxu0 %v2069_v59  ;;  %2390 = vmatpush1.bf16.msra.mxu1 %v2069_v59  ;;  %v1871_v59 = vld [vmem:[%s3964_s1 + $0x9f8] sm:$0xff] }
  0x76   :  { %2072 = vmatprep.subr.bf16.mxu0 %v2071_v60  ;;  %2392 = vmatprep.subr.bf16.mxu1 %v2071_v60  ;;  %v2109_v60 = vpack.c.bf16 %v1866_v57, %v1864_v56  ;;  %v2111_v61 = vpack.c.bf16 %v1871_v59, %v1869_v58  ;;  %v63_v56 = vld [vmem:[%s3964_s1 + $0x118] sm:$0xff]  ;;  %v60_v59 = vld [vmem:[%s3964_s1 + $0x100] sm:$0xff] }
  0x79   :  { %2074 = vmatpush1.bf16.msra.mxu0 %v2073_v1  ;;  %2394 = vmatpush1.bf16.msra.mxu1 %v2073_v1  ;;  %v31_v1 = vld [vmem:[%s3964_s1 + $0x18] sm:$0xff] }
  0x7a   :  { %2076 = vmatprep.subr.bf16.mxu0 %v2075_v2  ;;  %2396 = vmatprep.subr.bf16.mxu1 %v2075_v2  ;;  %v2113_v2 = vpack.c.bf16 %v1870_v63, %v1868_v62  ;;  %v2115_v5 = vpack.c.bf16 %v31_v1, %v29_v0  ;;  %v67_v62 = vld [vmem:[%s3964_s1 + $0x138] sm:$0xff]  ;;  %v64_v1 = vld [vmem:[%s3964_s1 + $0x120] sm:$0xff] }
  0x7d   :  { %2078 = vmatpush1.bf16.msra.mxu0 %v2077_v7  ;;  %2398 = vmatpush1.bf16.msra.mxu1 %v2077_v7  ;;  %v30_v7 = vld [vmem:[%s3964_s1 + $0x10] sm:$0xff] }
  0x7e   :  { %2080 = vmatprep.subr.bf16.mxu0 %v2079_v8  ;;  %2400 = vmatprep.subr.bf16.mxu1 %v2079_v8  ;;  %v33_v8 = vld [vmem:[%s3964_s1 + $0x28] sm:$0xff]  ;;  %v2117_v12 = vpack.c.bf16 %v30_v7, %v28_v6  ;;  %v2155_v6 = vpack.c.bf16 %v71_v4, %v69_v3  ;;  %v68_v7 = vld [vmem:[%s3964_s1 + $0x140] sm:$0xff]  ;;  %v106_v3 = vld [vmem:[%s3964_s1 + $0x270] sm:$0xff] }
  0x7f   :  { %v109_v4 = vld [vmem:[%s3964_s1 + $0x288] sm:$0xff] }
  0x81   :  { %2082 = vmatpush1.bf16.msra.mxu0 %v2081_v13  ;;  %2402 = vmatpush1.bf16.msra.mxu1 %v2081_v13  ;;  %v2119_v13 = vpack.c.bf16 %v35_v9, %v33_v8  ;;  %v70_v8 = vld [vmem:[%s3964_s1 + $0x150] sm:$0xff]  ;;  %v73_v9 = vld [vmem:[%s3964_s1 + $0x168] sm:$0xff] }
  0x82   :  { %2084 = vmatprep.subr.bf16.mxu0 %v2083_v16  ;;  %2404 = vmatprep.subr.bf16.mxu1 %v2083_v16  ;;  %v37_v16 = vld [vmem:[%s3964_s1 + $0x48] sm:$0xff] }
  0x84   :  { %505 = vmatmul.mubr.f32.vlgmr.msra.gmra.mrb[0].mxu0 %v361_v21  ;;  %988 = vmatmul.mubr.f32.vlgmr.msra.gmra.mrb[0].mxu1 %v844_v22  ;;  %v2123_v21 = vpack.c.bf16 %v39_v17, %v37_v16  ;;  %v36_v22 = vld [vmem:[%s3964_s1 + $0x40] sm:$0xff]  ;;  %v79_v16 = vld [vmem:[%s3964_s1 + $0x198] sm:$0xff] }
  0x85   :  { %2086 = vmatpush1.bf16.msra.mxu0 %v2085_v23  ;;  %2406 = vmatpush1.bf16.msra.mxu1 %v2085_v23  ;;  %v38_v23 = vld [vmem:[%s3964_s1 + $0x50] sm:$0xff] }
  0x86   :  { %2088 = vmatprep.subr.bf16.mxu0 %v2087_v24  ;;  %2408 = vmatprep.subr.bf16.mxu1 %v2087_v24  ;;  %v41_v24 = vld [vmem:[%s3964_s1 + $0x68] sm:$0xff]  ;;  %v2125_v26 = vpack.c.bf16 %v38_v23, %v36_v22  ;;  %v83_v22 = vld [vmem:[%s3964_s1 + $0x1b8] sm:$0xff] }
  0x87   :  { %575 = vmatprep.mubr.f32.mxu0 %v2714_v35  ;;  %1058 = vmatprep.mubr.f32.mxu1 %v2714_v35  ;;  %v2127_v27 = vpack.c.bf16 %v43_v25, %v41_v24  ;;  %v80_v25 = vld [vmem:[%s3964_s1 + $0x1a0] sm:$0xff] }
  0x89   :  { %2090 = vmatpush1.bf16.msra.mxu0 %v2089_v29  ;;  %2410 = vmatpush1.bf16.msra.mxu1 %v2089_v29  ;;  %v42_v29 = vld [vmem:[%s3964_s1 + $0x70] sm:$0xff] }
  0x8a   :  { %2092 = vmatprep.subr.bf16.mxu0 %v2091_v30  ;;  %2412 = vmatprep.subr.bf16.mxu1 %v2091_v30  ;;  %v45_v30 = vld [vmem:[%s3964_s1 + $0x88] sm:$0xff]  ;;  %v2129_v32 = vpack.c.bf16 %v42_v29, %v40_v28  ;;  %v87_v28 = vld [vmem:[%s3964_s1 + $0x1d8] sm:$0xff] }
  0x8b   :  { %v2131_v33 = vpack.c.bf16 %v47_v31, %v45_v30  ;;  %v84_v31 = vld [vmem:[%s3964_s1 + $0x1c0] sm:$0xff] }
  0x8d   :  { %2094 = vmatpush1.bf16.msra.mxu0 %v2093_v36  ;;  %2414 = vmatpush1.bf16.msra.mxu1 %v2093_v36  ;;  %v46_v36 = vld [vmem:[%s3964_s1 + $0x90] sm:$0xff] }
  0x8e   :  { %2096 = vmatprep.subr.bf16.mxu0 %v2095_v37  ;;  %2416 = vmatprep.subr.bf16.mxu1 %v2095_v37  ;;  %v49_v37 = vld [vmem:[%s3964_s1 + $0xa8] sm:$0xff]  ;;  %v2133_v39 = vpack.c.bf16 %v46_v36, %v44_v34  ;;  %v91_v34 = vld [vmem:[%s3964_s1 + $0x1f8] sm:$0xff] }
  0x8f   :  { %v2135_v40 = vpack.c.bf16 %v51_v38, %v49_v37  ;;  %v88_v38 = vld [vmem:[%s3964_s1 + $0x1e0] sm:$0xff] }
  0x91   :  { %2098 = vmatpush1.bf16.msra.mxu0 %v2097_v42  ;;  %2418 = vmatpush1.bf16.msra.mxu1 %v2097_v42  ;;  %v50_v42 = vld [vmem:[%s3964_s1 + $0xb0] sm:$0xff] }
  0x92   :  { %2100 = vmatprep.subr.bf16.mxu0 %v2099_v43  ;;  %2420 = vmatprep.subr.bf16.mxu1 %v2099_v43  ;;  %v53_v43 = vld [vmem:[%s3964_s1 + $0xc8] sm:$0xff]  ;;  %v2137_v45 = vpack.c.bf16 %v50_v42, %v48_v41  ;;  %v95_v41 = vld [vmem:[%s3964_s1 + $0x218] sm:$0xff] }
  0x93   :  { %v2139_v46 = vpack.c.bf16 %v55_v44, %v53_v43  ;;  %v92_v44 = vld [vmem:[%s3964_s1 + $0x200] sm:$0xff] }
  0x95   :  { %2102 = vmatpush1.bf16.msra.mxu0 %v2101_v48  ;;  %2422 = vmatpush1.bf16.msra.mxu1 %v2101_v48  ;;  %v54_v48 = vld [vmem:[%s3964_s1 + $0xd0] sm:$0xff] }
  0x96   :  { %2104 = vmatprep.subr.bf16.mxu0 %v2103_v49  ;;  %2424 = vmatprep.subr.bf16.mxu1 %v2103_v49  ;;  %v57_v49 = vld [vmem:[%s3964_s1 + $0xe8] sm:$0xff]  ;;  %v2141_v51 = vpack.c.bf16 %v54_v48, %v52_v47  ;;  %v99_v47 = vld [vmem:[%s3964_s1 + $0x238] sm:$0xff]  ;;  %v23_v48 = vld [vmem:[%s3965_s0] sm:$0xf] }
  0x97   :  { %v2143_v52 = vpack.c.bf16 %v59_v50, %v57_v49  ;;  %v1872_v50 = vld [vmem:[%s3965_s0 + $0x28] sm:$0xf] }
  0x99   :  { %2106 = vmatpush1.bf16.msra.mxu0 %v2105_v54  ;;  %2426 = vmatpush1.bf16.msra.mxu1 %v2105_v54  ;;  %v58_v54 = vld [vmem:[%s3964_s1 + $0xf0] sm:$0xff] }
  0x9a   :  { %2108 = vmatprep.subr.bf16.mxu0 %v2107_v55  ;;  %2428 = vmatprep.subr.bf16.mxu1 %v2107_v55  ;;  %v61_v55 = vld [vmem:[%s3964_s1 + $0x108] sm:$0xff]  ;;  %v2145_v57 = vpack.c.bf16 %v58_v54, %v56_v53  ;;  %v98_v53 = vld [vmem:[%s3964_s1 + $0x230] sm:$0xff] }
  0x9b   :  { %v2147_v58 = vpack.c.bf16 %v63_v56, %v61_v55  ;;  %v101_v54 = vld [vmem:[%s3964_s1 + $0x248] sm:$0xff]  ;;  %v103_v55 = vld [vmem:[%s3964_s1 + $0x258] sm:$0xff] }
  0x9c   :  { %v26_v56 = vld [vmem:[%s3965_s0 + $0x18] sm:$0xf] }
  0x9d   :  { %2110 = vmatpush1.bf16.msra.mxu0 %v2109_v60  ;;  %2430 = vmatpush1.bf16.msra.mxu1 %v2109_v60  ;;  %v62_v60 = vld [vmem:[%s3964_s1 + $0x110] sm:$0xff] }
  0x9e   :  { %2112 = vmatprep.subr.bf16.mxu0 %v2111_v61  ;;  %2432 = vmatprep.subr.bf16.mxu1 %v2111_v61  ;;  %v65_v61 = vld [vmem:[%s3964_s1 + $0x128] sm:$0xff]  ;;  %v2149_v63 = vpack.c.bf16 %v62_v60, %v60_v59  ;;  %v2187_v59 = vpack.c.bf16 %v103_v55, %v101_v54  ;;  %v100_v60 = vld [vmem:[%s3964_s1 + $0x240] sm:$0xff]  ;;  %v143_v54 = vld [vmem:[%s3964_s1 + $0x398] sm:$0xff] }
  0x9f   :  { %v2151_v0 = vpack.c.bf16 %v67_v62, %v65_v61  ;;  %v102_v61 = vld [vmem:[%s3964_s1 + $0x250] sm:$0xff]  ;;  %v105_v62 = vld [vmem:[%s3964_s1 + $0x268] sm:$0xff] }
  0xa1   :  { %2114 = vmatpush1.bf16.msra.mxu0 %v2113_v2  ;;  %2434 = vmatpush1.bf16.msra.mxu1 %v2113_v2  ;;  %v66_v2 = vld [vmem:[%s3964_s1 + $0x130] sm:$0xff] }
  0xa2   :  { %2116 = vmatprep.subr.bf16.mxu0 %v2115_v5  ;;  %2436 = vmatprep.subr.bf16.mxu1 %v2115_v5  ;;  %v2153_v5 = vpack.c.bf16 %v66_v2, %v64_v1  ;;  %v104_v2 = vld [vmem:[%s3964_s1 + $0x260] sm:$0xff] }
  0xa4   :  { %576 = vmatmul.mubr.f32.vlgmr.msra.gmra.mrb[0].mxu0 %v363_v10  ;;  %1059 = vmatmul.mubr.f32.vlgmr.msra.gmra.mrb[0].mxu1 %v846_v11  ;;  %v75_v10 = vld [vmem:[%s3964_s1 + $0x178] sm:$0xff]  ;;  %v2157_v11 = vpack.c.bf16 %v70_v8, %v68_v7  ;;  %v108_v8 = vld [vmem:[%s3964_s1 + $0x280] sm:$0xff] }
  0xa5   :  { %2118 = vmatpush1.bf16.msra.mxu0 %v2117_v12  ;;  %2438 = vmatpush1.bf16.msra.mxu1 %v2117_v12  ;;  %v2159_v12 = vpack.c.bf16 %v75_v10, %v73_v9  ;;  %v110_v9 = vld [vmem:[%s3964_s1 + $0x290] sm:$0xff]  ;;  %v113_v10 = vld [vmem:[%s3964_s1 + $0x2a8] sm:$0xff] }
  0xa6   :  { %2120 = vmatprep.subr.bf16.mxu0 %v2119_v13  ;;  %2440 = vmatprep.subr.bf16.mxu1 %v2119_v13  ;;  %v72_v13 = vld [vmem:[%s3964_s1 + $0x160] sm:$0xff] }
  0xa7   :  { %646 = vmatprep.mubr.f32.mxu0 %v24_v18  ;;  %1129 = vmatprep.mubr.f32.mxu1 %v1873_v19  ;;  %v2161_v17 = vpack.c.bf16 %v74_v14, %v72_v13  ;;  %v2163_v18 = vpack.c.bf16 %v79_v16, %v77_v15  ;;  %v76_v19 = vld [vmem:[%s3964_s1 + $0x180] sm:$0xff]  ;;  %v114_v15 = vld [vmem:[%s3964_s1 + $0x2b0] sm:$0xff]  ;;  %v117_v16 = vld [vmem:[%s3964_s1 + $0x2c8] sm:$0xff] }
  0xa8   :  { %v112_v14 = vld [vmem:[%s3964_s1 + $0x2a0] sm:$0xff] }
  0xa9   :  { %2122 = vmatpush1.bf16.msra.mxu0 %v2121_v20  ;;  %2442 = vmatpush1.bf16.msra.mxu1 %v2121_v20  ;;  %v78_v20 = vld [vmem:[%s3964_s1 + $0x190] sm:$0xff] }
  0xaa   :  { %2124 = vmatprep.subr.bf16.mxu0 %v2123_v21  ;;  %2444 = vmatprep.subr.bf16.mxu1 %v2123_v21  ;;  %v81_v21 = vld [vmem:[%s3964_s1 + $0x1a8] sm:$0xff]  ;;  %v2165_v23 = vpack.c.bf16 %v78_v20, %v76_v19  ;;  %v116_v20 = vld [vmem:[%s3964_s1 + $0x2c0] sm:$0xff] }
  0xab   :  { %v2167_v24 = vpack.c.bf16 %v83_v22, %v81_v21  ;;  %v118_v21 = vld [vmem:[%s3964_s1 + $0x2d0] sm:$0xff]  ;;  %v121_v22 = vld [vmem:[%s3964_s1 + $0x2e8] sm:$0xff] }
  0xad   :  { %2126 = vmatpush1.bf16.msra.mxu0 %v2125_v26  ;;  %2446 = vmatpush1.bf16.msra.mxu1 %v2125_v26  ;;  %v82_v26 = vld [vmem:[%s3964_s1 + $0x1b0] sm:$0xff] }
  0xae   :  { %2128 = vmatprep.subr.bf16.mxu0 %v2127_v27  ;;  %2448 = vmatprep.subr.bf16.mxu1 %v2127_v27  ;;  %v85_v27 = vld [vmem:[%s3964_s1 + $0x1c8] sm:$0xff]  ;;  %v2169_v29 = vpack.c.bf16 %v82_v26, %v80_v25  ;;  %v120_v26 = vld [vmem:[%s3964_s1 + $0x2e0] sm:$0xff] }
  0xaf   :  { %v2171_v30 = vpack.c.bf16 %v87_v28, %v85_v27  ;;  %v122_v27 = vld [vmem:[%s3964_s1 + $0x2f0] sm:$0xff]  ;;  %v125_v28 = vld [vmem:[%s3964_s1 + $0x308] sm:$0xff] }
  0xb1   :  { %2130 = vmatpush1.bf16.msra.mxu0 %v2129_v32  ;;  %2450 = vmatpush1.bf16.msra.mxu1 %v2129_v32  ;;  %v86_v32 = vld [vmem:[%s3964_s1 + $0x1d0] sm:$0xff] }
  0xb2   :  { %2132 = vmatprep.subr.bf16.mxu0 %v2131_v33  ;;  %2452 = vmatprep.subr.bf16.mxu1 %v2131_v33  ;;  %v89_v33 = vld [vmem:[%s3964_s1 + $0x1e8] sm:$0xff]  ;;  %v2173_v36 = vpack.c.bf16 %v86_v32, %v84_v31  ;;  %v124_v32 = vld [vmem:[%s3964_s1 + $0x300] sm:$0xff] }
  0xb3   :  { %v2175_v37 = vpack.c.bf16 %v91_v34, %v89_v33  ;;  %v126_v33 = vld [vmem:[%s3964_s1 + $0x310] sm:$0xff]  ;;  %v129_v34 = vld [vmem:[%s3964_s1 + $0x328] sm:$0xff] }
  0xb5   :  { %2134 = vmatpush1.bf16.msra.mxu0 %v2133_v39  ;;  %2454 = vmatpush1.bf16.msra.mxu1 %v2133_v39  ;;  %v90_v39 = vld [vmem:[%s3964_s1 + $0x1f0] sm:$0xff] }
  0xb6   :  { %2136 = vmatprep.subr.bf16.mxu0 %v2135_v40  ;;  %2456 = vmatprep.subr.bf16.mxu1 %v2135_v40  ;;  %v93_v40 = vld [vmem:[%s3964_s1 + $0x208] sm:$0xff]  ;;  %v2177_v42 = vpack.c.bf16 %v90_v39, %v88_v38  ;;  %v128_v39 = vld [vmem:[%s3964_s1 + $0x320] sm:$0xff] }
  0xb7   :  { %v2179_v43 = vpack.c.bf16 %v95_v41, %v93_v40  ;;  %v130_v40 = vld [vmem:[%s3964_s1 + $0x330] sm:$0xff]  ;;  %v133_v41 = vld [vmem:[%s3964_s1 + $0x348] sm:$0xff] }
  0xb9   :  { %2138 = vmatpush1.bf16.msra.mxu0 %v2137_v45  ;;  %2458 = vmatpush1.bf16.msra.mxu1 %v2137_v45  ;;  %v94_v45 = vld [vmem:[%s3964_s1 + $0x210] sm:$0xff] }
  0xba   :  { %2140 = vmatprep.subr.bf16.mxu0 %v2139_v46  ;;  %2460 = vmatprep.subr.bf16.mxu1 %v2139_v46  ;;  %v97_v46 = vld [vmem:[%s3964_s1 + $0x228] sm:$0xff]  ;;  %v2181_v49 = vpack.c.bf16 %v94_v45, %v92_v44  ;;  %v132_v45 = vld [vmem:[%s3964_s1 + $0x340] sm:$0xff] }
  0xbd   :  { %2142 = vmatpush1.bf16.msra.mxu0 %v2141_v51  ;;  %2462 = vmatpush1.bf16.msra.mxu1 %v2141_v51  ;;  %v2183_v51 = vpack.c.bf16 %v99_v47, %v97_v46  ;;  %v134_v46 = vld [vmem:[%s3964_s1 + $0x350] sm:$0xff]  ;;  %v137_v47 = vld [vmem:[%s3964_s1 + $0x368] sm:$0xff] }
  0xbe   :  { %2144 = vmatprep.subr.bf16.mxu0 %v2143_v52  ;;  %2464 = vmatprep.subr.bf16.mxu1 %v2143_v52  ;;  %v96_v52 = vld [vmem:[%s3964_s1 + $0x220] sm:$0xff] }
  0xc1   :  { %2146 = vmatpush1.bf16.msra.mxu0 %v2145_v57  ;;  %2466 = vmatpush1.bf16.msra.mxu1 %v2145_v57  ;;  %v1875_v57 = vld [vmem:[%s3965_s0 + $0x40] sm:$0xf] }
  0xc2   :  { %2148 = vmatprep.subr.bf16.mxu0 %v2147_v58  ;;  %2468 = vmatprep.subr.bf16.mxu1 %v2147_v58  ;;  %v2185_v58 = vpack.c.bf16 %v98_v53, %v96_v52  ;;  %v138_v52 = vld [vmem:[%s3964_s1 + $0x370] sm:$0xff]  ;;  %v141_v53 = vld [vmem:[%s3964_s1 + $0x388] sm:$0xff] }
  0xc5   :  { %2150 = vmatpush1.bf16.msra.mxu0 %v2149_v63  ;;  %2470 = vmatpush1.bf16.msra.mxu1 %v2149_v63  ;;  %v107_v63 = vld [vmem:[%s3964_s1 + $0x278] sm:$0xff] }
  0xc6   :  { %2152 = vmatprep.subr.bf16.mxu0 %v2151_v0  ;;  %2472 = vmatprep.subr.bf16.mxu1 %v2151_v0  ;;  %v2189_v0 = vpack.c.bf16 %v102_v61, %v100_v60  ;;  %v2191_v1 = vpack.c.bf16 %v107_v63, %v105_v62  ;;  %v147_v60 = vld [vmem:[%s3964_s1 + $0x3b8] sm:$0xff]  ;;  %v144_v63 = vld [vmem:[%s3964_s1 + $0x3a0] sm:$0xff] }
  0xc9   :  { %2154 = vmatpush1.bf16.msra.mxu0 %v2153_v5  ;;  %2474 = vmatpush1.bf16.msra.mxu1 %v2153_v5  ;;  %v111_v5 = vld [vmem:[%s3964_s1 + $0x298] sm:$0xff] }
  0xca   :  { %2156 = vmatprep.subr.bf16.mxu0 %v2155_v6  ;;  %2476 = vmatprep.subr.bf16.mxu1 %v2155_v6  ;;  %v2193_v6 = vpack.c.bf16 %v106_v3, %v104_v2  ;;  %v2195_v7 = vpack.c.bf16 %v111_v5, %v109_v4  ;;  %v151_v2 = vld [vmem:[%s3964_s1 + $0x3d8] sm:$0xff]  ;;  %v148_v5 = vld [vmem:[%s3964_s1 + $0x3c0] sm:$0xff] }
  0xcd   :  { %2158 = vmatpush1.bf16.msra.mxu0 %v2157_v11  ;;  %2478 = vmatpush1.bf16.msra.mxu1 %v2157_v11  ;;  %v115_v11 = vld [vmem:[%s3964_s1 + $0x2b8] sm:$0xff] }
  0xce   :  { %2160 = vmatprep.subr.bf16.mxu0 %v2159_v12  ;;  %2480 = vmatprep.subr.bf16.mxu1 %v2159_v12  ;;  %v2197_v12 = vpack.c.bf16 %v110_v9, %v108_v8  ;;  %v2199_v13 = vpack.c.bf16 %v115_v11, %v113_v10  ;;  %v155_v8 = vld [vmem:[%s3964_s1 + $0x3f8] sm:$0xff]  ;;  %v152_v11 = vld [vmem:[%s3964_s1 + $0x3e0] sm:$0xff] }
  0xd1   :  { %2162 = vmatpush1.bf16.msra.mxu0 %v2161_v17  ;;  %2482 = vmatpush1.bf16.msra.mxu1 %v2161_v17  ;;  %v119_v17 = vld [vmem:[%s3964_s1 + $0x2d8] sm:$0xff] }
  0xd2   :  { %2164 = vmatprep.subr.bf16.mxu0 %v2163_v18  ;;  %2484 = vmatprep.subr.bf16.mxu1 %v2163_v18  ;;  %v2201_v18 = vpack.c.bf16 %v114_v15, %v112_v14  ;;  %v2203_v19 = vpack.c.bf16 %v119_v17, %v117_v16  ;;  %v159_v14 = vld [vmem:[%s3964_s1 + $0x418] sm:$0xff]  ;;  %v156_v17 = vld [vmem:[%s3964_s1 + $0x400] sm:$0xff] }
  0xd5   :  { %2166 = vmatpush1.bf16.msra.mxu0 %v2165_v23  ;;  %2486 = vmatpush1.bf16.msra.mxu1 %v2165_v23  ;;  %v123_v23 = vld [vmem:[%s3964_s1 + $0x2f8] sm:$0xff] }
  0xd6   :  { %2168 = vmatprep.subr.bf16.mxu0 %v2167_v24  ;;  %2488 = vmatprep.subr.bf16.mxu1 %v2167_v24  ;;  %v2205_v24 = vpack.c.bf16 %v118_v21, %v116_v20  ;;  %v2207_v25 = vpack.c.bf16 %v123_v23, %v121_v22  ;;  %v163_v20 = vld [vmem:[%s3964_s1 + $0x438] sm:$0xff]  ;;  %v25_v21 = vld [vmem:[%s3965_s0 + $0x10] sm:$0xf] }
  0xd7   :  { %v1874_v23 = vld [vmem:[%s3965_s0 + $0x38] sm:$0xf] }
  0xd9   :  { %2170 = vmatpush1.bf16.msra.mxu0 %v2169_v29  ;;  %2490 = vmatpush1.bf16.msra.mxu1 %v2169_v29  ;;  %v127_v29 = vld [vmem:[%s3964_s1 + $0x318] sm:$0xff] }
  0xda   :  { %2172 = vmatprep.subr.bf16.mxu0 %v2171_v30  ;;  %2492 = vmatprep.subr.bf16.mxu1 %v2171_v30  ;;  %v2209_v30 = vpack.c.bf16 %v122_v27, %v120_v26  ;;  %v2211_v31 = vpack.c.bf16 %v127_v29, %v125_v28  ;;  %v162_v26 = vld [vmem:[%s3964_s1 + $0x430] sm:$0xff]  ;;  %v165_v27 = vld [vmem:[%s3964_s1 + $0x448] sm:$0xff]  ;;  %v167_v28 = vld [vmem:[%s3964_s1 + $0x458] sm:$0xff] }
  0xdd   :  { %2174 = vmatpush1.bf16.msra.mxu0 %v2173_v36  ;;  %2494 = vmatpush1.bf16.msra.mxu1 %v2173_v36  ;;  %v131_v36 = vld [vmem:[%s3964_s1 + $0x338] sm:$0xff] }
  0xde   :  { %2176 = vmatprep.subr.bf16.mxu0 %v2175_v37  ;;  %2496 = vmatprep.subr.bf16.mxu1 %v2175_v37  ;;  %v2213_v37 = vpack.c.bf16 %v126_v33, %v124_v32  ;;  %v2215_v38 = vpack.c.bf16 %v131_v36, %v129_v34  ;;  %v166_v32 = vld [vmem:[%s3964_s1 + $0x450] sm:$0xff]  ;;  %v169_v33 = vld [vmem:[%s3964_s1 + $0x468] sm:$0xff]  ;;  %v171_v34 = vld [vmem:[%s3964_s1 + $0x478] sm:$0xff] }
  0xe1   :  { %2178 = vmatpush1.bf16.msra.mxu0 %v2177_v42  ;;  %2498 = vmatpush1.bf16.msra.mxu1 %v2177_v42  ;;  %v135_v42 = vld [vmem:[%s3964_s1 + $0x358] sm:$0xff] }
  0xe2   :  { %2180 = vmatprep.subr.bf16.mxu0 %v2179_v43  ;;  %2500 = vmatprep.subr.bf16.mxu1 %v2179_v43  ;;  %v2217_v43 = vpack.c.bf16 %v130_v40, %v128_v39  ;;  %v2219_v44 = vpack.c.bf16 %v135_v42, %v133_v41  ;;  %v170_v39 = vld [vmem:[%s3964_s1 + $0x470] sm:$0xff]  ;;  %v173_v40 = vld [vmem:[%s3964_s1 + $0x488] sm:$0xff]  ;;  %v175_v41 = vld [vmem:[%s3964_s1 + $0x498] sm:$0xff] }
  0xe4   :  { %647 = vmatmul.mubr.f32.vlgmr.msra.gmra.mrb[0].mxu0 %v23_v48  ;;  %1130 = vmatmul.mubr.f32.vlgmr.msra.gmra.mrb[0].mxu1 %v1872_v50  ;;  %v139_v48 = vld [vmem:[%s3964_s1 + $0x378] sm:$0xff] }
  0xe5   :  { %2182 = vmatpush1.bf16.msra.mxu0 %v2181_v49  ;;  %2502 = vmatpush1.bf16.msra.mxu1 %v2181_v49  ;;  %v2221_v49 = vpack.c.bf16 %v134_v46, %v132_v45  ;;  %v2223_v50 = vpack.c.bf16 %v139_v48, %v137_v47  ;;  %v174_v45 = vld [vmem:[%s3964_s1 + $0x490] sm:$0xff]  ;;  %v177_v46 = vld [vmem:[%s3964_s1 + $0x4a8] sm:$0xff]  ;;  %v179_v47 = vld [vmem:[%s3964_s1 + $0x4b8] sm:$0xff] }
  0xe6   :  { %2184 = vmatprep.subr.bf16.mxu0 %v2183_v51  ;;  %2504 = vmatprep.subr.bf16.mxu1 %v2183_v51  ;;  %v136_v51 = vld [vmem:[%s3964_s1 + $0x360] sm:$0xff] }
  0xe7   :  { %717 = vmatprep.mubr.f32.mxu0 %v26_v56  ;;  %1200 = vmatprep.mubr.f32.mxu1 %v1875_v57  ;;  %v2225_v55 = vpack.c.bf16 %v138_v52, %v136_v51  ;;  %v2227_v56 = vpack.c.bf16 %v143_v54, %v141_v53  ;;  %v140_v57 = vld [vmem:[%s3964_s1 + $0x380] sm:$0xff]  ;;  %v178_v51 = vld [vmem:[%s3964_s1 + $0x4b0] sm:$0xff]  ;;  %v181_v52 = vld [vmem:[%s3964_s1 + $0x4c8] sm:$0xff] }
  0xe8   :  { %v183_v53 = vld [vmem:[%s3964_s1 + $0x4d8] sm:$0xff] }
  0xe9   :  { %2186 = vmatpush1.bf16.msra.mxu0 %v2185_v58  ;;  %2506 = vmatpush1.bf16.msra.mxu1 %v2185_v58  ;;  %v142_v58 = vld [vmem:[%s3964_s1 + $0x390] sm:$0xff] }
  0xea   :  { %2188 = vmatprep.subr.bf16.mxu0 %v2187_v59  ;;  %2508 = vmatprep.subr.bf16.mxu1 %v2187_v59  ;;  %v145_v59 = vld [vmem:[%s3964_s1 + $0x3a8] sm:$0xff]  ;;  %v2229_v61 = vpack.c.bf16 %v142_v58, %v140_v57  ;;  %v182_v57 = vld [vmem:[%s3964_s1 + $0x4d0] sm:$0xff] }
  0xeb   :  { %v2231_v62 = vpack.c.bf16 %v147_v60, %v145_v59  ;;  %v185_v58 = vld [vmem:[%s3964_s1 + $0x4e8] sm:$0xff]  ;;  %v187_v59 = vld [vmem:[%s3964_s1 + $0x4f8] sm:$0xff] }
  0xed   :  { %2190 = vmatpush1.bf16.msra.mxu0 %v2189_v0  ;;  %2510 = vmatpush1.bf16.msra.mxu1 %v2189_v0  ;;  %v146_v0 = vld [vmem:[%s3964_s1 + $0x3b0] sm:$0xff] }
  0xee   :  { %2192 = vmatprep.subr.bf16.mxu0 %v2191_v1  ;;  %2512 = vmatprep.subr.bf16.mxu1 %v2191_v1  ;;  %v149_v1 = vld [vmem:[%s3964_s1 + $0x3c8] sm:$0xff]  ;;  %v2233_v3 = vpack.c.bf16 %v146_v0, %v144_v63  ;;  %v186_v63 = vld [vmem:[%s3964_s1 + $0x4f0] sm:$0xff]  ;;  %v1328_v0 = vld [vmem:[%s3966_s2 + $0x80] sm:$0xff] }
  0xef   :  { %v2235_v4 = vpack.c.bf16 %v151_v2, %v149_v1  ;;  %v1329_v1 = vld [vmem:[%s3966_s2 + $0x88] sm:$0xff] }
  0xf1   :  { %2194 = vmatpush1.bf16.msra.mxu0 %v2193_v6  ;;  %2514 = vmatpush1.bf16.msra.mxu1 %v2193_v6  ;;  %v150_v6 = vld [vmem:[%s3964_s1 + $0x3d0] sm:$0xff] }
  0xf2   :  { %2196 = vmatprep.subr.bf16.mxu0 %v2195_v7  ;;  %2516 = vmatprep.subr.bf16.mxu1 %v2195_v7  ;;  %v153_v7 = vld [vmem:[%s3964_s1 + $0x3e8] sm:$0xff]  ;;  %v2237_v9 = vpack.c.bf16 %v150_v6, %v148_v5  ;;  %v1330_v6 = vld [vmem:[%s3966_s2 + $0x90] sm:$0xff] }
  0xf3   :  { %v2239_v10 = vpack.c.bf16 %v155_v8, %v153_v7  ;;  %v1313_v5 = vld [vmem:[%s3966_s2 + $0x8] sm:$0xff]  ;;  %v1331_v7 = vld [vmem:[%s3966_s2 + $0x98] sm:$0xff]  ;;  %v27_v8 = vld [vmem:[%s3965_s0 + $0x20] sm:$0xf] }
  0xf5   :  { %2198 = vmatpush1.bf16.msra.mxu0 %v2197_v12  ;;  %2518 = vmatpush1.bf16.msra.mxu1 %v2197_v12  ;;  %v154_v12 = vld [vmem:[%s3964_s1 + $0x3f0] sm:$0xff] }
  0xf6   :  { %2200 = vmatprep.subr.bf16.mxu0 %v2199_v13  ;;  %2520 = vmatprep.subr.bf16.mxu1 %v2199_v13  ;;  %v157_v13 = vld [vmem:[%s3964_s1 + $0x408] sm:$0xff]  ;;  %v2241_v15 = vpack.c.bf16 %v154_v12, %v152_v11  ;;  %v2599_v11 = vpack.c.bf16 %v1331_v7, %v1330_v6  ;;  %v1314_v12 = vld [vmem:[%s3966_s2 + $0x10] sm:$0xff] }
  0xf7   :  { %v2243_v16 = vpack.c.bf16 %v159_v14, %v157_v13  ;;  %v1315_v13 = vld [vmem:[%s3966_s2 + $0x18] sm:$0xff]  ;;  %v1332_v14 = vld [vmem:[%s3966_s2 + $0xa0] sm:$0xff] }
  0xf9   :  { %2202 = vmatpush1.bf16.msra.mxu0 %v2201_v18  ;;  %2522 = vmatpush1.bf16.msra.mxu1 %v2201_v18  ;;  %v158_v18 = vld [vmem:[%s3964_s1 + $0x410] sm:$0xff] }
  0xfa   :  { %2204 = vmatprep.subr.bf16.mxu0 %v2203_v19  ;;  %2524 = vmatprep.subr.bf16.mxu1 %v2203_v19  ;;  %v161_v19 = vld [vmem:[%s3964_s1 + $0x428] sm:$0xff]  ;;  %v2245_v22 = vpack.c.bf16 %v158_v18, %v156_v17  ;;  %v1316_v18 = vld [vmem:[%s3966_s2 + $0x20] sm:$0xff] }
  0xfd   :  { %2206 = vmatpush1.bf16.msra.mxu0 %v2205_v24  ;;  %2526 = vmatpush1.bf16.msra.mxu1 %v2205_v24  ;;  %v2247_v24 = vpack.c.bf16 %v163_v20, %v161_v19  ;;  %v1317_v19 = vld [vmem:[%s3966_s2 + $0x28] sm:$0xff]  ;;  %v1334_v20 = vld [vmem:[%s3966_s2 + $0xb0] sm:$0xff] }
  0xfe   :  { %2208 = vmatprep.subr.bf16.mxu0 %v2207_v25  ;;  %2528 = vmatprep.subr.bf16.mxu1 %v2207_v25  ;;  %v160_v25 = vld [vmem:[%s3964_s1 + $0x420] sm:$0xff] }
  0xff   :  { %v2249_v29 = vpack.c.bf16 %v162_v26, %v160_v25  ;;  %v1319_v25 = vld [vmem:[%s3966_s2 + $0x38] sm:$0xff] }
 0x101   :  { %2210 = vmatpush1.bf16.msra.mxu0 %v2209_v30  ;;  %2530 = vmatpush1.bf16.msra.mxu1 %v2209_v30  ;;  %v2251_v30 = vpack.c.bf16 %v167_v28, %v165_v27  ;;  %v1336_v27 = vld [vmem:[%s3966_s2 + $0xc0] sm:$0xff]  ;;  %v1337_v28 = vld [vmem:[%s3966_s2 + $0xc8] sm:$0xff] }
 0x102   :  { %2212 = vmatprep.subr.bf16.mxu0 %v2211_v31  ;;  %2532 = vmatprep.subr.bf16.mxu1 %v2211_v31  ;;  %v164_v31 = vld [vmem:[%s3964_s1 + $0x440] sm:$0xff] }
 0x103   :  { %v2253_v36 = vpack.c.bf16 %v166_v32, %v164_v31  ;;  %v1321_v31 = vld [vmem:[%s3966_s2 + $0x48] sm:$0xff] }
 0x105   :  { %2214 = vmatpush1.bf16.msra.mxu0 %v2213_v37  ;;  %2534 = vmatpush1.bf16.msra.mxu1 %v2213_v37  ;;  %v2255_v37 = vpack.c.bf16 %v171_v34, %v169_v33  ;;  %v1338_v33 = vld [vmem:[%s3966_s2 + $0xd0] sm:$0xff]  ;;  %v1339_v34 = vld [vmem:[%s3966_s2 + $0xd8] sm:$0xff] }
 0x106   :  { %2216 = vmatprep.subr.bf16.mxu0 %v2215_v38  ;;  %2536 = vmatprep.subr.bf16.mxu1 %v2215_v38  ;;  %v168_v38 = vld [vmem:[%s3964_s1 + $0x460] sm:$0xff] }
 0x107   :  { %v2257_v42 = vpack.c.bf16 %v170_v39, %v168_v38  ;;  %v1323_v38 = vld [vmem:[%s3966_s2 + $0x58] sm:$0xff] }
 0x109   :  { %2218 = vmatpush1.bf16.msra.mxu0 %v2217_v43  ;;  %2538 = vmatpush1.bf16.msra.mxu1 %v2217_v43  ;;  %v2259_v43 = vpack.c.bf16 %v175_v41, %v173_v40  ;;  %v1340_v40 = vld [vmem:[%s3966_s2 + $0xe0] sm:$0xff]  ;;  %v1341_v41 = vld [vmem:[%s3966_s2 + $0xe8] sm:$0xff] }
 0x10a   :  { %2220 = vmatprep.subr.bf16.mxu0 %v2219_v44  ;;  %2540 = vmatprep.subr.bf16.mxu1 %v2219_v44  ;;  %v172_v44 = vld [vmem:[%s3964_s1 + $0x480] sm:$0xff] }
 0x10b   :  { %v2261_v48 = vpack.c.bf16 %v174_v45, %v172_v44  ;;  %v1325_v44 = vld [vmem:[%s3966_s2 + $0x68] sm:$0xff] }
 0x10d   :  { %2222 = vmatpush1.bf16.msra.mxu0 %v2221_v49  ;;  %2542 = vmatpush1.bf16.msra.mxu1 %v2221_v49  ;;  %v2263_v49 = vpack.c.bf16 %v179_v47, %v177_v46  ;;  %v1342_v46 = vld [vmem:[%s3966_s2 + $0xf0] sm:$0xff]  ;;  %v1343_v47 = vld [vmem:[%s3966_s2 + $0xf8] sm:$0xff] }
 0x10e   :  { %2224 = vmatprep.subr.bf16.mxu0 %v2223_v50  ;;  %2544 = vmatprep.subr.bf16.mxu1 %v2223_v50  ;;  %v176_v50 = vld [vmem:[%s3964_s1 + $0x4a0] sm:$0xff] }
 0x10f   :  { %v2265_v54 = vpack.c.bf16 %v178_v51, %v176_v50  ;;  %v1327_v50 = vld [vmem:[%s3966_s2 + $0x78] sm:$0xff] }
 0x111   :  { %2226 = vmatpush1.bf16.msra.mxu0 %v2225_v55  ;;  %2546 = vmatpush1.bf16.msra.mxu1 %v2225_v55  ;;  %v2267_v55 = vpack.c.bf16 %v183_v53, %v181_v52 }
 0x112   :  { %2228 = vmatprep.subr.bf16.mxu0 %v2227_v56  ;;  %2548 = vmatprep.subr.bf16.mxu1 %v2227_v56  ;;  %v180_v56 = vld [vmem:[%s3964_s1 + $0x4c0] sm:$0xff] }
 0x113   :  { %v2269_v60 = vpack.c.bf16 %v182_v57, %v180_v56 }
 0x115   :  { %2230 = vmatpush1.bf16.msra.mxu0 %v2229_v61  ;;  %2550 = vmatpush1.bf16.msra.mxu1 %v2229_v61  ;;  %v2271_v61 = vpack.c.bf16 %v187_v59, %v185_v58 }
 0x116   :  { %2232 = vmatprep.subr.bf16.mxu0 %v2231_v62  ;;  %2552 = vmatprep.subr.bf16.mxu1 %v2231_v62  ;;  %v184_v62 = vld [vmem:[%s3964_s1 + $0x4e0] sm:$0xff] }
 0x117   :  { %v2273_v2 = vpack.c.bf16 %v186_v63, %v184_v62 }
 0x119   :  { %2234 = vmatpush1.bf16.msra.mxu0 %v2233_v3  ;;  %2554 = vmatpush1.bf16.msra.mxu1 %v2233_v3  ;;  %v2595_v3 = vpack.c.bf16 %v1329_v1, %v1328_v0 }
 0x11a   :  { %2236 = vmatprep.subr.bf16.mxu0 %v2235_v4  ;;  %2556 = vmatprep.subr.bf16.mxu1 %v2235_v4  ;;  %v1312_v4 = vld [vmem:[%s3966_s2] sm:$0xff] }
 0x11d   :  { %2238 = vmatpush1.bf16.msra.mxu0 %v2237_v9  ;;  %2558 = vmatpush1.bf16.msra.mxu1 %v2237_v9  ;;  %v1876_v9 = vld [vmem:[%s3965_s0 + $0x48] sm:$0xf] }
 0x11e   :  { %2240 = vmatprep.subr.bf16.mxu0 %v2239_v10  ;;  %2560 = vmatprep.subr.bf16.mxu1 %v2239_v10  ;;  %v2597_v10 = vpack.c.bf16 %v1313_v5, %v1312_v4 }
 0x121   :  { %2242 = vmatpush1.bf16.msra.mxu0 %v2241_v15  ;;  %2562 = vmatpush1.bf16.msra.mxu1 %v2241_v15  ;;  %v1333_v15 = vld [vmem:[%s3966_s2 + $0xa8] sm:$0xff] }
 0x122   :  { %2244 = vmatprep.subr.bf16.mxu0 %v2243_v16  ;;  %2564 = vmatprep.subr.bf16.mxu1 %v2243_v16  ;;  %v2601_v16 = vpack.c.bf16 %v1315_v13, %v1314_v12  ;;  %v2603_v17 = vpack.c.bf16 %v1333_v15, %v1332_v14 }
 0x124   :  { %718 = vmatmul.mubr.f32.vlgmr.msra.gmra.mrb[0].mxu0 %v25_v21  ;;  %1201 = vmatmul.mubr.f32.vlgmr.msra.gmra.mrb[0].mxu1 %v1874_v23  ;;  %v1335_v21 = vld [vmem:[%s3966_s2 + $0xb8] sm:$0xff] }
 0x125   :  { %2246 = vmatpush1.bf16.msra.mxu0 %v2245_v22  ;;  %2566 = vmatpush1.bf16.msra.mxu1 %v2245_v22  ;;  %v2605_v22 = vpack.c.bf16 %v1317_v19, %v1316_v18  ;;  %v2607_v23 = vpack.c.bf16 %v1335_v21, %v1334_v20 }
 0x126   :  { %2248 = vmatprep.subr.bf16.mxu0 %v2247_v24  ;;  %2568 = vmatprep.subr.bf16.mxu1 %v2247_v24  ;;  %v1318_v24 = vld [vmem:[%s3966_s2 + $0x30] sm:$0xff] }
 0x127   :  { %788 = vmatprep.mubr.f32.mxu0 %v2714_v35  ;;  %1271 = vmatprep.mubr.f32.mxu1 %v2714_v35  ;;  %v2609_v26 = vpack.c.bf16 %v1319_v25, %v1318_v24 }
 0x129   :  { %2250 = vmatpush1.bf16.msra.mxu0 %v2249_v29  ;;  %2570 = vmatpush1.bf16.msra.mxu1 %v2249_v29  ;;  %v2611_v29 = vpack.c.bf16 %v1337_v28, %v1336_v27 }
 0x12a   :  { %2252 = vmatprep.subr.bf16.mxu0 %v2251_v30  ;;  %2572 = vmatprep.subr.bf16.mxu1 %v2251_v30  ;;  %v1320_v30 = vld [vmem:[%s3966_s2 + $0x40] sm:$0xff] }
 0x12b   :  { %v2613_v32 = vpack.c.bf16 %v1321_v31, %v1320_v30 }
 0x12d   :  { %2254 = vmatpush1.bf16.msra.mxu0 %v2253_v36  ;;  %2574 = vmatpush1.bf16.msra.mxu1 %v2253_v36  ;;  %v2615_v36 = vpack.c.bf16 %v1339_v34, %v1338_v33 }
 0x12e   :  { %2256 = vmatprep.subr.bf16.mxu0 %v2255_v37  ;;  %2576 = vmatprep.subr.bf16.mxu1 %v2255_v37  ;;  %v1322_v37 = vld [vmem:[%s3966_s2 + $0x50] sm:$0xff] }
 0x12f   :  { %v2617_v39 = vpack.c.bf16 %v1323_v38, %v1322_v37 }
 0x131   :  { %2258 = vmatpush1.bf16.msra.mxu0 %v2257_v42  ;;  %2578 = vmatpush1.bf16.msra.mxu1 %v2257_v42  ;;  %v2619_v42 = vpack.c.bf16 %v1341_v41, %v1340_v40 }
 0x132   :  { %2260 = vmatprep.subr.bf16.mxu0 %v2259_v43  ;;  %2580 = vmatprep.subr.bf16.mxu1 %v2259_v43  ;;  %v1324_v43 = vld [vmem:[%s3966_s2 + $0x60] sm:$0xff] }
 0x133   :  { %v2621_v45 = vpack.c.bf16 %v1325_v44, %v1324_v43 }
 0x135   :  { %2262 = vmatpush1.bf16.msra.mxu0 %v2261_v48  ;;  %2582 = vmatpush1.bf16.msra.mxu1 %v2261_v48  ;;  %v1326_v48 = vld [vmem:[%s3966_s2 + $0x70] sm:$0xff] }
 0x136   :  { %2264 = vmatprep.subr.bf16.mxu0 %v2263_v49  ;;  %2584 = vmatprep.subr.bf16.mxu1 %v2263_v49  ;;  %v2623_v49 = vpack.c.bf16 %v1343_v47, %v1342_v46  ;;  %v2625_v51 = vpack.c.bf16 %v1327_v50, %v1326_v48 }
 0x139   :  { %2266 = vmatpush1.bf16.msra.mxu0 %v2265_v54  ;;  %2586 = vmatpush1.bf16.msra.mxu1 %v2265_v54 }
 0x13a   :  { %2268 = vmatprep.subr.bf16.mxu0 %v2267_v55  ;;  %2588 = vmatprep.subr.bf16.mxu1 %v2267_v55 }
 0x13d   :  { %2270 = vmatpush1.bf16.msra.mxu0 %v2269_v60  ;;  %2590 = vmatpush1.bf16.msra.mxu1 %v2269_v60 }
 0x13e   :  { %2272 = vmatprep.subr.bf16.mxu0 %v2271_v61  ;;  %2592 = vmatprep.subr.bf16.mxu1 %v2271_v61 }
 0x141   :  { %2274 = vmatpush1.bf16.msra.mxu0 %v2273_v2  ;;  %2594 = vmatpush1.bf16.msra.mxu1 %v2273_v2 }
 0x142   :  { %2596 = vmatprep.subr.bf16.mxu0 %v2595_v3  ;;  %2628 = vmatprep.subr.bf16.mxu1 %v2595_v3 }
 0x144   :  { %789 = vmatmul.mubr.f32.vlgmr.msra.gmra.mrb[0].mxu0 %v27_v8  ;;  %1272 = vmatmul.mubr.f32.vlgmr.msra.gmra.mrb[0].mxu1 %v1876_v9 }
 0x145   :  { %2598 = vmatpush3.bf16.msra.mxu0 %v2597_v10  ;;  %2630 = vmatpush3.bf16.msra.mxu1 %v2597_v10 }
 0x146   :  { %2600 = vmatprep.subr.bf16.mxu0 %v2599_v11  ;;  %2632 = vmatprep.subr.bf16.mxu1 %v2599_v11 }
 0x149   :  { %2602 = vmatpush3.bf16.msra.mxu0 %v2601_v16  ;;  %2634 = vmatpush3.bf16.msra.mxu1 %v2601_v16 }
 0x14a   :  { %2604 = vmatprep.subr.bf16.mxu0 %v2603_v17  ;;  %2636 = vmatprep.subr.bf16.mxu1 %v2603_v17 }
 0x14d   :  { %2606 = vmatpush3.bf16.msra.mxu0 %v2605_v22  ;;  %2638 = vmatpush3.bf16.msra.mxu1 %v2605_v22 }
 0x14e   :  { %2608 = vmatprep.subr.bf16.mxu0 %v2607_v23  ;;  %2640 = vmatprep.subr.bf16.mxu1 %v2607_v23 }
 0x151   :  { %2610 = vmatpush3.bf16.msra.mxu0 %v2609_v26  ;;  %2642 = vmatpush3.bf16.msra.mxu1 %v2609_v26 }
 0x152   :  { %2612 = vmatprep.subr.bf16.mxu0 %v2611_v29  ;;  %2644 = vmatprep.subr.bf16.mxu1 %v2611_v29 }
 0x155   :  { %2614 = vmatpush3.bf16.msra.mxu0 %v2613_v32  ;;  %2646 = vmatpush3.bf16.msra.mxu1 %v2613_v32 }
 0x156   :  { %2616 = vmatprep.subr.bf16.mxu0 %v2615_v36  ;;  %2648 = vmatprep.subr.bf16.mxu1 %v2615_v36 }
 0x159   :  { %2618 = vmatpush3.bf16.msra.mxu0 %v2617_v39  ;;  %2650 = vmatpush3.bf16.msra.mxu1 %v2617_v39 }
 0x15a   :  { %2620 = vmatprep.subr.bf16.mxu0 %v2619_v42  ;;  %2652 = vmatprep.subr.bf16.mxu1 %v2619_v42 }
 0x15d   :  { %2622 = vmatpush3.bf16.msra.mxu0 %v2621_v45  ;;  %2654 = vmatpush3.bf16.msra.mxu1 %v2621_v45 }
 0x15e   :  { %2624 = vmatprep.subr.bf16.mxu0 %v2623_v49  ;;  %2656 = vmatprep.subr.bf16.mxu1 %v2623_v49 }
 0x161   :  { %2626 = vmatpush3.bf16.msra.mxu0 %v2625_v51  ;;  %2658 = vmatpush3.bf16.msra.mxu1 %v2625_v51 }
 0x217   :  { %v3870_v52 = vpop.f32.mrb[0].mxu0  ;;  %v3872_v53 = vpop.f32.mrb[0].mxu1 }
 0x218   :  { %v796_v54 = vsel %vm795_vm0, %v3870_v52, 0.0  ;;  %v810_v55 = vmul.f32 %v3870_v52, %v3870_v52  ;;  %v1278_v56 = vsel %vm795_vm0, %v3872_v53, 0.0  ;;  %v1292_v57 = vmul.f32 %v3872_v53, %v3872_v53  ;;  %v3882_v58 = vpop.f32.mrb[1].mxu0  ;;  %v3884_v59 = vpop.f32.mrb[1].mxu1 }
 0x219   :  { %v797_v60 = vrot.slane %v796_v54, 4  ;;  %v1279_v61 = vrot.slane %v1278_v56, 4  ;;  %v803_v62 = vsel %vm795_vm0, %v3882_v58, 0.0  ;;  %v811_v63 = vmul.f32 %v3882_v58, %v3882_v58 }
 0x21a   :  { %v812_v0 = vsel %vm795_vm0, %v810_v55, 0.0  ;;  %v1294_v1 = vsel %vm795_vm0, %v1292_v57, 0.0  ;;  %v804_v2 = vrot.slane %v803_v62, 4  ;;  %v1285_v3 = vsel %vm795_vm0, %v3884_v59, 0.0 }
 0x21b   :  { %v798_v4 = vadd.f32 %v797_v60, %v796_v54  ;;  %v813_v5 = vrot.slane %v812_v0, 4  ;;  %v1280_v6 = vadd.f32 %v1279_v61, %v1278_v56  ;;  %v1295_v7 = vrot.slane %v1294_v1, 4  ;;  %v1497_v61 = vld [vmem:[%s3967_s3 + $0x8] sm:$0xff] }
 0x21c   :  { %v805_v8 = vadd.f32 %v804_v2, %v803_v62  ;;  %v819_v9 = vsel %vm795_vm0, %v811_v63, 0.0  ;;  %v1286_v10 = vrot.slane %v1285_v3, 4  ;;  %v1293_v11 = vmul.f32 %v3884_v59, %v3884_v59  ;;  %v1499_v62 = vld [vmem:[%s3967_s3 + $0x18] sm:$0xff] }
 0x21d   :  { %v799_v12 = vrot.slane %v798_v4, 2  ;;  %v814_v13 = vadd.f32 %v813_v5, %v812_v0  ;;  %v1281_v14 = vrot.slane %v1280_v6, 2  ;;  %v1296_v15 = vadd.f32 %v1295_v7, %v1294_v1  ;;  %v1496_v0 = vld [vmem:[%s3967_s3] sm:$0xff]  ;;  %v1498_v1 = vld [vmem:[%s3967_s3 + $0x10] sm:$0xff] }
 0x21e   :  { %v806_v16 = vrot.slane %v805_v8, 2  ;;  %v820_v17 = vrot.slane %v819_v9, 4  ;;  %v1287_v18 = vadd.f32 %v1286_v10, %v1285_v3  ;;  %v1301_v19 = vsel %vm795_vm0, %v1293_v11, 0.0  ;;  %v1503_v3 = vld [vmem:[%s3967_s3 + $0x38] sm:$0xff]  ;;  %v1500_v5 = vld [vmem:[%s3967_s3 + $0x20] sm:$0xff] }
 0x21f   :  { %v800_v20 = vadd.f32 %v799_v12, %v798_v4  ;;  %v815_v21 = vrot.slane %v814_v13, 2  ;;  %v1282_v22 = vadd.f32 %v1281_v14, %v1280_v6  ;;  %v1297_v23 = vrot.slane %v1296_v15, 2  ;;  %v1502_v6 = vld [vmem:[%s3967_s3 + $0x30] sm:$0xff]  ;;  %v1504_v10 = vld [vmem:[%s3967_s3 + $0x40] sm:$0xff]  ;;  %v1511_v14 = vld [vmem:[%s3967_s3 + $0x78] sm:$0xff] }
 0x220   :  { %v807_v24 = vadd.f32 %v806_v16, %v805_v8  ;;  %v821_v25 = vadd.f32 %v820_v17, %v819_v9  ;;  %v1288_v26 = vrot.slane %v1287_v18, 2  ;;  %v1302_v27 = vrot.slane %v1301_v19, 4  ;;  %v1505_v8 = vld [vmem:[%s3967_s3 + $0x48] sm:$0xff]  ;;  %v1507_v9 = vld [vmem:[%s3967_s3 + $0x58] sm:$0xff]  ;;  %v1506_v12 = vld [vmem:[%s3967_s3 + $0x50] sm:$0xff] }
 0x221   :  { %v801_v28 = vrot.slane %v800_v20, 1  ;;  %v816_v29 = vadd.f32 %v815_v21, %v814_v13  ;;  %v1283_v30 = vrot.slane %v1282_v22, 1  ;;  %v1298_v31 = vadd.f32 %v1297_v23, %v1296_v15  ;;  %v1509_v13 = vld [vmem:[%s3967_s3 + $0x68] sm:$0xff]  ;;  %v1508_v17 = vld [vmem:[%s3967_s3 + $0x60] sm:$0xff] }
 0x222   :  { %v822_v32 = vrot.slane %v821_v25, 2  ;;  %v1289_v33 = vadd.f32 %v1288_v26, %v1287_v18  ;;  %v1303_v34 = vadd.f32 %v1302_v27, %v1301_v19  ;;  %v808_v36 = vrot.slane %v807_v24, 1  ;;  %v1510_v18 = vld [vmem:[%s3967_s3 + $0x70] sm:$0xff] }
 0x223   :  { %v802_v37 = vadd.f32 %v801_v28, %v800_v20  ;;  %v817_v38 = vrot.slane %v816_v29, 1  ;;  %v1284_v39 = vadd.f32 %v1283_v30, %v1282_v22  ;;  %v1299_v40 = vrot.slane %v1298_v31, 1 }
 0x224   :  { %v1304_v41 = vrot.slane %v1303_v34, 2  ;;  %v809_v42 = vadd.f32 %v808_v36, %v807_v24  ;;  %v1290_v43 = vrot.slane %v1289_v33, 1  ;;  %v823_v44 = vadd.f32 %v822_v32, %v821_v25 }
 0x225   :  { %v1308_v45 = vadd.f32 %v1284_v39, %v802_v37  ;;  %v818_v46 = vadd.f32 %v817_v38, %v816_v29  ;;  %v1300_v47 = vadd.f32 %v1299_v40, %v1298_v31  ;;  %v2659_v63 = vpack.c.bf16 %v1499_v62, %v1497_v61  ;;  %v1491_v31 = vld [vmem:[%s3968_s4] sm:$0x1] }
 0x226   :  { %v1291_v48 = vadd.f32 %v1290_v43, %v1289_v33  ;;  %v824_v49 = vrot.slane %v823_v44, 1  ;;  %v1305_v50 = vadd.f32 %v1304_v41, %v1303_v34  ;;  %v2661_v2 = vpack.c.bf16 %v1498_v1, %v1496_v0  ;;  %v1493_v34 = vld [vmem:[%s3969_s5] sm:$0x1] }
 0x227   :  { %v1310_v51 = vadd.f32 %v1300_v47, %v818_v46  ;;  %2660 = vmatprep.subr.bf16.mxu0 %v2659_v63  ;;  %2676 = vmatprep.subr.bf16.mxu1 %v2659_v63  ;;  %v2665_v7 = vpack.c.bf16 %v1502_v6, %v1500_v5  ;;  %v2667_v11 = vpack.c.bf16 %v1507_v9, %v1505_v8  ;;  %v1661_v38 = vlaneseq }
 0x228   :  { %v1309_v54 = vadd.f32 %v1291_v48, %v809_v42  ;;  %v825_v55 = vadd.f32 %v824_v49, %v823_v44  ;;  %v1306_v56 = vrot.slane %v1305_v50, 1  ;;  %v2669_v15 = vpack.c.bf16 %v1506_v12, %v1504_v10 }
 0x229   :  { %v2671_v16 = vpack.c.bf16 %v1511_v14, %v1509_v13  ;;  %v2673_v19 = vpack.c.bf16 %v1510_v18, %v1508_v17  ;;  %v1662_v39 = vshrl.u32 %v1661_v38, 7 }
 0x22a   :  { %1408 = vmatprep.mubr.f32.mxu0 %v1309_v54  ;;  %v1307_v57 = vadd.f32 %v1306_v56, %v1305_v50 }
 0x22b   :  { %1409 = vmatmul.mubr.f32.vlgmr.msra.gmra.mrb[2].mxu0 %v1308_v45  ;;  %v1663_v40 = vsub.s32 0, %v1662_v39 }
 0x22c   :  { %v1311_v60 = vadd.f32 %v1307_v57, %v825_v55  ;;  %1580 = vmatprep.mubr.f32.mxu0 %v2714_v35  ;;  %2662 = vmatpush1.bf16.msra.mxu0 %v2661_v2 }
 0x22e   :  { %1478 = vmatprep.mubr.f32.mxu1 %v1311_v60 }
 0x22f   :  { %1479 = vmatmul.mubr.f32.vlgmr.msra.gmra.mrb[2].mxu1 %v1310_v51 }
 0x230   :  { %1654 = vmatprep.mubr.f32.mxu1 %v2714_v35  ;;  %v1501_v35 = vld [vmem:[%s3967_s3 + $0x28] sm:$0xff]  ;;  %2678 = vmatpush1.bf16.msra.mxu1 %v2661_v2 }
 0x231   :  { %v2663_v4 = vpack.c.bf16 %v1503_v3, %v1501_v35 }
 0x233   :  { %2664 = vmatprep.subr.bf16.mxu0 %v2663_v4  ;;  %2680 = vmatprep.subr.bf16.mxu1 %v2663_v4 }
 0x234   :  { %2666 = vmatpush1.bf16.msra.mxu0 %v2665_v7  ;;  %2682 = vmatpush1.bf16.msra.mxu1 %v2665_v7 }
 0x235   :  { %2668 = vmatprep.subr.bf16.mxu0 %v2667_v11  ;;  %2684 = vmatprep.subr.bf16.mxu1 %v2667_v11 }
 0x238   :  { %2670 = vmatpush1.bf16.msra.mxu0 %v2669_v15  ;;  %2686 = vmatpush1.bf16.msra.mxu1 %v2669_v15 }
 0x239   :  { %2672 = vmatprep.subr.bf16.mxu0 %v2671_v16  ;;  %2688 = vmatprep.subr.bf16.mxu1 %v2671_v16 }
 0x23c   :  { %2674 = vmatpush1.bf16.msra.mxu0 %v2673_v19  ;;  %2690 = vmatpush1.bf16.msra.mxu1 %v2673_v19 }
 0x2fe   :  { %v1917_v20 = vpop.f32.mrb[2].mxu0 }
 0x2ff   :  { %v1918_v21 = vpop.f32.mrb[3].mxu0 }
 0x300   :  { %v1919_v22 = vadd.f32 %v1918_v21, %v1917_v20 }
 0x302   :  { %v1485_v23 = vmul.f32 0.03125, %v1919_v22  ;;  %v1952_v24 = vpop.f32.mrb[2].mxu1 }
 0x303   :  { %v1953_v25 = vpop.f32.mrb[3].mxu1 }
 0x304   :  { %v1487_v26 = vmul.f32 %v1485_v23, %v1485_v23  ;;  %v1954_v27 = vadd.f32 %v1953_v25, %v1952_v24 }
 0x306   :  { %v1486_v28 = vmul.f32 0.03125, %v1954_v27 }
 0x308   :  { %v1488_v29 = vsub.f32 %v1486_v28, %v1487_v26 }
 0x30a   :  { %v1489_v30 = vadd.f32 1e-05, %v1488_v29 }
 0x30c   :  { %2712 = vrsqrt.f32 %v1489_v30 }
 0x316   :  { %v2713_v32 = vpop.eup %2712 }
 0x317   :  { %v1492_v33 = vmul.f32 %v2713_v32, %v1491_v31 }
 0x319   :  { %1882 = vmatmul.mubr.msk.f32.vlgmr.msra.gmra.mrb[4].mxu0 %vm1512_vm1, %v1492_v33  ;;  %v1494_v36 = vmul.f32 %v1492_v33, %v1485_v23 }
 0x31b   :  { %v1495_v37 = vsub.f32 %v1493_v34, %v1494_v36 }
 0x31d   :  { %1883 = vmatmul.mubr.msk.f32.vlgmr.msra.gmra.mrb[4].mxu1 %vm1512_vm1, %v1495_v37 }
 0x3ec   :  { %v1582_v41 = vpop.f32.mrb[4].mxu0 }
 0x3ed   :  { %v1664_v42 = vrot.slane %v1582_v41, %v1663_v40  ;;  %v1584_v43 = vpop.f32.mrb[5].mxu0 }
 0x3ee   :  { %v1668_v44 = vrot.slane %v1584_v43, %v1663_v40 }
 0x3ef   :  { %v1669_v45 = vmul.f32 %v1664_v42, %v3870_v52  ;;  %v1692_v46 = vmul.f32 %v1664_v42, %v3872_v53 }
 0x3f0   :  { %v1670_v47 = vmul.f32 %v1668_v44, %v3882_v58  ;;  %v1693_v48 = vmul.f32 %v1668_v44, %v3884_v59  ;;  %v1656_v49 = vpop.f32.mrb[4].mxu1 }
 0x3f1   :  { %v1674_v50 = vrot.slane %v1656_v49, %v1663_v40  ;;  %v1658_v51 = vpop.f32.mrb[5].mxu1 }
 0x3f2   :  { %v1678_v54 = vrot.slane %v1658_v51, %v1663_v40 }
 0x3f3   :  { %v1679_v55 = vadd.f32 %v1674_v50, %v1669_v45  ;;  %v1694_v56 = vadd.f32 %v1692_v46, %v1674_v50 }
 0x3f4   :  { %v1680_v57 = vadd.f32 %v1678_v54, %v1670_v47  ;;  %v1695_v60 = vadd.f32 %v1693_v48, %v1678_v54 }
 0x3f5   :  { %vm1681_vm2 = vcmp.ge.f32.partialorder %v1679_v55, 0.0  ;;  %v1683_v61 = vmul.f32 0.2, %v1679_v55  ;;  %vm1696_vm3 = vcmp.ge.f32.partialorder %v1694_v56, 0.0  ;;  %v1698_v62 = vmul.f32 0.2, %v1694_v56 }
 0x3f6   :  { %vm1682_vm4 = vcmp.ge.f32.partialorder %v1680_v57, 0.0  ;;  %v1684_v52 = vmul.f32 0.2, %v1680_v57  ;;  %vm1697_vm5 = vcmp.ge.f32.partialorder %v1695_v60, 0.0  ;;  %v1699_v53 = vmul.f32 0.2, %v1695_v60 }
 0x3f7   :  { %v1685_v63 = vsel %vm1681_vm2, %v1679_v55, %v1683_v61  ;;  %v1700_v58 = vsel %vm1696_vm3, %v1694_v56, %v1698_v62 }
 0x3f8   :  { %v1686_v0 = vsel %vm1682_vm4, %v1680_v57, %v1684_v52  ;;  %v1701_v59 = vsel %vm1697_vm5, %v1695_v60, %v1699_v53 }
 0x3f9   :  { %v1689_v1 = vcombine.low %v1685_v63, %v1686_v0  ;;  %v1704_v2 = vcombine.low %v1700_v58, %v1701_v59 }
 0x3fb   :  { %1691 = vst [vmem:[%s3970_s6] sm:$0xff] %v1689_v1  ;;  %1884 = vst [vmem:[%s3970_s6 + $0x8] sm:$0xff] %v1704_v2 }

// kernel: _lambda_.9
= control target key start
LH: loop header
LB: loop body
LE: loop exit
PB: predicated region body
PF: predicated region fallthrough
CT: control target
= control target key end

     0   :  { %8 = vsyncpa [#allocation3], 0  ;;  %s3834_s0 = inlined_call_operand.vmem [shape: f32[2,5,640], index: 0, kind: input, shape index: {}]   ;;  %s3835_s1 = inlined_call_operand.vmem [shape: f32[4,640,2], index: 1, kind: input, shape index: {}]   ;;  %s3836_s2 = inlined_call_operand.vmem [shape: f32[1,2], index: 2, kind: input, shape index: {}]   ;;  %s3837_s3 = inlined_call_operand.hbm [shape: f32[2,2,2], index: 3, kind: output, shape index: {}]  }
   0x1   :  { %10 = vsyncpa [#allocation3 + $0x1], 0  ;;  %s2704_s12 = smov 0   ;;  %s2706_s13 = smov 0  }
   0x2   :  { %s2708_s14 = smov 0   ;;  %s2710_s15 = smov 0  }
   0x3 LB: > { %s2725_s16 = sadd.s32 4294967295, %s2678_s15   ;;  %s1482_s17 = sadd.s32 4294967294, %s2678_s15   ;;  %s2678_s15 = sphi %s2710_s15, %s3843_s15   ;;  %s2674_s14 = sphi %s2708_s14, %s3842_s14   ;;  %s2670_s13 = sphi %s2706_s13, %s3841_s13   ;;  %s2666_s12 = sphi %s2704_s12, %s3840_s12  }
   0x4   : > { %s2729_s18 = sadd.s32 1, %s2678_s15   ;;  %s91_s19 = sadd.s32 1, %s2674_s14 }
   0x5   : > { %s88_s20 = ssub.s32 %s2678_s15, %s2729_s18  ;;  %p101_p0 = scmp.ne.s32.totalorder %s2674_s14, %s2670_s13 }
   0x6   : > { %p89_p1 = scmp.eq.s32.totalorder %s88_s20, 0  ;;  %p102_p2 = scmp.eq.s32.totalorder %s2725_s16, 1 }
   0x7   : > { %p107_p3 = scmp.ne.s32.totalorder %s2670_s13, %s2666_s12  ;;  %p108_p4 = scmp.eq.s32.totalorder %s1482_s17, 1 }
   0x8   : > { %s2740_s21 = scalar_select %p89_p1, %s2674_s14, %s91_s19  }
   0x9   : > { %p2742_p5 = por %p102_p2, %p101_p0  ;;  %p2746_p6 = por %p108_p4, %p107_p3 }
   0xa   : > { %p1485_p7 = scmp.ge.s32.totalorder %s2678_s15, 1  ;;  %p140_p8 = scmp.lt.s32.totalorder %s2678_s15, 3 }
   0xc   : > { %p141_p9 = pnand %p1485_p7, %p140_p8 }
   0xd   : > { %v1504_v0 = vld [vmem:[%s3835_s1 + $0x300] sm:$0xff] (!%p141_p9)  ;;  %v1505_v1 = vld [vmem:[%s3835_s1 + $0x308] sm:$0xff] (!%p141_p9)  ;;  %v1506_v11 = vld [vmem:[%s3835_s1 + $0x310] sm:$0xff] (!%p141_p9)  ;;  %p164_p10 = scmp.lt.s32.totalorder (!%p141_p9), %s2725_s16, 1  ;;  %vm2681_vm0 = vmmov (!%p141_p9), 0   ;;  %s1730_s17 = sshll.u32 (!%p141_p9), %s2725_s16, 5 }
   0xe   : > { %144 = sbr.rel (%p141_p9) target bundleno = 446 (0x1be), region = 32  ;;  %v1536_v2 = vld [vmem:[%s3835_s1 + $0x400] sm:$0xff] (!%p141_p9)  ;;  %v2221_v3 = vpack.c.bf16 (!%p141_p9), %v1505_v1, %v1504_v0  ;;  %v1537_v4 = vld [vmem:[%s3835_s1 + $0x408] sm:$0xff] (!%p141_p9)  ;;  %v1507_v13 = vld [vmem:[%s3835_s1 + $0x318] sm:$0xff] (!%p141_p9)  ;;  %vm1407_vm1 = vcmask (!%p141_p9), 9216   ;;  %s3792_s27 = scalar_lea.hbm (!%p141_p9), %s3837_s3, %s1730_s17 }
   0xf   : > { %v1488_v5 = vld [vmem:[%s3835_s1 + $0x280] sm:$0xff] (!%p141_p9)  ;;  %v1489_v6 = vld [vmem:[%s3835_s1 + $0x288] sm:$0xff] (!%p141_p9)  ;;  %v2253_v7 = vpack.c.bf16 (!%p141_p9), %v1537_v4, %v1536_v2  ;;  %v1538_v14 = vld [vmem:[%s3835_s1 + $0x410] sm:$0xff] (!%p141_p9)  ;;  %v2225_v16 = vpack.c.bf16 (!%p141_p9), %v1507_v13, %v1506_v11 }
  0x10   : > { %v2223_v8 = vpack.c.bf16 (!%p141_p9), %v1489_v6, %v1488_v5  ;;  %v1520_v9 = vld [vmem:[%s3835_s1 + $0x380] sm:$0xff] (!%p141_p9)  ;;  %v1521_v10 = vld [vmem:[%s3835_s1 + $0x388] sm:$0xff] (!%p141_p9)  ;;  %2222 = vmatprep.subr.bf16.mxu0 (!%p141_p9), %v2221_v3  ;;  %v1539_v15 = vld [vmem:[%s3835_s1 + $0x418] sm:$0xff] (!%p141_p9) }
  0x11   : > { %v2255_v12 = vpack.c.bf16 (!%p141_p9), %v1521_v10, %v1520_v9  ;;  %2254 = vmatprep.subr.bf16.mxu1 (!%p141_p9), %v2253_v7  ;;  %v2257_v17 = vpack.c.bf16 (!%p141_p9), %v1539_v15, %v1538_v14  ;;  %v1490_v18 = vld [vmem:[%s3835_s1 + $0x290] sm:$0xff] (!%p141_p9)  ;;  %v1491_v19 = vld [vmem:[%s3835_s1 + $0x298] sm:$0xff] (!%p141_p9)  ;;  %v1508_v23 = vld [vmem:[%s3835_s1 + $0x320] sm:$0xff] (!%p141_p9) }
  0x12   : > { %2224 = vmatpush3.bf16.msra.mxu0 (!%p141_p9), %v2223_v8  ;;  %v1522_v20 = vld [vmem:[%s3835_s1 + $0x390] sm:$0xff] (!%p141_p9)  ;;  %v2227_v21 = vpack.c.bf16 (!%p141_p9), %v1491_v19, %v1490_v18  ;;  %v1523_v22 = vld [vmem:[%s3835_s1 + $0x398] sm:$0xff] (!%p141_p9)  ;;  %v1509_v24 = vld [vmem:[%s3835_s1 + $0x328] sm:$0xff] (!%p141_p9) }
  0x13   : > { %2256 = vmatpush3.bf16.msra.mxu1 (!%p141_p9), %v2255_v12  ;;  %2226 = vmatprep.subr.bf16.mxu0 (!%p141_p9), %v2225_v16  ;;  %v2259_v25 = vpack.c.bf16 (!%p141_p9), %v1523_v22, %v1522_v20  ;;  %v2229_v26 = vpack.c.bf16 (!%p141_p9), %v1509_v24, %v1508_v23  ;;  %v1540_v27 = vld [vmem:[%s3835_s1 + $0x420] sm:$0xff] (!%p141_p9)  ;;  %v1541_v28 = vld [vmem:[%s3835_s1 + $0x428] sm:$0xff] (!%p141_p9)  ;;  %v1510_v35 = vld [vmem:[%s3835_s1 + $0x330] sm:$0xff] (!%p141_p9) }
  0x14   : > { %2258 = vmatprep.subr.bf16.mxu1 (!%p141_p9), %v2257_v17  ;;  %v1492_v29 = vld [vmem:[%s3835_s1 + $0x2a0] sm:$0xff] (!%p141_p9)  ;;  %v2261_v30 = vpack.c.bf16 (!%p141_p9), %v1541_v28, %v1540_v27  ;;  %v1493_v31 = vld [vmem:[%s3835_s1 + $0x2a8] sm:$0xff] (!%p141_p9)  ;;  %v1511_v36 = vld [vmem:[%s3835_s1 + $0x338] sm:$0xff] (!%p141_p9) }
  0x15   : > { %v1524_v32 = vld [vmem:[%s3835_s1 + $0x3a0] sm:$0xff]  ;;  %v1525_v33 = vld [vmem:[%s3835_s1 + $0x3a8] sm:$0xff]  ;;  %v2231_v34 = vpack.c.bf16 %v1493_v31, %v1492_v29  ;;  %v1542_v37 = vld [vmem:[%s3835_s1 + $0x430] sm:$0xff]  ;;  %v2233_v39 = vpack.c.bf16 %v1511_v36, %v1510_v35  ;;  %s2855_s9 = scalar_select %p164_p10, %s2725_s16, 1 }
  0x16   : > { %2228 = vmatpush3.bf16.msra.mxu0 %v2227_v21  ;;  %v2263_v38 = vpack.c.bf16 %v1525_v33, %v1524_v32  ;;  %v1543_v40 = vld [vmem:[%s3835_s1 + $0x438] sm:$0xff]  ;;  %v1494_v41 = vld [vmem:[%s3835_s1 + $0x2b0] sm:$0xff]  ;;  %v1512_v46 = vld [vmem:[%s3835_s1 + $0x340] sm:$0xff]  ;;  %s2683_s16 = smov [#allocation2]  }
  0x17   : > { %2260 = vmatpush3.bf16.msra.mxu1 %v2259_v25  ;;  %2230 = vmatprep.subr.bf16.mxu0 %v2229_v26  ;;  %v1495_v42 = vld [vmem:[%s3835_s1 + $0x2b8] sm:$0xff]  ;;  %v2265_v43 = vpack.c.bf16 %v1543_v40, %v1542_v37  ;;  %v1526_v44 = vld [vmem:[%s3835_s1 + $0x3b0] sm:$0xff]  ;;  %v1513_v47 = vld [vmem:[%s3835_s1 + $0x348] sm:$0xff]  ;;  %s2573_s11 = smul.u32 40, %s2855_s9  ;;  %s2620_s29 = sshll.u32 %s2683_s16, 4  ;;  %s2621_s29 = int_to_ptr.vmem [resolvable:$false] %s2620_s29 }
  0x18   : > { %2262 = vmatprep.subr.bf16.mxu1 %v2261_v30  ;;  %v1527_v45 = vld [vmem:[%s3835_s1 + $0x3b8] sm:$0xff]  ;;  %v1544_v48 = vld [vmem:[%s3835_s1 + $0x440] sm:$0xff]  ;;  %v1545_v49 = vld [vmem:[%s3835_s1 + $0x448] sm:$0xff]  ;;  %v2235_v50 = vpack.c.bf16 %v1495_v42, %v1494_v41  ;;  %v2237_v52 = vpack.c.bf16 %v1513_v47, %v1512_v46 }
  0x19   : > { %v2267_v51 = vpack.c.bf16 %v1527_v45, %v1526_v44  ;;  %v1496_v53 = vld [vmem:[%s3835_s1 + $0x2c0] sm:$0xff]  ;;  %v1497_v54 = vld [vmem:[%s3835_s1 + $0x2c8] sm:$0xff]  ;;  %v2269_v56 = vpack.c.bf16 %v1545_v49, %v1544_v48  ;;  %v1514_v58 = vld [vmem:[%s3835_s1 + $0x350] sm:$0xff]  ;;  %s2912_s19 = scalar_lea.vmem %s3834_s0, %s2573_s11  ;;  %s2622_s11 = scalar_lea.vmem %s2621_s29, 64 }
  0x1a   : > { %2232 = vmatpush3.bf16.msra.mxu0 %v2231_v34  ;;  %v1528_v55 = vld [vmem:[%s3835_s1 + $0x3c0] sm:$0xff]  ;;  %v1529_v57 = vld [vmem:[%s3835_s1 + $0x3c8] sm:$0xff]  ;;  %v1515_v59 = vld [vmem:[%s3835_s1 + $0x358] sm:$0xff]  ;;  %v2239_v62 = vpack.c.bf16 %v1497_v54, %v1496_v53 }
  0x1b   : > { %2264 = vmatpush3.bf16.msra.mxu1 %v2263_v38  ;;  %2234 = vmatprep.subr.bf16.mxu0 %v2233_v39  ;;  %v1546_v60 = vld [vmem:[%s3835_s1 + $0x450] sm:$0xff]  ;;  %v1547_v61 = vld [vmem:[%s3835_s1 + $0x458] sm:$0xff]  ;;  %v2271_v63 = vpack.c.bf16 %v1529_v57, %v1528_v55  ;;  %v2241_v0 = vpack.c.bf16 %v1515_v59, %v1514_v58  ;;  %v1516_v6 = vld [vmem:[%s3835_s1 + $0x360] sm:$0xff] }
  0x1c   : > { %2266 = vmatprep.subr.bf16.mxu1 %v2265_v43  ;;  %v1498_v1 = vld [vmem:[%s3835_s1 + $0x2d0] sm:$0xff]  ;;  %v1499_v2 = vld [vmem:[%s3835_s1 + $0x2d8] sm:$0xff]  ;;  %v2273_v4 = vpack.c.bf16 %v1547_v61, %v1546_v60  ;;  %v1517_v7 = vld [vmem:[%s3835_s1 + $0x368] sm:$0xff] }
  0x1d   : > { %v1530_v3 = vld [vmem:[%s3835_s1 + $0x3d0] sm:$0xff]  ;;  %v1531_v5 = vld [vmem:[%s3835_s1 + $0x3d8] sm:$0xff]  ;;  %v1548_v8 = vld [vmem:[%s3835_s1 + $0x460] sm:$0xff]  ;;  %v2243_v10 = vpack.c.bf16 %v1499_v2, %v1498_v1  ;;  %v2245_v14 = vpack.c.bf16 %v1517_v7, %v1516_v6  ;;  %v2682_v2 = vmov 0.0  }
  0x1e   : > { %2236 = vmatpush3.bf16.msra.mxu0 %v2235_v50  ;;  %v1549_v9 = vld [vmem:[%s3835_s1 + $0x468] sm:$0xff]  ;;  %v1500_v11 = vld [vmem:[%s3835_s1 + $0x2e0] sm:$0xff]  ;;  %v2275_v13 = vpack.c.bf16 %v1531_v5, %v1530_v3  ;;  %v257_v17 = vld [vmem:[%s2912_s19 + $0x18] sm:$0x6]  ;;  %v2680_v50 = vmov 0.0|0.0  }
  0x1f   : > { %2268 = vmatpush3.bf16.msra.mxu1 %v2267_v51  ;;  %2238 = vmatprep.subr.bf16.mxu0 %v2237_v52  ;;  %v1501_v12 = vld [vmem:[%s3835_s1 + $0x2e8] sm:$0xff]  ;;  %v1532_v15 = vld [vmem:[%s3835_s1 + $0x3e0] sm:$0xff]  ;;  %v2277_v18 = vpack.c.bf16 %v1549_v9, %v1548_v8  ;;  %v1518_v20 = vld [vmem:[%s3835_s1 + $0x370] sm:$0xff]  ;;  %v348_v23 = vrot.slane %v257_v17, 1 }
  0x20   : > { %2270 = vmatprep.subr.bf16.mxu1 %v2269_v56  ;;  %v255_v16 = vld [vmem:[%s2912_s19 + $0x8] sm:$0x6]  ;;  %v1519_v21 = vld [vmem:[%s3835_s1 + $0x378] sm:$0xff]  ;;  %v1550_v24 = vld [vmem:[%s3835_s1 + $0x470] sm:$0xff]  ;;  %v2247_v26 = vpack.c.bf16 %v1501_v12, %v1500_v11 }
  0x21   : > { %v1533_v19 = vld [vmem:[%s3835_s1 + $0x3e8] sm:$0xff]  ;;  %v346_v22 = vrot.slane %v255_v16, 1  ;;  %v1551_v25 = vld [vmem:[%s3835_s1 + $0x478] sm:$0xff]  ;;  %v2249_v28 = vpack.c.bf16 %v1519_v21, %v1518_v20  ;;  %v1502_v29 = vld [vmem:[%s3835_s1 + $0x2f0] sm:$0xff]  ;;  %489 = vmatprep.mubr.f32.mxu1 %v348_v23 }
  0x22   : > { %2240 = vmatpush3.bf16.msra.mxu0 %v2239_v62  ;;  %v2279_v27 = vpack.c.bf16 %v1533_v19, %v1532_v15  ;;  %v1503_v30 = vld [vmem:[%s3835_s1 + $0x2f8] sm:$0xff]  ;;  %v2281_v31 = vpack.c.bf16 %v1551_v25, %v1550_v24  ;;  %v1534_v32 = vld [vmem:[%s3835_s1 + $0x3f0] sm:$0xff]  ;;  %v190_v34 = vld [vmem:[%s3835_s1 + $0x80] sm:$0xff] }
  0x23   : > { %2272 = vmatpush3.bf16.msra.mxu1 %v2271_v63  ;;  %2242 = vmatprep.subr.bf16.mxu0 %v2241_v0  ;;  %v1535_v33 = vld [vmem:[%s3835_s1 + $0x3f8] sm:$0xff]  ;;  %v191_v35 = vld [vmem:[%s3835_s1 + $0x88] sm:$0xff]  ;;  %v2251_v36 = vpack.c.bf16 %v1503_v30, %v1502_v29  ;;  %v254_v37 = vld [vmem:[%s2912_s19] sm:$0x6] }
  0x24   : > { %2274 = vmatprep.subr.bf16.mxu1 %v2273_v4  ;;  %419 = vmatprep.mubr.f32.mxu0 %v346_v22  ;;  %v2283_v38 = vpack.c.bf16 %v1535_v33, %v1534_v32  ;;  %v256_v39 = vld [vmem:[%s2912_s19 + $0x10] sm:$0x6]  ;;  %v1552_v40 = vld [vmem:[%s3835_s1 + $0x480] sm:$0xff]  ;;  %v1553_v41 = vld [vmem:[%s3835_s1 + $0x488] sm:$0xff]  ;;  %v2309_v42 = vpack.c.bf16 %v191_v35, %v190_v34  ;;  %v345_v45 = vrot.slane %v254_v37, 1 }
  0x25   : > { %v174_v43 = vld [vmem:[%s3835_s1] sm:$0xff]  ;;  %v175_v44 = vld [vmem:[%s3835_s1 + $0x8] sm:$0xff]  ;;  %v192_v46 = vld [vmem:[%s3835_s1 + $0x90] sm:$0xff]  ;;  %v347_v48 = vrot.slane %v256_v39, 1  ;;  %v2286_v49 = vpack.c.bf16 %v1553_v41, %v1552_v40 }
  0x26   : > { %2244 = vmatpush3.bf16.msra.mxu0 %v2243_v10  ;;  %v193_v47 = vld [vmem:[%s3835_s1 + $0x98] sm:$0xff]  ;;  %v2311_v51 = vpack.c.bf16 %v175_v44, %v174_v43  ;;  %v1554_v52 = vld [vmem:[%s3835_s1 + $0x490] sm:$0xff]  ;;  %v194_v57 = vld [vmem:[%s3835_s1 + $0xa0] sm:$0xff] }
  0x27   : > { %2276 = vmatpush3.bf16.msra.mxu1 %v2275_v13  ;;  %2246 = vmatprep.subr.bf16.mxu0 %v2245_v14  ;;  %v1555_v53 = vld [vmem:[%s3835_s1 + $0x498] sm:$0xff]  ;;  %v2313_v54 = vpack.c.bf16 %v193_v47, %v192_v46  ;;  %v176_v55 = vld [vmem:[%s3835_s1 + $0x10] sm:$0xff]  ;;  %v195_v58 = vld [vmem:[%s3835_s1 + $0xa8] sm:$0xff] }
  0x28   : > { %2278 = vmatprep.subr.bf16.mxu1 %v2277_v18  ;;  %v177_v56 = vld [vmem:[%s3835_s1 + $0x18] sm:$0xff]  ;;  %v2289_v59 = vpack.c.bf16 %v1555_v53, %v1554_v52  ;;  %v1556_v61 = vld [vmem:[%s3835_s1 + $0x4a0] sm:$0xff]  ;;  %v1557_v62 = vld [vmem:[%s3835_s1 + $0x4a8] sm:$0xff]  ;;  %v2317_v63 = vpack.c.bf16 %v195_v58, %v194_v57 }
  0x29   : > { %v2315_v60 = vpack.c.bf16 %v177_v56, %v176_v55  ;;  %v178_v0 = vld [vmem:[%s3835_s1 + $0x20] sm:$0xff]  ;;  %v179_v1 = vld [vmem:[%s3835_s1 + $0x28] sm:$0xff]  ;;  %v196_v3 = vld [vmem:[%s3835_s1 + $0xb0] sm:$0xff]  ;;  %v2292_v6 = vpack.c.bf16 %v1557_v62, %v1556_v61 }
  0x2a   : > { %2248 = vmatpush3.bf16.msra.mxu0 %v2247_v26  ;;  %v197_v4 = vld [vmem:[%s3835_s1 + $0xb8] sm:$0xff]  ;;  %v170_v5 = vld [vmem:[%s2912_s19 + $0x8] sm:$0x3]  ;;  %v2319_v7 = vpack.c.bf16 %v179_v1, %v178_v0  ;;  %v1558_v8 = vld [vmem:[%s3835_s1 + $0x4b0] sm:$0xff] }
  0x2b   : > { %2280 = vmatpush3.bf16.msra.mxu1 %v2279_v27  ;;  %2250 = vmatprep.subr.bf16.mxu0 %v2249_v28  ;;  %v1559_v9 = vld [vmem:[%s3835_s1 + $0x4b8] sm:$0xff]  ;;  %v2321_v10 = vpack.c.bf16 %v197_v4, %v196_v3  ;;  %v180_v11 = vld [vmem:[%s3835_s1 + $0x30] sm:$0xff]  ;;  %v198_v13 = vld [vmem:[%s3835_s1 + $0xc0] sm:$0xff] }
  0x2c   : > { %2282 = vmatprep.subr.bf16.mxu1 %v2281_v31  ;;  %v181_v12 = vld [vmem:[%s3835_s1 + $0x38] sm:$0xff]  ;;  %v199_v14 = vld [vmem:[%s3835_s1 + $0xc8] sm:$0xff]  ;;  %v2295_v15 = vpack.c.bf16 %v1559_v9, %v1558_v8  ;;  %v1560_v17 = vld [vmem:[%s3835_s1 + $0x4c0] sm:$0xff] }
  0x2d   : > { %v2323_v16 = vpack.c.bf16 %v181_v12, %v180_v11  ;;  %v1561_v18 = vld [vmem:[%s3835_s1 + $0x4c8] sm:$0xff]  ;;  %v2325_v19 = vpack.c.bf16 %v199_v14, %v198_v13  ;;  %v182_v20 = vld [vmem:[%s3835_s1 + $0x40] sm:$0xff]  ;;  %v200_v22 = vld [vmem:[%s3835_s1 + $0xd0] sm:$0xff] }
  0x2e   : > { %2252 = vmatpush3.bf16.msra.mxu0 %v2251_v36  ;;  %v183_v21 = vld [vmem:[%s3835_s1 + $0x48] sm:$0xff]  ;;  %v201_v23 = vld [vmem:[%s3835_s1 + $0xd8] sm:$0xff]  ;;  %v2298_v24 = vpack.c.bf16 %v1561_v18, %v1560_v17  ;;  %v1562_v26 = vld [vmem:[%s3835_s1 + $0x4d0] sm:$0xff] }
  0x2f   : > { %2284 = vmatpush3.bf16.msra.mxu1 %v2283_v38  ;;  %2285 = vmatprep.subr.bf16.mxu0 %v2680_v50  ;;  %v2327_v25 = vpack.c.bf16 %v183_v21, %v182_v20  ;;  %v1563_v27 = vld [vmem:[%s3835_s1 + $0x4d8] sm:$0xff]  ;;  %v2329_v28 = vpack.c.bf16 %v201_v23, %v200_v22  ;;  %v184_v29 = vld [vmem:[%s3835_s1 + $0x50] sm:$0xff]  ;;  %v202_v31 = vld [vmem:[%s3835_s1 + $0xe0] sm:$0xff] }
  0x30   : > { %2310 = vmatprep.subr.bf16.mxu1 %v2309_v42  ;;  %v185_v30 = vld [vmem:[%s3835_s1 + $0x58] sm:$0xff]  ;;  %v203_v32 = vld [vmem:[%s3835_s1 + $0xe8] sm:$0xff]  ;;  %v2301_v33 = vpack.c.bf16 %v1563_v27, %v1562_v26  ;;  %v1564_v35 = vld [vmem:[%s3835_s1 + $0x4e0] sm:$0xff] }
  0x31   : > { %420 = vmatmul.mubr.f32.vlgmr.msra.gmra.mrb[0].mxu0 %v345_v45  ;;  %v2331_v34 = vpack.c.bf16 %v185_v30, %v184_v29  ;;  %v1565_v36 = vld [vmem:[%s3835_s1 + $0x4e8] sm:$0xff]  ;;  %v2333_v37 = vpack.c.bf16 %v203_v32, %v202_v31  ;;  %v186_v38 = vld [vmem:[%s3835_s1 + $0x60] sm:$0xff]  ;;  %v204_v40 = vld [vmem:[%s3835_s1 + $0xf0] sm:$0xff] }
  0x32   : > { %490 = vmatmul.mubr.f32.vlgmr.msra.gmra.mrb[0].mxu1 %v347_v48  ;;  %2287 = vmatpush3.bf16.msra.mxu0 %v2286_v49  ;;  %v187_v39 = vld [vmem:[%s3835_s1 + $0x68] sm:$0xff]  ;;  %v205_v41 = vld [vmem:[%s3835_s1 + $0xf8] sm:$0xff]  ;;  %v2304_v42 = vpack.c.bf16 %v1565_v36, %v1564_v35  ;;  %v1566_v44 = vld [vmem:[%s3835_s1 + $0x4f0] sm:$0xff] }
  0x33   : > { %2312 = vmatpush3.bf16.msra.mxu1 %v2311_v51  ;;  %2288 = vmatprep.subr.bf16.mxu0 %v2680_v50  ;;  %v2335_v43 = vpack.c.bf16 %v187_v39, %v186_v38  ;;  %v1567_v45 = vld [vmem:[%s3835_s1 + $0x4f8] sm:$0xff]  ;;  %v188_v46 = vld [vmem:[%s3835_s1 + $0x70] sm:$0xff]  ;;  %v2337_v47 = vpack.c.bf16 %v205_v41, %v204_v40  ;;  %v222_v49 = vld [vmem:[%s3835_s1 + $0x180] sm:$0xff] }
  0x34   : > { %2314 = vmatprep.subr.bf16.mxu1 %v2313_v54  ;;  %2113 = vmatprep.mubr.msk.f32.mxu0 %vm2681_vm0, %v2682_v2  ;;  %v189_v48 = vld [vmem:[%s3835_s1 + $0x78] sm:$0xff]  ;;  %v223_v51 = vld [vmem:[%s3835_s1 + $0x188] sm:$0xff]  ;;  %v2307_v52 = vpack.c.bf16 %v1567_v45, %v1566_v44  ;;  %v258_v53 = vld [vmem:[%s2912_s19 + $0x20] sm:$0x6] }
  0x35   : > { %629 = vmatprep.mubr.f32.mxu1 %v170_v5  ;;  %v2339_v54 = vpack.c.bf16 %v189_v48, %v188_v46  ;;  %v2341_v55 = vpack.c.bf16 %v223_v51, %v222_v49  ;;  %v206_v56 = vld [vmem:[%s3835_s1 + $0x100] sm:$0xff]  ;;  %v207_v57 = vld [vmem:[%s3835_s1 + $0x108] sm:$0xff]  ;;  %v225_v61 = vld [vmem:[%s3835_s1 + $0x198] sm:$0xff]  ;;  %v349_v62 = vrot.slane %v258_v53, 1 }
  0x36   : > { %2290 = vmatpush3.bf16.msra.mxu0 %v2289_v59  ;;  %v238_v58 = vld [vmem:[%s3835_s1 + $0x200] sm:$0xff]  ;;  %v239_v59 = vld [vmem:[%s3835_s1 + $0x208] sm:$0xff]  ;;  %v2343_v0 = vpack.c.bf16 %v207_v57, %v206_v56  ;;  %v208_v4 = vld [vmem:[%s3835_s1 + $0x110] sm:$0xff] }
  0x37   : > { %2316 = vmatpush3.bf16.msra.mxu1 %v2315_v60  ;;  %2291 = vmatprep.subr.bf16.mxu0 %v2680_v50  ;;  %v224_v60 = vld [vmem:[%s3835_s1 + $0x190] sm:$0xff]  ;;  %v2374_v1 = vpack.c.bf16 %v239_v59, %v238_v58  ;;  %v209_v5 = vld [vmem:[%s3835_s1 + $0x118] sm:$0xff]  ;;  %v226_v8 = vld [vmem:[%s3835_s1 + $0x1a0] sm:$0xff] }
  0x38   : > { %2318 = vmatprep.subr.bf16.mxu1 %v2317_v63  ;;  %v169_v63 = vld [vmem:[%s2912_s19] sm:$0x3]  ;;  %v2345_v3 = vpack.c.bf16 %v225_v61, %v224_v60  ;;  %v227_v9 = vld [vmem:[%s3835_s1 + $0x1a8] sm:$0xff]  ;;  %v2347_v11 = vpack.c.bf16 %v209_v5, %v208_v4  ;;  %v228_v18 = vld [vmem:[%s3835_s1 + $0x1b0] sm:$0xff] }
  0x39   : > { %v2349_v13 = vpack.c.bf16 %v227_v9, %v226_v8  ;;  %v210_v14 = vld [vmem:[%s3835_s1 + $0x120] sm:$0xff]  ;;  %v243_v17 = vld [vmem:[%s3835_s1 + $0x228] sm:$0xff]  ;;  %v212_v23 = vld [vmem:[%s3835_s1 + $0x130] sm:$0xff] }
  0x3a   : > { %2293 = vmatpush3.bf16.msra.mxu0 %v2292_v6  ;;  %v240_v6 = vld [vmem:[%s3835_s1 + $0x210] sm:$0xff]  ;;  %v245_v26 = vld [vmem:[%s3835_s1 + $0x238] sm:$0xff]  ;;  %v230_v27 = vld [vmem:[%s3835_s1 + $0x1c0] sm:$0xff] }
  0x3b   : > { %2320 = vmatpush3.bf16.msra.mxu1 %v2319_v7  ;;  %2294 = vmatprep.subr.bf16.mxu0 %v2680_v50  ;;  %v241_v7 = vld [vmem:[%s3835_s1 + $0x218] sm:$0xff]  ;;  %v214_v32 = vld [vmem:[%s3835_s1 + $0x140] sm:$0xff]  ;;  %v247_v35 = vld [vmem:[%s3835_s1 + $0x248] sm:$0xff] }
  0x3c   : > { %2322 = vmatprep.subr.bf16.mxu1 %v2321_v10  ;;  %v172_v10 = vld [vmem:[%s2912_s19 + $0x18] sm:$0x3]  ;;  %v2377_v12 = vpack.c.bf16 %v241_v7, %v240_v6  ;;  %v232_v36 = vld [vmem:[%s3835_s1 + $0x1d0] sm:$0xff]  ;;  %v234_v45 = vld [vmem:[%s3835_s1 + $0x1e0] sm:$0xff] }
  0x3d   : > { %v216_v41 = vld [vmem:[%s3835_s1 + $0x150] sm:$0xff]  ;;  %v249_v44 = vld [vmem:[%s3835_s1 + $0x258] sm:$0xff]  ;;  %v235_v46 = vld [vmem:[%s3835_s1 + $0x1e8] sm:$0xff] }
  0x3e   : > { %2296 = vmatpush3.bf16.msra.mxu0 %v2295_v15  ;;  %v211_v15 = vld [vmem:[%s3835_s1 + $0x128] sm:$0xff]  ;;  %v2365_v49 = vpack.c.bf16 %v235_v46, %v234_v45  ;;  %v218_v51 = vld [vmem:[%s3835_s1 + $0x160] sm:$0xff]  ;;  %v237_v56 = vld [vmem:[%s3835_s1 + $0x1f8] sm:$0xff] }
  0x3f   : > { %2324 = vmatpush3.bf16.msra.mxu1 %v2323_v16  ;;  %2297 = vmatprep.subr.bf16.mxu0 %v2680_v50  ;;  %v242_v16 = vld [vmem:[%s3835_s1 + $0x220] sm:$0xff]  ;;  %v2351_v20 = vpack.c.bf16 %v211_v15, %v210_v14  ;;  %v220_v60 = vld [vmem:[%s3835_s1 + $0x170] sm:$0xff]  ;;  %v221_v61 = vld [vmem:[%s3835_s1 + $0x178] sm:$0xff] }
  0x40   : > { %2326 = vmatprep.subr.bf16.mxu1 %v2325_v19  ;;  %v229_v19 = vld [vmem:[%s3835_s1 + $0x1b8] sm:$0xff]  ;;  %v2380_v21 = vpack.c.bf16 %v243_v17, %v242_v16  ;;  %v250_v53 = vld [vmem:[%s3835_s1 + $0x260] sm:$0xff]  ;;  %v1617_v4 = vld [vmem:[%s3835_s1 + $0x688] sm:$0xff]  ;;  %v2371_v5 = vpack.c.bf16 %v221_v61, %v220_v60 }
  0x41   : > { %v2353_v22 = vpack.c.bf16 %v229_v19, %v228_v18  ;;  %v1568_v8 = vld [vmem:[%s3835_s1 + $0x500] sm:$0xff]  ;;  %v1569_v9 = vld [vmem:[%s3835_s1 + $0x508] sm:$0xff]  ;;  %v1587_v14 = vld [vmem:[%s3835_s1 + $0x598] sm:$0xff] }
  0x42   : > { %2299 = vmatpush3.bf16.msra.mxu0 %v2298_v24  ;;  %v213_v24 = vld [vmem:[%s3835_s1 + $0x138] sm:$0xff]  ;;  %v1618_v15 = vld [vmem:[%s3835_s1 + $0x690] sm:$0xff]  ;;  %v776_v17 = vld [vmem:[%s2912_s19 + $0x8] sm:$0xc] }
  0x43   : > { %2328 = vmatpush3.bf16.msra.mxu1 %v2327_v25  ;;  %2300 = vmatprep.subr.bf16.mxu0 %v2680_v50  ;;  %v244_v25 = vld [vmem:[%s3835_s1 + $0x230] sm:$0xff]  ;;  %v2355_v29 = vpack.c.bf16 %v213_v24, %v212_v23  ;;  %v1619_v16 = vld [vmem:[%s3835_s1 + $0x698] sm:$0xff]  ;;  %v173_v19 = vld [vmem:[%s2912_s19 + $0x20] sm:$0x3] }
  0x44   : > { %2330 = vmatprep.subr.bf16.mxu1 %v2329_v28  ;;  %v231_v28 = vld [vmem:[%s3835_s1 + $0x1c8] sm:$0xff]  ;;  %v2383_v30 = vpack.c.bf16 %v245_v26, %v244_v25  ;;  %v171_v18 = vld [vmem:[%s2912_s19 + $0x10] sm:$0x3]  ;;  %v1571_v25 = vld [vmem:[%s3835_s1 + $0x518] sm:$0xff] }
  0x45   : > { %v2357_v31 = vpack.c.bf16 %v231_v28, %v230_v27  ;;  %v1570_v24 = vld [vmem:[%s3835_s1 + $0x510] sm:$0xff]  ;;  %v2433_v27 = vpack.c.bf16 %v1619_v16, %v1618_v15  ;;  %v1603_v28 = vld [vmem:[%s3835_s1 + $0x618] sm:$0xff] }
  0x46   : > { %2302 = vmatpush3.bf16.msra.mxu0 %v2301_v33  ;;  %v215_v33 = vld [vmem:[%s3835_s1 + $0x148] sm:$0xff]  ;;  %v1602_v26 = vld [vmem:[%s3835_s1 + $0x610] sm:$0xff]  ;;  %v1623_v46 = vld [vmem:[%s3835_s1 + $0x6b8] sm:$0xff] }
  0x47   : > { %2332 = vmatpush3.bf16.msra.mxu1 %v2331_v34  ;;  %2303 = vmatprep.subr.bf16.mxu0 %v2680_v50  ;;  %v246_v34 = vld [vmem:[%s3835_s1 + $0x240] sm:$0xff]  ;;  %v2359_v38 = vpack.c.bf16 %v215_v33, %v214_v32  ;;  %v1621_v33 = vld [vmem:[%s3835_s1 + $0x6a8] sm:$0xff]  ;;  %v1622_v45 = vld [vmem:[%s3835_s1 + $0x6b0] sm:$0xff] }
  0x48   : > { %2334 = vmatprep.subr.bf16.mxu1 %v2333_v37  ;;  %v233_v37 = vld [vmem:[%s3835_s1 + $0x1d8] sm:$0xff]  ;;  %v2386_v39 = vpack.c.bf16 %v247_v35, %v246_v34  ;;  %v1620_v32 = vld [vmem:[%s3835_s1 + $0x6a0] sm:$0xff]  ;;  %v2403_v35 = vpack.c.bf16 %v1571_v25, %v1570_v24  ;;  %v1581_v25 = vld [vmem:[%s3835_s1 + $0x568] sm:$0xff] }
  0x49   : > { %v2361_v40 = vpack.c.bf16 %v233_v37, %v232_v36  ;;  %v2435_v36 = vpack.c.bf16 %v1603_v28, %v1602_v26  ;;  %v1611_v16 = vld [vmem:[%s3835_s1 + $0x658] sm:$0xff]  ;;  %v1580_v24 = vld [vmem:[%s3835_s1 + $0x560] sm:$0xff]  ;;  %v1613_v28 = vld [vmem:[%s3835_s1 + $0x668] sm:$0xff] }
  0x4a   : > { %2305 = vmatpush3.bf16.msra.mxu0 %v2304_v42  ;;  %v217_v42 = vld [vmem:[%s3835_s1 + $0x158] sm:$0xff]  ;;  %v1612_v26 = vld [vmem:[%s3835_s1 + $0x660] sm:$0xff] }
  0x4b   : > { %2336 = vmatpush3.bf16.msra.mxu1 %v2335_v43  ;;  %2306 = vmatprep.subr.bf16.mxu0 %v2680_v50  ;;  %v248_v43 = vld [vmem:[%s3835_s1 + $0x250] sm:$0xff] }
  0x4c   : > { %2338 = vmatprep.subr.bf16.mxu1 %v2337_v47  ;;  %v2363_v47 = vpack.c.bf16 %v217_v42, %v216_v41  ;;  %v2389_v48 = vpack.c.bf16 %v249_v44, %v248_v43  ;;  %v2437_v41 = vpack.c.bf16 %v1621_v33, %v1620_v32  ;;  %v1605_v42 = vld [vmem:[%s3835_s1 + $0x628] sm:$0xff]  ;;  %v1590_v43 = vld [vmem:[%s3835_s1 + $0x5b0] sm:$0xff]  ;;  %v1591_v44 = vld [vmem:[%s3835_s1 + $0x5b8] sm:$0xff]  ;;  %v2423_v33 = vpack.c.bf16 %v1581_v25, %v1580_v24 }
  0x4d   : > { %v1631_v32 = vld [vmem:[%s3835_s1 + $0x6f8] sm:$0xff]  ;;  %v1640_v24 = vld [vmem:[%s3835_s1 + $0x740] sm:$0xff]  ;;  %v1641_v25 = vld [vmem:[%s3835_s1 + $0x748] sm:$0xff] }
  0x4e   : > { %2308 = vmatpush3.bf16.msra.mxu0 %v2307_v52  ;;  %v219_v52 = vld [vmem:[%s3835_s1 + $0x168] sm:$0xff] }
  0x4f   : > { %2340 = vmatpush3.bf16.msra.mxu1 %v2339_v54  ;;  %2342 = vmatprep.subr.bf16.mxu0 %v2341_v55  ;;  %v251_v54 = vld [vmem:[%s3835_s1 + $0x268] sm:$0xff]  ;;  %v236_v55 = vld [vmem:[%s3835_s1 + $0x1f0] sm:$0xff]  ;;  %v2367_v57 = vpack.c.bf16 %v219_v52, %v218_v51  ;;  %v1575_v52 = vld [vmem:[%s3835_s1 + $0x538] sm:$0xff] }
  0x50   : > { %2373 = vmatprep.subr.bf16.mxu1 %v2680_v50  ;;  %v2392_v58 = vpack.c.bf16 %v251_v54, %v250_v53  ;;  %v2369_v59 = vpack.c.bf16 %v237_v56, %v236_v55  ;;  %v1574_v51 = vld [vmem:[%s3835_s1 + $0x530] sm:$0xff]  ;;  %v2441_v54 = vpack.c.bf16 %v1623_v46, %v1622_v45  ;;  %v1607_v55 = vld [vmem:[%s3835_s1 + $0x638] sm:$0xff]  ;;  %v1592_v56 = vld [vmem:[%s3835_s1 + $0x5c0] sm:$0xff] }
  0x51   : > { %2114 = vmatmul.mubr.f32.vlgmr.msra.gmra.mrb[2].mxu0 %v349_v62  ;;  %v252_v62 = vld [vmem:[%s3835_s1 + $0x270] sm:$0xff]  ;;  %v2411_v60 = vpack.c.bf16 %v1575_v52, %v1574_v51  ;;  %v1648_v51 = vld [vmem:[%s3835_s1 + $0x780] sm:$0xff]  ;;  %v1649_v52 = vld [vmem:[%s3835_s1 + $0x788] sm:$0xff] }
  0x52   : > { %630 = vmatmul.mubr.f32.vlgmr.msra.gmra.mrb[2].mxu1 %v169_v63  ;;  %2344 = vmatpush3.bf16.msra.mxu0 %v2343_v0  ;;  %v253_v63 = vld [vmem:[%s3835_s1 + $0x278] sm:$0xff]  ;;  %v1584_v0 = vld [vmem:[%s3835_s1 + $0x580] sm:$0xff]  ;;  %v1606_v53 = vld [vmem:[%s3835_s1 + $0x630] sm:$0xff] }
  0x53   : > { %2375 = vmatpush3.bf16.msra.mxu1 %v2374_v1  ;;  %2346 = vmatprep.subr.bf16.mxu0 %v2345_v3  ;;  %v1585_v1 = vld [vmem:[%s3835_s1 + $0x588] sm:$0xff]  ;;  %v1616_v3 = vld [vmem:[%s3835_s1 + $0x680] sm:$0xff]  ;;  %v2395_v6 = vpack.c.bf16 %v253_v63, %v252_v62  ;;  %v2443_v61 = vpack.c.bf16 %v1607_v55, %v1606_v53  ;;  %v777_v46 = vld [vmem:[%s2912_s19 + $0x10] sm:$0xc] }
  0x54   : > { %2376 = vmatprep.subr.bf16.mxu1 %v2680_v50  ;;  %699 = vmatprep.mubr.f32.mxu0 %v172_v10  ;;  %v2397_v7 = vpack.c.bf16 %v1585_v1, %v1584_v0  ;;  %v1600_v10 = vld [vmem:[%s3835_s1 + $0x600] sm:$0xff]  ;;  %v1577_v0 = vld [vmem:[%s3835_s1 + $0x548] sm:$0xff]  ;;  %v1667_v55 = vld [vmem:[%s3835_s1 + $0x818] sm:$0xff] }
  0x55   : > { %2148 = vmatprep.mubr.msk.f32.mxu1 %vm2681_vm0, %v2682_v2  ;;  %v1576_v63 = vld [vmem:[%s3835_s1 + $0x540] sm:$0xff] }
  0x56   : > { %2348 = vmatpush3.bf16.msra.mxu0 %v2347_v11  ;;  %v2429_v11 = vpack.c.bf16 %v1617_v4, %v1616_v3  ;;  %v1608_v1 = vld [vmem:[%s3835_s1 + $0x640] sm:$0xff]  ;;  %v1609_v4 = vld [vmem:[%s3835_s1 + $0x648] sm:$0xff] }
  0x57   : > { %2378 = vmatpush3.bf16.msra.mxu1 %v2377_v12  ;;  %2350 = vmatprep.subr.bf16.mxu0 %v2349_v13  ;;  %v1601_v12 = vld [vmem:[%s3835_s1 + $0x608] sm:$0xff]  ;;  %v1586_v13 = vld [vmem:[%s3835_s1 + $0x590] sm:$0xff] }
  0x58   : > { %2379 = vmatprep.subr.bf16.mxu1 %v2680_v50  ;;  %v2401_v23 = vpack.c.bf16 %v1587_v14, %v1586_v13  ;;  %v1579_v13 = vld [vmem:[%s3835_s1 + $0x558] sm:$0xff]  ;;  %v1610_v14 = vld [vmem:[%s3835_s1 + $0x650] sm:$0xff] }
  0x5a   : > { %2352 = vmatpush3.bf16.msra.mxu0 %v2351_v20  ;;  %v2399_v20 = vpack.c.bf16 %v1569_v9, %v1568_v8  ;;  %v1627_v8 = vld [vmem:[%s3835_s1 + $0x6d8] sm:$0xff]  ;;  %v2415_v9 = vpack.c.bf16 %v1577_v0, %v1576_v63  ;;  %v1650_v63 = vld [vmem:[%s3835_s1 + $0x790] sm:$0xff] }
  0x5b   : > { %2381 = vmatpush3.bf16.msra.mxu1 %v2380_v21  ;;  %2354 = vmatprep.subr.bf16.mxu0 %v2353_v22  ;;  %v778_v21 = vld [vmem:[%s2912_s19 + $0x18] sm:$0xc]  ;;  %v2431_v22 = vpack.c.bf16 %v1601_v12, %v1600_v10  ;;  %v2447_v10 = vpack.c.bf16 %v1609_v4, %v1608_v1  ;;  %v1578_v12 = vld [vmem:[%s3835_s1 + $0x550] sm:$0xff]  ;;  %v1668_v1 = vld [vmem:[%s3835_s1 + $0x820] sm:$0xff] }
  0x5c   : > { %2382 = vmatprep.subr.bf16.mxu1 %v2680_v50  ;;  %v869_v34 = vrot.slane %v778_v21, 2  ;;  %v2419_v21 = vpack.c.bf16 %v1579_v13, %v1578_v12  ;;  %v1651_v0 = vld [vmem:[%s3835_s1 + $0x798] sm:$0xff]  ;;  %v1670_v12 = vld [vmem:[%s3835_s1 + $0x830] sm:$0xff] }
  0x5d   : > { %v1671_v13 = vld [vmem:[%s3835_s1 + $0x838] sm:$0xff] }
  0x5e   : > { %2356 = vmatpush3.bf16.msra.mxu0 %v2355_v29  ;;  %v1588_v29 = vld [vmem:[%s3835_s1 + $0x5a0] sm:$0xff] }
  0x5f   : > { %2384 = vmatpush3.bf16.msra.mxu1 %v2383_v30  ;;  %2358 = vmatprep.subr.bf16.mxu0 %v2357_v31  ;;  %v1589_v30 = vld [vmem:[%s3835_s1 + $0x5a8] sm:$0xff]  ;;  %v867_v31 = vrot.slane %v776_v17, 2  ;;  %v1596_v17 = vld [vmem:[%s3835_s1 + $0x5e0] sm:$0xff] }
  0x60   : > { %2385 = vmatprep.subr.bf16.mxu1 %v2680_v50  ;;  %v2405_v37 = vpack.c.bf16 %v1589_v30, %v1588_v29  ;;  %v1598_v29 = vld [vmem:[%s3835_s1 + $0x5f0] sm:$0xff]  ;;  %v1599_v30 = vld [vmem:[%s3835_s1 + $0x5f8] sm:$0xff] }
  0x62   : > { %2360 = vmatpush3.bf16.msra.mxu0 %v2359_v38  ;;  %v1572_v38 = vld [vmem:[%s3835_s1 + $0x520] sm:$0xff] }
  0x63   : > { %2387 = vmatpush3.bf16.msra.mxu1 %v2386_v39  ;;  %2362 = vmatprep.subr.bf16.mxu0 %v2361_v40  ;;  %v1573_v39 = vld [vmem:[%s3835_s1 + $0x528] sm:$0xff]  ;;  %v1604_v40 = vld [vmem:[%s3835_s1 + $0x620] sm:$0xff] }
  0x64   : > { %2388 = vmatprep.subr.bf16.mxu1 %v2680_v50 }
  0x66   : > { %2364 = vmatpush3.bf16.msra.mxu0 %v2363_v47  ;;  %v2407_v47 = vpack.c.bf16 %v1573_v39, %v1572_v38  ;;  %v1614_v39 = vld [vmem:[%s3835_s1 + $0x670] sm:$0xff] }
  0x67   : > { %2390 = vmatpush3.bf16.msra.mxu1 %v2389_v48  ;;  %2366 = vmatprep.subr.bf16.mxu0 %v2365_v49  ;;  %v2439_v48 = vpack.c.bf16 %v1605_v42, %v1604_v40  ;;  %v2409_v49 = vpack.c.bf16 %v1591_v44, %v1590_v43  ;;  %v1615_v40 = vld [vmem:[%s3835_s1 + $0x678] sm:$0xff]  ;;  %v1665_v42 = vld [vmem:[%s3835_s1 + $0x808] sm:$0xff]  ;;  %v775_v44 = vld [vmem:[%s2912_s19] sm:$0xc] }
  0x68   : > { %2391 = vmatprep.subr.bf16.mxu1 %v2680_v50  ;;  %v2459_v45 = vpack.c.bf16 %v1615_v40, %v1614_v39  ;;  %v866_v53 = vrot.slane %v775_v44, 2  ;;  %v1676_v39 = vld [vmem:[%s3835_s1 + $0x860] sm:$0xff]  ;;  %v1677_v40 = vld [vmem:[%s3835_s1 + $0x868] sm:$0xff] }
  0x6a   : > { %2368 = vmatpush3.bf16.msra.mxu0 %v2367_v57  ;;  %v1593_v57 = vld [vmem:[%s3835_s1 + $0x5c8] sm:$0xff] }
  0x6b   : > { %2393 = vmatpush3.bf16.msra.mxu1 %v2392_v58  ;;  %2370 = vmatprep.subr.bf16.mxu0 %v2369_v59  ;;  %v1624_v58 = vld [vmem:[%s3835_s1 + $0x6c0] sm:$0xff]  ;;  %v1625_v59 = vld [vmem:[%s3835_s1 + $0x6c8] sm:$0xff]  ;;  %v2413_v62 = vpack.c.bf16 %v1593_v57, %v1592_v56  ;;  %v868_v56 = vrot.slane %v777_v46, 2 }
  0x6c   : > { %2394 = vmatprep.subr.bf16.mxu1 %v2680_v50  ;;  %v2445_v3 = vpack.c.bf16 %v1625_v59, %v1624_v58  ;;  %v1088_v58 = vld [vmem:[%s2912_s19 + $0x8] sm:$0x18]  ;;  %v1634_v59 = vld [vmem:[%s3835_s1 + $0x710] sm:$0xff]  ;;  %v1660_v46 = vld [vmem:[%s3835_s1 + $0x7e0] sm:$0xff] }
  0x6d   : > { %v1179_v4 = vrot.slane %v1088_v58, 3  ;;  %v1662_v58 = vld [vmem:[%s3835_s1 + $0x7f0] sm:$0xff] }
  0x6e   : > { %2372 = vmatpush3.bf16.msra.mxu0 %v2371_v5  ;;  %v1594_v5 = vld [vmem:[%s3835_s1 + $0x5d0] sm:$0xff] }
  0x6f   : > { %2396 = vmatpush3.bf16.msra.mxu1 %v2395_v6  ;;  %2398 = vmatprep.subr.bf16.mxu0 %v2397_v7  ;;  %v1595_v6 = vld [vmem:[%s3835_s1 + $0x5d8] sm:$0xff]  ;;  %v1626_v7 = vld [vmem:[%s3835_s1 + $0x6d0] sm:$0xff] }
  0x70   : > { %2430 = vmatprep.subr.bf16.mxu1 %v2429_v11  ;;  %v2417_v11 = vpack.c.bf16 %v1595_v6, %v1594_v5  ;;  %v2449_v15 = vpack.c.bf16 %v1627_v8, %v1626_v7  ;;  %v1636_v6 = vld [vmem:[%s3835_s1 + $0x720] sm:$0xff]  ;;  %v1637_v7 = vld [vmem:[%s3835_s1 + $0x728] sm:$0xff]  ;;  %v2491_v8 = vpack.c.bf16 %v1651_v0, %v1650_v63 }
  0x71   : > { %700 = vmatmul.mubr.f32.vlgmr.msra.gmra.mrb[4].mxu0 %v171_v18  ;;  %v1597_v18 = vld [vmem:[%s3835_s1 + $0x5e8] sm:$0xff] }
  0x72   : > { %2149 = vmatmul.mubr.f32.vlgmr.msra.gmra.mrb[4].mxu1 %v173_v19  ;;  %2400 = vmatpush3.bf16.msra.mxu0 %v2399_v20  ;;  %v1628_v19 = vld [vmem:[%s3835_s1 + $0x6e0] sm:$0xff]  ;;  %v1629_v20 = vld [vmem:[%s3835_s1 + $0x6e8] sm:$0xff] }
  0x73   : > { %2432 = vmatpush3.bf16.msra.mxu1 %v2431_v22  ;;  %2402 = vmatprep.subr.bf16.mxu0 %v2401_v23  ;;  %v2451_v22 = vpack.c.bf16 %v1611_v16, %v1610_v14  ;;  %v2421_v23 = vpack.c.bf16 %v1597_v18, %v1596_v17  ;;  %v2468_v14 = vpack.c.bf16 %v1637_v7, %v1636_v6  ;;  %v1639_v16 = vld [vmem:[%s3835_s1 + $0x738] sm:$0xff]  ;;  %v1712_v6 = vld [vmem:[%s3835_s1 + $0x980] sm:$0xff]  ;;  %v1713_v7 = vld [vmem:[%s3835_s1 + $0x988] sm:$0xff] }
  0x74   : > { %2434 = vmatprep.subr.bf16.mxu1 %v2433_v27  ;;  %940 = vmatprep.mubr.f32.mxu0 %v867_v31  ;;  %v2453_v27 = vpack.c.bf16 %v1629_v20, %v1628_v19  ;;  %v1630_v31 = vld [vmem:[%s3835_s1 + $0x6f0] sm:$0xff]  ;;  %v2497_v18 = vpack.c.bf16 %v1671_v13, %v1670_v12  ;;  %v1655_v20 = vld [vmem:[%s3835_s1 + $0x7b8] sm:$0xff] }
  0x75   : > { %1010 = vmatprep.mubr.f32.mxu1 %v869_v34  ;;  %v2455_v34 = vpack.c.bf16 %v1613_v28, %v1612_v26  ;;  %v2457_v38 = vpack.c.bf16 %v1631_v32, %v1630_v31  ;;  %v1654_v19 = vld [vmem:[%s3835_s1 + $0x7b0] sm:$0xff]  ;;  %v1656_v28 = vld [vmem:[%s3835_s1 + $0x7c0] sm:$0xff]  ;;  %v1675_v31 = vld [vmem:[%s3835_s1 + $0x858] sm:$0xff]  ;;  %v2474_v32 = vpack.c.bf16 %v1641_v25, %v1640_v24 }
  0x76   : > { %2404 = vmatpush3.bf16.msra.mxu0 %v2403_v35  ;;  %v2425_v35 = vpack.c.bf16 %v1599_v30, %v1598_v29  ;;  %v2499_v26 = vpack.c.bf16 %v1655_v20, %v1654_v19  ;;  %v1657_v29 = vld [vmem:[%s3835_s1 + $0x7c8] sm:$0xff]  ;;  %v1674_v30 = vld [vmem:[%s3835_s1 + $0x850] sm:$0xff]  ;;  %v1715_v19 = vld [vmem:[%s3835_s1 + $0x998] sm:$0xff] }
  0x77   : > { %2436 = vmatpush3.bf16.msra.mxu1 %v2435_v36  ;;  %2406 = vmatprep.subr.bf16.mxu0 %v2405_v37  ;;  %v1582_v36 = vld [vmem:[%s3835_s1 + $0x570] sm:$0xff]  ;;  %v1583_v37 = vld [vmem:[%s3835_s1 + $0x578] sm:$0xff]  ;;  %v1685_v24 = vld [vmem:[%s3835_s1 + $0x8a8] sm:$0xff] }
  0x78   : > { %2438 = vmatprep.subr.bf16.mxu1 %v2437_v41  ;;  %v1664_v41 = vld [vmem:[%s3835_s1 + $0x800] sm:$0xff]  ;;  %v2427_v43 = vpack.c.bf16 %v1583_v37, %v1582_v36  ;;  %v2505_v36 = vpack.c.bf16 %v1675_v31, %v1674_v30  ;;  %v1658_v37 = vld [vmem:[%s3835_s1 + $0x7d0] sm:$0xff] }
  0x79   : > { %v1682_v13 = vld [vmem:[%s3835_s1 + $0x890] sm:$0xff] }
  0x7a   : > { %2408 = vmatpush3.bf16.msra.mxu0 %v2407_v47  ;;  %v1632_v47 = vld [vmem:[%s3835_s1 + $0x700] sm:$0xff] }
  0x7b   : > { %2440 = vmatpush3.bf16.msra.mxu1 %v2439_v48  ;;  %2410 = vmatprep.subr.bf16.mxu0 %v2409_v49  ;;  %v1633_v48 = vld [vmem:[%s3835_s1 + $0x708] sm:$0xff]  ;;  %v2485_v49 = vpack.c.bf16 %v1665_v42, %v1664_v41  ;;  %v1644_v42 = vld [vmem:[%s3835_s1 + $0x760] sm:$0xff] }
  0x7c   : > { %2442 = vmatprep.subr.bf16.mxu1 %v2441_v54  ;;  %v1666_v54 = vld [vmem:[%s3835_s1 + $0x810] sm:$0xff]  ;;  %v2462_v57 = vpack.c.bf16 %v1633_v48, %v1632_v47  ;;  %v1661_v47 = vld [vmem:[%s3835_s1 + $0x7e8] sm:$0xff] }
  0x7d   : > { %v1678_v48 = vld [vmem:[%s3835_s1 + $0x870] sm:$0xff] }
  0x7e   : > { %2412 = vmatpush3.bf16.msra.mxu0 %v2411_v60  ;;  %v1635_v60 = vld [vmem:[%s3835_s1 + $0x718] sm:$0xff] }
  0x7f   : > { %2444 = vmatpush3.bf16.msra.mxu1 %v2443_v61  ;;  %2414 = vmatprep.subr.bf16.mxu0 %v2413_v62  ;;  %v2487_v61 = vpack.c.bf16 %v1649_v52, %v1648_v51  ;;  %v2489_v62 = vpack.c.bf16 %v1667_v55, %v1666_v54  ;;  %v2465_v5 = vpack.c.bf16 %v1635_v60, %v1634_v59  ;;  %v1646_v52 = vld [vmem:[%s3835_s1 + $0x770] sm:$0xff]  ;;  %v1696_v55 = vld [vmem:[%s3835_s1 + $0x900] sm:$0xff]  ;;  %v1663_v59 = vld [vmem:[%s3835_s1 + $0x7f8] sm:$0xff] }
  0x80   : > { %2446 = vmatprep.subr.bf16.mxu1 %v2445_v3  ;;  %v1669_v3 = vld [vmem:[%s3835_s1 + $0x828] sm:$0xff]  ;;  %v2511_v54 = vpack.c.bf16 %v1661_v47, %v1660_v46  ;;  %v2515_v0 = vpack.c.bf16 %v1663_v59, %v1662_v58  ;;  %v1692_v59 = vld [vmem:[%s3835_s1 + $0x8e0] sm:$0xff] }
  0x81   : > { %v1721_v46 = vld [vmem:[%s3835_s1 + $0x9c8] sm:$0xff] }
  0x82   : > { %2416 = vmatpush3.bf16.msra.mxu0 %v2415_v9  ;;  %v2493_v9 = vpack.c.bf16 %v1669_v3, %v1668_v1  ;;  %v1681_v1 = vld [vmem:[%s3835_s1 + $0x888] sm:$0xff]  ;;  %v1698_v3 = vld [vmem:[%s3835_s1 + $0x910] sm:$0xff] }
  0x83   : > { %2448 = vmatpush3.bf16.msra.mxu1 %v2447_v10  ;;  %2418 = vmatprep.subr.bf16.mxu0 %v2417_v11  ;;  %v1652_v10 = vld [vmem:[%s3835_s1 + $0x7a0] sm:$0xff]  ;;  %v1653_v11 = vld [vmem:[%s3835_s1 + $0x7a8] sm:$0xff] }
  0x84   : > { %2450 = vmatprep.subr.bf16.mxu1 %v2449_v15  ;;  %v1638_v15 = vld [vmem:[%s3835_s1 + $0x730] sm:$0xff]  ;;  %v2495_v17 = vpack.c.bf16 %v1653_v11, %v1652_v10 }
  0x86   : > { %2420 = vmatpush3.bf16.msra.mxu0 %v2419_v21  ;;  %v1672_v21 = vld [vmem:[%s3835_s1 + $0x840] sm:$0xff] }
  0x87   : > { %2452 = vmatpush3.bf16.msra.mxu1 %v2451_v22  ;;  %2422 = vmatprep.subr.bf16.mxu0 %v2421_v23  ;;  %v1673_v22 = vld [vmem:[%s3835_s1 + $0x848] sm:$0xff]  ;;  %v2471_v23 = vpack.c.bf16 %v1639_v16, %v1638_v15  ;;  %v2550_v15 = vpack.c.bf16 %v1713_v7, %v1712_v6  ;;  %v1700_v16 = vld [vmem:[%s3835_s1 + $0x920] sm:$0xff]  ;;  %v1695_v6 = vld [vmem:[%s3835_s1 + $0x8f8] sm:$0xff] }
  0x88   : > { %2454 = vmatprep.subr.bf16.mxu1 %v2453_v27  ;;  %v2501_v27 = vpack.c.bf16 %v1673_v22, %v1672_v21 }
  0x8a   : > { %2424 = vmatpush3.bf16.msra.mxu0 %v2423_v33  ;;  %v1642_v33 = vld [vmem:[%s3835_s1 + $0x750] sm:$0xff] }
  0x8b   : > { %2456 = vmatpush3.bf16.msra.mxu1 %v2455_v34  ;;  %2426 = vmatprep.subr.bf16.mxu0 %v2425_v35  ;;  %v1643_v34 = vld [vmem:[%s3835_s1 + $0x758] sm:$0xff]  ;;  %v2503_v35 = vpack.c.bf16 %v1657_v29, %v1656_v28  ;;  %v1716_v28 = vld [vmem:[%s3835_s1 + $0x9a0] sm:$0xff]  ;;  %v1717_v29 = vld [vmem:[%s3835_s1 + $0x9a8] sm:$0xff] }
  0x8c   : > { %2458 = vmatprep.subr.bf16.mxu1 %v2457_v38  ;;  %v1659_v38 = vld [vmem:[%s3835_s1 + $0x7d8] sm:$0xff]  ;;  %v2477_v41 = vpack.c.bf16 %v1643_v34, %v1642_v33  ;;  %v2556_v34 = vpack.c.bf16 %v1717_v29, %v1716_v28 }
  0x8d   : > { %v2507_v44 = vpack.c.bf16 %v1659_v38, %v1658_v37  ;;  %v1687_v33 = vld [vmem:[%s3835_s1 + $0x8b8] sm:$0xff] }
  0x8e   : > { %2428 = vmatpush3.bf16.msra.mxu0 %v2427_v43  ;;  %v1645_v43 = vld [vmem:[%s3835_s1 + $0x768] sm:$0xff]  ;;  %v1719_v37 = vld [vmem:[%s3835_s1 + $0x9b8] sm:$0xff] }
  0x8f   : > { %2460 = vmatpush3.bf16.msra.mxu1 %v2459_v45  ;;  %2461 = vmatprep.subr.bf16.mxu0 %v2680_v50  ;;  %v2509_v45 = vpack.c.bf16 %v1677_v40, %v1676_v39  ;;  %v2480_v51 = vpack.c.bf16 %v1645_v43, %v1644_v42  ;;  %v1688_v40 = vld [vmem:[%s3835_s1 + $0x8c0] sm:$0xff]  ;;  %v1706_v43 = vld [vmem:[%s3835_s1 + $0x950] sm:$0xff] }
  0x90   : > { %2486 = vmatprep.subr.bf16.mxu1 %v2485_v49  ;;  %v1679_v49 = vld [vmem:[%s3835_s1 + $0x878] sm:$0xff] }
  0x91   : > { %941 = vmatmul.mubr.f32.vlgmr.msra.gmra.mrb[6].mxu0 %v866_v53  ;;  %v1647_v53 = vld [vmem:[%s3835_s1 + $0x778] sm:$0xff] }
  0x92   : > { %1011 = vmatmul.mubr.f32.vlgmr.msra.gmra.mrb[6].mxu1 %v868_v56  ;;  %2463 = vmatpush3.bf16.msra.mxu0 %v2462_v57  ;;  %v2513_v56 = vpack.c.bf16 %v1679_v49, %v1678_v48  ;;  %v1697_v57 = vld [vmem:[%s3835_s1 + $0x908] sm:$0xff]  ;;  %v2483_v60 = vpack.c.bf16 %v1647_v53, %v1646_v52  ;;  %v1690_v49 = vld [vmem:[%s3835_s1 + $0x8d0] sm:$0xff]  ;;  %v1708_v53 = vld [vmem:[%s3835_s1 + $0x960] sm:$0xff] }
  0x93   : > { %2464 = vmatprep.subr.bf16.mxu0 %v2680_v50  ;;  %2488 = vmatpush3.bf16.msra.mxu1 %v2487_v61  ;;  %v779_v61 = vld [vmem:[%s2912_s19 + $0x20] sm:$0xc]  ;;  %v2517_v63 = vpack.c.bf16 %v1697_v57, %v1696_v55  ;;  %v1722_v55 = vld [vmem:[%s3835_s1 + $0x9d0] sm:$0xff] }
  0x94   : > { %2490 = vmatprep.subr.bf16.mxu1 %v2489_v62  ;;  %2183 = vmatprep.mubr.msk.f32.mxu0 %vm2681_vm0, %v2682_v2  ;;  %v1680_v62 = vld [vmem:[%s3835_s1 + $0x880] sm:$0xff] }
  0x95   : > { %1252 = vmatprep.mubr.f32.mxu1 %v1179_v4  ;;  %v1087_v4 = vld [vmem:[%s2912_s19] sm:$0x18]  ;;  %v2519_v10 = vpack.c.bf16 %v1681_v1, %v1680_v62  ;;  %v1710_v62 = vld [vmem:[%s3835_s1 + $0x970] sm:$0xff]  ;;  %v1725_v1 = vld [vmem:[%s3835_s1 + $0x9e8] sm:$0xff] }
  0x96   : > { %2466 = vmatpush3.bf16.msra.mxu0 %v2465_v5  ;;  %v1699_v5 = vld [vmem:[%s3835_s1 + $0x918] sm:$0xff]  ;;  %v1178_v11 = vrot.slane %v1087_v4, 3 }
  0x97   : > { %2467 = vmatprep.subr.bf16.mxu0 %v2680_v50  ;;  %2492 = vmatpush3.bf16.msra.mxu1 %v2491_v8  ;;  %v870_v8 = vrot.slane %v779_v61, 2  ;;  %v2521_v12 = vpack.c.bf16 %v1699_v5, %v1698_v3  ;;  %v1694_v5 = vld [vmem:[%s3835_s1 + $0x8f0] sm:$0xff] }
  0x98   : > { %2494 = vmatprep.subr.bf16.mxu1 %v2493_v9  ;;  %v1090_v9 = vld [vmem:[%s2912_s19 + $0x18] sm:$0x18] }
  0x99   : > { %v1181_v20 = vrot.slane %v1090_v9, 3  ;;  %v1727_v9 = vld [vmem:[%s3835_s1 + $0x9f8] sm:$0xff] }
  0x9a   : > { %2469 = vmatpush3.bf16.msra.mxu0 %v2468_v14  ;;  %v1683_v14 = vld [vmem:[%s3835_s1 + $0x898] sm:$0xff] }
  0x9b   : > { %2470 = vmatprep.subr.bf16.mxu0 %v2680_v50  ;;  %2496 = vmatpush3.bf16.msra.mxu1 %v2495_v17  ;;  %v1701_v17 = vld [vmem:[%s3835_s1 + $0x928] sm:$0xff]  ;;  %v2523_v21 = vpack.c.bf16 %v1683_v14, %v1682_v13  ;;  %v1091_v13 = vld [vmem:[%s2912_s19 + $0x20] sm:$0x18] }
  0x9c   : > { %2498 = vmatprep.subr.bf16.mxu1 %v2497_v18  ;;  %v1714_v18 = vld [vmem:[%s3835_s1 + $0x990] sm:$0xff]  ;;  %v2525_v22 = vpack.c.bf16 %v1701_v17, %v1700_v16 }
  0x9d   : > { %v2553_v25 = vpack.c.bf16 %v1715_v19, %v1714_v18 }
  0x9e   : > { %2472 = vmatpush3.bf16.msra.mxu0 %v2471_v23  ;;  %v1684_v23 = vld [vmem:[%s3835_s1 + $0x8a0] sm:$0xff] }
  0x9f   : > { %2473 = vmatprep.subr.bf16.mxu0 %v2680_v50  ;;  %2500 = vmatpush3.bf16.msra.mxu1 %v2499_v26  ;;  %v1702_v26 = vld [vmem:[%s3835_s1 + $0x930] sm:$0xff]  ;;  %v2527_v30 = vpack.c.bf16 %v1685_v24, %v1684_v23 }
  0xa0   : > { %2502 = vmatprep.subr.bf16.mxu1 %v2501_v27  ;;  %v1703_v27 = vld [vmem:[%s3835_s1 + $0x938] sm:$0xff] }
  0xa1   : > { %v2529_v31 = vpack.c.bf16 %v1703_v27, %v1702_v26 }
  0xa2   : > { %2475 = vmatpush3.bf16.msra.mxu0 %v2474_v32  ;;  %v1686_v32 = vld [vmem:[%s3835_s1 + $0x8b0] sm:$0xff] }
  0xa3   : > { %2476 = vmatprep.subr.bf16.mxu0 %v2680_v50  ;;  %2504 = vmatpush3.bf16.msra.mxu1 %v2503_v35  ;;  %v1704_v35 = vld [vmem:[%s3835_s1 + $0x940] sm:$0xff]  ;;  %v2531_v38 = vpack.c.bf16 %v1687_v33, %v1686_v32 }
  0xa4   : > { %2506 = vmatprep.subr.bf16.mxu1 %v2505_v36  ;;  %v1718_v36 = vld [vmem:[%s3835_s1 + $0x9b0] sm:$0xff] }
  0xa5   : > { %v2559_v42 = vpack.c.bf16 %v1719_v37, %v1718_v36 }
  0xa6   : > { %2478 = vmatpush3.bf16.msra.mxu0 %v2477_v41  ;;  %v1689_v41 = vld [vmem:[%s3835_s1 + $0x8c8] sm:$0xff] }
  0xa7   : > { %2479 = vmatprep.subr.bf16.mxu0 %v2680_v50  ;;  %2508 = vmatpush3.bf16.msra.mxu1 %v2507_v44  ;;  %v1707_v44 = vld [vmem:[%s3835_s1 + $0x958] sm:$0xff]  ;;  %v2535_v47 = vpack.c.bf16 %v1689_v41, %v1688_v40 }
  0xa8   : > { %2510 = vmatprep.subr.bf16.mxu1 %v2509_v45  ;;  %v1720_v45 = vld [vmem:[%s3835_s1 + $0x9c0] sm:$0xff]  ;;  %v2537_v48 = vpack.c.bf16 %v1707_v44, %v1706_v43 }
  0xa9   : > { %v2562_v52 = vpack.c.bf16 %v1721_v46, %v1720_v45 }
  0xaa   : > { %2481 = vmatpush3.bf16.msra.mxu0 %v2480_v51  ;;  %v1691_v51 = vld [vmem:[%s3835_s1 + $0x8d8] sm:$0xff] }
  0xab   : > { %2482 = vmatprep.subr.bf16.mxu0 %v2680_v50  ;;  %2512 = vmatpush3.bf16.msra.mxu1 %v2511_v54  ;;  %v1709_v54 = vld [vmem:[%s3835_s1 + $0x968] sm:$0xff]  ;;  %v2539_v57 = vpack.c.bf16 %v1691_v51, %v1690_v49 }
  0xac   : > { %2514 = vmatprep.subr.bf16.mxu1 %v2513_v56  ;;  %v1723_v56 = vld [vmem:[%s3835_s1 + $0x9d8] sm:$0xff]  ;;  %v2541_v58 = vpack.c.bf16 %v1709_v54, %v1708_v53 }
  0xad   : > { %v2565_v61 = vpack.c.bf16 %v1723_v56, %v1722_v55 }
  0xae   : > { %2484 = vmatpush3.bf16.msra.mxu0 %v2483_v60  ;;  %v1693_v60 = vld [vmem:[%s3835_s1 + $0x8e8] sm:$0xff] }
  0xaf   : > { %2518 = vmatprep.subr.bf16.mxu0 %v2517_v63  ;;  %2516 = vmatpush3.bf16.msra.mxu1 %v2515_v0  ;;  %v1711_v63 = vld [vmem:[%s3835_s1 + $0x978] sm:$0xff]  ;;  %v1724_v0 = vld [vmem:[%s3835_s1 + $0x9e0] sm:$0xff]  ;;  %v2543_v3 = vpack.c.bf16 %v1693_v60, %v1692_v59 }
  0xb0   : > { %2549 = vmatprep.subr.bf16.mxu1 %v2680_v50  ;;  %v2545_v4 = vpack.c.bf16 %v1711_v63, %v1710_v62  ;;  %v2568_v7 = vpack.c.bf16 %v1725_v1, %v1724_v0 }
  0xb1   : > { %2184 = vmatmul.mubr.f32.vlgmr.msra.gmra.mrb[8].mxu0 %v870_v8  ;;  %v1726_v8 = vld [vmem:[%s3835_s1 + $0x9f0] sm:$0xff] }
  0xb2   : > { %2520 = vmatpush3.bf16.msra.mxu0 %v2519_v10  ;;  %1253 = vmatmul.mubr.f32.vlgmr.msra.gmra.mrb[8].mxu1 %v1178_v11  ;;  %v2547_v10 = vpack.c.bf16 %v1695_v6, %v1694_v5  ;;  %v1089_v11 = vld [vmem:[%s2912_s19 + $0x10] sm:$0x18]  ;;  %s161_s19 = sand.u32 1, %s2670_s13  }
  0xb3   : > { %2522 = vmatprep.subr.bf16.mxu0 %v2521_v12  ;;  %2551 = vmatpush3.bf16.msra.mxu1 %v2550_v15  ;;  %v2571_v12 = vpack.c.bf16 %v1727_v9, %v1726_v8  ;;  %v1180_v14 = vrot.slane %v1089_v11, 3  ;;  %v1182_v15 = vrot.slane %v1091_v13, 3  ;;  %s1486_s7 = sshll.u32 %s161_s19, 1  ;;  %s1410_s9 = scalar_lea.sflag [#allocation3], %s161_s19 }
  0xb4   : > { %2552 = vmatprep.subr.bf16.mxu1 %v2680_v50  ;;  %1322 = vmatprep.mubr.f32.mxu0 %v1181_v20  ;;  %s163_s20 = scalar_lea.vmem [#allocation2], %s1486_s7 }
  0xb5   : > { %2218 = vmatprep.mubr.msk.f32.mxu1 %vm2681_vm0, %v2682_v2  ;;  %v1705_v2 = vld [vmem:[%s3835_s1 + $0x948] sm:$0xff]  ;;  %s1423_s24 = sshll.u32 %s163_s20, 4  ;;  %s3794_s24 = int_to_ptr.vmem [resolvable:$true] %s1423_s24 }
  0xb6   : > { %2524 = vmatpush3.bf16.msra.mxu0 %v2523_v21  ;;  %v2533_v39 = vpack.c.bf16 %v1705_v2, %v1704_v35  ;;  %s2616_s28 = scalar_lea.vmem %s3794_s24, 32  ;;  %p2623_p0 = scmp.lt.s32.totalorder %s3794_s24, %s2621_s29 }
  0xb7   : > { %2526 = vmatprep.subr.bf16.mxu0 %v2525_v22  ;;  %2554 = vmatpush3.bf16.msra.mxu1 %v2553_v25  ;;  %p2617_p11 = scmp.ne.s32.totalorder %s3794_s24, %s2616_s28  ;;  %p2624_p1 = scmp.lt.s32.totalorder %s2622_s11, %s2616_s28 }
  0xb8   : > { %2555 = vmatprep.subr.bf16.mxu1 %v2680_v50 }
  0xb9   : > { %p2618_p12 = pnand %p2617_p11, %p2742_p5  ;;  %p2625_p2 = por %p2624_p1, %p2623_p0 }
  0xba   : > { %2528 = vmatpush3.bf16.msra.mxu0 %v2527_v30 }
  0xbb   : > { %2530 = vmatprep.subr.bf16.mxu0 %v2529_v31  ;;  %2557 = vmatpush3.bf16.msra.mxu1 %v2556_v34  ;;  %p2619_p13 = pneg %p2618_p12 }
  0xbc   : > { %2558 = vmatprep.subr.bf16.mxu1 %v2680_v50 }
  0xbd   : > { %p2626_p3 = pnand %p2625_p2, %p2619_p13 }
  0xbe   : > { %2532 = vmatpush3.bf16.msra.mxu0 %v2531_v38 }
  0xbf   : > { %2534 = vmatprep.subr.bf16.mxu0 %v2533_v39  ;;  %2560 = vmatpush3.bf16.msra.mxu1 %v2559_v42 }
  0xc0   : > { %2561 = vmatprep.subr.bf16.mxu1 %v2680_v50 }
  0xc2   : > { %2536 = vmatpush3.bf16.msra.mxu0 %v2535_v47 }
  0xc3   : > { %2538 = vmatprep.subr.bf16.mxu0 %v2537_v48  ;;  %2563 = vmatpush3.bf16.msra.mxu1 %v2562_v52 }
  0xc4   : > { %2564 = vmatprep.subr.bf16.mxu1 %v2680_v50 }
  0xc6   : > { %2540 = vmatpush3.bf16.msra.mxu0 %v2539_v57  ;;  %v1728_v57 = vld [vmem:[%s3836_s2] ss:$0 sm:$0xff] }
  0xc7   : > { %2542 = vmatprep.subr.bf16.mxu0 %v2541_v58  ;;  %2566 = vmatpush3.bf16.msra.mxu1 %v2565_v61 }
  0xc8   : > { %2567 = vmatprep.subr.bf16.mxu1 %v2680_v50 }
  0xca   : > { %2544 = vmatpush3.bf16.msra.mxu0 %v2543_v3 }
  0xcb   : > { %2546 = vmatprep.subr.bf16.mxu0 %v2545_v4  ;;  %2569 = vmatpush3.bf16.msra.mxu1 %v2568_v7 }
  0xcc   : > { %2570 = vmatprep.subr.bf16.mxu1 %v2680_v50 }
  0xce   : > { %2548 = vmatpush3.bf16.msra.mxu0 %v2547_v10 }
  0xcf   : > { %2572 = vmatpush3.bf16.msra.mxu1 %v2571_v12 }
  0xd1   : > { %1323 = vmatmul.mubr.f32.vlgmr.msra.gmra.mrb[10].mxu0 %v1180_v14 }
  0xd2   : > { %2219 = vmatmul.mubr.f32.vlgmr.msra.gmra.mrb[10].mxu1 %v1182_v15 }
 0x104   : > { %v1765_v16 = vpop.f32.mrb[0].mxu0 }
 0x105   : > { %v1800_v17 = vpop.f32.mrb[0].mxu1  ;;  %v1766_v18 = vpop.f32.mrb[1].mxu0 }
 0x106   : > { %v1767_v19 = vadd.f32 %v1766_v18, %v1765_v16  ;;  %v1801_v20 = vpop.f32.mrb[1].mxu1 }
 0x107   : > { %v1802_v21 = vadd.f32 %v1801_v20, %v1800_v17 }
 0x109   : > { %v492_v22 = vadd.f32 %v1802_v21, %v1767_v19 }
 0x124   : > { %v561_v23 = vpop.f32.mrb[2].mxu0 }
 0x125   : > { %v562_v24 = vadd.f32 %v561_v23, %v492_v22  ;;  %v1852_v25 = vpop.f32.mrb[2].mxu1  ;;  %v2115_v26 = vpop.f32.mrb[3].mxu0 }
 0x126   : > { %v1853_v27 = vpop.f32.mrb[3].mxu1 }
 0x127   : > { %v1854_v28 = vadd.f32 %v1853_v27, %v1852_v25 }
 0x129   : > { %v632_v50 = vadd.f32 %v1854_v28, %v562_v24 }
 0x144   : > { %v1887_v29 = vpop.f32.mrb[4].mxu0 }
 0x145   : > { %v1888_v30 = vpop.f32.mrb[5].mxu0  ;;  %v771_v31 = vpop.f32.mrb[4].mxu1 }
 0x146   : > { %v1889_v32 = vadd.f32 %v1888_v30, %v1887_v29  ;;  %v2150_v33 = vpop.f32.mrb[5].mxu1 }
 0x148   : > { %v702_v34 = vadd.f32 %v1889_v32, %v632_v50 }
 0x14a   : > { %v772_v35 = vadd.f32 %v771_v31, %v702_v34 }
 0x164   : > { %v1939_v2 = vpop.f32.mrb[6].mxu0 }
 0x165   : > { %v1974_v36 = vpop.f32.mrb[6].mxu1  ;;  %v1940_v37 = vpop.f32.mrb[7].mxu0 }
 0x166   : > { %v1941_v38 = vadd.f32 %v1940_v37, %v1939_v2  ;;  %v1975_v39 = vpop.f32.mrb[7].mxu1 }
 0x167   : > { %v1976_v40 = vadd.f32 %v1975_v39, %v1974_v36 }
 0x169   : > { %v1013_v41 = vadd.f32 %v1976_v40, %v1941_v38 }
 0x184   : > { %v1082_v42 = vpop.f32.mrb[8].mxu0 }
 0x185   : > { %v1083_v43 = vadd.f32 %v1082_v42, %v1013_v41  ;;  %v2185_v44 = vpop.f32.mrb[9].mxu0  ;;  %v2026_v45 = vpop.f32.mrb[8].mxu1 }
 0x186   : > { %v2027_v46 = vpop.f32.mrb[9].mxu1 }
 0x187   : > { %v1086_v47 = vadd.f32 %v1083_v43, %v772_v35  ;;  %v2028_v48 = vadd.f32 %v2027_v46, %v2026_v45 }
 0x1a4   : > { %v2061_v49 = vpop.f32.mrb[10].mxu0 }
 0x1a5   : > { %v2062_v51 = vpop.f32.mrb[11].mxu0  ;;  %v1394_v52 = vpop.f32.mrb[10].mxu1 }
 0x1a6   : > { %v2063_v53 = vadd.f32 %v2062_v51, %v2061_v49  ;;  %v2220_v54 = vpop.f32.mrb[11].mxu1 }
 0x1a8   : > { %v1325_v55 = vadd.f32 %v2063_v53, %v2028_v48 }
 0x1aa   : > { %v1395_v56 = vadd.f32 %v1394_v52, %v1325_v55 }
 0x1ac   : > { %v1398_v58 = vadd.f32 %v1395_v56, %v1086_v47 }
 0x1ae   : > { %v1406_v59 = vadd.f32 %v1728_v57, %v1398_v58 }
 0x1b0   : > { %1408 = vst.msk [vmem:[%s163_s20] sm:$0x3] %vm1407_vm1, %v1406_v59 }
 0x1b1   : > { %2629 = shalt.err (!%p2626_p3)
}
 0x1b2   : > { %s2630_s30 = scalar_lea.hbm %s3792_s27, 32  ;;  %s2634_s6 = scalar_lea.hbm %s3837_s3, 64 }
 0x1b3   : > { %p2631_p4 = scmp.ne.s32.totalorder %s3792_s27, %s2630_s30  ;;  %p2635_p9 = scmp.lt.u32.totalorder %s3792_s27, %s3837_s3 }
 0x1b4   : > { %p2636_p10 = scmp.lt.u32.totalorder %s2634_s6, %s2630_s30  ;;  %p2638_p12 = scmp.lt.u32.totalorder %s2630_s30, %s3792_s27 }
 0x1b5   : > { %p2632_p7 = pnand %p2631_p4, %p2742_p5 }
 0x1b6   : > { %p2637_p11 = por %p2636_p10, %p2635_p9 }
 0x1b7   : > { %p2633_p8 = pneg %p2632_p7 }
 0x1b8   : > { %p2639_p13 = por %p2638_p12, %p2637_p11 }
 0x1ba   : > { %p2640_p0 = pnand %p2639_p13, %p2633_p8 }
 0x1bc   : > { %2643 = shalt.err (!%p2640_p0)
}
 0x1bd   : > { %2574 = dma.vmem_to_hbm [thread:$0]  (%p2742_p5), %s3794_s24, 32, %s3792_s27, %s1410_s9  }
 0x1be PF: > { %p2580_p1 = scmp.ge.s32.totalorder %s2678_s15, 2  ;;  %s1435_s8 = sand.u32 1, %s2666_s12  }
 0x1bf   : > { %s1436_s10 = scalar_lea.sflag [#allocation3], %s1435_s8 }
 0x1c0   : > { %p2577_p2 = pnand %p2580_p1, %p2746_p6 }
 0x1c2   : > { %2661 = dma.done.wait (!%p2577_p2), %s1436_s10, 32  }
 0x1c3   : > { %2663 = vsyncadd (!%p2577_p2), %s1436_s10, 4294967264  ;;  %p13_p3 = scmp.ge.s32.totalorder %s2729_s18, 4   ;;  %s3840_s12 = smov %s2670_s13 }
 0x1c4   : > { %s3841_s13 = smov %s2674_s14  ;;  %s3842_s14 = smov %s2740_s21 }
 0x1c5   : > { %s3843_s15 = smov %s2729_s18  ;;  %15 = sbr.rel (!%p13_p3) target bundleno = 3 (0x3), region = 70 }
 0x1cc   :  { %1441 = vsyncpa [#allocation3], 1 }
 0x1cd   :  { %1443 = vsyncpa [#allocation3 + $0x1], 1 }

// kernel: _lambda_.8
= control target key start
LH: loop header
LB: loop body
LE: loop exit
PB: predicated region body
PF: predicated region fallthrough
CT: control target
= control target key end

     0   :  { %vm6701_vm0 = vmmov 0   ;;  %vm1775_vm1 = vcmask 1042432   ;;  %s10473_s1 = inlined_call_operand.vmem [shape: f32[4,384,384], index: 1, kind: input, shape index: {}]   ;;  %s10474_s0 = inlined_call_operand.vmem [shape: f32[2,6,384], index: 0, kind: input, shape index: {}]   ;;  %s10475_s2 = inlined_call_operand.vmem [shape: f32[384,128], index: 2, kind: input, shape index: {}]   ;;  %s10476_s3 = inlined_call_operand.vmem [shape: f32[128,384], index: 3, kind: input, shape index: {}]   ;;  %s10477_s4 = inlined_call_operand.vmem [shape: f32[1,128], index: 4, kind: input, shape index: {}]   ;;  %s10478_s5 = inlined_call_operand.vmem [shape: f32[1,128], index: 5, kind: input, shape index: {}]   ;;  %s10479_s6 = inlined_call_operand.vmem [shape: f32[2,3,384], index: 6, kind: output, shape index: {}]  }
   0x1   :  { %v3788_v0 = vld [vmem:[%s10473_s1 + $0x488] sm:$0xff]  ;;  %v3791_v1 = vld [vmem:[%s10473_s1 + $0x4a0] sm:$0xff]  ;;  %v3837_v2 = vld [vmem:[%s10473_s1 + $0x610] sm:$0xff] }
   0x2   :  { %v6747_v3 = vpack.c.bf16 %v3791_v1, %v3788_v0  ;;  %v3840_v4 = vld [vmem:[%s10473_s1 + $0x628] sm:$0xff]  ;;  %v3787_v5 = vld [vmem:[%s10473_s1 + $0x480] sm:$0xff]  ;;  %v3790_v6 = vld [vmem:[%s10473_s1 + $0x498] sm:$0xff] }
   0x3   :  { %v6758_v7 = vpack.c.bf16 %v3840_v4, %v3837_v2  ;;  %v6760_v8 = vpack.c.bf16 %v3790_v6, %v3787_v5  ;;  %v3789_v9 = vld [vmem:[%s10473_s1 + $0x490] sm:$0xff]  ;;  %v3792_v10 = vld [vmem:[%s10473_s1 + $0x4a8] sm:$0xff]  ;;  %v3794_v11 = vld [vmem:[%s10473_s1 + $0x4b8] sm:$0xff] }
   0x4   :  { %5208 = vmatprep.subr.bf16.mxu0 %v6747_v3  ;;  %v6772_v12 = vpack.c.bf16 %v3792_v10, %v3789_v9  ;;  %v3797_v13 = vld [vmem:[%s10473_s1 + $0x4d0] sm:$0xff]  ;;  %v3843_v14 = vld [vmem:[%s10473_s1 + $0x640] sm:$0xff]  ;;  %v3846_v15 = vld [vmem:[%s10473_s1 + $0x658] sm:$0xff] }
   0x5   :  { %10692 = vst [vmem:[#allocation2_spill] sm:$0xff] %v6758_v7  ;;  %5304 = vmatprep.subr.bf16.mxu1 %v6758_v7  ;;  %5210 = vmatpush1.bf16.msra.mxu0 %v6760_v8  ;;  %v6785_v16 = vpack.c.bf16 %v3797_v13, %v3794_v11  ;;  %v6787_v17 = vpack.c.bf16 %v3846_v15, %v3843_v14  ;;  %v3793_v18 = vld [vmem:[%s10473_s1 + $0x4b0] sm:$0xff]  ;;  %v3796_v19 = vld [vmem:[%s10473_s1 + $0x4c8] sm:$0xff]  ;;  %v3795_v20 = vld [vmem:[%s10473_s1 + $0x4c0] sm:$0xff] }
   0x6   :  { %10693 = vst [vmem:[#allocation3_spill] sm:$0xff] %v6772_v12  ;;  %5306 = vmatpush3.bf16.msra.mxu1 %v6772_v12  ;;  %v6799_v21 = vpack.c.bf16 %v3796_v19, %v3793_v18  ;;  %v3798_v22 = vld [vmem:[%s10473_s1 + $0x4d8] sm:$0xff]  ;;  %v3800_v23 = vld [vmem:[%s10473_s1 + $0x4e8] sm:$0xff]  ;;  %v3803_v24 = vld [vmem:[%s10473_s1 + $0x500] sm:$0xff] }
   0x7   :  { %10694 = vst [vmem:[#allocation4_spill] sm:$0xff] %v6787_v17  ;;  %5212 = vmatprep.subr.bf16.mxu0 %v6785_v16  ;;  %5308 = vmatprep.subr.bf16.mxu1 %v6787_v17  ;;  %v6812_v25 = vpack.c.bf16 %v3798_v22, %v3795_v20  ;;  %v6814_v26 = vpack.c.bf16 %v3803_v24, %v3800_v23  ;;  %v3849_v27 = vld [vmem:[%s10473_s1 + $0x670] sm:$0xff]  ;;  %v3852_v28 = vld [vmem:[%s10473_s1 + $0x688] sm:$0xff]  ;;  %v3799_v29 = vld [vmem:[%s10473_s1 + $0x4e0] sm:$0xff] }
   0x8   :  { %v6825_v30 = vpack.c.bf16 %v3852_v28, %v3849_v27  ;;  %v3802_v31 = vld [vmem:[%s10473_s1 + $0x4f8] sm:$0xff]  ;;  %v3801_v32 = vld [vmem:[%s10473_s1 + $0x4f0] sm:$0xff]  ;;  %v3804_v33 = vld [vmem:[%s10473_s1 + $0x508] sm:$0xff] }
   0x9   :  { %10695 = vst [vmem:[#allocation5_spill] sm:$0xff] %v6812_v25  ;;  %5214 = vmatpush1.bf16.msra.mxu0 %v6799_v21  ;;  %v6837_v34 = vpack.c.bf16 %v3802_v31, %v3799_v29  ;;  %v3806_v35 = vld [vmem:[%s10473_s1 + $0x518] sm:$0xff]  ;;  %v3809_v36 = vld [vmem:[%s10473_s1 + $0x530] sm:$0xff]  ;;  %v3855_v37 = vld [vmem:[%s10473_s1 + $0x6a0] sm:$0xff]  ;;  %v6850_v38 = vpack.c.bf16 %v3804_v33, %v3801_v32 }
   0xa   :  { %10696 = vst [vmem:[#allocation6_spill] sm:$0xff] %v6825_v30  ;;  %5310 = vmatpush3.bf16.msra.mxu1 %v6812_v25  ;;  %5216 = vmatprep.subr.bf16.mxu0 %v6814_v26  ;;  %v6852_v39 = vpack.c.bf16 %v3809_v36, %v3806_v35  ;;  %v3858_v40 = vld [vmem:[%s10473_s1 + $0x6b8] sm:$0xff]  ;;  %v3805_v41 = vld [vmem:[%s10473_s1 + $0x510] sm:$0xff]  ;;  %v3808_v42 = vld [vmem:[%s10473_s1 + $0x528] sm:$0xff] }
   0xb   :  { %10697 = vst [vmem:[#allocation7_spill] sm:$0xff] %v6850_v38  ;;  %5312 = vmatprep.subr.bf16.mxu1 %v6825_v30  ;;  %v6864_v43 = vpack.c.bf16 %v3858_v40, %v3855_v37  ;;  %v3807_v44 = vld [vmem:[%s10473_s1 + $0x520] sm:$0xff]  ;;  %v3810_v45 = vld [vmem:[%s10473_s1 + $0x538] sm:$0xff]  ;;  %v3812_v46 = vld [vmem:[%s10473_s1 + $0x548] sm:$0xff]  ;;  %v6885_v50 = vpack.c.bf16 %v3808_v42, %v3805_v41 }
   0xc   :  { %v3815_v47 = vld [vmem:[%s10473_s1 + $0x560] sm:$0xff]  ;;  %v3861_v48 = vld [vmem:[%s10473_s1 + $0x6d0] sm:$0xff]  ;;  %v3864_v49 = vld [vmem:[%s10473_s1 + $0x6e8] sm:$0xff]  ;;  %v6889_v51 = vpack.c.bf16 %v3810_v45, %v3807_v44 }
   0xd   :  { %10698 = vst [vmem:[#allocation8_spill] sm:$0xff] %v6864_v43  ;;  %5218 = vmatpush1.bf16.msra.mxu0 %v6837_v34  ;;  %v6891_v52 = vpack.c.bf16 %v3815_v47, %v3812_v46  ;;  %v3811_v53 = vld [vmem:[%s10473_s1 + $0x540] sm:$0xff]  ;;  %v3814_v54 = vld [vmem:[%s10473_s1 + $0x558] sm:$0xff]  ;;  %v3813_v55 = vld [vmem:[%s10473_s1 + $0x550] sm:$0xff]  ;;  %v6903_v56 = vpack.c.bf16 %v3864_v49, %v3861_v48 }
   0xe   :  { %5314 = vmatpush3.bf16.msra.mxu1 %v6850_v38  ;;  %5220 = vmatprep.subr.bf16.mxu0 %v6852_v39  ;;  %10699 = vst [vmem:[#allocation9_spill] sm:$0xff] %v6889_v51  ;;  %v3816_v57 = vld [vmem:[%s10473_s1 + $0x568] sm:$0xff]  ;;  %v3818_v58 = vld [vmem:[%s10473_s1 + $0x578] sm:$0xff]  ;;  %v3821_v59 = vld [vmem:[%s10473_s1 + $0x590] sm:$0xff]  ;;  %v6921_v62 = vpack.c.bf16 %v3814_v54, %v3811_v53 }
   0xf   :  { %5316 = vmatprep.subr.bf16.mxu1 %v6864_v43  ;;  %10700 = vst [vmem:[#allocation10_spill] sm:$0xff] %v6903_v56  ;;  %v3867_v60 = vld [vmem:[%s10473_s1 + $0x700] sm:$0xff]  ;;  %v3870_v61 = vld [vmem:[%s10473_s1 + $0x718] sm:$0xff]  ;;  %v6925_v63 = vpack.c.bf16 %v3816_v57, %v3813_v55  ;;  %v6927_v0 = vpack.c.bf16 %v3821_v59, %v3818_v58  ;;  %v3817_v1 = vld [vmem:[%s10473_s1 + $0x570] sm:$0xff] }
  0x10   :  { %v3820_v2 = vld [vmem:[%s10473_s1 + $0x588] sm:$0xff]  ;;  %v3819_v4 = vld [vmem:[%s10473_s1 + $0x580] sm:$0xff]  ;;  %v6939_v5 = vpack.c.bf16 %v3870_v61, %v3867_v60  ;;  %v3822_v6 = vld [vmem:[%s10473_s1 + $0x598] sm:$0xff] }
  0x11   :  { %5222 = vmatpush1.bf16.msra.mxu0 %v6885_v50  ;;  %10701 = vst [vmem:[#allocation11_spill] sm:$0xff] %v6925_v63  ;;  %v3824_v9 = vld [vmem:[%s10473_s1 + $0x5a8] sm:$0xff]  ;;  %v3827_v10 = vld [vmem:[%s10473_s1 + $0x5c0] sm:$0xff]  ;;  %v3873_v11 = vld [vmem:[%s10473_s1 + $0x730] sm:$0xff]  ;;  %v6957_v14 = vpack.c.bf16 %v3820_v2, %v3817_v1  ;;  %v6964_v18 = vpack.c.bf16 %v3822_v6, %v3819_v4 }
  0x12   :  { %5318 = vmatpush3.bf16.msra.mxu1 %v6889_v51  ;;  %5224 = vmatprep.subr.bf16.mxu0 %v6891_v52  ;;  %10702 = vst [vmem:[#allocation12_spill] sm:$0xff] %v6939_v5  ;;  %v3876_v13 = vld [vmem:[%s10473_s1 + $0x748] sm:$0xff]  ;;  %v3823_v15 = vld [vmem:[%s10473_s1 + $0x5a0] sm:$0xff]  ;;  %v6966_v19 = vpack.c.bf16 %v3827_v10, %v3824_v9  ;;  %v3826_v20 = vld [vmem:[%s10473_s1 + $0x5b8] sm:$0xff] }
  0x13   :  { %5320 = vmatprep.subr.bf16.mxu1 %v6903_v56  ;;  %10703 = vst [vmem:[#allocation13_spill] sm:$0xff] %v6964_v18  ;;  %v3825_v22 = vld [vmem:[%s10473_s1 + $0x5b0] sm:$0xff]  ;;  %v171_v23 = vld [vmem:[%s10474_s0 + $0x8] sm:$0xe]  ;;  %v6978_v24 = vpack.c.bf16 %v3876_v13, %v3873_v11  ;;  %v3830_v28 = vld [vmem:[%s10473_s1 + $0x5d8] sm:$0xff]  ;;  %v6996_v35 = vpack.c.bf16 %v3826_v20, %v3823_v15  ;;  %v10483_v13 = vmov 0.0|0.0  }
  0x14   :  { %v3828_v27 = vld [vmem:[%s10473_s1 + $0x5c8] sm:$0xff]  ;;  %v3833_v29 = vld [vmem:[%s10473_s1 + $0x5f0] sm:$0xff]  ;;  %v322_v31 = vrot.slane %v171_v23, 1  ;;  %v3879_v32 = vld [vmem:[%s10473_s1 + $0x760] sm:$0xff] }
  0x15   :  { %5226 = vmatpush1.bf16.msra.mxu0 %v6921_v62  ;;  %10704 = vst [vmem:[#allocation14_spill] sm:$0xff] %v6978_v24  ;;  %v3882_v33 = vld [vmem:[%s10473_s1 + $0x778] sm:$0xff]  ;;  %v7000_v36 = vpack.c.bf16 %v3828_v27, %v3825_v22  ;;  %v7002_v37 = vpack.c.bf16 %v3833_v29, %v3830_v28  ;;  %v3829_v40 = vld [vmem:[%s10473_s1 + $0x5d0] sm:$0xff]  ;;  %v3832_v41 = vld [vmem:[%s10473_s1 + $0x5e8] sm:$0xff] }
  0x16   :  { %5322 = vmatpush3.bf16.msra.mxu1 %v6925_v63  ;;  %5228 = vmatprep.subr.bf16.mxu0 %v6927_v0  ;;  %v3831_v42 = vld [vmem:[%s10473_s1 + $0x5e0] sm:$0xff]  ;;  %v7014_v44 = vpack.c.bf16 %v3882_v33, %v3879_v32  ;;  %v3834_v45 = vld [vmem:[%s10473_s1 + $0x5f8] sm:$0xff]  ;;  %v3836_v46 = vld [vmem:[%s10473_s1 + $0x608] sm:$0xff]  ;;  %v7026_v48 = vpack.c.bf16 %v3832_v41, %v3829_v40 }
  0x17   :  { %5324 = vmatprep.subr.bf16.mxu1 %v6939_v5  ;;  %533 = vmatprep.mubr.f32.mxu1 %v322_v31  ;;  %10705 = vst [vmem:[#allocation15_spill] sm:$0xff] %v7000_v36  ;;  %v3839_v47 = vld [vmem:[%s10473_s1 + $0x620] sm:$0xff]  ;;  %v7035_v53 = vpack.c.bf16 %v3834_v45, %v3831_v42  ;;  %v3838_v57 = vld [vmem:[%s10473_s1 + $0x618] sm:$0xff]  ;;  %v3885_v58 = vld [vmem:[%s10473_s1 + $0x790] sm:$0xff]  ;;  %v10480_v42 = vmov 0.0  }
  0x18   :  { %10706 = vst [vmem:[#allocation16_spill] sm:$0xff] %v7014_v44  ;;  %391 = vmatprep.mubr.f32.mxu0 %v322_v31  ;;  %v7031_v49 = vld [vmem:[%s10474_s0] sm:$0xe]  ;;  %v7037_v54 = vpack.c.bf16 %v3839_v47, %v3836_v46  ;;  %v3888_v59 = vld [vmem:[%s10473_s1 + $0x7a8] sm:$0xff]  ;;  %v3842_v60 = vld [vmem:[%s10473_s1 + $0x638] sm:$0xff] }
  0x19   :  { %5230 = vmatpush1.bf16.msra.mxu0 %v6957_v14  ;;  %10707 = vst [vmem:[#allocation17_spill] sm:$0xff] %v7035_v53  ;;  %v3835_v55 = vld [vmem:[%s10473_s1 + $0x600] sm:$0xff]  ;;  %v3845_v61 = vld [vmem:[%s10473_s1 + $0x650] sm:$0xff]  ;;  %v10482_v1 = vrot.slane %v7031_v49, 1  ;;  %v7064_v4 = vpack.c.bf16 %v3888_v59, %v3885_v58  ;;  %v3844_v10 = vld [vmem:[%s10473_s1 + $0x648] sm:$0xff] }
  0x1a   :  { %5326 = vmatpush3.bf16.msra.mxu1 %v6964_v18  ;;  %5232 = vmatprep.subr.bf16.mxu0 %v6966_v19  ;;  %v7060_v2 = vpack.c.bf16 %v3838_v57, %v3835_v55  ;;  %v7066_v6 = vpack.c.bf16 %v3845_v61, %v3842_v60  ;;  %v3841_v9 = vld [vmem:[%s10473_s1 + $0x630] sm:$0xff]  ;;  %v3891_v11 = vld [vmem:[%s10473_s1 + $0x7c0] sm:$0xff]  ;;  %v3894_v15 = vld [vmem:[%s10473_s1 + $0x7d8] sm:$0xff] }
  0x1b   :  { %5328 = vmatprep.subr.bf16.mxu1 %v6978_v24  ;;  %10708 = vst [vmem:[#allocation18_spill] sm:$0xff] %v7064_v4  ;;  %v3848_v20 = vld [vmem:[%s10473_s1 + $0x668] sm:$0xff]  ;;  %v3851_v22 = vld [vmem:[%s10473_s1 + $0x680] sm:$0xff]  ;;  %v7090_v23 = vpack.c.bf16 %v3844_v10, %v3841_v9  ;;  %v7094_v27 = vpack.c.bf16 %v3894_v15, %v3891_v11  ;;  %v3850_v31 = vld [vmem:[%s10473_s1 + $0x678] sm:$0xff] }
  0x1c   :  { %v7096_v28 = vpack.c.bf16 %v3851_v22, %v3848_v20  ;;  %v3847_v29 = vld [vmem:[%s10473_s1 + $0x660] sm:$0xff]  ;;  %v3897_v32 = vld [vmem:[%s10473_s1 + $0x7f0] sm:$0xff]  ;;  %v3900_v33 = vld [vmem:[%s10473_s1 + $0x808] sm:$0xff] }
  0x1d   :  { %5234 = vmatpush1.bf16.msra.mxu0 %v6996_v35  ;;  %10709 = vst [vmem:[#allocation19_spill] sm:$0xff] %v7094_v27  ;;  %v3854_v40 = vld [vmem:[%s10473_s1 + $0x698] sm:$0xff]  ;;  %v3857_v41 = vld [vmem:[%s10473_s1 + $0x6b0] sm:$0xff]  ;;  %v7120_v45 = vpack.c.bf16 %v3850_v31, %v3847_v29  ;;  %v7124_v46 = vpack.c.bf16 %v3900_v33, %v3897_v32  ;;  %v3856_v57 = vld [vmem:[%s10473_s1 + $0x6a8] sm:$0xff] }
  0x1e   :  { %5330 = vmatpush3.bf16.msra.mxu1 %v7000_v36  ;;  %5236 = vmatprep.subr.bf16.mxu0 %v7002_v37  ;;  %v7126_v47 = vpack.c.bf16 %v3857_v41, %v3854_v40  ;;  %v3853_v55 = vld [vmem:[%s10473_s1 + $0x690] sm:$0xff]  ;;  %v3903_v58 = vld [vmem:[%s10473_s1 + $0x820] sm:$0xff]  ;;  %v3906_v59 = vld [vmem:[%s10473_s1 + $0x838] sm:$0xff] }
  0x1f   :  { %5332 = vmatprep.subr.bf16.mxu1 %v7014_v44  ;;  %10710 = vst [vmem:[#allocation20_spill] sm:$0xff] %v7124_v46  ;;  %v3860_v60 = vld [vmem:[%s10473_s1 + $0x6c8] sm:$0xff]  ;;  %v3863_v61 = vld [vmem:[%s10473_s1 + $0x6e0] sm:$0xff]  ;;  %v7148_v9 = vpack.c.bf16 %v3856_v57, %v3853_v55  ;;  %v7152_v10 = vpack.c.bf16 %v3906_v59, %v3903_v58  ;;  %v3862_v20 = vld [vmem:[%s10473_s1 + $0x6d8] sm:$0xff] }
  0x20   :  { %v7154_v11 = vpack.c.bf16 %v3863_v61, %v3860_v60  ;;  %v3859_v15 = vld [vmem:[%s10473_s1 + $0x6c0] sm:$0xff]  ;;  %v3909_v22 = vld [vmem:[%s10473_s1 + $0x850] sm:$0xff]  ;;  %v3912_v29 = vld [vmem:[%s10473_s1 + $0x868] sm:$0xff] }
  0x21   :  { %5238 = vmatpush1.bf16.msra.mxu0 %v7026_v48  ;;  %10711 = vst [vmem:[#allocation21_spill] sm:$0xff] %v7152_v10  ;;  %v3866_v31 = vld [vmem:[%s10473_s1 + $0x6f8] sm:$0xff]  ;;  %v3869_v32 = vld [vmem:[%s10473_s1 + $0x710] sm:$0xff]  ;;  %v7176_v33 = vpack.c.bf16 %v3862_v20, %v3859_v15  ;;  %v7180_v40 = vpack.c.bf16 %v3912_v29, %v3909_v22  ;;  %v3868_v57 = vld [vmem:[%s10473_s1 + $0x708] sm:$0xff] }
  0x22   :  { %5334 = vmatpush3.bf16.msra.mxu1 %v7035_v53  ;;  %5240 = vmatprep.subr.bf16.mxu0 %v7037_v54  ;;  %v7182_v41 = vpack.c.bf16 %v3869_v32, %v3866_v31  ;;  %v3865_v55 = vld [vmem:[%s10473_s1 + $0x6f0] sm:$0xff]  ;;  %v3915_v58 = vld [vmem:[%s10473_s1 + $0x880] sm:$0xff]  ;;  %v3918_v59 = vld [vmem:[%s10473_s1 + $0x898] sm:$0xff] }
  0x23   :  { %5335 = vmatprep.subr.bf16.mxu1 %v10483_v13  ;;  %10712 = vst [vmem:[#allocation22_spill] sm:$0xff] %v7180_v40  ;;  %v3872_v60 = vld [vmem:[%s10473_s1 + $0x728] sm:$0xff]  ;;  %v3875_v61 = vld [vmem:[%s10473_s1 + $0x740] sm:$0xff]  ;;  %v7204_v15 = vpack.c.bf16 %v3868_v57, %v3865_v55  ;;  %v7208_v20 = vpack.c.bf16 %v3918_v59, %v3915_v58  ;;  %v3874_v31 = vld [vmem:[%s10473_s1 + $0x738] sm:$0xff] }
  0x24   :  { %v7210_v22 = vpack.c.bf16 %v3875_v61, %v3872_v60  ;;  %v3871_v29 = vld [vmem:[%s10473_s1 + $0x720] sm:$0xff]  ;;  %v3921_v32 = vld [vmem:[%s10473_s1 + $0x8b0] sm:$0xff]  ;;  %v3924_v55 = vld [vmem:[%s10473_s1 + $0x8c8] sm:$0xff] }
  0x25   :  { %534 = vmatmul.mubr.f32.vlgmr.msra.gmra.mrb[0].mxu1 %v10482_v1  ;;  %5242 = vmatpush1.bf16.msra.mxu0 %v7060_v2  ;;  %10713 = vst [vmem:[#allocation23_spill] sm:$0xff] %v7208_v20  ;;  %v3878_v57 = vld [vmem:[%s10473_s1 + $0x758] sm:$0xff]  ;;  %v3881_v58 = vld [vmem:[%s10473_s1 + $0x770] sm:$0xff]  ;;  %v7232_v59 = vpack.c.bf16 %v3874_v31, %v3871_v29  ;;  %v7236_v60 = vpack.c.bf16 %v3924_v55, %v3921_v32  ;;  %v3880_v1 = vld [vmem:[%s10473_s1 + $0x768] sm:$0xff] }
  0x26   :  { %5337 = vmatpush3.bf16.msra.mxu1 %v7064_v4  ;;  %5244 = vmatprep.subr.bf16.mxu0 %v7066_v6  ;;  %v7238_v61 = vpack.c.bf16 %v3881_v58, %v3878_v57  ;;  %v3927_v29 = vld [vmem:[%s10473_s1 + $0x8e0] sm:$0xff]  ;;  %v3930_v31 = vld [vmem:[%s10473_s1 + $0x8f8] sm:$0xff]  ;;  %v3884_v32 = vld [vmem:[%s10473_s1 + $0x788] sm:$0xff] }
  0x27   :  { %5338 = vmatprep.subr.bf16.mxu1 %v10483_v13  ;;  %4819 = vmatprep.mubr.msk.f32.mxu1 %vm6701_vm0, %v10480_v42  ;;  %10714 = vst [vmem:[#allocation24_spill] sm:$0xff] %v7236_v60  ;;  %v3877_v42 = vld [vmem:[%s10473_s1 + $0x750] sm:$0xff]  ;;  %v3887_v55 = vld [vmem:[%s10473_s1 + $0x7a0] sm:$0xff]  ;;  %v79_v58 = vld [vmem:[%s10473_s1 + $0x1a8] sm:$0xff] }
  0x28   :  { %v76_v57 = vld [vmem:[%s10473_s1 + $0x190] sm:$0xff]  ;;  %v3892_v24 = vld [vmem:[%s10473_s1 + $0x7c8] sm:$0xff]  ;;  %v3895_v18 = vld [vmem:[%s10473_s1 + $0x7e0] sm:$0xff] }
  0x29   :  { %5246 = vmatpush1.bf16.msra.mxu0 %v7090_v23  ;;  %v3889_v36 = vld [vmem:[%s10473_s1 + $0x7b0] sm:$0xff]  ;;  %v7348_v4 = vld [vmem:[%s10474_s0 + $0x8] sm:$0x7]  ;;  %v3898_v5 = vld [vmem:[%s10473_s1 + $0x7f8] sm:$0xff] }
  0x2a   :  { %5340 = vmatpush3.bf16.msra.mxu1 %v7094_v27  ;;  %5248 = vmatprep.subr.bf16.mxu0 %v7096_v28  ;;  %v7289_v27 = vpack.c.bf16 %v79_v58, %v76_v57  ;;  %v85_v57 = vld [vmem:[%s10473_s1 + $0x1d8] sm:$0xff]  ;;  %v3901_v63 = vld [vmem:[%s10473_s1 + $0x810] sm:$0xff]  ;;  %v3904_v56 = vld [vmem:[%s10473_s1 + $0x828] sm:$0xff] }
  0x2b   :  { %5341 = vmatprep.subr.bf16.mxu1 %v10483_v13  ;;  %v3907_v51 = vld [vmem:[%s10473_s1 + $0x840] sm:$0xff]  ;;  %v3910_v43 = vld [vmem:[%s10473_s1 + $0x858] sm:$0xff]  ;;  %v3913_v38 = vld [vmem:[%s10473_s1 + $0x870] sm:$0xff] }
  0x2c   :  { %10717 = vst [vmem:[#allocation26_spill] sm:$0xff] %v7289_v27  ;;  %v3916_v30 = vld [vmem:[%s10473_s1 + $0x888] sm:$0xff]  ;;  %v3919_v25 = vld [vmem:[%s10473_s1 + $0x8a0] sm:$0xff]  ;;  %v3922_v17 = vld [vmem:[%s10473_s1 + $0x8b8] sm:$0xff] }
  0x2d   :  { %5250 = vmatpush1.bf16.msra.mxu0 %v7120_v45  ;;  %v3925_v12 = vld [vmem:[%s10473_s1 + $0x8d0] sm:$0xff]  ;;  %v3928_v7 = vld [vmem:[%s10473_s1 + $0x8e8] sm:$0xff] }
  0x2e   :  { %5343 = vmatpush3.bf16.msra.mxu1 %v7124_v46  ;;  %5252 = vmatprep.subr.bf16.mxu0 %v7126_v47  ;;  %v3886_v46 = vld [vmem:[%s10473_s1 + $0x798] sm:$0xff] }
  0x2f   :  { %5344 = vmatprep.subr.bf16.mxu1 %v10483_v13 }
  0x31   :  { %5254 = vmatpush1.bf16.msra.mxu0 %v7148_v9 }
  0x32   :  { %5346 = vmatpush3.bf16.msra.mxu1 %v7152_v10  ;;  %5256 = vmatprep.subr.bf16.mxu0 %v7154_v11  ;;  %v7275_v10 = vpack.c.bf16 %v3887_v55, %v3884_v32  ;;  %v3893_v32 = vld [vmem:[%s10473_s1 + $0x7d0] sm:$0xff]  ;;  %v82_v55 = vld [vmem:[%s10473_s1 + $0x1c0] sm:$0xff] }
  0x33   :  { %5347 = vmatprep.subr.bf16.mxu1 %v10483_v13 }
  0x35   :  { %5258 = vmatpush1.bf16.msra.mxu0 %v7176_v33 }
  0x36   :  { %5349 = vmatpush3.bf16.msra.mxu1 %v7180_v40  ;;  %5260 = vmatprep.subr.bf16.mxu0 %v7182_v41  ;;  %v7273_v40 = vpack.c.bf16 %v3930_v31, %v3927_v29  ;;  %v31_v29 = vld [vmem:[%s10473_s1 + $0x28] sm:$0xff]  ;;  %v3890_v31 = vld [vmem:[%s10473_s1 + $0x7b8] sm:$0xff] }
  0x37   :  { %5350 = vmatprep.subr.bf16.mxu1 %v10483_v13  ;;  %v7314_v44 = vpack.c.bf16 %v3893_v32, %v3890_v31  ;;  %v3899_v31 = vld [vmem:[%s10473_s1 + $0x800] sm:$0xff]  ;;  %v10720_v32 = vrot.slane %v7031_v49, 1  ;;  %v7353_v49 = vpack.c.bf16 %v3892_v24, %v3889_v36  ;;  %v40_v24 = vld [vmem:[%s10473_s1 + $0x70] sm:$0xff] }
  0x38   :  { %10715 = vst [vmem:[#allocation25_spill] sm:$0xff] %v7273_v40 }
  0x39   :  { %5262 = vmatpush1.bf16.msra.mxu0 %v7204_v15 }
  0x3a   :  { %5352 = vmatpush3.bf16.msra.mxu1 %v7208_v20  ;;  %5264 = vmatprep.subr.bf16.mxu0 %v7210_v22  ;;  %v3883_v20 = vld [vmem:[%s10473_s1 + $0x780] sm:$0xff] }
  0x3b   :  { %5353 = vmatprep.subr.bf16.mxu1 %v10483_v13  ;;  %v7266_v13 = vpack.c.bf16 %v3880_v1, %v3877_v42  ;;  %v7283_v1 = vld [vmem:[%s10474_s0 + $0x10] sm:$0xe]  ;;  %v7307_v58 = vpack.c.bf16 %v3886_v46, %v3883_v20  ;;  %v34_v46 = vld [vmem:[%s10473_s1 + $0x40] sm:$0xff]  ;;  %v7326_v20 = vpack.c.bf16 %v85_v57, %v82_v55  ;;  %v91_v57 = vld [vmem:[%s10473_s1 + $0x208] sm:$0xff] }
  0x3c   :  { %v28_v42 = vld [vmem:[%s10473_s1 + $0x10] sm:$0xff] }
  0x3d   :  { %5266 = vmatpush1.bf16.msra.mxu0 %v7232_v59  ;;  %v7312_v53 = vpack.c.bf16 %v31_v29, %v28_v42  ;;  %10719 = vst [vmem:[#allocation28_spill] sm:$0xff] %v7326_v20  ;;  %v37_v42 = vld [vmem:[%s10473_s1 + $0x58] sm:$0xff]  ;;  %v3896_v29 = vld [vmem:[%s10473_s1 + $0x7e8] sm:$0xff]  ;;  %v88_v55 = vld [vmem:[%s10473_s1 + $0x1f0] sm:$0xff] }
  0x3e   :  { %5355 = vmatpush3.bf16.msra.mxu1 %v7236_v60  ;;  %5268 = vmatprep.subr.bf16.mxu0 %v7238_v61  ;;  %v10716_v60 = vmov 0.0|0.0   ;;  %v7371_v36 = vpack.c.bf16 %v91_v57, %v88_v55  ;;  %v10724_v55 = vmov 0.0   ;;  %v7391_v57 = vpack.c.bf16 %v3898_v5, %v3895_v18  ;;  %v46_v5 = vld [vmem:[%s10473_s1 + $0xa0] sm:$0xff] }
  0x3f   :  { %5356 = vmatprep.subr.bf16.mxu1 %v10716_v60  ;;  %10718 = vst [vmem:[#allocation27_spill] sm:$0xff] %v7312_v53 }
  0x40   :  { %10723 = vst [vmem:[#allocation30_spill] sm:$0xff] %v7371_v36 }
  0x41   :  { %5270 = vmatpush1.bf16.msra.mxu0 %v7266_v13 }
  0x42   :  { %5358 = vmatpush3.bf16.msra.mxu1 %v7273_v40  ;;  %5272 = vmatprep.subr.bf16.mxu0 %v7275_v10  ;;  %v7359_v40 = vpack.c.bf16 %v3899_v31, %v3896_v29  ;;  %v94_v29 = vld [vmem:[%s10473_s1 + $0x220] sm:$0xff]  ;;  %v97_v31 = vld [vmem:[%s10473_s1 + $0x238] sm:$0xff] }
  0x43   :  { %5456 = vmatprep.subr.bf16.mxu1 %v7289_v27  ;;  %v10721_v27 = vrot.slane %v7283_v1, 1  ;;  %v7409_v18 = vpack.c.bf16 %v97_v31, %v94_v29  ;;  %v103_v29 = vld [vmem:[%s10473_s1 + $0x268] sm:$0xff]  ;;  %v7427_v31 = vpack.c.bf16 %v3904_v56, %v3901_v63  ;;  %v52_v56 = vld [vmem:[%s10473_s1 + $0xd0] sm:$0xff] }
  0x44   :  { %392 = vmatmul.mubr.f32.vlgmr.msra.gmra.mrb[0].mxu0 %v10720_v32  ;;  %v7357_v32 = vpack.c.bf16 %v37_v42, %v34_v46  ;;  %v3902_v46 = vld [vmem:[%s10473_s1 + $0x818] sm:$0xff]  ;;  %v3905_v42 = vld [vmem:[%s10473_s1 + $0x830] sm:$0xff] }
  0x45   :  { %5274 = vmatpush1.bf16.msra.mxu0 %v7307_v58  ;;  %4820 = vmatmul.mubr.f32.vlgmr.msra.gmra.mrb[2].mxu1 %v10721_v27  ;;  %v43_v27 = vld [vmem:[%s10473_s1 + $0x88] sm:$0xff]  ;;  %10726 = vst [vmem:[#allocation32_spill] sm:$0xff] %v7409_v18 }
  0x46   :  { %5458 = vmatpush3.bf16.msra.mxu1 %v7312_v53  ;;  %5276 = vmatprep.subr.bf16.mxu0 %v7314_v44  ;;  %10722 = vst [vmem:[#allocation29_spill] sm:$0xff] %v7357_v32  ;;  %v7397_v53 = vpack.c.bf16 %v3905_v42, %v3902_v46  ;;  %v3911_v46 = vld [vmem:[%s10473_s1 + $0x860] sm:$0xff]  ;;  %v100_v42 = vld [vmem:[%s10473_s1 + $0x250] sm:$0xff] }
  0x47   :  { %5460 = vmatprep.subr.bf16.mxu1 %v7326_v20  ;;  %815 = vmatprep.mubr.f32.mxu1 %v7348_v4  ;;  %v7395_v20 = vpack.c.bf16 %v43_v27, %v40_v24  ;;  %v49_v24 = vld [vmem:[%s10473_s1 + $0xb8] sm:$0xff]  ;;  %v3908_v27 = vld [vmem:[%s10473_s1 + $0x848] sm:$0xff]  ;;  %v7445_v63 = vpack.c.bf16 %v103_v29, %v100_v42  ;;  %v7463_v29 = vpack.c.bf16 %v3910_v43, %v3907_v51  ;;  %v58_v43 = vld [vmem:[%s10473_s1 + $0x100] sm:$0xff] }
  0x48   :  { %462 = vmatprep.mubr.f32.mxu0 %v10724_v55  ;;  %v109_v42 = vld [vmem:[%s10473_s1 + $0x298] sm:$0xff] }
  0x49   :  { %5278 = vmatpush1.bf16.msra.mxu0 %v7353_v49  ;;  %10725 = vst [vmem:[#allocation31_spill] sm:$0xff] %v7395_v20  ;;  %10729 = vst [vmem:[#allocation35_spill] sm:$0xff] %v7445_v63 }
  0x4a   :  { %5462 = vmatpush3.bf16.msra.mxu1 %v7357_v32  ;;  %5280 = vmatprep.subr.bf16.mxu0 %v7359_v40  ;;  %v7433_v32 = vpack.c.bf16 %v3911_v46, %v3908_v27  ;;  %v3917_v27 = vld [vmem:[%s10473_s1 + $0x890] sm:$0xff]  ;;  %v106_v46 = vld [vmem:[%s10473_s1 + $0x280] sm:$0xff]  ;;  %10730 = vst [vmem:[#allocation36_spill] sm:$0xff] %v7463_v29 }
  0x4b   :  { %5464 = vmatprep.subr.bf16.mxu1 %v7371_v36  ;;  %v7431_v36 = vpack.c.bf16 %v49_v24, %v46_v5  ;;  %v55_v5 = vld [vmem:[%s10473_s1 + $0xe8] sm:$0xff]  ;;  %v3914_v24 = vld [vmem:[%s10473_s1 + $0x878] sm:$0xff]  ;;  %v7481_v51 = vpack.c.bf16 %v109_v42, %v106_v46  ;;  %v7499_v42 = vpack.c.bf16 %v3916_v30, %v3913_v38  ;;  %v64_v30 = vld [vmem:[%s10473_s1 + $0x130] sm:$0xff] }
  0x4c   :  { %10728 = vst [vmem:[#allocation34_spill] sm:$0xff] %v7433_v32  ;;  %v115_v46 = vld [vmem:[%s10473_s1 + $0x2c8] sm:$0xff] }
  0x4d   :  { %5282 = vmatpush1.bf16.msra.mxu0 %v7391_v57  ;;  %10727 = vst [vmem:[#allocation33_spill] sm:$0xff] %v7431_v36  ;;  %10733 = vst [vmem:[#allocation39_spill] sm:$0xff] %v7481_v51 }
  0x4e   :  { %5466 = vmatpush3.bf16.msra.mxu1 %v7395_v20  ;;  %5284 = vmatprep.subr.bf16.mxu0 %v7397_v53  ;;  %v7469_v20 = vpack.c.bf16 %v3917_v27, %v3914_v24  ;;  %v3923_v24 = vld [vmem:[%s10473_s1 + $0x8c0] sm:$0xff]  ;;  %v112_v27 = vld [vmem:[%s10473_s1 + $0x2b0] sm:$0xff]  ;;  %10734 = vst [vmem:[#allocation40_spill] sm:$0xff] %v7499_v42 }
  0x4f   :  { %5468 = vmatprep.subr.bf16.mxu1 %v7409_v18  ;;  %v7467_v18 = vpack.c.bf16 %v55_v5, %v52_v56  ;;  %v61_v56 = vld [vmem:[%s10473_s1 + $0x118] sm:$0xff]  ;;  %v3920_v5 = vld [vmem:[%s10473_s1 + $0x8a8] sm:$0xff]  ;;  %v7517_v38 = vpack.c.bf16 %v115_v46, %v112_v27  ;;  %v7535_v46 = vpack.c.bf16 %v3922_v17, %v3919_v25  ;;  %v70_v17 = vld [vmem:[%s10473_s1 + $0x160] sm:$0xff] }
  0x50   :  { %10732 = vst [vmem:[#allocation38_spill] sm:$0xff] %v7469_v20  ;;  %v121_v27 = vld [vmem:[%s10473_s1 + $0x2f8] sm:$0xff] }
  0x51   :  { %5286 = vmatpush1.bf16.msra.mxu0 %v7427_v31  ;;  %10731 = vst [vmem:[#allocation37_spill] sm:$0xff] %v7467_v18  ;;  %10737 = vst [vmem:[#allocation43_spill] sm:$0xff] %v7517_v38 }
  0x52   :  { %5470 = vmatpush3.bf16.msra.mxu1 %v7431_v36  ;;  %5288 = vmatprep.subr.bf16.mxu0 %v7433_v32  ;;  %v7505_v36 = vpack.c.bf16 %v3923_v24, %v3920_v5  ;;  %v3929_v5 = vld [vmem:[%s10473_s1 + $0x8f0] sm:$0xff]  ;;  %v118_v24 = vld [vmem:[%s10473_s1 + $0x2e0] sm:$0xff]  ;;  %10738 = vst [vmem:[#allocation44_spill] sm:$0xff] %v7535_v46 }
  0x53   :  { %5472 = vmatprep.subr.bf16.mxu1 %v7445_v63  ;;  %v7503_v63 = vpack.c.bf16 %v61_v56, %v58_v43  ;;  %v67_v43 = vld [vmem:[%s10473_s1 + $0x148] sm:$0xff]  ;;  %v3926_v56 = vld [vmem:[%s10473_s1 + $0x8d8] sm:$0xff]  ;;  %v7553_v25 = vpack.c.bf16 %v121_v27, %v118_v24  ;;  %v3937_v32 = vld [vmem:[%s10473_s1 + $0x930] sm:$0xff] }
  0x54   :  { %10736 = vst [vmem:[#allocation42_spill] sm:$0xff] %v7505_v36 }
  0x55   :  { %5290 = vmatpush1.bf16.msra.mxu0 %v7463_v29  ;;  %10735 = vst [vmem:[#allocation41_spill] sm:$0xff] %v7503_v63  ;;  %10741 = vst [vmem:[#allocation47_spill] sm:$0xff] %v7553_v25 }
  0x56   :  { %5474 = vmatpush3.bf16.msra.mxu1 %v7467_v18  ;;  %5292 = vmatprep.subr.bf16.mxu0 %v7469_v20  ;;  %v7541_v18 = vpack.c.bf16 %v3929_v5, %v3926_v56  ;;  %v30_v56 = vld [vmem:[%s10473_s1 + $0x20] sm:$0xff]  ;;  %v7565_v5 = vpack.c.bf16 %v3928_v7, %v3925_v12  ;;  %v124_v7 = vld [vmem:[%s10473_s1 + $0x310] sm:$0xff]  ;;  %v127_v12 = vld [vmem:[%s10473_s1 + $0x328] sm:$0xff] }
  0x57   :  { %5476 = vmatprep.subr.bf16.mxu1 %v7481_v51  ;;  %v7539_v51 = vpack.c.bf16 %v67_v43, %v64_v30  ;;  %v73_v30 = vld [vmem:[%s10473_s1 + $0x178] sm:$0xff]  ;;  %v27_v43 = vld [vmem:[%s10473_s1 + $0x8] sm:$0xff] }
  0x58   :  { %10740 = vst [vmem:[#allocation46_spill] sm:$0xff] %v7541_v18  ;;  %10742 = vst [vmem:[#allocation48_spill] sm:$0xff] %v7565_v5  ;;  %v7569_v24 = vpack.c.bf16 %v73_v30, %v70_v17  ;;  %v7571_v27 = vpack.c.bf16 %v30_v56, %v27_v43  ;;  %v33_v17 = vld [vmem:[%s10473_s1 + $0x38] sm:$0xff]  ;;  %v36_v30 = vld [vmem:[%s10473_s1 + $0x50] sm:$0xff] }
  0x59   :  { %5294 = vmatpush1.bf16.msra.mxu0 %v7499_v42  ;;  %10739 = vst [vmem:[#allocation45_spill] sm:$0xff] %v7539_v51  ;;  %v7596_v43 = vld [vmem:[%s10474_s0] sm:$0x7]  ;;  %v80_v42 = vld [vmem:[%s10473_s1 + $0x1b0] sm:$0xff]  ;;  %v95_v20 = vld [vmem:[%s10473_s1 + $0x228] sm:$0xff] }
  0x5a   :  { %5478 = vmatpush3.bf16.msra.mxu1 %v7503_v63  ;;  %5296 = vmatprep.subr.bf16.mxu0 %v7505_v36  ;;  %10743 = vst [vmem:[#allocation49_spill] sm:$0xff] %v7569_v24  ;;  %10744 = vst [vmem:[#allocation50_spill] sm:$0xff] %v7571_v27  ;;  %v29_v63 = vld [vmem:[%s10473_s1 + $0x18] sm:$0xff] }
  0x5b   :  { %5480 = vmatprep.subr.bf16.mxu1 %v7517_v38  ;;  %v26_v38 = vld [vmem:[%s10473_s1] sm:$0xff] }
  0x5c   :  { %v7598_v56 = vpack.c.bf16 %v29_v63, %v26_v38  ;;  %v130_v63 = vld [vmem:[%s10473_s1 + $0x340] sm:$0xff]  ;;  %v133_v38 = vld [vmem:[%s10473_s1 + $0x358] sm:$0xff] }
  0x5d   :  { %5298 = vmatpush1.bf16.msra.mxu0 %v7535_v46  ;;  %v38_v46 = vld [vmem:[%s10473_s1 + $0x60] sm:$0xff] }
  0x5e   :  { %5482 = vmatpush3.bf16.msra.mxu1 %v7539_v51  ;;  %5300 = vmatprep.subr.bf16.mxu0 %v7541_v18  ;;  %10745 = vst [vmem:[#allocation51_spill] sm:$0xff] %v7598_v56  ;;  %v7604_v51 = vpack.c.bf16 %v36_v30, %v33_v17  ;;  %v32_v18 = vld [vmem:[%s10473_s1 + $0x30] sm:$0xff]  ;;  %v10748_v17 = vrot.slane %v7283_v1, 1  ;;  %v41_v1 = vld [vmem:[%s10473_s1 + $0x78] sm:$0xff] }
  0x5f   :  { %5484 = vmatprep.subr.bf16.mxu1 %v7553_v25  ;;  %v7602_v25 = vpack.c.bf16 %v127_v12, %v124_v7  ;;  %v39_v7 = vld [vmem:[%s10473_s1 + $0x68] sm:$0xff]  ;;  %v42_v12 = vld [vmem:[%s10473_s1 + $0x80] sm:$0xff] }
  0x60   :  { %10747 = vst [vmem:[#allocation53_spill] sm:$0xff] %v7604_v51 }
  0x61   :  { %5302 = vmatpush1.bf16.msra.mxu0 %v7565_v5  ;;  %10746 = vst [vmem:[#allocation52_spill] sm:$0xff] %v7602_v25  ;;  %v35_v5 = vld [vmem:[%s10473_s1 + $0x48] sm:$0xff] }
  0x62   :  { %5486 = vmatpush3.bf16.msra.mxu1 %v7569_v24  ;;  %5360 = vmatprep.subr.bf16.mxu0 %v7571_v27  ;;  %v7629_v30 = vpack.c.bf16 %v35_v5, %v32_v18  ;;  %v7633_v24 = vpack.c.bf16 %v133_v38, %v130_v63  ;;  %v7635_v27 = vpack.c.bf16 %v42_v12, %v39_v7  ;;  %v136_v18 = vld [vmem:[%s10473_s1 + $0x370] sm:$0xff]  ;;  %v139_v5 = vld [vmem:[%s10473_s1 + $0x388] sm:$0xff]  ;;  %v45_v63 = vld [vmem:[%s10473_s1 + $0x98] sm:$0xff] }
  0x63   :  { %5487 = vmatprep.subr.bf16.mxu1 %v10716_v60  ;;  %v48_v38 = vld [vmem:[%s10473_s1 + $0xb0] sm:$0xff]  ;;  %v7660_v7 = vpack.c.bf16 %v41_v1, %v38_v46  ;;  %v7664_v12 = vpack.c.bf16 %v139_v5, %v136_v18  ;;  %v142_v46 = vld [vmem:[%s10473_s1 + $0x3a0] sm:$0xff]  ;;  %v145_v1 = vld [vmem:[%s10473_s1 + $0x3b8] sm:$0xff] }
  0x64   :  { %463 = vmatmul.mubr.f32.vlgmr.msra.gmra.mrb[0].mxu0 %v10748_v17  ;;  %10749 = vst [vmem:[#allocation54_spill] sm:$0xff] %v7629_v30  ;;  %10750 = vst [vmem:[#allocation55_spill] sm:$0xff] %v7633_v24  ;;  %v7666_v17 = vpack.c.bf16 %v48_v38, %v45_v63  ;;  %v51_v18 = vld [vmem:[%s10473_s1 + $0xc8] sm:$0xff]  ;;  %v54_v5 = vld [vmem:[%s10473_s1 + $0xe0] sm:$0xff]  ;;  %v7692_v38 = vpack.c.bf16 %v145_v1, %v142_v46 }
  0x65   :  { %816 = vmatmul.mubr.f32.vlgmr.msra.gmra.mrb[4].mxu1 %v7596_v43  ;;  %5362 = vmatpush1.bf16.msra.mxu0 %v7598_v56  ;;  %10751 = vst [vmem:[#allocation56_spill] sm:$0xff] %v7635_v27  ;;  %10752 = vst [vmem:[#allocation57_spill] sm:$0xff] %v7660_v7  ;;  %v57_v46 = vld [vmem:[%s10473_s1 + $0xf8] sm:$0xff]  ;;  %v60_v1 = vld [vmem:[%s10473_s1 + $0x110] sm:$0xff] }
  0x66   :  { %5489 = vmatpush3.bf16.msra.mxu1 %v7602_v25  ;;  %5364 = vmatprep.subr.bf16.mxu0 %v7604_v51  ;;  %10753 = vst [vmem:[#allocation58_spill] sm:$0xff] %v7664_v12  ;;  %10754 = vst [vmem:[#allocation59_spill] sm:$0xff] %v7666_v17  ;;  %v44_v25 = vld [vmem:[%s10473_s1 + $0x90] sm:$0xff]  ;;  %v74_v51 = vld [vmem:[%s10473_s1 + $0x180] sm:$0xff] }
  0x67   :  { %5490 = vmatprep.subr.bf16.mxu1 %v10716_v60  ;;  %4854 = vmatprep.mubr.msk.f32.mxu1 %vm6701_vm0, %v10724_v55  ;;  %10756 = vst [vmem:[#allocation61_spill] sm:$0xff] %v7692_v38  ;;  %v77_v56 = vld [vmem:[%s10473_s1 + $0x198] sm:$0xff] }
  0x68   :  { %673 = vmatprep.mubr.f32.mxu0 %v7348_v4  ;;  %v47_v4 = vld [vmem:[%s10473_s1 + $0xa8] sm:$0xff] }
  0x69   :  { %5366 = vmatpush1.bf16.msra.mxu0 %v7629_v30  ;;  %v7688_v63 = vpack.c.bf16 %v47_v4, %v44_v25  ;;  %v53_v30 = vld [vmem:[%s10473_s1 + $0xd8] sm:$0xff]  ;;  %v148_v25 = vld [vmem:[%s10473_s1 + $0x3d0] sm:$0xff]  ;;  %v151_v4 = vld [vmem:[%s10473_s1 + $0x3e8] sm:$0xff] }
  0x6a   :  { %5492 = vmatpush3.bf16.msra.mxu1 %v7633_v24  ;;  %5368 = vmatprep.subr.bf16.mxu0 %v7635_v27  ;;  %v7694_v24 = vpack.c.bf16 %v54_v5, %v51_v18  ;;  %v50_v27 = vld [vmem:[%s10473_s1 + $0xc0] sm:$0xff]  ;;  %v7720_v5 = vpack.c.bf16 %v151_v4, %v148_v25  ;;  %v63_v25 = vld [vmem:[%s10473_s1 + $0x128] sm:$0xff] }
  0x6b   :  { %5493 = vmatprep.subr.bf16.mxu1 %v10716_v60  ;;  %10755 = vst [vmem:[#allocation60_spill] sm:$0xff] %v7688_v63  ;;  %v7716_v18 = vpack.c.bf16 %v53_v30, %v50_v27  ;;  %v154_v27 = vld [vmem:[%s10473_s1 + $0x400] sm:$0xff]  ;;  %v157_v30 = vld [vmem:[%s10473_s1 + $0x418] sm:$0xff] }
  0x6c   :  { %10757 = vst [vmem:[#allocation62_spill] sm:$0xff] %v7694_v24  ;;  %10759 = vst [vmem:[#allocation64_spill] sm:$0xff] %v7720_v5  ;;  %v66_v4 = vld [vmem:[%s10473_s1 + $0x140] sm:$0xff] }
  0x6d   :  { %5370 = vmatpush1.bf16.msra.mxu0 %v7660_v7  ;;  %10758 = vst [vmem:[#allocation63_spill] sm:$0xff] %v7716_v18  ;;  %v59_v7 = vld [vmem:[%s10473_s1 + $0x108] sm:$0xff] }
  0x6e   :  { %5495 = vmatpush3.bf16.msra.mxu1 %v7664_v12  ;;  %5372 = vmatprep.subr.bf16.mxu0 %v7666_v17  ;;  %v7722_v12 = vpack.c.bf16 %v60_v1, %v57_v46  ;;  %v56_v17 = vld [vmem:[%s10473_s1 + $0xf0] sm:$0xff]  ;;  %v7748_v1 = vpack.c.bf16 %v157_v30, %v154_v27  ;;  %v69_v27 = vld [vmem:[%s10473_s1 + $0x158] sm:$0xff] }
  0x6f   :  { %5496 = vmatprep.subr.bf16.mxu1 %v10716_v60  ;;  %v7744_v46 = vpack.c.bf16 %v59_v7, %v56_v17  ;;  %v160_v7 = vld [vmem:[%s10473_s1 + $0x430] sm:$0xff]  ;;  %v163_v17 = vld [vmem:[%s10473_s1 + $0x448] sm:$0xff] }
  0x70   :  { %10760 = vst [vmem:[#allocation65_spill] sm:$0xff] %v7722_v12  ;;  %10762 = vst [vmem:[#allocation67_spill] sm:$0xff] %v7748_v1  ;;  %v72_v30 = vld [vmem:[%s10473_s1 + $0x170] sm:$0xff] }
  0x71   :  { %5374 = vmatpush1.bf16.msra.mxu0 %v7688_v63  ;;  %10761 = vst [vmem:[#allocation66_spill] sm:$0xff] %v7744_v46  ;;  %v65_v63 = vld [vmem:[%s10473_s1 + $0x138] sm:$0xff] }
  0x72   :  { %5498 = vmatpush3.bf16.msra.mxu1 %v7692_v38  ;;  %5376 = vmatprep.subr.bf16.mxu0 %v7694_v24  ;;  %v7750_v38 = vpack.c.bf16 %v66_v4, %v63_v25  ;;  %v62_v24 = vld [vmem:[%s10473_s1 + $0x120] sm:$0xff]  ;;  %v7776_v4 = vpack.c.bf16 %v163_v17, %v160_v7  ;;  %v75_v7 = vld [vmem:[%s10473_s1 + $0x188] sm:$0xff] }
  0x73   :  { %5499 = vmatprep.subr.bf16.mxu1 %v10716_v60  ;;  %v7772_v25 = vpack.c.bf16 %v65_v63, %v62_v24  ;;  %v166_v24 = vld [vmem:[%s10473_s1 + $0x460] sm:$0xff]  ;;  %v169_v63 = vld [vmem:[%s10473_s1 + $0x478] sm:$0xff] }
  0x74   :  { %10763 = vst [vmem:[#allocation68_spill] sm:$0xff] %v7750_v38  ;;  %10765 = vst [vmem:[#allocation70_spill] sm:$0xff] %v7776_v4  ;;  %v78_v17 = vld [vmem:[%s10473_s1 + $0x1a0] sm:$0xff] }
  0x75   :  { %5378 = vmatpush1.bf16.msra.mxu0 %v7716_v18  ;;  %10764 = vst [vmem:[#allocation69_spill] sm:$0xff] %v7772_v25  ;;  %v71_v18 = vld [vmem:[%s10473_s1 + $0x168] sm:$0xff] }
  0x76   :  { %5501 = vmatpush3.bf16.msra.mxu1 %v7720_v5  ;;  %5380 = vmatprep.subr.bf16.mxu0 %v7722_v12  ;;  %v7778_v5 = vpack.c.bf16 %v72_v30, %v69_v27  ;;  %v68_v12 = vld [vmem:[%s10473_s1 + $0x150] sm:$0xff]  ;;  %v3984_v30 = vld [vmem:[%s10473_s1 + $0xaa8] sm:$0xff] }
  0x77   :  { %5502 = vmatprep.subr.bf16.mxu1 %v10716_v60  ;;  %v3981_v27 = vld [vmem:[%s10473_s1 + $0xa90] sm:$0xff] }
  0x78   :  { %10766 = vst [vmem:[#allocation71_spill] sm:$0xff] %v7778_v5 }
  0x79   :  { %5382 = vmatpush1.bf16.msra.mxu0 %v7744_v46  ;;  %v7812_v46 = vpack.c.bf16 %v78_v17, %v75_v7  ;;  %v84_v7 = vld [vmem:[%s10473_s1 + $0x1d0] sm:$0xff]  ;;  %v3987_v17 = vld [vmem:[%s10473_s1 + $0xac0] sm:$0xff] }
  0x7a   :  { %5504 = vmatpush3.bf16.msra.mxu1 %v7748_v1  ;;  %5384 = vmatprep.subr.bf16.mxu0 %v7750_v38  ;;  %v7806_v1 = vpack.c.bf16 %v71_v18, %v68_v12  ;;  %v7810_v38 = vpack.c.bf16 %v169_v63, %v166_v24  ;;  %v3933_v12 = vld [vmem:[%s10473_s1 + $0x910] sm:$0xff]  ;;  %v7824_v18 = vpack.c.bf16 %v3984_v30, %v3981_v27  ;;  %v3936_v24 = vld [vmem:[%s10473_s1 + $0x928] sm:$0xff]  ;;  %v81_v63 = vld [vmem:[%s10473_s1 + $0x1b8] sm:$0xff] }
  0x7b   :  { %5505 = vmatprep.subr.bf16.mxu1 %v10716_v60  ;;  %10769 = vst [vmem:[#allocation74_spill] sm:$0xff] %v7812_v46  ;;  %v3990_v27 = vld [vmem:[%s10473_s1 + $0xad8] sm:$0xff]  ;;  %v7844_v30 = vld [vmem:[%s10474_s0 + $0x8] sm:$0x1c]  ;;  %v7858_v36 = vpack.c.bf16 %v84_v7, %v81_v63  ;;  %v90_v63 = vld [vmem:[%s10473_s1 + $0x200] sm:$0xff] }
  0x7c   :  { %10767 = vst [vmem:[#allocation72_spill] sm:$0xff] %v7806_v1  ;;  %10768 = vst [vmem:[#allocation73_spill] sm:$0xff] %v7810_v38 }
  0x7d   :  { %5386 = vmatpush1.bf16.msra.mxu0 %v7772_v25  ;;  %10770 = vst [vmem:[#allocation75_spill] sm:$0xff] %v7824_v18  ;;  %v7856_v25 = vpack.c.bf16 %v3936_v24, %v3933_v12  ;;  %10773 = vst [vmem:[#allocation78_spill] sm:$0xff] %v7858_v36  ;;  %v3942_v12 = vld [vmem:[%s10473_s1 + $0x958] sm:$0xff]  ;;  %v87_v24 = vld [vmem:[%s10473_s1 + $0x1e8] sm:$0xff] }
  0x7e   :  { %5507 = vmatpush3.bf16.msra.mxu1 %v7776_v4  ;;  %5388 = vmatprep.subr.bf16.mxu0 %v7778_v5  ;;  %v7847_v4 = vpack.c.bf16 %v77_v56, %v74_v51  ;;  %v7852_v5 = vld [vmem:[%s10474_s0 + $0x10] sm:$0x7]  ;;  %v83_v51 = vld [vmem:[%s10473_s1 + $0x1c8] sm:$0xff]  ;;  %v3939_v56 = vld [vmem:[%s10473_s1 + $0x940] sm:$0xff]  ;;  %v7896_v7 = vpack.c.bf16 %v90_v63, %v87_v24  ;;  %v10779_v63 = vrot.slane %v7844_v30, 2 }
  0x7f   :  { %5508 = vmatprep.subr.bf16.mxu1 %v10716_v60  ;;  %10772 = vst [vmem:[#allocation77_spill] sm:$0xff] %v7856_v25  ;;  %v96_v24 = vld [vmem:[%s10473_s1 + $0x230] sm:$0xff] }
  0x80   :  { %10771 = vst [vmem:[#allocation76_spill] sm:$0xff] %v7847_v4  ;;  %10777 = vst [vmem:[#allocation82_spill] sm:$0xff] %v7896_v7 }
  0x81   :  { %5390 = vmatpush1.bf16.msra.mxu0 %v7806_v1  ;;  %v86_v1 = vld [vmem:[%s10473_s1 + $0x1e0] sm:$0xff] }
  0x82   :  { %5510 = vmatpush3.bf16.msra.mxu1 %v7810_v38  ;;  %5392 = vmatprep.subr.bf16.mxu0 %v7812_v46  ;;  %v7870_v38 = vpack.c.bf16 %v3990_v27, %v3987_v17  ;;  %v3996_v17 = vld [vmem:[%s10473_s1 + $0xb08] sm:$0xff]  ;;  %v7890_v27 = vpack.c.bf16 %v83_v51, %v80_v42  ;;  %v7894_v46 = vpack.c.bf16 %v3942_v12, %v3939_v56  ;;  %v3945_v42 = vld [vmem:[%s10473_s1 + $0x970] sm:$0xff]  ;;  %v93_v12 = vld [vmem:[%s10473_s1 + $0x218] sm:$0xff] }
  0x83   :  { %5608 = vmatprep.subr.bf16.mxu1 %v7824_v18  ;;  %v3993_v18 = vld [vmem:[%s10473_s1 + $0xaf0] sm:$0xff]  ;;  %v3948_v56 = vld [vmem:[%s10473_s1 + $0x988] sm:$0xff] }
  0x84   :  { %10774 = vst [vmem:[#allocation79_spill] sm:$0xff] %v7870_v38  ;;  %10775 = vst [vmem:[#allocation80_spill] sm:$0xff] %v7890_v27  ;;  %v7908_v51 = vpack.c.bf16 %v3996_v17, %v3993_v18  ;;  %v3999_v18 = vld [vmem:[%s10473_s1 + $0xb20] sm:$0xff]  ;;  %v4002_v17 = vld [vmem:[%s10473_s1 + $0xb38] sm:$0xff] }
  0x85   :  { %5394 = vmatpush1.bf16.msra.mxu0 %v7847_v4  ;;  %4855 = vmatmul.mubr.f32.vlgmr.msra.gmra.mrb[2].mxu1 %v7852_v5  ;;  %10776 = vst [vmem:[#allocation81_spill] sm:$0xff] %v7894_v46  ;;  %v89_v4 = vld [vmem:[%s10473_s1 + $0x1f8] sm:$0xff] }
  0x86   :  { %5610 = vmatpush3.bf16.msra.mxu1 %v7856_v25  ;;  %5396 = vmatprep.subr.bf16.mxu0 %v7858_v36  ;;  %10778 = vst [vmem:[#allocation83_spill] sm:$0xff] %v7908_v51  ;;  %v7932_v25 = vpack.c.bf16 %v3948_v56, %v3945_v42  ;;  %v7934_v36 = vpack.c.bf16 %v96_v24, %v93_v12  ;;  %v3954_v42 = vld [vmem:[%s10473_s1 + $0x9b8] sm:$0xff]  ;;  %v99_v56 = vld [vmem:[%s10473_s1 + $0x248] sm:$0xff]  ;;  %v102_v12 = vld [vmem:[%s10473_s1 + $0x260] sm:$0xff] }
  0x87   :  { %5612 = vmatprep.subr.bf16.mxu1 %v7870_v38  ;;  %1254 = vmatprep.mubr.f32.mxu1 %v10779_v63  ;;  %v7928_v38 = vpack.c.bf16 %v89_v4, %v86_v1  ;;  %v92_v63 = vld [vmem:[%s10473_s1 + $0x210] sm:$0xff]  ;;  %v3951_v1 = vld [vmem:[%s10473_s1 + $0x9a0] sm:$0xff]  ;;  %v7946_v4 = vpack.c.bf16 %v4002_v17, %v3999_v18  ;;  %v4008_v18 = vld [vmem:[%s10473_s1 + $0xb68] sm:$0xff] }
  0x88   :  { %10781 = vst [vmem:[#allocation85_spill] sm:$0xff] %v7932_v25  ;;  %10782 = vst [vmem:[#allocation86_spill] sm:$0xff] %v7934_v36  ;;  %v4005_v24 = vld [vmem:[%s10473_s1 + $0xb50] sm:$0xff]  ;;  %v7964_v17 = vpack.c.bf16 %v95_v20, %v92_v63 }
  0x89   :  { %5398 = vmatpush1.bf16.msra.mxu0 %v7890_v27  ;;  %10780 = vst [vmem:[#allocation84_spill] sm:$0xff] %v7928_v38  ;;  %10783 = vst [vmem:[#allocation87_spill] sm:$0xff] %v7946_v4  ;;  %v101_v27 = vld [vmem:[%s10473_s1 + $0x258] sm:$0xff]  ;;  %v3957_v20 = vld [vmem:[%s10473_s1 + $0x9d0] sm:$0xff]  ;;  %v7982_v63 = vpack.c.bf16 %v4008_v18, %v4005_v24 }
  0x8a   :  { %5614 = vmatpush3.bf16.msra.mxu1 %v7894_v46  ;;  %5400 = vmatprep.subr.bf16.mxu0 %v7896_v7  ;;  %10784 = vst [vmem:[#allocation88_spill] sm:$0xff] %v7964_v17  ;;  %v7970_v46 = vpack.c.bf16 %v102_v12, %v99_v56  ;;  %v98_v7 = vld [vmem:[%s10473_s1 + $0x240] sm:$0xff]  ;;  %v108_v56 = vld [vmem:[%s10473_s1 + $0x290] sm:$0xff]  ;;  %v4014_v24 = vld [vmem:[%s10473_s1 + $0xb98] sm:$0xff] }
  0x8b   :  { %5616 = vmatprep.subr.bf16.mxu1 %v7908_v51  ;;  %v7968_v51 = vpack.c.bf16 %v3954_v42, %v3951_v1  ;;  %10787 = vst [vmem:[#allocation91_spill] sm:$0xff] %v7982_v63  ;;  %v3960_v1 = vld [vmem:[%s10473_s1 + $0x9e8] sm:$0xff]  ;;  %v105_v42 = vld [vmem:[%s10473_s1 + $0x278] sm:$0xff]  ;;  %v4011_v12 = vld [vmem:[%s10473_s1 + $0xb80] sm:$0xff]  ;;  %v8000_v18 = vpack.c.bf16 %v101_v27, %v98_v7 }
  0x8c   :  { %10786 = vst [vmem:[#allocation90_spill] sm:$0xff] %v7970_v46  ;;  %v3963_v7 = vld [vmem:[%s10473_s1 + $0xa00] sm:$0xff]  ;;  %v8018_v27 = vpack.c.bf16 %v4014_v24, %v4011_v12  ;;  %v4020_v12 = vld [vmem:[%s10473_s1 + $0xbc8] sm:$0xff] }
  0x8d   :  { %5402 = vmatpush1.bf16.msra.mxu0 %v7928_v38  ;;  %10785 = vst [vmem:[#allocation89_spill] sm:$0xff] %v7968_v51  ;;  %10788 = vst [vmem:[#allocation92_spill] sm:$0xff] %v8000_v18  ;;  %v107_v38 = vld [vmem:[%s10473_s1 + $0x288] sm:$0xff] }
  0x8e   :  { %5618 = vmatpush3.bf16.msra.mxu1 %v7932_v25  ;;  %5404 = vmatprep.subr.bf16.mxu0 %v7934_v36  ;;  %v8006_v25 = vpack.c.bf16 %v108_v56, %v105_v42  ;;  %v104_v36 = vld [vmem:[%s10473_s1 + $0x270] sm:$0xff]  ;;  %10791 = vst [vmem:[#allocation95_spill] sm:$0xff] %v8018_v27  ;;  %v114_v42 = vld [vmem:[%s10473_s1 + $0x2c0] sm:$0xff] }
  0x8f   :  { %5620 = vmatprep.subr.bf16.mxu1 %v7946_v4  ;;  %v8004_v4 = vpack.c.bf16 %v3960_v1, %v3957_v20  ;;  %v3966_v20 = vld [vmem:[%s10473_s1 + $0xa18] sm:$0xff]  ;;  %v111_v1 = vld [vmem:[%s10473_s1 + $0x2a8] sm:$0xff]  ;;  %v4017_v56 = vld [vmem:[%s10473_s1 + $0xbb0] sm:$0xff]  ;;  %v8036_v24 = vpack.c.bf16 %v107_v38, %v104_v36 }
  0x90   :  { %10790 = vst [vmem:[#allocation94_spill] sm:$0xff] %v8006_v25  ;;  %v3969_v36 = vld [vmem:[%s10473_s1 + $0xa30] sm:$0xff]  ;;  %v8054_v38 = vpack.c.bf16 %v4020_v12, %v4017_v56  ;;  %v4026_v56 = vld [vmem:[%s10473_s1 + $0xbf8] sm:$0xff] }
  0x91   :  { %5406 = vmatpush1.bf16.msra.mxu0 %v7964_v17  ;;  %10789 = vst [vmem:[#allocation93_spill] sm:$0xff] %v8004_v4  ;;  %10792 = vst [vmem:[#allocation96_spill] sm:$0xff] %v8036_v24  ;;  %v113_v17 = vld [vmem:[%s10473_s1 + $0x2b8] sm:$0xff] }
  0x92   :  { %5622 = vmatpush3.bf16.msra.mxu1 %v7968_v51  ;;  %5408 = vmatprep.subr.bf16.mxu0 %v7970_v46  ;;  %v8042_v51 = vpack.c.bf16 %v114_v42, %v111_v1  ;;  %v110_v46 = vld [vmem:[%s10473_s1 + $0x2a0] sm:$0xff]  ;;  %10795 = vst [vmem:[#allocation99_spill] sm:$0xff] %v8054_v38  ;;  %v120_v1 = vld [vmem:[%s10473_s1 + $0x2f0] sm:$0xff] }
  0x93   :  { %5624 = vmatprep.subr.bf16.mxu1 %v7982_v63  ;;  %v8040_v63 = vpack.c.bf16 %v3966_v20, %v3963_v7  ;;  %v3972_v7 = vld [vmem:[%s10473_s1 + $0xa48] sm:$0xff]  ;;  %v117_v20 = vld [vmem:[%s10473_s1 + $0x2d8] sm:$0xff]  ;;  %v4023_v42 = vld [vmem:[%s10473_s1 + $0xbe0] sm:$0xff]  ;;  %v8072_v12 = vpack.c.bf16 %v113_v17, %v110_v46 }
  0x94   :  { %10794 = vst [vmem:[#allocation98_spill] sm:$0xff] %v8042_v51  ;;  %v3975_v46 = vld [vmem:[%s10473_s1 + $0xa60] sm:$0xff]  ;;  %v8090_v17 = vpack.c.bf16 %v4026_v56, %v4023_v42 }
  0x95   :  { %5410 = vmatpush1.bf16.msra.mxu0 %v8000_v18  ;;  %10793 = vst [vmem:[#allocation97_spill] sm:$0xff] %v8040_v63  ;;  %10796 = vst [vmem:[#allocation100_spill] sm:$0xff] %v8072_v12  ;;  %v119_v18 = vld [vmem:[%s10473_s1 + $0x2e8] sm:$0xff]  ;;  %v8107_v42 = vld [vmem:[%s10474_s0] sm:$0x1c] }
  0x96   :  { %5626 = vmatpush3.bf16.msra.mxu1 %v8004_v4  ;;  %5412 = vmatprep.subr.bf16.mxu0 %v8006_v25  ;;  %v8078_v4 = vpack.c.bf16 %v120_v1, %v117_v20  ;;  %v116_v25 = vld [vmem:[%s10473_s1 + $0x2d0] sm:$0xff]  ;;  %10799 = vst [vmem:[#allocation103_spill] sm:$0xff] %v8090_v17  ;;  %v126_v20 = vld [vmem:[%s10473_s1 + $0x320] sm:$0xff] }
  0x97   :  { %5628 = vmatprep.subr.bf16.mxu1 %v8018_v27  ;;  %v8076_v27 = vpack.c.bf16 %v3972_v7, %v3969_v36  ;;  %v3978_v36 = vld [vmem:[%s10473_s1 + $0xa78] sm:$0xff]  ;;  %v123_v7 = vld [vmem:[%s10473_s1 + $0x308] sm:$0xff]  ;;  %v8102_v1 = vpack.c.bf16 %v119_v18, %v116_v25  ;;  %v4029_v18 = vld [vmem:[%s10473_s1 + $0xc10] sm:$0xff] }
  0x98   :  { %10798 = vst [vmem:[#allocation102_spill] sm:$0xff] %v8078_v4  ;;  %v8111_v56 = vpack.c.bf16 %v3978_v36, %v3975_v46  ;;  %v125_v25 = vld [vmem:[%s10473_s1 + $0x318] sm:$0xff]  ;;  %v4032_v46 = vld [vmem:[%s10473_s1 + $0xc28] sm:$0xff] }
  0x99   :  { %5414 = vmatpush1.bf16.msra.mxu0 %v8036_v24  ;;  %10797 = vst [vmem:[#allocation101_spill] sm:$0xff] %v8076_v27  ;;  %10800 = vst [vmem:[#allocation104_spill] sm:$0xff] %v8102_v1  ;;  %v129_v36 = vld [vmem:[%s10473_s1 + $0x338] sm:$0xff] }
  0x9a   :  { %5630 = vmatpush3.bf16.msra.mxu1 %v8040_v63  ;;  %5416 = vmatprep.subr.bf16.mxu0 %v8042_v51  ;;  %10801 = vst [vmem:[#allocation105_spill] sm:$0xff] %v8111_v56  ;;  %v122_v63 = vld [vmem:[%s10473_s1 + $0x300] sm:$0xff]  ;;  %v3934_v51 = vld [vmem:[%s10473_s1 + $0x918] sm:$0xff] }
  0x9b   :  { %5632 = vmatprep.subr.bf16.mxu1 %v8054_v38  ;;  %v8113_v38 = vpack.c.bf16 %v126_v20, %v123_v7  ;;  %v132_v7 = vld [vmem:[%s10473_s1 + $0x350] sm:$0xff]  ;;  %v10586_v20 = vrot.slane %v8107_v42, 2 }
  0x9d   :  { %5418 = vmatpush1.bf16.msra.mxu0 %v8072_v12  ;;  %10802 = vst [vmem:[#allocation106_spill] sm:$0xff] %v8113_v38  ;;  %v128_v12 = vld [vmem:[%s10473_s1 + $0x330] sm:$0xff] }
  0x9e   :  { %5634 = vmatpush3.bf16.msra.mxu1 %v8076_v27  ;;  %5420 = vmatprep.subr.bf16.mxu0 %v8078_v4  ;;  %v8136_v27 = vpack.c.bf16 %v125_v25, %v122_v63  ;;  %v8142_v4 = vpack.c.bf16 %v132_v7, %v129_v36  ;;  %v4035_v63 = vld [vmem:[%s10473_s1 + $0xc40] sm:$0xff]  ;;  %v4038_v25 = vld [vmem:[%s10473_s1 + $0xc58] sm:$0xff] }
  0x9f   :  { %5636 = vmatprep.subr.bf16.mxu1 %v8090_v17  ;;  %v8140_v17 = vpack.c.bf16 %v4032_v46, %v4029_v18  ;;  %v135_v18 = vld [vmem:[%s10473_s1 + $0x368] sm:$0xff]  ;;  %v138_v46 = vld [vmem:[%s10473_s1 + $0x380] sm:$0xff]  ;;  %v8171_v7 = vpack.c.bf16 %v4038_v25, %v4035_v63  ;;  %v141_v63 = vld [vmem:[%s10473_s1 + $0x398] sm:$0xff] }
  0xa0   :  { %10803 = vst [vmem:[#allocation107_spill] sm:$0xff] %v8136_v27  ;;  %10805 = vst [vmem:[#allocation109_spill] sm:$0xff] %v8142_v4  ;;  %v144_v25 = vld [vmem:[%s10473_s1 + $0x3b0] sm:$0xff] }
  0xa1   :  { %5422 = vmatpush1.bf16.msra.mxu0 %v8102_v1  ;;  %10804 = vst [vmem:[#allocation108_spill] sm:$0xff] %v8140_v17  ;;  %v131_v1 = vld [vmem:[%s10473_s1 + $0x348] sm:$0xff]  ;;  %10807 = vst [vmem:[#allocation111_spill] sm:$0xff] %v8171_v7 }
  0xa2   :  { %5638 = vmatpush3.bf16.msra.mxu1 %v8111_v56  ;;  %5424 = vmatprep.subr.bf16.mxu0 %v8113_v38  ;;  %v8167_v36 = vpack.c.bf16 %v131_v1, %v128_v12  ;;  %v8173_v56 = vpack.c.bf16 %v138_v46, %v135_v18  ;;  %v134_v38 = vld [vmem:[%s10473_s1 + $0x360] sm:$0xff]  ;;  %v4041_v12 = vld [vmem:[%s10473_s1 + $0xc70] sm:$0xff]  ;;  %v4044_v1 = vld [vmem:[%s10473_s1 + $0xc88] sm:$0xff] }
  0xa3   :  { %5639 = vmatprep.subr.bf16.mxu1 %v10716_v60  ;;  %v8202_v46 = vpack.c.bf16 %v4044_v1, %v4041_v12  ;;  %v147_v12 = vld [vmem:[%s10473_s1 + $0x3c8] sm:$0xff]  ;;  %v150_v1 = vld [vmem:[%s10473_s1 + $0x3e0] sm:$0xff] }
  0xa4   :  { %674 = vmatmul.mubr.f32.vlgmr.msra.gmra.mrb[0].mxu0 %v7596_v43  ;;  %10806 = vst [vmem:[#allocation110_spill] sm:$0xff] %v8167_v36  ;;  %10808 = vst [vmem:[#allocation112_spill] sm:$0xff] %v8173_v56  ;;  %v137_v43 = vld [vmem:[%s10473_s1 + $0x378] sm:$0xff] }
  0xa5   :  { %1255 = vmatmul.mubr.f32.vlgmr.msra.gmra.mrb[6].mxu1 %v10586_v20  ;;  %5426 = vmatpush1.bf16.msra.mxu0 %v8136_v27  ;;  %v8198_v18 = vpack.c.bf16 %v137_v43, %v134_v38  ;;  %10810 = vst [vmem:[#allocation114_spill] sm:$0xff] %v8202_v46  ;;  %v8204_v20 = vpack.c.bf16 %v144_v25, %v141_v63  ;;  %v4047_v38 = vld [vmem:[%s10473_s1 + $0xca0] sm:$0xff]  ;;  %v4050_v43 = vld [vmem:[%s10473_s1 + $0xcb8] sm:$0xff] }
  0xa6   :  { %5641 = vmatpush3.bf16.msra.mxu1 %v8140_v17  ;;  %5428 = vmatprep.subr.bf16.mxu0 %v8142_v4  ;;  %v140_v17 = vld [vmem:[%s10473_s1 + $0x390] sm:$0xff]  ;;  %v143_v4 = vld [vmem:[%s10473_s1 + $0x3a8] sm:$0xff]  ;;  %v8230_v25 = vpack.c.bf16 %v4050_v43, %v4047_v38  ;;  %v153_v38 = vld [vmem:[%s10473_s1 + $0x3f8] sm:$0xff] }
  0xa7   :  { %5642 = vmatprep.subr.bf16.mxu1 %v10716_v60  ;;  %744 = vmatprep.mubr.f32.mxu0 %v10724_v55  ;;  %10809 = vst [vmem:[#allocation113_spill] sm:$0xff] %v8198_v18  ;;  %10811 = vst [vmem:[#allocation115_spill] sm:$0xff] %v8204_v20  ;;  %v8226_v63 = vpack.c.bf16 %v143_v4, %v140_v17  ;;  %v4053_v4 = vld [vmem:[%s10473_s1 + $0xcd0] sm:$0xff]  ;;  %v4056_v17 = vld [vmem:[%s10473_s1 + $0xce8] sm:$0xff] }
  0xa8   :  { %4889 = vmatprep.mubr.msk.f32.mxu1 %vm6701_vm0, %v10724_v55  ;;  %10813 = vst [vmem:[#allocation117_spill] sm:$0xff] %v8230_v25  ;;  %v156_v43 = vld [vmem:[%s10473_s1 + $0x410] sm:$0xff] }
  0xa9   :  { %5430 = vmatpush1.bf16.msra.mxu0 %v8167_v36  ;;  %10812 = vst [vmem:[#allocation116_spill] sm:$0xff] %v8226_v63  ;;  %v149_v36 = vld [vmem:[%s10473_s1 + $0x3d8] sm:$0xff] }
  0xaa   :  { %5644 = vmatpush3.bf16.msra.mxu1 %v8171_v7  ;;  %5432 = vmatprep.subr.bf16.mxu0 %v8173_v56  ;;  %v8232_v7 = vpack.c.bf16 %v150_v1, %v147_v12  ;;  %v146_v56 = vld [vmem:[%s10473_s1 + $0x3c0] sm:$0xff]  ;;  %v8258_v1 = vpack.c.bf16 %v4056_v17, %v4053_v4  ;;  %v159_v4 = vld [vmem:[%s10473_s1 + $0x428] sm:$0xff] }
  0xab   :  { %5645 = vmatprep.subr.bf16.mxu1 %v10716_v60  ;;  %v8254_v12 = vpack.c.bf16 %v149_v36, %v146_v56  ;;  %v4059_v56 = vld [vmem:[%s10473_s1 + $0xd00] sm:$0xff]  ;;  %v4062_v36 = vld [vmem:[%s10473_s1 + $0xd18] sm:$0xff] }
  0xac   :  { %10814 = vst [vmem:[#allocation118_spill] sm:$0xff] %v8232_v7  ;;  %10816 = vst [vmem:[#allocation120_spill] sm:$0xff] %v8258_v1  ;;  %v162_v17 = vld [vmem:[%s10473_s1 + $0x440] sm:$0xff] }
  0xad   :  { %5434 = vmatpush1.bf16.msra.mxu0 %v8198_v18  ;;  %10815 = vst [vmem:[#allocation119_spill] sm:$0xff] %v8254_v12  ;;  %v155_v18 = vld [vmem:[%s10473_s1 + $0x408] sm:$0xff] }
  0xae   :  { %5647 = vmatpush3.bf16.msra.mxu1 %v8202_v46  ;;  %5436 = vmatprep.subr.bf16.mxu0 %v8204_v20  ;;  %v8260_v46 = vpack.c.bf16 %v156_v43, %v153_v38  ;;  %v152_v20 = vld [vmem:[%s10473_s1 + $0x3f0] sm:$0xff]  ;;  %v8286_v43 = vpack.c.bf16 %v4062_v36, %v4059_v56  ;;  %v165_v56 = vld [vmem:[%s10473_s1 + $0x458] sm:$0xff] }
  0xaf   :  { %5648 = vmatprep.subr.bf16.mxu1 %v10716_v60  ;;  %v8282_v38 = vpack.c.bf16 %v155_v18, %v152_v20  ;;  %v4065_v20 = vld [vmem:[%s10473_s1 + $0xd30] sm:$0xff]  ;;  %v4068_v18 = vld [vmem:[%s10473_s1 + $0xd48] sm:$0xff] }
  0xb0   :  { %10817 = vst [vmem:[#allocation121_spill] sm:$0xff] %v8260_v46  ;;  %10819 = vst [vmem:[#allocation123_spill] sm:$0xff] %v8286_v43  ;;  %v168_v36 = vld [vmem:[%s10473_s1 + $0x470] sm:$0xff] }
  0xb1   :  { %5438 = vmatpush1.bf16.msra.mxu0 %v8226_v63  ;;  %10818 = vst [vmem:[#allocation122_spill] sm:$0xff] %v8282_v38  ;;  %v161_v63 = vld [vmem:[%s10473_s1 + $0x438] sm:$0xff] }
  0xb2   :  { %5650 = vmatpush3.bf16.msra.mxu1 %v8230_v25  ;;  %5440 = vmatprep.subr.bf16.mxu0 %v8232_v7  ;;  %v8288_v25 = vpack.c.bf16 %v162_v17, %v159_v4  ;;  %v158_v7 = vld [vmem:[%s10473_s1 + $0x420] sm:$0xff]  ;;  %v8314_v17 = vpack.c.bf16 %v4068_v18, %v4065_v20  ;;  %v3932_v20 = vld [vmem:[%s10473_s1 + $0x908] sm:$0xff] }
  0xb3   :  { %5651 = vmatprep.subr.bf16.mxu1 %v10716_v60  ;;  %v8310_v4 = vpack.c.bf16 %v161_v63, %v158_v7  ;;  %v4071_v7 = vld [vmem:[%s10473_s1 + $0xd60] sm:$0xff]  ;;  %v4074_v63 = vld [vmem:[%s10473_s1 + $0xd78] sm:$0xff] }
  0xb4   :  { %10820 = vst [vmem:[#allocation124_spill] sm:$0xff] %v8288_v25  ;;  %10822 = vst [vmem:[#allocation126_spill] sm:$0xff] %v8314_v17  ;;  %v3935_v18 = vld [vmem:[%s10473_s1 + $0x920] sm:$0xff] }
  0xb5   :  { %5442 = vmatpush1.bf16.msra.mxu0 %v8254_v12  ;;  %10821 = vst [vmem:[#allocation125_spill] sm:$0xff] %v8310_v4  ;;  %v167_v12 = vld [vmem:[%s10473_s1 + $0x468] sm:$0xff]  ;;  %v8353_v27 = vpack.c.bf16 %v3935_v18, %v3932_v20  ;;  %v3941_v20 = vld [vmem:[%s10473_s1 + $0x950] sm:$0xff]  ;;  %v4131_v18 = vld [vmem:[%s10473_s1 + $0xf40] sm:$0xff] }
  0xb6   :  { %5653 = vmatpush3.bf16.msra.mxu1 %v8258_v1  ;;  %5444 = vmatprep.subr.bf16.mxu0 %v8260_v46  ;;  %v8316_v1 = vpack.c.bf16 %v168_v36, %v165_v56  ;;  %v164_v46 = vld [vmem:[%s10473_s1 + $0x450] sm:$0xff]  ;;  %v4128_v36 = vld [vmem:[%s10473_s1 + $0xf28] sm:$0xff] }
  0xb7   :  { %5654 = vmatprep.subr.bf16.mxu1 %v10716_v60  ;;  %v4125_v56 = vld [vmem:[%s10473_s1 + $0xf10] sm:$0xff] }
  0xb8   :  { %10823 = vst [vmem:[#allocation127_spill] sm:$0xff] %v8316_v1 }
  0xb9   :  { %5446 = vmatpush1.bf16.msra.mxu0 %v8282_v38  ;;  %v8351_v38 = vpack.c.bf16 %v4074_v63, %v4071_v7  ;;  %v4080_v7 = vld [vmem:[%s10473_s1 + $0xda8] sm:$0xff]  ;;  %v3938_v63 = vld [vmem:[%s10473_s1 + $0x938] sm:$0xff] }
  0xba   :  { %5656 = vmatpush3.bf16.msra.mxu1 %v8286_v43  ;;  %5448 = vmatprep.subr.bf16.mxu0 %v8288_v25  ;;  %v8344_v43 = vpack.c.bf16 %v167_v12, %v164_v46  ;;  %v3931_v25 = vld [vmem:[%s10473_s1 + $0x900] sm:$0xff]  ;;  %v8361_v46 = vld [vmem:[%s10474_s0 + $0x10] sm:$0x1c]  ;;  %v8397_v29 = vpack.c.bf16 %v3941_v20, %v3938_v63 }
  0xbb   :  { %5657 = vmatprep.subr.bf16.mxu1 %v10716_v60  ;;  %10825 = vst [vmem:[#allocation129_spill] sm:$0xff] %v8351_v38  ;;  %v4077_v12 = vld [vmem:[%s10473_s1 + $0xd90] sm:$0xff]  ;;  %v3947_v63 = vld [vmem:[%s10473_s1 + $0x980] sm:$0xff] }
  0xbc   :  { %10824 = vst [vmem:[#allocation128_spill] sm:$0xff] %v8344_v43  ;;  %v8395_v24 = vpack.c.bf16 %v4080_v7, %v4077_v12  ;;  %10829 = vst [vmem:[#allocation133_spill] sm:$0xff] %v8397_v29  ;;  %v4086_v12 = vld [vmem:[%s10473_s1 + $0xdd8] sm:$0xff]  ;;  %v3944_v7 = vld [vmem:[%s10473_s1 + $0x968] sm:$0xff] }
  0xbd   :  { %5450 = vmatpush1.bf16.msra.mxu0 %v8310_v4  ;;  %v10616_v4 = vrot.slane %v8361_v46, 2  ;;  %v8437_v20 = vpack.c.bf16 %v3947_v63, %v3944_v7  ;;  %v3953_v7 = vld [vmem:[%s10473_s1 + $0x9b0] sm:$0xff] }
  0xbe   :  { %5659 = vmatpush3.bf16.msra.mxu1 %v8314_v17  ;;  %5452 = vmatprep.subr.bf16.mxu0 %v8316_v1  ;;  %v8367_v17 = vpack.c.bf16 %v4128_v36, %v4125_v56  ;;  %v4134_v56 = vld [vmem:[%s10473_s1 + $0xf58] sm:$0xff]  ;;  %v8387_v36 = vld [vmem:[%s10474_s0 + $0x8] sm:$0x38]  ;;  %v8390_v1 = vpack.c.bf16 %v3934_v51, %v3931_v25  ;;  %10828 = vst [vmem:[#allocation132_spill] sm:$0xff] %v8395_v24  ;;  %v4083_v51 = vld [vmem:[%s10473_s1 + $0xdc0] sm:$0xff] }
  0xbf   :  { %5660 = vmatprep.subr.bf16.mxu1 %v10716_v60  ;;  %v8409_v25 = vpack.c.bf16 %v4134_v56, %v4131_v18  ;;  %v4137_v18 = vld [vmem:[%s10473_s1 + $0xf70] sm:$0xff]  ;;  %v4140_v56 = vld [vmem:[%s10473_s1 + $0xf88] sm:$0xff]  ;;  %10832 = vst [vmem:[#allocation136_spill] sm:$0xff] %v8437_v20  ;;  %v10834_v63 = vrot.slane %v8387_v36, 3 }
  0xc0   :  { %10826 = vst [vmem:[#allocation130_spill] sm:$0xff] %v8367_v17  ;;  %10827 = vst [vmem:[#allocation131_spill] sm:$0xff] %v8390_v1 }
  0xc1   :  { %5454 = vmatpush1.bf16.msra.mxu0 %v8344_v43  ;;  %v3940_v43 = vld [vmem:[%s10473_s1 + $0x948] sm:$0xff]  ;;  %10830 = vst [vmem:[#allocation134_spill] sm:$0xff] %v8409_v25 }
  0xc2   :  { %5662 = vmatpush3.bf16.msra.mxu1 %v8351_v38  ;;  %5512 = vmatprep.subr.bf16.mxu0 %v8353_v27  ;;  %v3943_v38 = vld [vmem:[%s10473_s1 + $0x960] sm:$0xff] }
  0xc3   :  { %5760 = vmatprep.subr.bf16.mxu1 %v8367_v17  ;;  %v8431_v17 = vpack.c.bf16 %v3940_v43, %v3937_v32  ;;  %v4089_v32 = vld [vmem:[%s10473_s1 + $0xdf0] sm:$0xff]  ;;  %v8449_v43 = vpack.c.bf16 %v4140_v56, %v4137_v18  ;;  %v4143_v18 = vld [vmem:[%s10473_s1 + $0xfa0] sm:$0xff]  ;;  %v4146_v56 = vld [vmem:[%s10473_s1 + $0xfb8] sm:$0xff] }
  0xc4   :  { %745 = vmatmul.mubr.f32.vlgmr.msra.gmra.mrb[0].mxu0 %v7852_v5  ;;  %v8435_v5 = vpack.c.bf16 %v4086_v12, %v4083_v51  ;;  %v4092_v51 = vld [vmem:[%s10473_s1 + $0xe08] sm:$0xff]  ;;  %v3950_v12 = vld [vmem:[%s10473_s1 + $0x998] sm:$0xff] }
  0xc5   :  { %5514 = vmatpush1.bf16.msra.mxu0 %v8390_v1  ;;  %4890 = vmatmul.mubr.f32.vlgmr.msra.gmra.mrb[2].mxu1 %v10616_v4  ;;  %v3946_v1 = vld [vmem:[%s10473_s1 + $0x978] sm:$0xff]  ;;  %10833 = vst [vmem:[#allocation137_spill] sm:$0xff] %v8449_v43  ;;  %v10835_v4 = vrot.slane %v7844_v30, 2  ;;  %v3952_v30 = vld [vmem:[%s10473_s1 + $0x9a8] sm:$0xff] }
  0xc6   :  { %5762 = vmatpush3.bf16.msra.mxu1 %v8395_v24  ;;  %5516 = vmatprep.subr.bf16.mxu0 %v8397_v29  ;;  %10831 = vst [vmem:[#allocation135_spill] sm:$0xff] %v8435_v5  ;;  %v8477_v24 = vpack.c.bf16 %v3953_v7, %v3950_v12  ;;  %v3949_v29 = vld [vmem:[%s10473_s1 + $0x990] sm:$0xff]  ;;  %v4152_v7 = vld [vmem:[%s10473_s1 + $0xfe8] sm:$0xff] }
  0xc7   :  { %5764 = vmatprep.subr.bf16.mxu1 %v8409_v25  ;;  %1696 = vmatprep.mubr.f32.mxu1 %v10834_v63  ;;  %v8471_v25 = vpack.c.bf16 %v3946_v1, %v3943_v38  ;;  %v8475_v63 = vpack.c.bf16 %v4092_v51, %v4089_v32  ;;  %v4095_v1 = vld [vmem:[%s10473_s1 + $0xe20] sm:$0xff]  ;;  %v8489_v38 = vpack.c.bf16 %v4146_v56, %v4143_v18  ;;  %v3956_v32 = vld [vmem:[%s10473_s1 + $0x9c8] sm:$0xff]  ;;  %v4149_v12 = vld [vmem:[%s10473_s1 + $0xfd0] sm:$0xff] }
  0xc8   :  { %1112 = vmatprep.mubr.f32.mxu0 %v10835_v4  ;;  %10838 = vst [vmem:[#allocation140_spill] sm:$0xff] %v8477_v24  ;;  %v4098_v4 = vld [vmem:[%s10473_s1 + $0xe38] sm:$0xff]  ;;  %v3959_v51 = vld [vmem:[%s10473_s1 + $0x9e0] sm:$0xff]  ;;  %v8507_v18 = vpack.c.bf16 %v3952_v30, %v3949_v29  ;;  %v4101_v29 = vld [vmem:[%s10473_s1 + $0xe50] sm:$0xff]  ;;  %v8525_v30 = vpack.c.bf16 %v4152_v7, %v4149_v12 }
  0xc9   :  { %5518 = vmatpush1.bf16.msra.mxu0 %v8431_v17  ;;  %10836 = vst [vmem:[#allocation138_spill] sm:$0xff] %v8471_v25  ;;  %10837 = vst [vmem:[#allocation139_spill] sm:$0xff] %v8475_v63  ;;  %v8511_v56 = vpack.c.bf16 %v4098_v4, %v4095_v1  ;;  %v4104_v1 = vld [vmem:[%s10473_s1 + $0xe68] sm:$0xff]  ;;  %v3962_v4 = vld [vmem:[%s10473_s1 + $0x9f8] sm:$0xff] }
  0xca   :  { %5766 = vmatpush3.bf16.msra.mxu1 %v8435_v5  ;;  %5520 = vmatprep.subr.bf16.mxu0 %v8437_v20  ;;  %10839 = vst [vmem:[#allocation141_spill] sm:$0xff] %v8489_v38  ;;  %10840 = vst [vmem:[#allocation142_spill] sm:$0xff] %v8507_v18  ;;  %v3955_v5 = vld [vmem:[%s10473_s1 + $0x9c0] sm:$0xff]  ;;  %v3958_v20 = vld [vmem:[%s10473_s1 + $0x9d8] sm:$0xff] }
  0xcb   :  { %5768 = vmatprep.subr.bf16.mxu1 %v8449_v43  ;;  %10841 = vst [vmem:[#allocation143_spill] sm:$0xff] %v8511_v56  ;;  %v8513_v43 = vpack.c.bf16 %v3959_v51, %v3956_v32  ;;  %10843 = vst [vmem:[#allocation145_spill] sm:$0xff] %v8525_v30  ;;  %v3965_v32 = vld [vmem:[%s10473_s1 + $0xa10] sm:$0xff]  ;;  %v4155_v51 = vld [vmem:[%s10473_s1 + $0x1000] sm:$0xff]  ;;  %v8543_v7 = vpack.c.bf16 %v3958_v20, %v3955_v5 }
  0xcc   :  { %v4158_v12 = vld [vmem:[%s10473_s1 + $0x1018] sm:$0xff]  ;;  %v4107_v20 = vld [vmem:[%s10473_s1 + $0xe80] sm:$0xff] }
  0xcd   :  { %5522 = vmatpush1.bf16.msra.mxu0 %v8471_v25  ;;  %10842 = vst [vmem:[#allocation144_spill] sm:$0xff] %v8513_v43  ;;  %10844 = vst [vmem:[#allocation146_spill] sm:$0xff] %v8543_v7  ;;  %v3964_v25 = vld [vmem:[%s10473_s1 + $0xa08] sm:$0xff]  ;;  %v8561_v5 = vpack.c.bf16 %v4158_v12, %v4155_v51 }
  0xce   :  { %5770 = vmatpush3.bf16.msra.mxu1 %v8475_v63  ;;  %5524 = vmatprep.subr.bf16.mxu0 %v8477_v24  ;;  %v8549_v63 = vpack.c.bf16 %v3965_v32, %v3962_v4  ;;  %v3961_v24 = vld [vmem:[%s10473_s1 + $0x9f0] sm:$0xff]  ;;  %v3971_v4 = vld [vmem:[%s10473_s1 + $0xa40] sm:$0xff]  ;;  %v4164_v51 = vld [vmem:[%s10473_s1 + $0x1048] sm:$0xff] }
  0xcf   :  { %5772 = vmatprep.subr.bf16.mxu1 %v8489_v38  ;;  %v8547_v38 = vpack.c.bf16 %v4104_v1, %v4101_v29  ;;  %10847 = vst [vmem:[#allocation149_spill] sm:$0xff] %v8561_v5  ;;  %v4110_v29 = vld [vmem:[%s10473_s1 + $0xe98] sm:$0xff]  ;;  %v3968_v1 = vld [vmem:[%s10473_s1 + $0xa28] sm:$0xff]  ;;  %v4161_v32 = vld [vmem:[%s10473_s1 + $0x1030] sm:$0xff]  ;;  %v8579_v12 = vpack.c.bf16 %v3964_v25, %v3961_v24 }
  0xd0   :  { %10846 = vst [vmem:[#allocation148_spill] sm:$0xff] %v8549_v63  ;;  %v4113_v24 = vld [vmem:[%s10473_s1 + $0xeb0] sm:$0xff]  ;;  %v8597_v25 = vpack.c.bf16 %v4164_v51, %v4161_v32  ;;  %v4170_v32 = vld [vmem:[%s10473_s1 + $0x1078] sm:$0xff] }
  0xd1   :  { %5526 = vmatpush1.bf16.msra.mxu0 %v8507_v18  ;;  %10845 = vst [vmem:[#allocation147_spill] sm:$0xff] %v8547_v38  ;;  %10848 = vst [vmem:[#allocation150_spill] sm:$0xff] %v8579_v12  ;;  %v3970_v18 = vld [vmem:[%s10473_s1 + $0xa38] sm:$0xff] }
  0xd2   :  { %5774 = vmatpush3.bf16.msra.mxu1 %v8511_v56  ;;  %5528 = vmatprep.subr.bf16.mxu0 %v8513_v43  ;;  %v8585_v56 = vpack.c.bf16 %v3971_v4, %v3968_v1  ;;  %v3967_v43 = vld [vmem:[%s10473_s1 + $0xa20] sm:$0xff]  ;;  %10851 = vst [vmem:[#allocation153_spill] sm:$0xff] %v8597_v25  ;;  %v3977_v1 = vld [vmem:[%s10473_s1 + $0xa70] sm:$0xff] }
  0xd3   :  { %5776 = vmatprep.subr.bf16.mxu1 %v8525_v30  ;;  %v8583_v30 = vpack.c.bf16 %v4110_v29, %v4107_v20  ;;  %v4116_v20 = vld [vmem:[%s10473_s1 + $0xec8] sm:$0xff]  ;;  %v3974_v29 = vld [vmem:[%s10473_s1 + $0xa58] sm:$0xff]  ;;  %v4167_v4 = vld [vmem:[%s10473_s1 + $0x1060] sm:$0xff]  ;;  %v8615_v51 = vpack.c.bf16 %v3970_v18, %v3967_v43 }
  0xd4   :  { %10850 = vst [vmem:[#allocation152_spill] sm:$0xff] %v8585_v56  ;;  %v4119_v43 = vld [vmem:[%s10473_s1 + $0xee0] sm:$0xff]  ;;  %v8633_v18 = vpack.c.bf16 %v4170_v32, %v4167_v4 }
  0xd5   :  { %5530 = vmatpush1.bf16.msra.mxu0 %v8543_v7  ;;  %10849 = vst [vmem:[#allocation151_spill] sm:$0xff] %v8583_v30  ;;  %10852 = vst [vmem:[#allocation154_spill] sm:$0xff] %v8615_v51  ;;  %v3976_v7 = vld [vmem:[%s10473_s1 + $0xa68] sm:$0xff]  ;;  %v8650_v4 = vld [vmem:[%s10474_s0] sm:$0x38] }
  0xd6   :  { %5778 = vmatpush3.bf16.msra.mxu1 %v8547_v38  ;;  %5532 = vmatprep.subr.bf16.mxu0 %v8549_v63  ;;  %v8621_v38 = vpack.c.bf16 %v3977_v1, %v3974_v29  ;;  %v3973_v63 = vld [vmem:[%s10473_s1 + $0xa50] sm:$0xff]  ;;  %10855 = vst [vmem:[#allocation157_spill] sm:$0xff] %v8633_v18  ;;  %v3983_v29 = vld [vmem:[%s10473_s1 + $0xaa0] sm:$0xff] }
  0xd7   :  { %5780 = vmatprep.subr.bf16.mxu1 %v8561_v5  ;;  %v8619_v5 = vpack.c.bf16 %v4116_v20, %v4113_v24  ;;  %v4122_v24 = vld [vmem:[%s10473_s1 + $0xef8] sm:$0xff]  ;;  %v3980_v20 = vld [vmem:[%s10473_s1 + $0xa88] sm:$0xff]  ;;  %v8645_v1 = vpack.c.bf16 %v3976_v7, %v3973_v63  ;;  %v4173_v7 = vld [vmem:[%s10473_s1 + $0x1090] sm:$0xff] }
  0xd8   :  { %10854 = vst [vmem:[#allocation156_spill] sm:$0xff] %v8621_v38  ;;  %v8654_v32 = vpack.c.bf16 %v4122_v24, %v4119_v43  ;;  %v3982_v63 = vld [vmem:[%s10473_s1 + $0xa98] sm:$0xff]  ;;  %v4176_v43 = vld [vmem:[%s10473_s1 + $0x10a8] sm:$0xff] }
  0xd9   :  { %5534 = vmatpush1.bf16.msra.mxu0 %v8579_v12  ;;  %10853 = vst [vmem:[#allocation155_spill] sm:$0xff] %v8619_v5  ;;  %10856 = vst [vmem:[#allocation158_spill] sm:$0xff] %v8645_v1  ;;  %v3986_v24 = vld [vmem:[%s10473_s1 + $0xab8] sm:$0xff]  ;;  %v4021_v12 = vld [vmem:[%s10473_s1 + $0xbd0] sm:$0xff] }
  0xda   :  { %5782 = vmatpush3.bf16.msra.mxu1 %v8583_v30  ;;  %5536 = vmatprep.subr.bf16.mxu0 %v8585_v56  ;;  %10857 = vst [vmem:[#allocation159_spill] sm:$0xff] %v8654_v32  ;;  %v3979_v30 = vld [vmem:[%s10473_s1 + $0xa80] sm:$0xff] }
  0xdb   :  { %5784 = vmatprep.subr.bf16.mxu1 %v8597_v25  ;;  %v8656_v25 = vpack.c.bf16 %v3983_v29, %v3980_v20  ;;  %v3989_v20 = vld [vmem:[%s10473_s1 + $0xad0] sm:$0xff]  ;;  %v10644_v29 = vrot.slane %v8650_v4, 3 }
  0xdd   :  { %5538 = vmatpush1.bf16.msra.mxu0 %v8615_v51  ;;  %10858 = vst [vmem:[#allocation160_spill] sm:$0xff] %v8656_v25  ;;  %v3985_v51 = vld [vmem:[%s10473_s1 + $0xab0] sm:$0xff] }
  0xde   :  { %5786 = vmatpush3.bf16.msra.mxu1 %v8619_v5  ;;  %5540 = vmatprep.subr.bf16.mxu0 %v8621_v38  ;;  %v8679_v5 = vpack.c.bf16 %v3982_v63, %v3979_v30  ;;  %v8685_v38 = vpack.c.bf16 %v3989_v20, %v3986_v24  ;;  %v4179_v30 = vld [vmem:[%s10473_s1 + $0x10c0] sm:$0xff]  ;;  %v4182_v63 = vld [vmem:[%s10473_s1 + $0x10d8] sm:$0xff] }
  0xdf   :  { %5788 = vmatprep.subr.bf16.mxu1 %v8633_v18  ;;  %v8683_v18 = vpack.c.bf16 %v4176_v43, %v4173_v7  ;;  %v3992_v7 = vld [vmem:[%s10473_s1 + $0xae8] sm:$0xff]  ;;  %v3995_v43 = vld [vmem:[%s10473_s1 + $0xb00] sm:$0xff]  ;;  %v8713_v20 = vpack.c.bf16 %v4182_v63, %v4179_v30  ;;  %v3998_v30 = vld [vmem:[%s10473_s1 + $0xb18] sm:$0xff] }
  0xe0   :  { %10859 = vst [vmem:[#allocation161_spill] sm:$0xff] %v8679_v5  ;;  %10861 = vst [vmem:[#allocation163_spill] sm:$0xff] %v8685_v38  ;;  %v4001_v63 = vld [vmem:[%s10473_s1 + $0xb30] sm:$0xff] }
  0xe1   :  { %5542 = vmatpush1.bf16.msra.mxu0 %v8645_v1  ;;  %10860 = vst [vmem:[#allocation162_spill] sm:$0xff] %v8683_v18  ;;  %v3988_v1 = vld [vmem:[%s10473_s1 + $0xac8] sm:$0xff]  ;;  %10863 = vst [vmem:[#allocation165_spill] sm:$0xff] %v8713_v20 }
  0xe2   :  { %5790 = vmatpush3.bf16.msra.mxu1 %v8654_v32  ;;  %5544 = vmatprep.subr.bf16.mxu0 %v8656_v25  ;;  %v8709_v24 = vpack.c.bf16 %v3988_v1, %v3985_v51  ;;  %v8715_v32 = vpack.c.bf16 %v3995_v43, %v3992_v7  ;;  %v3991_v25 = vld [vmem:[%s10473_s1 + $0xae0] sm:$0xff]  ;;  %v4185_v51 = vld [vmem:[%s10473_s1 + $0x10f0] sm:$0xff]  ;;  %v4188_v1 = vld [vmem:[%s10473_s1 + $0x1108] sm:$0xff] }
  0xe3   :  { %5791 = vmatprep.subr.bf16.mxu1 %v10716_v60  ;;  %v8743_v43 = vpack.c.bf16 %v4188_v1, %v4185_v51  ;;  %v4004_v51 = vld [vmem:[%s10473_s1 + $0xb48] sm:$0xff]  ;;  %v4007_v1 = vld [vmem:[%s10473_s1 + $0xb60] sm:$0xff] }
  0xe4   :  { %10862 = vst [vmem:[#allocation164_spill] sm:$0xff] %v8709_v24  ;;  %10864 = vst [vmem:[#allocation166_spill] sm:$0xff] %v8715_v32 }
  0xe5   :  { %1697 = vmatmul.mubr.f32.vlgmr.msra.gmra.mrb[8].mxu1 %v10644_v29  ;;  %5546 = vmatpush1.bf16.msra.mxu0 %v8679_v5  ;;  %v3994_v29 = vld [vmem:[%s10473_s1 + $0xaf8] sm:$0xff]  ;;  %10866 = vst [vmem:[#allocation168_spill] sm:$0xff] %v8743_v43  ;;  %v4000_v5 = vld [vmem:[%s10473_s1 + $0xb28] sm:$0xff] }
  0xe6   :  { %5793 = vmatpush3.bf16.msra.mxu1 %v8683_v18  ;;  %5548 = vmatprep.subr.bf16.mxu0 %v8685_v38  ;;  %v8739_v7 = vpack.c.bf16 %v3994_v29, %v3991_v25  ;;  %v8745_v18 = vpack.c.bf16 %v4001_v63, %v3998_v30  ;;  %v3997_v38 = vld [vmem:[%s10473_s1 + $0xb10] sm:$0xff]  ;;  %v4191_v25 = vld [vmem:[%s10473_s1 + $0x1120] sm:$0xff]  ;;  %v4194_v29 = vld [vmem:[%s10473_s1 + $0x1138] sm:$0xff] }
  0xe7   :  { %5794 = vmatprep.subr.bf16.mxu1 %v10716_v60  ;;  %4924 = vmatprep.mubr.msk.f32.mxu1 %vm6701_vm0, %v10724_v55  ;;  %v8767_v30 = vpack.c.bf16 %v4000_v5, %v3997_v38  ;;  %v8771_v63 = vpack.c.bf16 %v4194_v29, %v4191_v25  ;;  %v4197_v38 = vld [vmem:[%s10473_s1 + $0x1150] sm:$0xff]  ;;  %v4200_v5 = vld [vmem:[%s10473_s1 + $0x1168] sm:$0xff]  ;;  %v4010_v25 = vld [vmem:[%s10473_s1 + $0xb78] sm:$0xff] }
  0xe8   :  { %10865 = vst [vmem:[#allocation167_spill] sm:$0xff] %v8739_v7  ;;  %10867 = vst [vmem:[#allocation169_spill] sm:$0xff] %v8745_v18  ;;  %v4013_v29 = vld [vmem:[%s10473_s1 + $0xb90] sm:$0xff] }
  0xe9   :  { %5550 = vmatpush1.bf16.msra.mxu0 %v8709_v24  ;;  %10868 = vst [vmem:[#allocation170_spill] sm:$0xff] %v8767_v30  ;;  %10869 = vst [vmem:[#allocation171_spill] sm:$0xff] %v8771_v63  ;;  %v4006_v24 = vld [vmem:[%s10473_s1 + $0xb58] sm:$0xff] }
  0xea   :  { %5796 = vmatpush3.bf16.msra.mxu1 %v8713_v20  ;;  %5552 = vmatprep.subr.bf16.mxu0 %v8715_v32  ;;  %v8773_v20 = vpack.c.bf16 %v4007_v1, %v4004_v51  ;;  %v4003_v32 = vld [vmem:[%s10473_s1 + $0xb40] sm:$0xff]  ;;  %v8799_v1 = vpack.c.bf16 %v4200_v5, %v4197_v38  ;;  %v4016_v38 = vld [vmem:[%s10473_s1 + $0xba8] sm:$0xff] }
  0xeb   :  { %5797 = vmatprep.subr.bf16.mxu1 %v10716_v60  ;;  %v8795_v51 = vpack.c.bf16 %v4006_v24, %v4003_v32  ;;  %v4203_v32 = vld [vmem:[%s10473_s1 + $0x1180] sm:$0xff]  ;;  %v4206_v24 = vld [vmem:[%s10473_s1 + $0x1198] sm:$0xff] }
  0xec   :  { %10870 = vst [vmem:[#allocation172_spill] sm:$0xff] %v8773_v20  ;;  %10872 = vst [vmem:[#allocation174_spill] sm:$0xff] %v8799_v1  ;;  %v4019_v5 = vld [vmem:[%s10473_s1 + $0xbc0] sm:$0xff] }
  0xed   :  { %5554 = vmatpush1.bf16.msra.mxu0 %v8739_v7  ;;  %10871 = vst [vmem:[#allocation173_spill] sm:$0xff] %v8795_v51  ;;  %v4012_v7 = vld [vmem:[%s10473_s1 + $0xb88] sm:$0xff] }
  0xee   :  { %5799 = vmatpush3.bf16.msra.mxu1 %v8743_v43  ;;  %5556 = vmatprep.subr.bf16.mxu0 %v8745_v18  ;;  %v8801_v43 = vpack.c.bf16 %v4013_v29, %v4010_v25  ;;  %v4009_v18 = vld [vmem:[%s10473_s1 + $0xb70] sm:$0xff]  ;;  %v8827_v29 = vpack.c.bf16 %v4206_v24, %v4203_v32  ;;  %v4022_v32 = vld [vmem:[%s10473_s1 + $0xbd8] sm:$0xff] }
  0xef   :  { %5800 = vmatprep.subr.bf16.mxu1 %v10716_v60  ;;  %v8823_v25 = vpack.c.bf16 %v4012_v7, %v4009_v18  ;;  %v4209_v18 = vld [vmem:[%s10473_s1 + $0x11b0] sm:$0xff]  ;;  %v4212_v7 = vld [vmem:[%s10473_s1 + $0x11c8] sm:$0xff] }
  0xf0   :  { %10873 = vst [vmem:[#allocation175_spill] sm:$0xff] %v8801_v43  ;;  %10875 = vst [vmem:[#allocation177_spill] sm:$0xff] %v8827_v29  ;;  %v4025_v24 = vld [vmem:[%s10473_s1 + $0xbf0] sm:$0xff] }
  0xf1   :  { %5558 = vmatpush1.bf16.msra.mxu0 %v8767_v30  ;;  %10874 = vst [vmem:[#allocation176_spill] sm:$0xff] %v8823_v25  ;;  %v4018_v30 = vld [vmem:[%s10473_s1 + $0xbb8] sm:$0xff]  ;;  %v8859_v56 = vpack.c.bf16 %v4025_v24, %v4022_v32 }
  0xf2   :  { %5802 = vmatpush3.bf16.msra.mxu1 %v8771_v63  ;;  %5560 = vmatprep.subr.bf16.mxu0 %v8773_v20  ;;  %v8829_v63 = vpack.c.bf16 %v4019_v5, %v4016_v38  ;;  %v4015_v20 = vld [vmem:[%s10473_s1 + $0xba0] sm:$0xff] }
  0xf3   :  { %5803 = vmatprep.subr.bf16.mxu1 %v10716_v60  ;;  %10877 = vst [vmem:[#allocation179_spill] sm:$0xff] %v8859_v56 }
  0xf5   :  { %5562 = vmatpush1.bf16.msra.mxu0 %v8795_v51  ;;  %v8857_v51 = vpack.c.bf16 %v4212_v7, %v4209_v18  ;;  %v4028_v18 = vld [vmem:[%s10473_s1 + $0xc08] sm:$0xff]  ;;  %v4031_v7 = vld [vmem:[%s10473_s1 + $0xc20] sm:$0xff] }
  0xf6   :  { %5805 = vmatpush3.bf16.msra.mxu1 %v8799_v1  ;;  %5564 = vmatprep.subr.bf16.mxu0 %v8801_v43  ;;  %v8851_v1 = vpack.c.bf16 %v4018_v30, %v4015_v20  ;;  %v4215_v20 = vld [vmem:[%s10473_s1 + $0x11e0] sm:$0xff]  ;;  %v4218_v30 = vld [vmem:[%s10473_s1 + $0x11f8] sm:$0xff] }
  0xf7   :  { %5806 = vmatprep.subr.bf16.mxu1 %v10716_v60  ;;  %10876 = vst [vmem:[#allocation178_spill] sm:$0xff] %v8857_v51  ;;  %v8885_v24 = vpack.c.bf16 %v4218_v30, %v4215_v20  ;;  %v4037_v20 = vld [vmem:[%s10473_s1 + $0xc50] sm:$0xff]  ;;  %v4043_v30 = vld [vmem:[%s10473_s1 + $0xc80] sm:$0xff] }
  0xf8   :  { %v4265_v38 = vpop.f32.mrb[0].mxu1 }
  0xf9   :  { %v4266_v5 = vpop.f32.mrb[1].mxu1  ;;  %5566 = vmatpush1.bf16.msra.mxu0 %v8823_v25  ;;  %v4024_v25 = vld [vmem:[%s10473_s1 + $0xbe8] sm:$0xff]  ;;  %10878 = vst [vmem:[#allocation180_spill] sm:$0xff] %v8885_v24 }
  0xfa   :  { %v8853_v43 = vadd.f32 %v4266_v5, %v4265_v38  ;;  %5808 = vmatpush3.bf16.msra.mxu1 %v8827_v29  ;;  %5568 = vmatprep.subr.bf16.mxu0 %v8829_v63  ;;  %v8881_v32 = vpack.c.bf16 %v4024_v25, %v4021_v12  ;;  %v8887_v38 = vpack.c.bf16 %v4031_v7, %v4028_v18  ;;  %v8892_v5 = vld [vmem:[%s10474_s0 + $0x10] sm:$0x38]  ;;  %v4027_v29 = vld [vmem:[%s10473_s1 + $0xc00] sm:$0xff]  ;;  %v4030_v12 = vld [vmem:[%s10473_s1 + $0xc18] sm:$0xff] }
  0xfb   :  { %5809 = vmatprep.subr.bf16.mxu1 %v10716_v60  ;;  %v4034_v25 = vld [vmem:[%s10473_s1 + $0xc38] sm:$0xff]  ;;  %v8909_v18 = vpack.c.bf16 %v4030_v12, %v4027_v29  ;;  %v8914_v7 = vld [vmem:[%s10474_s0 + $0x20] sm:$0xe]  ;;  %v4036_v29 = vld [vmem:[%s10473_s1 + $0xc48] sm:$0xff] }
  0xfc   :  { %10879 = vst [vmem:[#allocation181_spill] sm:$0xff] %v8887_v38  ;;  %v4040_v12 = vld [vmem:[%s10473_s1 + $0xc68] sm:$0xff] }
  0xfd   :  { %5570 = vmatpush1.bf16.msra.mxu0 %v8851_v1 }
  0xfe   :  { %5811 = vmatpush3.bf16.msra.mxu1 %v8857_v51  ;;  %5572 = vmatprep.subr.bf16.mxu0 %v8859_v56  ;;  %v8918_v51 = vpack.c.bf16 %v4037_v20, %v4034_v25  ;;  %v4033_v56 = vld [vmem:[%s10473_s1 + $0xc30] sm:$0xff]  ;;  %v10880_v25 = vrot.slane %v8107_v42, 2  ;;  %v10669_v20 = vrot.slane %v8914_v7, 1  ;;  %v4039_v42 = vld [vmem:[%s10473_s1 + $0xc60] sm:$0xff] }
  0xff   :  { %5812 = vmatprep.subr.bf16.mxu1 %v10716_v60 }
 0x101   :  { %5574 = vmatpush1.bf16.msra.mxu0 %v8881_v32 }
 0x102   :  { %5814 = vmatpush3.bf16.msra.mxu1 %v8885_v24  ;;  %5576 = vmatprep.subr.bf16.mxu0 %v8887_v38  ;;  %v10881_v24 = vrot.slane %v8892_v5, 3  ;;  %v8939_v38 = vpack.c.bf16 %v4036_v29, %v4033_v56  ;;  %v4046_v56 = vld [vmem:[%s10473_s1 + $0xc98] sm:$0xff]  ;;  %v4048_v29 = vld [vmem:[%s10473_s1 + $0xca8] sm:$0xff] }
 0x103   :  { %5816 = vmatprep.subr.bf16.mxu1 %v6747_v3  ;;  %v8943_v3 = vpack.c.bf16 %v4043_v30, %v4040_v12  ;;  %v4045_v30 = vld [vmem:[%s10473_s1 + $0xc90] sm:$0xff]  ;;  %v4052_v12 = vld [vmem:[%s10473_s1 + $0xcc8] sm:$0xff] }
 0x104   :  { %1113 = vmatmul.mubr.f32.vlgmr.msra.gmra.mrb[0].mxu0 %v10880_v25  ;;  %v4042_v25 = vld [vmem:[%s10473_s1 + $0xc78] sm:$0xff] }
 0x105   :  { %4925 = vmatmul.mubr.f32.vlgmr.msra.gmra.mrb[2].mxu1 %v10881_v24  ;;  %5578 = vmatpush1.bf16.msra.mxu0 %v8909_v18  ;;  %v8962_v24 = vpack.c.bf16 %v4042_v25, %v4039_v42  ;;  %v8982_v42 = vpack.c.bf16 %v4048_v29, %v4045_v30 }
 0x106   :  { %5818 = vmatpush1.bf16.msra.mxu1 %v6760_v8  ;;  %5580 = vmatprep.subr.bf16.mxu0 %v8918_v51  ;;  %v4049_v8 = vld [vmem:[%s10473_s1 + $0xcb0] sm:$0xff] }
 0x107   :  { %5820 = vmatprep.subr.bf16.mxu1 %v6785_v16  ;;  %1183 = vmatprep.mubr.f32.mxu0 %v10724_v55  ;;  %v8966_v16 = vpack.c.bf16 %v4049_v8, %v4046_v56  ;;  %v4054_v56 = vld [vmem:[%s10473_s1 + $0xcd8] sm:$0xff] }
 0x108   :  { %1901 = vmatprep.mubr.f32.mxu1 %v10669_v20  ;;  %v4058_v8 = vld [vmem:[%s10473_s1 + $0xcf8] sm:$0xff]  ;;  %v10892_v20 = vld [vmem:[#allocation38_spill] sm:$0xff] }
 0x109   :  { %5582 = vmatpush1.bf16.msra.mxu0 %v8939_v38 }
 0x10a   :  { %5822 = vmatpush1.bf16.msra.mxu1 %v6799_v21  ;;  %5584 = vmatprep.subr.bf16.mxu0 %v8943_v3  ;;  %v4055_v21 = vld [vmem:[%s10473_s1 + $0xce0] sm:$0xff] }
 0x10b   :  { %5824 = vmatprep.subr.bf16.mxu1 %v6814_v26  ;;  %v8986_v25 = vpack.c.bf16 %v4055_v21, %v4052_v12  ;;  %v4051_v26 = vld [vmem:[%s10473_s1 + $0xcc0] sm:$0xff]  ;;  %v4060_v12 = vld [vmem:[%s10473_s1 + $0xd08] sm:$0xff] }
 0x10c   :  { %v9002_v30 = vpack.c.bf16 %v4054_v56, %v4051_v26  ;;  %v4064_v21 = vld [vmem:[%s10473_s1 + $0xd28] sm:$0xff] }
 0x10d   :  { %5586 = vmatpush1.bf16.msra.mxu0 %v8962_v24 }
 0x10e   :  { %5826 = vmatpush1.bf16.msra.mxu1 %v6837_v34  ;;  %5588 = vmatprep.subr.bf16.mxu0 %v8966_v16  ;;  %v4061_v34 = vld [vmem:[%s10473_s1 + $0xd10] sm:$0xff] }
 0x10f   :  { %5828 = vmatprep.subr.bf16.mxu1 %v6852_v39  ;;  %v9006_v29 = vpack.c.bf16 %v4061_v34, %v4058_v8  ;;  %v4057_v39 = vld [vmem:[%s10473_s1 + $0xcf0] sm:$0xff]  ;;  %v4066_v8 = vld [vmem:[%s10473_s1 + $0xd38] sm:$0xff] }
 0x110   :  { %v9022_v26 = vpack.c.bf16 %v4060_v12, %v4057_v39  ;;  %v4070_v34 = vld [vmem:[%s10473_s1 + $0xd58] sm:$0xff] }
 0x111   :  { %5590 = vmatpush1.bf16.msra.mxu0 %v8982_v42 }
 0x112   :  { %5830 = vmatpush1.bf16.msra.mxu1 %v6885_v50  ;;  %5592 = vmatprep.subr.bf16.mxu0 %v8986_v25  ;;  %v4067_v50 = vld [vmem:[%s10473_s1 + $0xd40] sm:$0xff] }
 0x113   :  { %5832 = vmatprep.subr.bf16.mxu1 %v6891_v52  ;;  %v9026_v56 = vpack.c.bf16 %v4067_v50, %v4064_v21  ;;  %v4063_v52 = vld [vmem:[%s10473_s1 + $0xd20] sm:$0xff]  ;;  %v4072_v21 = vld [vmem:[%s10473_s1 + $0xd68] sm:$0xff] }
 0x114   :  { %v9042_v39 = vpack.c.bf16 %v4066_v8, %v4063_v52  ;;  %v4076_v50 = vld [vmem:[%s10473_s1 + $0xd88] sm:$0xff] }
 0x115   :  { %5594 = vmatpush1.bf16.msra.mxu0 %v9002_v30 }
 0x116   :  { %5834 = vmatpush1.bf16.msra.mxu1 %v6921_v62  ;;  %5596 = vmatprep.subr.bf16.mxu0 %v9006_v29  ;;  %v4073_v62 = vld [vmem:[%s10473_s1 + $0xd70] sm:$0xff] }
 0x117   :  { %5836 = vmatprep.subr.bf16.mxu1 %v6927_v0  ;;  %v9046_v12 = vpack.c.bf16 %v4073_v62, %v4070_v34  ;;  %v4069_v0 = vld [vmem:[%s10473_s1 + $0xd50] sm:$0xff]  ;;  %v4078_v34 = vld [vmem:[%s10473_s1 + $0xd98] sm:$0xff] }
 0x118   :  { %v9062_v52 = vpack.c.bf16 %v4072_v21, %v4069_v0  ;;  %v4082_v62 = vld [vmem:[%s10473_s1 + $0xdb8] sm:$0xff] }
 0x119   :  { %5598 = vmatpush1.bf16.msra.mxu0 %v9022_v26 }
 0x11a   :  { %5838 = vmatpush1.bf16.msra.mxu1 %v6957_v14  ;;  %5600 = vmatprep.subr.bf16.mxu0 %v9026_v56  ;;  %v4079_v14 = vld [vmem:[%s10473_s1 + $0xda0] sm:$0xff] }
 0x11b   :  { %5840 = vmatprep.subr.bf16.mxu1 %v6966_v19  ;;  %v9066_v8 = vpack.c.bf16 %v4079_v14, %v4076_v50  ;;  %v4075_v19 = vld [vmem:[%s10473_s1 + $0xd80] sm:$0xff]  ;;  %v4084_v50 = vld [vmem:[%s10473_s1 + $0xdc8] sm:$0xff] }
 0x11c   :  { %v9082_v0 = vpack.c.bf16 %v4078_v34, %v4075_v19  ;;  %v4088_v14 = vld [vmem:[%s10473_s1 + $0xde8] sm:$0xff]  ;;  %v10882_v19 = vrot.slane %v8361_v46, 2  ;;  %v4090_v46 = vld [vmem:[%s10473_s1 + $0xdf8] sm:$0xff] }
 0x11d   :  { %5602 = vmatpush1.bf16.msra.mxu0 %v9042_v39 }
 0x11e   :  { %5842 = vmatpush1.bf16.msra.mxu1 %v6996_v35  ;;  %5604 = vmatprep.subr.bf16.mxu0 %v9046_v12  ;;  %v4085_v35 = vld [vmem:[%s10473_s1 + $0xdd0] sm:$0xff] }
 0x11f   :  { %5844 = vmatprep.subr.bf16.mxu1 %v7002_v37  ;;  %v9086_v21 = vpack.c.bf16 %v4085_v35, %v4082_v62  ;;  %v4081_v37 = vld [vmem:[%s10473_s1 + $0xdb0] sm:$0xff]  ;;  %v10883_v62 = vrot.slane %v8387_v36, 3  ;;  %v4087_v35 = vld [vmem:[%s10473_s1 + $0xde0] sm:$0xff]  ;;  %v4094_v36 = vld [vmem:[%s10473_s1 + $0xe18] sm:$0xff] }
 0x120   :  { %v9104_v34 = vpack.c.bf16 %v4084_v50, %v4081_v37  ;;  %v9126_v37 = vpack.c.bf16 %v4090_v46, %v4087_v35  ;;  %v4102_v35 = vld [vmem:[%s10473_s1 + $0xe58] sm:$0xff] }
 0x121   :  { %5606 = vmatpush1.bf16.msra.mxu0 %v9062_v52  ;;  %v4106_v46 = vld [vmem:[%s10473_s1 + $0xe78] sm:$0xff] }
 0x122   :  { %5846 = vmatpush1.bf16.msra.mxu1 %v7026_v48  ;;  %5664 = vmatprep.subr.bf16.mxu0 %v9066_v8  ;;  %v4091_v48 = vld [vmem:[%s10473_s1 + $0xe00] sm:$0xff] }
 0x123   :  { %5848 = vmatprep.subr.bf16.mxu1 %v7037_v54  ;;  %v9110_v54 = vpack.c.bf16 %v4091_v48, %v4088_v14  ;;  %v4096_v14 = vld [vmem:[%s10473_s1 + $0xe28] sm:$0xff] }
 0x124   :  { %1184 = vmatmul.mubr.f32.vlgmr.msra.gmra.mrb[0].mxu0 %v10882_v19  ;;  %v4100_v48 = vld [vmem:[%s10473_s1 + $0xe48] sm:$0xff] }
 0x125   :  { %5666 = vmatpush1.bf16.msra.mxu0 %v9082_v0  ;;  %1554 = vmatprep.mubr.f32.mxu0 %v10883_v62 }
 0x126   :  { %5850 = vmatpush1.bf16.msra.mxu1 %v7060_v2  ;;  %5668 = vmatprep.subr.bf16.mxu0 %v9086_v21  ;;  %v4097_v2 = vld [vmem:[%s10473_s1 + $0xe30] sm:$0xff] }
 0x127   :  { %5852 = vmatprep.subr.bf16.mxu1 %v7066_v6  ;;  %v9130_v50 = vpack.c.bf16 %v4097_v2, %v4094_v36  ;;  %v4093_v6 = vld [vmem:[%s10473_s1 + $0xe10] sm:$0xff] }
 0x128   :  { %v9146_v19 = vpack.c.bf16 %v4096_v14, %v4093_v6  ;;  %v4108_v6 = vld [vmem:[%s10473_s1 + $0xe88] sm:$0xff] }
 0x129   :  { %5670 = vmatpush1.bf16.msra.mxu0 %v9104_v34  ;;  %v4112_v14 = vld [vmem:[%s10473_s1 + $0xea8] sm:$0xff] }
 0x12a   :  { %5854 = vmatpush1.bf16.msra.mxu1 %v7090_v23  ;;  %5672 = vmatprep.subr.bf16.mxu0 %v9110_v54  ;;  %v4103_v23 = vld [vmem:[%s10473_s1 + $0xe60] sm:$0xff] }
 0x12b   :  { %5856 = vmatprep.subr.bf16.mxu1 %v7096_v28  ;;  %v9150_v62 = vpack.c.bf16 %v4103_v23, %v4100_v48  ;;  %v4099_v28 = vld [vmem:[%s10473_s1 + $0xe40] sm:$0xff] }
 0x12c   :  { %v9166_v36 = vpack.c.bf16 %v4102_v35, %v4099_v28  ;;  %v4114_v28 = vld [vmem:[%s10473_s1 + $0xeb8] sm:$0xff] }
 0x12d   :  { %5674 = vmatpush1.bf16.msra.mxu0 %v9126_v37  ;;  %v4118_v35 = vld [vmem:[%s10473_s1 + $0xed8] sm:$0xff] }
 0x12e   :  { %5858 = vmatpush1.bf16.msra.mxu1 %v7120_v45  ;;  %5676 = vmatprep.subr.bf16.mxu0 %v9130_v50  ;;  %v4109_v45 = vld [vmem:[%s10473_s1 + $0xe90] sm:$0xff] }
 0x12f   :  { %5860 = vmatprep.subr.bf16.mxu1 %v7126_v47  ;;  %v9170_v2 = vpack.c.bf16 %v4109_v45, %v4106_v46  ;;  %v4105_v47 = vld [vmem:[%s10473_s1 + $0xe70] sm:$0xff] }
 0x130   :  { %v9186_v48 = vpack.c.bf16 %v4108_v6, %v4105_v47 }
 0x131   :  { %5678 = vmatpush1.bf16.msra.mxu0 %v9146_v19 }
 0x132   :  { %5862 = vmatpush1.bf16.msra.mxu1 %v7148_v9  ;;  %5680 = vmatprep.subr.bf16.mxu0 %v9150_v62  ;;  %v4115_v9 = vld [vmem:[%s10473_s1 + $0xec0] sm:$0xff] }
 0x133   :  { %5864 = vmatprep.subr.bf16.mxu1 %v7154_v11  ;;  %v9190_v23 = vpack.c.bf16 %v4115_v9, %v4112_v14  ;;  %v4111_v11 = vld [vmem:[%s10473_s1 + $0xea0] sm:$0xff]  ;;  %v4117_v14 = vld [vmem:[%s10473_s1 + $0xed0] sm:$0xff]  ;;  %v4120_v9 = vld [vmem:[%s10473_s1 + $0xee8] sm:$0xff] }
 0x134   :  { %v9206_v47 = vpack.c.bf16 %v4114_v28, %v4111_v11  ;;  %v4124_v11 = vld [vmem:[%s10473_s1 + $0xf08] sm:$0xff] }
 0x135   :  { %5682 = vmatpush1.bf16.msra.mxu0 %v9166_v36 }
 0x136   :  { %5866 = vmatpush1.bf16.msra.mxu1 %v7176_v33  ;;  %5684 = vmatprep.subr.bf16.mxu0 %v9170_v2  ;;  %v4121_v33 = vld [vmem:[%s10473_s1 + $0xef0] sm:$0xff] }
 0x137   :  { %5868 = vmatprep.subr.bf16.mxu1 %v7182_v41  ;;  %v9210_v41 = vpack.c.bf16 %v4121_v33, %v4118_v35  ;;  %v9229_v35 = vpack.c.bf16 %v4120_v9, %v4117_v14  ;;  %v4123_v33 = vld [vmem:[%s10473_s1 + $0xf00] sm:$0xff] }
 0x138   :  { %v4317_v46 = vpop.f32.mrb[4].mxu1 }
 0x139   :  { %v4318_v45 = vpop.f32.mrb[5].mxu1  ;;  %5686 = vmatpush1.bf16.msra.mxu0 %v9186_v48 }
 0x13a   :  { %v4319_v6 = vadd.f32 %v4318_v45, %v4317_v46  ;;  %5870 = vmatpush1.bf16.msra.mxu1 %v7204_v15  ;;  %5688 = vmatprep.subr.bf16.mxu0 %v9190_v23  ;;  %v4127_v15 = vld [vmem:[%s10473_s1 + $0xf20] sm:$0xff]  ;;  %v4126_v46 = vld [vmem:[%s10473_s1 + $0xf18] sm:$0xff]  ;;  %v4133_v45 = vld [vmem:[%s10473_s1 + $0xf50] sm:$0xff] }
 0x13b   :  { %5872 = vmatprep.subr.bf16.mxu1 %v7210_v22  ;;  %v9233_v22 = vpack.c.bf16 %v4127_v15, %v4124_v11  ;;  %v4132_v11 = vld [vmem:[%s10473_s1 + $0xf48] sm:$0xff] }
 0x13c   :  { %v9226_v28 = vadd.f32 %v4319_v6, %v8853_v43  ;;  %v9244_v43 = vld [vmem:[%s10474_s0 + $0x18] sm:$0xe]  ;;  %v9254_v6 = vpack.c.bf16 %v4126_v46, %v4123_v33  ;;  %v4136_v15 = vld [vmem:[%s10473_s1 + $0xf68] sm:$0xff]  ;;  %v4135_v46 = vld [vmem:[%s10473_s1 + $0xf60] sm:$0xff] }
 0x13d   :  { %5690 = vmatpush1.bf16.msra.mxu0 %v9206_v47  ;;  %v10668_v14 = vrot.slane %v9244_v43, 1 }
 0x13e   :  { %5874 = vmatpush1.bf16.msra.mxu1 %v7232_v59  ;;  %5692 = vmatprep.subr.bf16.mxu0 %v9210_v41  ;;  %v4130_v59 = vld [vmem:[%s10473_s1 + $0xf38] sm:$0xff] }
 0x13f   :  { %5876 = vmatprep.subr.bf16.mxu1 %v7238_v61  ;;  %v9259_v9 = vpack.c.bf16 %v4133_v45, %v4130_v59  ;;  %v4129_v61 = vld [vmem:[%s10473_s1 + $0xf30] sm:$0xff]  ;;  %v4138_v59 = vld [vmem:[%s10473_s1 + $0xf78] sm:$0xff] }
 0x140   :  { %v9277_v33 = vpack.c.bf16 %v4132_v11, %v4129_v61  ;;  %v4142_v45 = vld [vmem:[%s10473_s1 + $0xf98] sm:$0xff]  ;;  %v9298_v61 = vpack.c.bf16 %v4138_v59, %v4135_v46 }
 0x141   :  { %5694 = vmatpush1.bf16.msra.mxu0 %v9229_v35 }
 0x142   :  { %5878 = vmatpush1.bf16.msra.mxu1 %v7266_v13  ;;  %5696 = vmatprep.subr.bf16.mxu0 %v9233_v22  ;;  %v4139_v13 = vld [vmem:[%s10473_s1 + $0xf80] sm:$0xff] }
 0x143   :  { %5880 = vmatprep.subr.bf16.mxu1 %v7275_v10  ;;  %v9281_v10 = vpack.c.bf16 %v4139_v13, %v4136_v15  ;;  %v4144_v15 = vld [vmem:[%s10473_s1 + $0xfa8] sm:$0xff] }
 0x144   :  { %v4148_v13 = vld [vmem:[%s10473_s1 + $0xfc8] sm:$0xff] }
 0x145   :  { %5698 = vmatpush1.bf16.msra.mxu0 %v9254_v6  ;;  %1902 = vmatmul.mubr.f32.vlgmr.msra.gmra.mrb[10].mxu1 %v10668_v14  ;;  %v4162_v14 = vld [vmem:[%s10473_s1 + $0x1038] sm:$0xff] }
 0x146   :  { %5882 = vmatpush1.bf16.msra.mxu1 %v7307_v58  ;;  %5700 = vmatprep.subr.bf16.mxu0 %v9259_v9  ;;  %v4145_v58 = vld [vmem:[%s10473_s1 + $0xfb0] sm:$0xff] }
 0x147   :  { %5884 = vmatprep.subr.bf16.mxu1 %v7314_v44  ;;  %1972 = vmatprep.mubr.f32.mxu1 %v10724_v55  ;;  %v9302_v11 = vpack.c.bf16 %v4145_v58, %v4142_v45  ;;  %v4141_v44 = vld [vmem:[%s10473_s1 + $0xf90] sm:$0xff]  ;;  %v4150_v45 = vld [vmem:[%s10473_s1 + $0xfd8] sm:$0xff] }
 0x148   :  { %v9318_v46 = vpack.c.bf16 %v4144_v15, %v4141_v44  ;;  %v4154_v58 = vld [vmem:[%s10473_s1 + $0xff8] sm:$0xff] }
 0x149   :  { %5702 = vmatpush1.bf16.msra.mxu0 %v9277_v33 }
 0x14a   :  { %5886 = vmatpush1.bf16.msra.mxu1 %v7353_v49  ;;  %5704 = vmatprep.subr.bf16.mxu0 %v9281_v10  ;;  %v4151_v49 = vld [vmem:[%s10473_s1 + $0xfe0] sm:$0xff]  ;;  %10884 = vst [vmem:[#allocation182_spill] sm:$0xff] %v9318_v46 }
 0x14b   :  { %5888 = vmatprep.subr.bf16.mxu1 %v7359_v40  ;;  %v9322_v59 = vpack.c.bf16 %v4151_v49, %v4148_v13  ;;  %v4147_v40 = vld [vmem:[%s10473_s1 + $0xfc0] sm:$0xff]  ;;  %v4156_v13 = vld [vmem:[%s10473_s1 + $0x1008] sm:$0xff] }
 0x14c   :  { %v9338_v44 = vpack.c.bf16 %v4150_v45, %v4147_v40  ;;  %v10888_v49 = vld [vmem:[#allocation34_spill] sm:$0xff]  ;;  %v4160_v40 = vld [vmem:[%s10473_s1 + $0x1028] sm:$0xff] }
 0x14d   :  { %5706 = vmatpush1.bf16.msra.mxu0 %v9298_v61  ;;  %10885 = vst [vmem:[#allocation183_spill] sm:$0xff] %v9322_v59 }
 0x14e   :  { %5890 = vmatpush1.bf16.msra.mxu1 %v7391_v57  ;;  %5708 = vmatprep.subr.bf16.mxu0 %v9302_v11  ;;  %v4157_v57 = vld [vmem:[%s10473_s1 + $0x1010] sm:$0xff]  ;;  %10886 = vst [vmem:[#allocation184_spill] sm:$0xff] %v9338_v44 }
 0x14f   :  { %5892 = vmatprep.subr.bf16.mxu1 %v7397_v53  ;;  %v9342_v15 = vpack.c.bf16 %v4157_v57, %v4154_v58  ;;  %v4153_v53 = vld [vmem:[%s10473_s1 + $0xff0] sm:$0xff] }
 0x150   :  { %v9358_v45 = vpack.c.bf16 %v4156_v13, %v4153_v53  ;;  %v10890_v58 = vld [vmem:[#allocation36_spill] sm:$0xff]  ;;  %v4166_v53 = vld [vmem:[%s10473_s1 + $0x1058] sm:$0xff] }
 0x151   :  { %5710 = vmatpush1.bf16.msra.mxu0 %v9318_v46  ;;  %10887 = vst [vmem:[#allocation185_spill] sm:$0xff] %v9342_v15  ;;  %v4169_v13 = vld [vmem:[%s10473_s1 + $0x1070] sm:$0xff]  ;;  %v10904_v46 = vld [vmem:[#allocation2_spill] sm:$0xff] }
 0x152   :  { %5894 = vmatpush1.bf16.msra.mxu1 %v7427_v31  ;;  %5712 = vmatprep.subr.bf16.mxu0 %v9322_v59  ;;  %v4163_v31 = vld [vmem:[%s10473_s1 + $0x1040] sm:$0xff]  ;;  %10889 = vst [vmem:[#allocation34_spill] sm:$0xff] %v9358_v45  ;;  %v4180_v59 = vld [vmem:[%s10473_s1 + $0x10c8] sm:$0xff] }
 0x153   :  { %5896 = vmatprep.subr.bf16.mxu1 %v10888_v49  ;;  %v9362_v57 = vpack.c.bf16 %v4163_v31, %v4160_v40  ;;  %v4159_v49 = vld [vmem:[%s10473_s1 + $0x1020] sm:$0xff]  ;;  %v10894_v31 = vld [vmem:[#allocation40_spill] sm:$0xff] }
 0x154   :  { %v9378_v40 = vpack.c.bf16 %v4162_v14, %v4159_v49  ;;  %v4172_v14 = vld [vmem:[%s10473_s1 + $0x1088] sm:$0xff]  ;;  %v4175_v49 = vld [vmem:[%s10473_s1 + $0x10a0] sm:$0xff] }
 0x155   :  { %5714 = vmatpush1.bf16.msra.mxu0 %v9338_v44  ;;  %10891 = vst [vmem:[#allocation36_spill] sm:$0xff] %v9362_v57  ;;  %v10896_v44 = vld [vmem:[#allocation42_spill] sm:$0xff] }
 0x156   :  { %5898 = vmatpush1.bf16.msra.mxu1 %v10890_v58  ;;  %5716 = vmatprep.subr.bf16.mxu0 %v9342_v15  ;;  %10893 = vst [vmem:[#allocation38_spill] sm:$0xff] %v9378_v40  ;;  %v9382_v58 = vpack.c.bf16 %v4169_v13, %v4166_v53  ;;  %v4168_v15 = vld [vmem:[%s10473_s1 + $0x1068] sm:$0xff]  ;;  %v10898_v13 = vld [vmem:[#allocation44_spill] sm:$0xff] }
 0x157   :  { %5900 = vmatprep.subr.bf16.mxu1 %v10892_v20  ;;  %v4165_v20 = vld [vmem:[%s10473_s1 + $0x1050] sm:$0xff] }
 0x158   :  { %10895 = vst [vmem:[#allocation40_spill] sm:$0xff] %v9382_v58  ;;  %v9398_v53 = vpack.c.bf16 %v4168_v15, %v4165_v20  ;;  %v10900_v15 = vld [vmem:[#allocation46_spill] sm:$0xff]  ;;  %v4178_v20 = vld [vmem:[%s10473_s1 + $0x10b8] sm:$0xff] }
 0x159   :  { %5718 = vmatpush1.bf16.msra.mxu0 %v9358_v45 }
 0x15a   :  { %5902 = vmatpush1.bf16.msra.mxu1 %v10894_v31  ;;  %5720 = vmatprep.subr.bf16.mxu0 %v9362_v57  ;;  %10897 = vst [vmem:[#allocation42_spill] sm:$0xff] %v9398_v53  ;;  %v9402_v31 = vpack.c.bf16 %v4175_v49, %v4172_v14  ;;  %v4174_v57 = vld [vmem:[%s10473_s1 + $0x1098] sm:$0xff]  ;;  %v4181_v14 = vld [vmem:[%s10473_s1 + $0x10d0] sm:$0xff] }
 0x15b   :  { %5904 = vmatprep.subr.bf16.mxu1 %v10896_v44  ;;  %v4171_v44 = vld [vmem:[%s10473_s1 + $0x1080] sm:$0xff]  ;;  %v9428_v45 = vpack.c.bf16 %v4181_v14, %v4178_v20  ;;  %v10907_v14 = vld [vmem:[#allocation3_spill] sm:$0xff] }
 0x15c   :  { %10899 = vst [vmem:[#allocation44_spill] sm:$0xff] %v9402_v31  ;;  %v9423_v49 = vpack.c.bf16 %v4174_v57, %v4171_v44  ;;  %v4184_v57 = vld [vmem:[%s10473_s1 + $0x10e8] sm:$0xff]  ;;  %v10905_v44 = vrot.slane %v8650_v4, 3  ;;  %v4186_v4 = vld [vmem:[%s10473_s1 + $0x10f8] sm:$0xff] }
 0x15d   :  { %5722 = vmatpush1.bf16.msra.mxu0 %v9378_v40  ;;  %v9413_v40 = vld [vmem:[%s10474_s0 + $0x28] sm:$0xe] }
 0x15e   :  { %5906 = vmatpush1.bf16.msra.mxu1 %v10898_v13  ;;  %5724 = vmatprep.subr.bf16.mxu0 %v9382_v58  ;;  %10901 = vst [vmem:[#allocation46_spill] sm:$0xff] %v9423_v49  ;;  %v10679_v13 = vrot.slane %v9413_v40, 1  ;;  %v10902_v58 = vld [vmem:[#allocation48_spill] sm:$0xff] }
 0x15f   :  { %5908 = vmatprep.subr.bf16.mxu1 %v10900_v15  ;;  %10903 = vst [vmem:[#allocation48_spill] sm:$0xff] %v9428_v45  ;;  %v4177_v15 = vld [vmem:[%s10473_s1 + $0x10b0] sm:$0xff] }
 0x160   :  { %v9448_v20 = vpack.c.bf16 %v4180_v59, %v4177_v15  ;;  %v4190_v59 = vld [vmem:[%s10473_s1 + $0x1118] sm:$0xff]  ;;  %v4193_v15 = vld [vmem:[%s10473_s1 + $0x1130] sm:$0xff] }
 0x161   :  { %5726 = vmatpush1.bf16.msra.mxu0 %v9398_v53  ;;  %v10926_v53 = vld [vmem:[#allocation14_spill] sm:$0xff] }
 0x162   :  { %5910 = vmatpush1.bf16.msra.mxu1 %v10902_v58  ;;  %5728 = vmatprep.subr.bf16.mxu0 %v9402_v31  ;;  %v4187_v58 = vld [vmem:[%s10473_s1 + $0x1100] sm:$0xff]  ;;  %10906 = vst [vmem:[#allocation2_spill] sm:$0xff] %v9448_v20 }
 0x163   :  { %5912 = vmatprep.subr.bf16.mxu1 %v10904_v46  ;;  %v9452_v46 = vpack.c.bf16 %v4187_v58, %v4184_v57  ;;  %v4183_v31 = vld [vmem:[%s10473_s1 + $0x10e0] sm:$0xff]  ;;  %v10910_v57 = vrot.slane %v8914_v7, 1 }
 0x164   :  { %1555 = vmatmul.mubr.f32.vlgmr.msra.gmra.mrb[0].mxu0 %v10905_v44  ;;  %v10909_v44 = vld [vmem:[#allocation4_spill] sm:$0xff]  ;;  %v9471_v58 = vpack.c.bf16 %v4186_v4, %v4183_v31  ;;  %v10914_v7 = vld [vmem:[#allocation6_spill] sm:$0xff]  ;;  %v4196_v31 = vld [vmem:[%s10473_s1 + $0x1148] sm:$0xff] }
 0x165   :  { %5730 = vmatpush1.bf16.msra.mxu0 %v9423_v49  ;;  %1973 = vmatmul.mubr.f32.vlgmr.msra.gmra.mrb[10].mxu1 %v10679_v13  ;;  %10908 = vst [vmem:[#allocation3_spill] sm:$0xff] %v9452_v46  ;;  %v4189_v13 = vld [vmem:[%s10473_s1 + $0x1110] sm:$0xff]  ;;  %v4199_v4 = vld [vmem:[%s10473_s1 + $0x1160] sm:$0xff]  ;;  %v4216_v49 = vld [vmem:[%s10473_s1 + $0x11e8] sm:$0xff] }
 0x166   :  { %5914 = vmatpush3.bf16.msra.mxu1 %v10907_v14  ;;  %5732 = vmatprep.subr.bf16.mxu0 %v9428_v45  ;;  %10911 = vst [vmem:[#allocation4_spill] sm:$0xff] %v9471_v58  ;;  %v10912_v14 = vld [vmem:[#allocation5_spill] sm:$0xff]  ;;  %v4192_v45 = vld [vmem:[%s10473_s1 + $0x1128] sm:$0xff] }
 0x167   :  { %5916 = vmatprep.subr.bf16.mxu1 %v10909_v44  ;;  %1625 = vmatprep.mubr.f32.mxu0 %v10724_v55  ;;  %v9475_v44 = vpack.c.bf16 %v4193_v15, %v4190_v59  ;;  %v9491_v59 = vpack.c.bf16 %v4192_v45, %v4189_v13  ;;  %v10916_v15 = vld [vmem:[#allocation7_spill] sm:$0xff]  ;;  %v4202_v45 = vld [vmem:[%s10473_s1 + $0x1178] sm:$0xff]  ;;  %v4205_v13 = vld [vmem:[%s10473_s1 + $0x1190] sm:$0xff] }
 0x168   :  { %2043 = vmatprep.mubr.f32.mxu1 %v10910_v57  ;;  %v9495_v57 = vpack.c.bf16 %v4199_v4, %v4196_v31  ;;  %v10920_v4 = vld [vmem:[#allocation9_spill] sm:$0xff] }
 0x169   :  { %5734 = vmatpush1.bf16.msra.mxu0 %v9448_v20  ;;  %10913 = vst [vmem:[#allocation5_spill] sm:$0xff] %v9475_v44  ;;  %10915 = vst [vmem:[#allocation6_spill] sm:$0xff] %v9491_v59  ;;  %v4213_v20 = vld [vmem:[%s10473_s1 + $0x11d0] sm:$0xff] }
 0x16a   :  { %5918 = vmatpush3.bf16.msra.mxu1 %v10912_v14  ;;  %5736 = vmatprep.subr.bf16.mxu0 %v9452_v46  ;;  %10917 = vst [vmem:[#allocation7_spill] sm:$0xff] %v9495_v57  ;;  %v4195_v14 = vld [vmem:[%s10473_s1 + $0x1140] sm:$0xff]  ;;  %v10918_v46 = vld [vmem:[#allocation8_spill] sm:$0xff] }
 0x16b   :  { %5920 = vmatprep.subr.bf16.mxu1 %v10914_v7  ;;  %v4198_v7 = vld [vmem:[%s10473_s1 + $0x1158] sm:$0xff] }
 0x16c   :  { %v9511_v31 = vpack.c.bf16 %v4198_v7, %v4195_v14  ;;  %v4208_v14 = vld [vmem:[%s10473_s1 + $0x11a8] sm:$0xff]  ;;  %v4211_v7 = vld [vmem:[%s10473_s1 + $0x11c0] sm:$0xff] }
 0x16d   :  { %5738 = vmatpush1.bf16.msra.mxu0 %v9471_v58  ;;  %v10922_v58 = vld [vmem:[#allocation10_spill] sm:$0xff] }
 0x16e   :  { %5922 = vmatpush3.bf16.msra.mxu1 %v10916_v15  ;;  %5740 = vmatprep.subr.bf16.mxu0 %v9475_v44  ;;  %10919 = vst [vmem:[#allocation8_spill] sm:$0xff] %v9511_v31  ;;  %v9515_v15 = vpack.c.bf16 %v4205_v13, %v4202_v45  ;;  %v4204_v44 = vld [vmem:[%s10473_s1 + $0x1188] sm:$0xff] }
 0x16f   :  { %5924 = vmatprep.subr.bf16.mxu1 %v10918_v46  ;;  %v4201_v46 = vld [vmem:[%s10473_s1 + $0x1170] sm:$0xff]  ;;  %v10923_v13 = vld [vmem:[#allocation11_spill] sm:$0xff] }
 0x170   :  { %10921 = vst [vmem:[#allocation9_spill] sm:$0xff] %v9515_v15  ;;  %v9531_v45 = vpack.c.bf16 %v4204_v44, %v4201_v46  ;;  %v4214_v44 = vld [vmem:[%s10473_s1 + $0x11d8] sm:$0xff]  ;;  %v4217_v46 = vld [vmem:[%s10473_s1 + $0x11f0] sm:$0xff] }
 0x171   :  { %5742 = vmatpush1.bf16.msra.mxu0 %v9491_v59  ;;  %v10924_v59 = vld [vmem:[#allocation12_spill] sm:$0xff] }
 0x172   :  { %5926 = vmatpush3.bf16.msra.mxu1 %v10920_v4  ;;  %5744 = vmatprep.subr.bf16.mxu0 %v9495_v57  ;;  %v9535_v4 = vpack.c.bf16 %v4211_v7, %v4208_v14  ;;  %v4210_v57 = vld [vmem:[%s10473_s1 + $0x11b8] sm:$0xff] }
 0x173   :  { %5928 = vmatprep.subr.bf16.mxu1 %v10922_v58  ;;  %v4207_v58 = vld [vmem:[%s10473_s1 + $0x11a0] sm:$0xff] }
 0x175   :  { %5746 = vmatpush1.bf16.msra.mxu0 %v9511_v31  ;;  %v10925_v31 = vld [vmem:[#allocation13_spill] sm:$0xff] }
 0x176   :  { %5930 = vmatpush3.bf16.msra.mxu1 %v10923_v13  ;;  %5748 = vmatprep.subr.bf16.mxu0 %v9515_v15  ;;  %v9551_v13 = vpack.c.bf16 %v4210_v57, %v4207_v58  ;;  %v10927_v58 = vld [vmem:[#allocation15_spill] sm:$0xff] }
 0x177   :  { %5932 = vmatprep.subr.bf16.mxu1 %v10924_v59  ;;  %v9555_v59 = vpack.c.bf16 %v4217_v46, %v4214_v44  ;;  %v10928_v44 = vld [vmem:[#allocation16_spill] sm:$0xff]  ;;  %v10929_v46 = vld [vmem:[#allocation17_spill] sm:$0xff] }
 0x178   :  { %v4369_v14 = vpop.f32.mrb[6].mxu1 }
 0x179   :  { %v4370_v7 = vpop.f32.mrb[7].mxu1  ;;  %5750 = vmatpush1.bf16.msra.mxu0 %v9531_v45 }
 0x17a   :  { %v4371_v15 = vadd.f32 %v4370_v7, %v4369_v14  ;;  %5934 = vmatpush3.bf16.msra.mxu1 %v10925_v31  ;;  %5752 = vmatprep.subr.bf16.mxu0 %v9535_v4  ;;  %v9568_v31 = vpack.c.bf16 %v4216_v49, %v4213_v20  ;;  %v10932_v49 = vrot.slane %v9244_v43, 1  ;;  %v10933_v20 = vld [vmem:[#allocation18_spill] sm:$0xff]  ;;  %v10934_v14 = vld [vmem:[#allocation51_spill] sm:$0xff]  ;;  %v10935_v7 = vld [vmem:[#allocation53_spill] sm:$0xff] }
 0x17b   :  { %5936 = vmatprep.subr.bf16.mxu1 %v10926_v53  ;;  %v10930_v53 = vld [vmem:[#allocation50_spill] sm:$0xff] }
 0x17c   :  { %v9565_v57 = vadd.f32 %v9226_v28, %v4371_v15  ;;  %v10931_v28 = vrot.slane %v8892_v5, 3  ;;  %v4220_v15 = vld [vmem:[%s10474_s0 + $0x20] sm:$0x7]  ;;  %v10936_v5 = vld [vmem:[#allocation19_spill] sm:$0xff] }
 0x17d   :  { %5754 = vmatpush1.bf16.msra.mxu0 %v9551_v13  ;;  %v10937_v43 = vld [vmem:[#allocation54_spill] sm:$0xff] }
 0x17e   :  { %5938 = vmatpush3.bf16.msra.mxu1 %v10927_v58  ;;  %5756 = vmatprep.subr.bf16.mxu0 %v9555_v59  ;;  %v10938_v58 = vld [vmem:[#allocation56_spill] sm:$0xff] }
 0x17f   :  { %5940 = vmatprep.subr.bf16.mxu1 %v10928_v44  ;;  %v10939_v44 = vld [vmem:[#allocation20_spill] sm:$0xff] }
 0x181   :  { %5758 = vmatpush1.bf16.msra.mxu0 %v9568_v31 }
 0x182   :  { %5942 = vmatpush3.bf16.msra.mxu1 %v10929_v46  ;;  %5943 = vmatprep.subr.bf16.mxu0 %v10716_v60  ;;  %v10940_v46 = vld [vmem:[#allocation57_spill] sm:$0xff] }
 0x183   :  { %5968 = vmatprep.subr.bf16.mxu1 %v10930_v53  ;;  %v10941_v53 = vld [vmem:[#allocation59_spill] sm:$0xff] }
 0x184   :  { %1626 = vmatmul.mubr.f32.vlgmr.msra.gmra.mrb[0].mxu0 %v10931_v28  ;;  %v10942_v28 = vld [vmem:[#allocation21_spill] sm:$0xff] }
 0x185   :  { %2044 = vmatmul.mubr.f32.vlgmr.msra.gmra.mrb[12].mxu1 %v10932_v49  ;;  %5945 = vmatpush3.bf16.msra.mxu0 %v10933_v20  ;;  %v10943_v49 = vld [vmem:[#allocation60_spill] sm:$0xff]  ;;  %v10944_v20 = vld [vmem:[#allocation62_spill] sm:$0xff] }
 0x186   :  { %5970 = vmatpush1.bf16.msra.mxu1 %v10934_v14  ;;  %5946 = vmatprep.subr.bf16.mxu0 %v10716_v60  ;;  %v10945_v14 = vld [vmem:[#allocation22_spill] sm:$0xff] }
 0x187   :  { %5972 = vmatprep.subr.bf16.mxu1 %v10935_v7  ;;  %4959 = vmatprep.mubr.msk.f32.mxu0 %vm6701_vm0, %v10724_v55  ;;  %v10946_v7 = vld [vmem:[#allocation63_spill] sm:$0xff] }
 0x188   :  { %2183 = vmatprep.mubr.f32.mxu1 %v4220_v15 }
 0x189   :  { %5948 = vmatpush3.bf16.msra.mxu0 %v10936_v5  ;;  %v10947_v5 = vld [vmem:[#allocation65_spill] sm:$0xff] }
 0x18a   :  { %5974 = vmatpush1.bf16.msra.mxu1 %v10937_v43  ;;  %5949 = vmatprep.subr.bf16.mxu0 %v10716_v60  ;;  %v10948_v43 = vld [vmem:[#allocation23_spill] sm:$0xff] }
 0x18b   :  { %5976 = vmatprep.subr.bf16.mxu1 %v10938_v58  ;;  %v10949_v58 = vld [vmem:[#allocation66_spill] sm:$0xff] }
 0x18d   :  { %5951 = vmatpush3.bf16.msra.mxu0 %v10939_v44  ;;  %v10950_v44 = vld [vmem:[#allocation68_spill] sm:$0xff] }
 0x18e   :  { %5978 = vmatpush1.bf16.msra.mxu1 %v10940_v46  ;;  %5952 = vmatprep.subr.bf16.mxu0 %v10716_v60  ;;  %v10951_v46 = vld [vmem:[#allocation24_spill] sm:$0xff] }
 0x18f   :  { %5980 = vmatprep.subr.bf16.mxu1 %v10941_v53  ;;  %v10952_v53 = vld [vmem:[#allocation69_spill] sm:$0xff] }
 0x191   :  { %5954 = vmatpush3.bf16.msra.mxu0 %v10942_v28  ;;  %v10953_v28 = vld [vmem:[#allocation71_spill] sm:$0xff] }
 0x192   :  { %5982 = vmatpush1.bf16.msra.mxu1 %v10943_v49  ;;  %5955 = vmatprep.subr.bf16.mxu0 %v10716_v60  ;;  %v10954_v49 = vld [vmem:[#allocation25_spill] sm:$0xff] }
 0x193   :  { %5984 = vmatprep.subr.bf16.mxu1 %v10944_v20  ;;  %v10955_v20 = vld [vmem:[#allocation72_spill] sm:$0xff] }
 0x195   :  { %5957 = vmatpush3.bf16.msra.mxu0 %v10945_v14  ;;  %v10956_v14 = vld [vmem:[#allocation26_spill] sm:$0xff] }
 0x196   :  { %5986 = vmatpush1.bf16.msra.mxu1 %v10946_v7  ;;  %5958 = vmatprep.subr.bf16.mxu0 %v10716_v60  ;;  %v10957_v7 = vld [vmem:[#allocation74_spill] sm:$0xff] }
 0x197   :  { %5988 = vmatprep.subr.bf16.mxu1 %v10947_v5  ;;  %v10958_v5 = vrot.slane %v9413_v40, 1  ;;  %v10968_v40 = vld [vmem:[#allocation84_spill] sm:$0xff] }
 0x199   :  { %5960 = vmatpush3.bf16.msra.mxu0 %v10948_v43  ;;  %v10959_v43 = vld [vmem:[#allocation27_spill] sm:$0xff] }
 0x19a   :  { %5990 = vmatpush1.bf16.msra.mxu1 %v10949_v58  ;;  %5961 = vmatprep.subr.bf16.mxu0 %v10716_v60  ;;  %v10960_v58 = vld [vmem:[#allocation76_spill] sm:$0xff] }
 0x19b   :  { %5992 = vmatprep.subr.bf16.mxu1 %v10950_v44  ;;  %v10961_v44 = vld [vmem:[#allocation28_spill] sm:$0xff] }
 0x19d   :  { %5963 = vmatpush3.bf16.msra.mxu0 %v10951_v46  ;;  %v10962_v46 = vld [vmem:[#allocation78_spill] sm:$0xff] }
 0x19e   :  { %5994 = vmatpush1.bf16.msra.mxu1 %v10952_v53  ;;  %5964 = vmatprep.subr.bf16.mxu0 %v10716_v60  ;;  %v10963_v53 = vld [vmem:[#allocation29_spill] sm:$0xff] }
 0x19f   :  { %5996 = vmatprep.subr.bf16.mxu1 %v10953_v28  ;;  %v10964_v28 = vld [vmem:[#allocation80_spill] sm:$0xff] }
 0x1a1   :  { %5966 = vmatpush3.bf16.msra.mxu0 %v10954_v49  ;;  %v10965_v49 = vld [vmem:[#allocation30_spill] sm:$0xff] }
 0x1a2   :  { %5998 = vmatpush1.bf16.msra.mxu1 %v10955_v20  ;;  %6064 = vmatprep.subr.bf16.mxu0 %v10956_v14  ;;  %v10966_v20 = vld [vmem:[#allocation82_spill] sm:$0xff]  ;;  %v10967_v14 = vld [vmem:[#allocation31_spill] sm:$0xff] }
 0x1a3   :  { %6000 = vmatprep.subr.bf16.mxu1 %v10957_v7  ;;  %v10969_v7 = vld [vmem:[#allocation32_spill] sm:$0xff] }
 0x1a4   :  { %4960 = vmatmul.mubr.f32.vlgmr.msra.gmra.mrb[2].mxu0 %v10958_v5  ;;  %v10971_v5 = vld [vmem:[#allocation33_spill] sm:$0xff] }
 0x1a5   :  { %6066 = vmatpush3.bf16.msra.mxu0 %v10959_v43  ;;  %2325 = vmatprep.mubr.f32.mxu0 %v4220_v15  ;;  %v10970_v15 = vld [vmem:[#allocation86_spill] sm:$0xff]  ;;  %v10972_v43 = vld [vmem:[#allocation88_spill] sm:$0xff] }
 0x1a6   :  { %6002 = vmatpush1.bf16.msra.mxu1 %v10960_v58  ;;  %6068 = vmatprep.subr.bf16.mxu0 %v10961_v44  ;;  %v10973_v58 = vld [vmem:[#allocation35_spill] sm:$0xff]  ;;  %v10974_v44 = vld [vmem:[#allocation90_spill] sm:$0xff] }
 0x1a7   :  { %6004 = vmatprep.subr.bf16.mxu1 %v10962_v46  ;;  %v10975_v46 = vld [vmem:[#allocation37_spill] sm:$0xff] }
 0x1a9   :  { %6070 = vmatpush3.bf16.msra.mxu0 %v10963_v53  ;;  %v10976_v53 = vld [vmem:[#allocation92_spill] sm:$0xff] }
 0x1aa   :  { %6006 = vmatpush1.bf16.msra.mxu1 %v10964_v28  ;;  %6072 = vmatprep.subr.bf16.mxu0 %v10965_v49  ;;  %v10977_v28 = vld [vmem:[#allocation39_spill] sm:$0xff]  ;;  %v10978_v49 = vld [vmem:[#allocation94_spill] sm:$0xff] }
 0x1ab   :  { %6008 = vmatprep.subr.bf16.mxu1 %v10966_v20 }
 0x1ad   :  { %6074 = vmatpush3.bf16.msra.mxu0 %v10967_v14 }
 0x1ae   :  { %6010 = vmatpush1.bf16.msra.mxu1 %v10968_v40  ;;  %6076 = vmatprep.subr.bf16.mxu0 %v10969_v7  ;;  %v10979_v40 = vld [vmem:[#allocation41_spill] sm:$0xff] }
 0x1af   :  { %6012 = vmatprep.subr.bf16.mxu1 %v10970_v15  ;;  %v10980_v15 = vld [vmem:[#allocation96_spill] sm:$0xff] }
 0x1b1   :  { %6078 = vmatpush3.bf16.msra.mxu0 %v10971_v5  ;;  %v10981_v5 = vld [vmem:[#allocation43_spill] sm:$0xff] }
 0x1b2   :  { %6014 = vmatpush1.bf16.msra.mxu1 %v10972_v43  ;;  %6080 = vmatprep.subr.bf16.mxu0 %v10973_v58  ;;  %v10982_v43 = vld [vmem:[#allocation98_spill] sm:$0xff] }
 0x1b3   :  { %6016 = vmatprep.subr.bf16.mxu1 %v10974_v44  ;;  %v10983_v44 = vld [vmem:[#allocation45_spill] sm:$0xff] }
 0x1b5   :  { %6082 = vmatpush3.bf16.msra.mxu0 %v10975_v46  ;;  %v10984_v46 = vld [vmem:[#allocation100_spill] sm:$0xff] }
 0x1b6   :  { %6018 = vmatpush1.bf16.msra.mxu1 %v10976_v53  ;;  %6084 = vmatprep.subr.bf16.mxu0 %v10977_v28  ;;  %v10985_v53 = vld [vmem:[#allocation47_spill] sm:$0xff]  ;;  %v10986_v28 = vld [vmem:[#allocation102_spill] sm:$0xff] }
 0x1b7   :  { %6020 = vmatprep.subr.bf16.mxu1 %v10978_v49  ;;  %v10987_v49 = vld [vmem:[#allocation49_spill] sm:$0xff] }
 0x1b8   :  { %v4421_v20 = vpop.f32.mrb[8].mxu1 }
 0x1b9   :  { %v4422_v14 = vpop.f32.mrb[9].mxu1  ;;  %6086 = vmatpush3.bf16.msra.mxu0 %v10979_v40  ;;  %v10989_v40 = vld [vmem:[#allocation106_spill] sm:$0xff] }
 0x1ba   :  { %v4423_v7 = vadd.f32 %v4422_v14, %v4421_v20  ;;  %6022 = vmatpush1.bf16.msra.mxu1 %v10980_v15  ;;  %6088 = vmatprep.subr.bf16.mxu0 %v10981_v5  ;;  %v4219_v20 = vld [vmem:[%s10474_s0 + $0x18] sm:$0x7]  ;;  %v10988_v14 = vld [vmem:[#allocation104_spill] sm:$0xff]  ;;  %v10993_v5 = vld [vmem:[#allocation55_spill] sm:$0xff] }
 0x1bb   :  { %6024 = vmatprep.subr.bf16.mxu1 %v10982_v43  ;;  %v10992_v15 = vld [vmem:[#allocation109_spill] sm:$0xff]  ;;  %v10994_v43 = vld [vmem:[#allocation110_spill] sm:$0xff] }
 0x1bc   :  { %v6649_v58 = vadd.f32 %v9565_v57, %v4423_v7  ;;  %v10990_v57 = vld [vmem:[#allocation52_spill] sm:$0xff]  ;;  %v10991_v7 = vld [vmem:[#allocation107_spill] sm:$0xff] }
 0x1bd   :  { %6090 = vmatpush3.bf16.msra.mxu0 %v10983_v44  ;;  %v10995_v44 = vld [vmem:[#allocation112_spill] sm:$0xff] }
 0x1be   :  { %6026 = vmatpush1.bf16.msra.mxu1 %v10984_v46  ;;  %6092 = vmatprep.subr.bf16.mxu0 %v10985_v53  ;;  %v10996_v46 = vld [vmem:[#allocation58_spill] sm:$0xff]  ;;  %v10997_v53 = vld [vmem:[#allocation113_spill] sm:$0xff] }
 0x1bf   :  { %6028 = vmatprep.subr.bf16.mxu1 %v10986_v28  ;;  %v10998_v28 = vld [vmem:[#allocation115_spill] sm:$0xff] }
 0x1c1   :  { %6094 = vmatpush3.bf16.msra.mxu0 %v10987_v49  ;;  %v10999_v49 = vld [vmem:[#allocation61_spill] sm:$0xff] }
 0x1c2   :  { %6030 = vmatpush1.bf16.msra.mxu1 %v10988_v14  ;;  %6095 = vmatprep.subr.bf16.mxu0 %v10716_v60  ;;  %v11001_v14 = vld [vmem:[#allocation118_spill] sm:$0xff] }
 0x1c3   :  { %6032 = vmatprep.subr.bf16.mxu1 %v10989_v40  ;;  %v11002_v40 = vld [vmem:[#allocation64_spill] sm:$0xff] }
 0x1c4   :  { %2326 = vmatmul.mubr.f32.vlgmr.msra.gmra.mrb[4].mxu0 %v4219_v20 }
 0x1c5   :  { %2184 = vmatmul.mubr.f32.vlgmr.msra.gmra.mrb[10].mxu1 %v4219_v20  ;;  %6097 = vmatpush3.bf16.msra.mxu0 %v10990_v57  ;;  %v11000_v20 = vld [vmem:[#allocation116_spill] sm:$0xff]  ;;  %v11003_v57 = vld [vmem:[#allocation119_spill] sm:$0xff] }
 0x1c6   :  { %6034 = vmatpush1.bf16.msra.mxu1 %v10991_v7  ;;  %6098 = vmatprep.subr.bf16.mxu0 %v10716_v60  ;;  %v11004_v7 = vld [vmem:[#allocation121_spill] sm:$0xff] }
 0x1c7   :  { %6036 = vmatprep.subr.bf16.mxu1 %v10992_v15  ;;  %2254 = vmatprep.mubr.f32.mxu1 %v10724_v55 }
 0x1c8   :  { %4994 = vmatprep.mubr.msk.f32.mxu0 %vm6701_vm0, %v10724_v55 }
 0x1c9   :  { %6100 = vmatpush3.bf16.msra.mxu0 %v10993_v5 }
 0x1ca   :  { %6038 = vmatpush1.bf16.msra.mxu1 %v10994_v43  ;;  %6101 = vmatprep.subr.bf16.mxu0 %v10716_v60 }
 0x1cb   :  { %6040 = vmatprep.subr.bf16.mxu1 %v10995_v44  ;;  %v11005_v44 = vld [vmem:[#allocation67_spill] sm:$0xff] }
 0x1cd   :  { %6103 = vmatpush3.bf16.msra.mxu0 %v10996_v46  ;;  %v11006_v46 = vld [vmem:[#allocation122_spill] sm:$0xff] }
 0x1ce   :  { %6042 = vmatpush1.bf16.msra.mxu1 %v10997_v53  ;;  %6104 = vmatprep.subr.bf16.mxu0 %v10716_v60  ;;  %v11007_v53 = vld [vmem:[#allocation124_spill] sm:$0xff] }
 0x1cf   :  { %6044 = vmatprep.subr.bf16.mxu1 %v10998_v28  ;;  %v11008_v28 = vld [vmem:[#allocation70_spill] sm:$0xff] }
 0x1d1   :  { %6106 = vmatpush3.bf16.msra.mxu0 %v10999_v49  ;;  %v11009_v49 = vld [vmem:[#allocation125_spill] sm:$0xff] }
 0x1d2   :  { %6046 = vmatpush1.bf16.msra.mxu1 %v11000_v20  ;;  %6107 = vmatprep.subr.bf16.mxu0 %v10716_v60  ;;  %v11010_v20 = vld [vmem:[#allocation127_spill] sm:$0xff] }
 0x1d3   :  { %6048 = vmatprep.subr.bf16.mxu1 %v11001_v14  ;;  %v11011_v14 = vld [vmem:[#allocation73_spill] sm:$0xff] }
 0x1d5   :  { %6109 = vmatpush3.bf16.msra.mxu0 %v11002_v40  ;;  %v4221_v40 = vld [vmem:[%s10474_s0 + $0x28] sm:$0x7] }
 0x1d6   :  { %6050 = vmatpush1.bf16.msra.mxu1 %v11003_v57  ;;  %6110 = vmatprep.subr.bf16.mxu0 %v10716_v60  ;;  %v11012_v57 = vld [vmem:[#allocation128_spill] sm:$0xff] }
 0x1d7   :  { %6052 = vmatprep.subr.bf16.mxu1 %v11004_v7  ;;  %v11013_v7 = vld [vmem:[#allocation75_spill] sm:$0xff] }
 0x1d8   :  { %v1768_v15 = vpop.f32.mrb[2].mxu1 }
 0x1d9   :  { %v9679_v5 = vadd.f32 %v6649_v58, %v1768_v15  ;;  %v4926_v43 = vpop.f32.mrb[3].mxu1  ;;  %6112 = vmatpush3.bf16.msra.mxu0 %v11005_v44  ;;  %v4226_v58 = vld [vmem:[%s10474_s0 + $0x20] sm:$0x1c]  ;;  %v11015_v44 = vld [vmem:[#allocation131_spill] sm:$0xff] }
 0x1da   :  { %6054 = vmatpush1.bf16.msra.mxu1 %v11006_v46  ;;  %6113 = vmatprep.subr.bf16.mxu0 %v10716_v60  ;;  %v2408_v15 = vrot.slane %v4226_v58, 2  ;;  %v11014_v43 = vld [vmem:[#allocation77_spill] sm:$0xff]  ;;  %v11016_v46 = vld [vmem:[#allocation79_spill] sm:$0xff]  ;;  %v11022_v58 = vld [vmem:[#allocation138_spill] sm:$0xff] }
 0x1db   :  { %6056 = vmatprep.subr.bf16.mxu1 %v11007_v53  ;;  %v11017_v53 = vld [vmem:[#allocation133_spill] sm:$0xff] }
 0x1dd   :  { %6115 = vmatpush3.bf16.msra.mxu0 %v11008_v28  ;;  %v11018_v28 = vld [vmem:[#allocation81_spill] sm:$0xff] }
 0x1de   :  { %6058 = vmatpush1.bf16.msra.mxu1 %v11009_v49  ;;  %6116 = vmatprep.subr.bf16.mxu0 %v10716_v60  ;;  %v11019_v49 = vld [vmem:[#allocation83_spill] sm:$0xff] }
 0x1df   :  { %6060 = vmatprep.subr.bf16.mxu1 %v11010_v20  ;;  %v11021_v20 = vld [vmem:[#allocation85_spill] sm:$0xff] }
 0x1e1   :  { %6118 = vmatpush3.bf16.msra.mxu0 %v11011_v14  ;;  %v11023_v14 = vld [vmem:[#allocation87_spill] sm:$0xff] }
 0x1e2   :  { %6062 = vmatpush1.bf16.msra.mxu1 %v11012_v57  ;;  %6216 = vmatprep.subr.bf16.mxu0 %v11013_v7  ;;  %v11025_v57 = vld [vmem:[#allocation89_spill] sm:$0xff]  ;;  %v11026_v7 = vld [vmem:[#allocation142_spill] sm:$0xff] }
 0x1e3   :  { %6120 = vmatprep.subr.bf16.mxu1 %v8353_v27  ;;  %v11020_v27 = vld [vmem:[#allocation136_spill] sm:$0xff] }
 0x1e4   :  { %4995 = vmatmul.mubr.f32.vlgmr.msra.gmra.mrb[2].mxu0 %v4221_v40 }
 0x1e5   :  { %2255 = vmatmul.mubr.f32.vlgmr.msra.gmra.mrb[10].mxu1 %v4221_v40  ;;  %6218 = vmatpush3.bf16.msra.mxu0 %v11014_v43  ;;  %v11024_v40 = vld [vmem:[#allocation140_spill] sm:$0xff] }
 0x1e6   :  { %6122 = vmatpush1.bf16.msra.mxu1 %v11015_v44  ;;  %6220 = vmatprep.subr.bf16.mxu0 %v11016_v46  ;;  %v11028_v43 = vld [vmem:[#allocation144_spill] sm:$0xff]  ;;  %v11030_v44 = vld [vmem:[#allocation146_spill] sm:$0xff]  ;;  %v11031_v46 = vld [vmem:[#allocation95_spill] sm:$0xff] }
 0x1e7   :  { %6124 = vmatprep.subr.bf16.mxu1 %v11017_v53  ;;  %2619 = vmatprep.mubr.f32.mxu0 %v2408_v15  ;;  %v11032_v53 = vld [vmem:[#allocation148_spill] sm:$0xff] }
 0x1e8   :  { %2477 = vmatprep.mubr.f32.mxu1 %v2408_v15  ;;  %v11027_v15 = vld [vmem:[#allocation91_spill] sm:$0xff] }
 0x1e9   :  { %6222 = vmatpush3.bf16.msra.mxu0 %v11018_v28  ;;  %v11033_v28 = vld [vmem:[#allocation97_spill] sm:$0xff] }
 0x1ea   :  { %6126 = vmatpush1.bf16.msra.mxu1 %v8431_v17  ;;  %6224 = vmatprep.subr.bf16.mxu0 %v11019_v49  ;;  %v11029_v17 = vld [vmem:[#allocation93_spill] sm:$0xff]  ;;  %v11034_v49 = vld [vmem:[#allocation150_spill] sm:$0xff] }
 0x1eb   :  { %6128 = vmatprep.subr.bf16.mxu1 %v11020_v27  ;;  %v11035_v27 = vld [vmem:[#allocation99_spill] sm:$0xff] }
 0x1ed   :  { %6226 = vmatpush3.bf16.msra.mxu0 %v11021_v20  ;;  %v11036_v20 = vld [vmem:[#allocation152_spill] sm:$0xff] }
 0x1ee   :  { %6130 = vmatpush1.bf16.msra.mxu1 %v11022_v58  ;;  %6228 = vmatprep.subr.bf16.mxu0 %v11023_v14  ;;  %v11037_v58 = vld [vmem:[#allocation101_spill] sm:$0xff] }
 0x1ef   :  { %6132 = vmatprep.subr.bf16.mxu1 %v11024_v40  ;;  %v4225_v14 = vld [vmem:[%s10474_s0 + $0x18] sm:$0x1c]  ;;  %v11038_v40 = vld [vmem:[#allocation154_spill] sm:$0xff] }
 0x1f1   :  { %6230 = vmatpush3.bf16.msra.mxu0 %v11025_v57  ;;  %v11039_v57 = vld [vmem:[#allocation103_spill] sm:$0xff] }
 0x1f2   :  { %6134 = vmatpush1.bf16.msra.mxu1 %v11026_v7  ;;  %6232 = vmatprep.subr.bf16.mxu0 %v11027_v15  ;;  %v11040_v7 = vld [vmem:[#allocation156_spill] sm:$0xff]  ;;  %v2407_v15 = vrot.slane %v4225_v14, 2  ;;  %v11051_v14 = vld [vmem:[#allocation167_spill] sm:$0xff] }
 0x1f3   :  { %6136 = vmatprep.subr.bf16.mxu1 %v11028_v43  ;;  %v11041_v43 = vld [vmem:[#allocation105_spill] sm:$0xff] }
 0x1f5   :  { %6234 = vmatpush3.bf16.msra.mxu0 %v11029_v17  ;;  %v11042_v17 = vld [vmem:[#allocation158_spill] sm:$0xff] }
 0x1f6   :  { %6138 = vmatpush1.bf16.msra.mxu1 %v11030_v44  ;;  %6236 = vmatprep.subr.bf16.mxu0 %v11031_v46  ;;  %v11043_v44 = vld [vmem:[#allocation160_spill] sm:$0xff] }
 0x1f7   :  { %6140 = vmatprep.subr.bf16.mxu1 %v11032_v53  ;;  %v11044_v46 = vld [vmem:[#allocation108_spill] sm:$0xff]  ;;  %v11045_v53 = vld [vmem:[#allocation161_spill] sm:$0xff] }
 0x1f9   :  { %6238 = vmatpush3.bf16.msra.mxu0 %v11033_v28  ;;  %v11046_v28 = vld [vmem:[#allocation163_spill] sm:$0xff] }
 0x1fa   :  { %6142 = vmatpush1.bf16.msra.mxu1 %v11034_v49  ;;  %6240 = vmatprep.subr.bf16.mxu0 %v11035_v27  ;;  %v11047_v49 = vld [vmem:[#allocation111_spill] sm:$0xff]  ;;  %v11048_v27 = vld [vmem:[#allocation164_spill] sm:$0xff] }
 0x1fb   :  { %6144 = vmatprep.subr.bf16.mxu1 %v11036_v20  ;;  %v11049_v20 = vld [vmem:[#allocation166_spill] sm:$0xff] }
 0x1fd   :  { %6242 = vmatpush3.bf16.msra.mxu0 %v11037_v58  ;;  %v11050_v58 = vld [vmem:[#allocation114_spill] sm:$0xff] }
 0x1fe   :  { %6146 = vmatpush1.bf16.msra.mxu1 %v11038_v40  ;;  %6244 = vmatprep.subr.bf16.mxu0 %v11039_v57  ;;  %v11052_v40 = vld [vmem:[#allocation169_spill] sm:$0xff] }
 0x1ff   :  { %6148 = vmatprep.subr.bf16.mxu1 %v11040_v7  ;;  %v11053_v57 = vld [vmem:[#allocation117_spill] sm:$0xff]  ;;  %v11054_v7 = vld [vmem:[#allocation170_spill] sm:$0xff] }
 0x201   :  { %6246 = vmatpush3.bf16.msra.mxu0 %v11041_v43  ;;  %v11055_v43 = vld [vmem:[#allocation172_spill] sm:$0xff] }
 0x202   :  { %6150 = vmatpush1.bf16.msra.mxu1 %v11042_v17  ;;  %6247 = vmatprep.subr.bf16.mxu0 %v10716_v60  ;;  %v11056_v17 = vld [vmem:[#allocation120_spill] sm:$0xff] }
 0x203   :  { %6152 = vmatprep.subr.bf16.mxu1 %v11043_v44  ;;  %v11057_v44 = vld [vmem:[#allocation173_spill] sm:$0xff] }
 0x204   :  { %2620 = vmatmul.mubr.f32.vlgmr.msra.gmra.mrb[6].mxu0 %v2407_v15 }
 0x205   :  { %6249 = vmatpush3.bf16.msra.mxu0 %v11044_v46  ;;  %5029 = vmatprep.mubr.msk.f32.mxu0 %vm6701_vm0, %v10724_v55  ;;  %v11058_v46 = vld [vmem:[#allocation175_spill] sm:$0xff] }
 0x206   :  { %6154 = vmatpush1.bf16.msra.mxu1 %v11045_v53  ;;  %6250 = vmatprep.subr.bf16.mxu0 %v10716_v60  ;;  %v11059_v53 = vld [vmem:[#allocation123_spill] sm:$0xff] }
 0x207   :  { %6156 = vmatprep.subr.bf16.mxu1 %v11046_v28  ;;  %v11060_v28 = vld [vmem:[#allocation176_spill] sm:$0xff] }
 0x209   :  { %6252 = vmatpush3.bf16.msra.mxu0 %v11047_v49  ;;  %v11061_v49 = vld [vmem:[#allocation126_spill] sm:$0xff] }
 0x20a   :  { %6158 = vmatpush1.bf16.msra.mxu1 %v11048_v27  ;;  %6253 = vmatprep.subr.bf16.mxu0 %v10716_v60  ;;  %v4227_v27 = vld [vmem:[%s10474_s0 + $0x28] sm:$0x1c] }
 0x20b   :  { %6160 = vmatprep.subr.bf16.mxu1 %v11049_v20  ;;  %v11062_v20 = vld [vmem:[#allocation179_spill] sm:$0xff] }
 0x20d   :  { %6255 = vmatpush3.bf16.msra.mxu0 %v11050_v58  ;;  %v2409_v58 = vrot.slane %v4227_v27, 2  ;;  %v11105_v27 = vld [vmem:[#allocation6_spill] sm:$0xff] }
 0x20e   :  { %6162 = vmatpush1.bf16.msra.mxu1 %v11051_v14  ;;  %6256 = vmatprep.subr.bf16.mxu0 %v10716_v60  ;;  %v4229_v14 = vld [vmem:[%s10474_s0 + $0x20] sm:$0x38] }
 0x20f   :  { %6164 = vmatprep.subr.bf16.mxu1 %v11052_v40  ;;  %v11063_v40 = vld [vmem:[#allocation129_spill] sm:$0xff] }
 0x211   :  { %6258 = vmatpush3.bf16.msra.mxu0 %v11053_v57  ;;  %v11065_v57 = vld [vmem:[#allocation181_spill] sm:$0xff] }
 0x212   :  { %6166 = vmatpush1.bf16.msra.mxu1 %v11054_v7  ;;  %6259 = vmatprep.subr.bf16.mxu0 %v10716_v60  ;;  %v2705_v7 = vrot.slane %v4229_v14, 3 }
 0x213   :  { %6168 = vmatprep.subr.bf16.mxu1 %v11055_v43  ;;  %v11067_v43 = vld [vmem:[#allocation134_spill] sm:$0xff] }
 0x215   :  { %6261 = vmatpush3.bf16.msra.mxu0 %v11056_v17  ;;  %v11068_v17 = vld [vmem:[#allocation135_spill] sm:$0xff] }
 0x216   :  { %6170 = vmatpush1.bf16.msra.mxu1 %v11057_v44  ;;  %6262 = vmatprep.subr.bf16.mxu0 %v10716_v60  ;;  %v11073_v44 = vld [vmem:[#allocation145_spill] sm:$0xff] }
 0x217   :  { %6172 = vmatprep.subr.bf16.mxu1 %v11058_v46  ;;  %v11101_v46 = vld [vmem:[#allocation2_spill] sm:$0xff] }
 0x219   :  { %6264 = vmatpush3.bf16.msra.mxu0 %v11059_v53  ;;  %v11102_v53 = vld [vmem:[#allocation3_spill] sm:$0xff] }
 0x21a   :  { %6174 = vmatpush1.bf16.msra.mxu1 %v11060_v28  ;;  %6265 = vmatprep.subr.bf16.mxu0 %v10716_v60  ;;  %v11103_v28 = vld [vmem:[#allocation4_spill] sm:$0xff] }
 0x21b   :  { %6176 = vmatprep.subr.bf16.mxu1 %v8829_v63  ;;  %v11064_v63 = vld [vmem:[#allocation130_spill] sm:$0xff] }
 0x21d   :  { %6267 = vmatpush3.bf16.msra.mxu0 %v11061_v49  ;;  %v11104_v49 = vld [vmem:[#allocation5_spill] sm:$0xff] }
 0x21e   :  { %6178 = vmatpush1.bf16.msra.mxu1 %v8851_v1  ;;  %6268 = vmatprep.subr.bf16.mxu0 %v10716_v60  ;;  %v11066_v1 = vld [vmem:[#allocation132_spill] sm:$0xff] }
 0x21f   :  { %6180 = vmatprep.subr.bf16.mxu1 %v11062_v20  ;;  %v11106_v20 = vld [vmem:[#allocation7_spill] sm:$0xff] }
 0x221   :  { %6270 = vmatpush3.bf16.msra.mxu0 %v11063_v40  ;;  %v11108_v40 = vld [vmem:[#allocation9_spill] sm:$0xff] }
 0x222   :  { %6182 = vmatpush1.bf16.msra.mxu1 %v8881_v32  ;;  %6368 = vmatprep.subr.bf16.mxu0 %v11064_v63  ;;  %v11069_v32 = vld [vmem:[#allocation137_spill] sm:$0xff] }
 0x223   :  { %6184 = vmatprep.subr.bf16.mxu1 %v11065_v57 }
 0x224   :  { %5030 = vmatmul.mubr.f32.vlgmr.msra.gmra.mrb[2].mxu0 %v2409_v58 }
 0x225   :  { %2478 = vmatmul.mubr.f32.vlgmr.msra.gmra.mrb[10].mxu1 %v2407_v15  ;;  %6370 = vmatpush3.bf16.msra.mxu0 %v11066_v1  ;;  %v11070_v15 = vld [vmem:[#allocation139_spill] sm:$0xff]  ;;  %v3078_v1 = vld [vmem:[%s10475_s2 + $0x100] sm:$0xff] }
 0x226   :  { %6186 = vmatpush1.bf16.msra.mxu1 %v8909_v18  ;;  %6372 = vmatprep.subr.bf16.mxu0 %v11067_v43  ;;  %v11071_v18 = vld [vmem:[#allocation141_spill] sm:$0xff]  ;;  %v3079_v43 = vld [vmem:[%s10475_s2 + $0x108] sm:$0xff] }
 0x227   :  { %6188 = vmatprep.subr.bf16.mxu1 %v8918_v51  ;;  %2916 = vmatprep.mubr.f32.mxu0 %v2705_v7  ;;  %v11072_v51 = vld [vmem:[#allocation143_spill] sm:$0xff] }
 0x228   :  { %2548 = vmatprep.mubr.f32.mxu1 %v10724_v55 }
 0x229   :  { %6374 = vmatpush3.bf16.msra.mxu0 %v11068_v17  ;;  %v9897_v17 = vpack.c.bf16 %v3079_v43, %v3078_v1  ;;  %v3073_v1 = vld [vmem:[%s10475_s2 + $0xd8] sm:$0xff] }
 0x22a   :  { %6190 = vmatpush1.bf16.msra.mxu1 %v8939_v38  ;;  %6376 = vmatprep.subr.bf16.mxu0 %v11069_v32  ;;  %v11074_v38 = vld [vmem:[#allocation147_spill] sm:$0xff] }
 0x22b   :  { %6192 = vmatprep.subr.bf16.mxu1 %v8943_v3  ;;  %v11075_v3 = vld [vmem:[#allocation149_spill] sm:$0xff] }
 0x22d   :  { %6378 = vmatpush3.bf16.msra.mxu0 %v11070_v15  ;;  %v3084_v15 = vld [vmem:[%s10475_s2 + $0x130] sm:$0xff] }
 0x22e   :  { %6194 = vmatpush1.bf16.msra.mxu1 %v8962_v24  ;;  %6380 = vmatprep.subr.bf16.mxu0 %v11071_v18  ;;  %v11076_v24 = vld [vmem:[#allocation151_spill] sm:$0xff]  ;;  %v3085_v18 = vld [vmem:[%s10475_s2 + $0x138] sm:$0xff] }
 0x22f   :  { %6196 = vmatprep.subr.bf16.mxu1 %v8966_v16  ;;  %v11077_v16 = vld [vmem:[#allocation153_spill] sm:$0xff] }
 0x231   :  { %6382 = vmatpush3.bf16.msra.mxu0 %v11072_v51  ;;  %v9930_v51 = vpack.c.bf16 %v3085_v18, %v3084_v15  ;;  %v3075_v15 = vld [vmem:[%s10475_s2 + $0xe8] sm:$0xff] }
 0x232   :  { %6198 = vmatpush1.bf16.msra.mxu1 %v8982_v42  ;;  %6384 = vmatprep.subr.bf16.mxu0 %v11073_v44  ;;  %v11078_v42 = vld [vmem:[#allocation155_spill] sm:$0xff]  ;;  %v3086_v44 = vld [vmem:[%s10475_s2 + $0x140] sm:$0xff] }
 0x233   :  { %6200 = vmatprep.subr.bf16.mxu1 %v8986_v25  ;;  %v9803_v25 = vld [vmem:[%s10474_s0 + $0x18] sm:$0x38] }
 0x235   :  { %6386 = vmatpush3.bf16.msra.mxu0 %v11074_v38  ;;  %v3087_v38 = vld [vmem:[%s10475_s2 + $0x148] sm:$0xff] }
 0x236   :  { %6202 = vmatpush1.bf16.msra.mxu1 %v9002_v30  ;;  %6388 = vmatprep.subr.bf16.mxu0 %v11075_v3  ;;  %v11079_v30 = vld [vmem:[#allocation157_spill] sm:$0xff]  ;;  %v9940_v3 = vpack.c.bf16 %v3087_v38, %v3086_v44  ;;  %v3058_v44 = vld [vmem:[%s10475_s2 + $0x60] sm:$0xff]  ;;  %v3059_v38 = vld [vmem:[%s10475_s2 + $0x68] sm:$0xff] }
 0x237   :  { %6204 = vmatprep.subr.bf16.mxu1 %v9006_v29  ;;  %v2704_v29 = vrot.slane %v9803_v25, 3  ;;  %v3090_v25 = vld [vmem:[%s10475_s2 + $0x160] sm:$0xff] }
 0x239   :  { %6390 = vmatpush3.bf16.msra.mxu0 %v11076_v24  ;;  %v3088_v24 = vld [vmem:[%s10475_s2 + $0x150] sm:$0xff] }
 0x23a   :  { %6206 = vmatpush1.bf16.msra.mxu1 %v9022_v26  ;;  %6392 = vmatprep.subr.bf16.mxu0 %v11077_v16  ;;  %v11080_v26 = vld [vmem:[#allocation159_spill] sm:$0xff]  ;;  %v3089_v16 = vld [vmem:[%s10475_s2 + $0x158] sm:$0xff] }
 0x23b   :  { %6208 = vmatprep.subr.bf16.mxu1 %v9026_v56  ;;  %v11081_v56 = vld [vmem:[#allocation162_spill] sm:$0xff] }
 0x23d   :  { %6394 = vmatpush3.bf16.msra.mxu0 %v11078_v42  ;;  %v9950_v42 = vpack.c.bf16 %v3089_v16, %v3088_v24  ;;  %v10097_v24 = vpack.c.bf16 %v3059_v38, %v3058_v44  ;;  %v3076_v16 = vld [vmem:[%s10475_s2 + $0xf0] sm:$0xff] }
 0x23e   :  { %6210 = vmatpush1.bf16.msra.mxu1 %v9042_v39  ;;  %6396 = vmatprep.subr.bf16.mxu0 %v11079_v30  ;;  %v11082_v39 = vld [vmem:[#allocation165_spill] sm:$0xff]  ;;  %v3091_v30 = vld [vmem:[%s10475_s2 + $0x168] sm:$0xff] }
 0x23f   :  { %6212 = vmatprep.subr.bf16.mxu1 %v9046_v12  ;;  %v11083_v12 = vld [vmem:[#allocation168_spill] sm:$0xff] }
 0x241   :  { %6398 = vmatpush3.bf16.msra.mxu0 %v11080_v26  ;;  %v3092_v26 = vld [vmem:[%s10475_s2 + $0x170] sm:$0xff] }
 0x242   :  { %6214 = vmatpush1.bf16.msra.mxu1 %v9062_v52  ;;  %6399 = vmatprep.subr.bf16.mxu0 %v10716_v60  ;;  %v11084_v52 = vld [vmem:[#allocation171_spill] sm:$0xff] }
 0x243   :  { %6272 = vmatprep.subr.bf16.mxu1 %v9066_v8  ;;  %v11085_v8 = vld [vmem:[#allocation174_spill] sm:$0xff] }
 0x244   :  { %2917 = vmatmul.mubr.f32.vlgmr.msra.gmra.mrb[8].mxu0 %v2704_v29 }
 0x245   :  { %2549 = vmatmul.mubr.f32.vlgmr.msra.gmra.mrb[10].mxu1 %v2409_v58  ;;  %6401 = vmatpush3.bf16.msra.mxu0 %v11081_v56  ;;  %v11107_v58 = vld [vmem:[#allocation8_spill] sm:$0xff]  ;;  %v3093_v56 = vld [vmem:[%s10475_s2 + $0x178] sm:$0xff] }
 0x246   :  { %6274 = vmatpush1.bf16.msra.mxu1 %v9082_v0  ;;  %6402 = vmatprep.subr.bf16.mxu0 %v10716_v60 }
 0x247   :  { %6276 = vmatprep.subr.bf16.mxu1 %v9086_v21  ;;  %5064 = vmatprep.mubr.msk.f32.mxu0 %vm6701_vm0, %v10724_v55 }
 0x248   :  { %2774 = vmatprep.mubr.f32.mxu1 %v2705_v7 }
 0x249   :  { %6404 = vmatpush3.bf16.msra.mxu0 %v11082_v39  ;;  %v9969_v39 = vpack.c.bf16 %v3093_v56, %v3092_v26  ;;  %v3060_v26 = vld [vmem:[%s10475_s2 + $0x70] sm:$0xff]  ;;  %v3061_v56 = vld [vmem:[%s10475_s2 + $0x78] sm:$0xff] }
 0x24a   :  { %6278 = vmatpush1.bf16.msra.mxu1 %v9104_v34  ;;  %6405 = vmatprep.subr.bf16.mxu0 %v10716_v60 }
 0x24b   :  { %6280 = vmatprep.subr.bf16.mxu1 %v9110_v54 }
 0x24d   :  { %6407 = vmatpush3.bf16.msra.mxu0 %v11083_v12  ;;  %v3062_v12 = vld [vmem:[%s10475_s2 + $0x80] sm:$0xff] }
 0x24e   :  { %6282 = vmatpush1.bf16.msra.mxu1 %v9126_v37  ;;  %6408 = vmatprep.subr.bf16.mxu0 %v10716_v60  ;;  %v11086_v37 = vld [vmem:[#allocation177_spill] sm:$0xff] }
 0x24f   :  { %6284 = vmatprep.subr.bf16.mxu1 %v9130_v50 }
 0x251   :  { %6410 = vmatpush3.bf16.msra.mxu0 %v11084_v52  ;;  %v3063_v52 = vld [vmem:[%s10475_s2 + $0x88] sm:$0xff] }
 0x252   :  { %6286 = vmatpush1.bf16.msra.mxu1 %v9146_v19  ;;  %6411 = vmatprep.subr.bf16.mxu0 %v10716_v60  ;;  %v11087_v19 = vld [vmem:[#allocation178_spill] sm:$0xff] }
 0x253   :  { %6288 = vmatprep.subr.bf16.mxu1 %v9150_v62  ;;  %v4230_v62 = vld [vmem:[%s10474_s0 + $0x28] sm:$0x38] }
 0x255   :  { %6413 = vmatpush3.bf16.msra.mxu0 %v11085_v8  ;;  %v3046_v8 = vld [vmem:[%s10475_s2] sm:$0xff] }
 0x256   :  { %6290 = vmatpush1.bf16.msra.mxu1 %v9166_v36  ;;  %6414 = vmatprep.subr.bf16.mxu0 %v10716_v60  ;;  %v2706_v36 = vrot.slane %v4230_v62, 3 }
 0x257   :  { %v9836_v0 = vpop.f32.mrb[0].mxu0  ;;  %6292 = vmatprep.subr.bf16.mxu1 %v9170_v2  ;;  %v11088_v2 = vld [vmem:[#allocation180_spill] sm:$0xff] }
 0x258   :  { %v4473_v21 = vpop.f32.mrb[12].mxu1  ;;  %v9839_v34 = vpop.f32.mrb[1].mxu0 }
 0x259   :  { %v4474_v54 = vpop.f32.mrb[13].mxu1  ;;  %6416 = vmatpush3.bf16.msra.mxu0 %v11086_v37  ;;  %v3064_v37 = vld [vmem:[%s10475_s2 + $0x90] sm:$0xff] }
 0x25a   :  { %v4475_v50 = vadd.f32 %v4474_v54, %v4473_v21  ;;  %6294 = vmatpush1.bf16.msra.mxu1 %v9186_v48  ;;  %6417 = vmatprep.subr.bf16.mxu0 %v10716_v60  ;;  %v11089_v48 = vld [vmem:[#allocation182_spill] sm:$0xff]  ;;  %v9983_v21 = vpack.c.bf16 %v3063_v52, %v3062_v12  ;;  %v3047_v54 = vld [vmem:[%s10475_s2 + $0x8] sm:$0xff]  ;;  %v10115_v12 = vpack.c.bf16 %v3061_v56, %v3060_v26 }
 0x25b   :  { %6296 = vmatprep.subr.bf16.mxu1 %v9190_v23  ;;  %v11090_v23 = vld [vmem:[#allocation183_spill] sm:$0xff] }
 0x25d   :  { %6419 = vmatpush3.bf16.msra.mxu0 %v11087_v19  ;;  %v9994_v19 = vpack.c.bf16 %v3047_v54, %v3046_v8 }
 0x25e   :  { %6298 = vmatpush1.bf16.msra.mxu1 %v9206_v47  ;;  %6420 = vmatprep.subr.bf16.mxu0 %v10716_v60  ;;  %v11091_v47 = vld [vmem:[#allocation184_spill] sm:$0xff] }
 0x25f   :  { %6300 = vmatprep.subr.bf16.mxu1 %v9210_v41  ;;  %v11092_v41 = vld [vmem:[#allocation185_spill] sm:$0xff] }
 0x261   :  { %6422 = vmatpush3.bf16.msra.mxu0 %v11088_v2  ;;  %v3049_v2 = vld [vmem:[%s10475_s2 + $0x18] sm:$0xff] }
 0x262   :  { %6302 = vmatpush1.bf16.msra.mxu1 %v9229_v35  ;;  %v11093_v35 = vld [vmem:[#allocation34_spill] sm:$0xff]  ;;  %6424 = vmatprep.subr.bf16.mxu0 %v9983_v21 }
 0x263   :  { %6304 = vmatprep.subr.bf16.mxu1 %v9233_v22  ;;  %v11094_v22 = vld [vmem:[#allocation36_spill] sm:$0xff] }
 0x264   :  { %5065 = vmatmul.mubr.f32.vlgmr.msra.gmra.mrb[2].mxu0 %v2706_v36 }
 0x265   :  { %6426 = vmatpush3.bf16.msra.mxu0 %v9994_v19 }
 0x266   :  { %6306 = vmatpush1.bf16.msra.mxu1 %v9254_v6  ;;  %v11095_v6 = vld [vmem:[#allocation38_spill] sm:$0xff] }
 0x267   :  { %6308 = vmatprep.subr.bf16.mxu1 %v9259_v9  ;;  %v11096_v9 = vld [vmem:[#allocation40_spill] sm:$0xff] }
 0x26a   :  { %6310 = vmatpush1.bf16.msra.mxu1 %v9277_v33  ;;  %v11097_v33 = vld [vmem:[#allocation42_spill] sm:$0xff] }
 0x26b   :  { %6312 = vmatprep.subr.bf16.mxu1 %v9281_v10  ;;  %v11098_v10 = vld [vmem:[#allocation44_spill] sm:$0xff] }
 0x26e   :  { %6314 = vmatpush1.bf16.msra.mxu1 %v9298_v61  ;;  %v11099_v61 = vld [vmem:[#allocation46_spill] sm:$0xff] }
 0x26f   :  { %6316 = vmatprep.subr.bf16.mxu1 %v9302_v11  ;;  %v11100_v11 = vld [vmem:[#allocation48_spill] sm:$0xff] }
 0x272   :  { %6318 = vmatpush1.bf16.msra.mxu1 %v11089_v48  ;;  %v3066_v48 = vld [vmem:[%s10475_s2 + $0xa0] sm:$0xff] }
 0x273   :  { %6320 = vmatprep.subr.bf16.mxu1 %v11090_v23  ;;  %v3067_v23 = vld [vmem:[%s10475_s2 + $0xa8] sm:$0xff] }
 0x276   :  { %6322 = vmatpush1.bf16.msra.mxu1 %v11091_v47 }
 0x277   :  { %6324 = vmatprep.subr.bf16.mxu1 %v11092_v41  ;;  %v10015_v41 = vpack.c.bf16 %v3067_v23, %v3066_v48 }
 0x27a   :  { %6326 = vmatpush1.bf16.msra.mxu1 %v11093_v35  ;;  %v3050_v35 = vld [vmem:[%s10475_s2 + $0x20] sm:$0xff] }
 0x27b   :  { %6328 = vmatprep.subr.bf16.mxu1 %v11094_v22  ;;  %v3051_v22 = vld [vmem:[%s10475_s2 + $0x28] sm:$0xff] }
 0x27e   :  { %6330 = vmatpush1.bf16.msra.mxu1 %v11095_v6  ;;  %v3068_v6 = vld [vmem:[%s10475_s2 + $0xb0] sm:$0xff] }
 0x27f   :  { %6332 = vmatprep.subr.bf16.mxu1 %v11096_v9  ;;  %v3069_v9 = vld [vmem:[%s10475_s2 + $0xb8] sm:$0xff] }
 0x282   :  { %6334 = vmatpush1.bf16.msra.mxu1 %v11097_v33  ;;  %v10030_v33 = vpack.c.bf16 %v3051_v22, %v3050_v35 }
 0x283   :  { %6336 = vmatprep.subr.bf16.mxu1 %v11098_v10  ;;  %v10033_v10 = vpack.c.bf16 %v3069_v9, %v3068_v6 }
 0x285   :  { %2775 = vmatmul.mubr.f32.vlgmr.msra.gmra.mrb[10].mxu1 %v2704_v29  ;;  %v9960_v29 = vpack.c.bf16 %v3091_v30, %v3090_v25  ;;  %v3077_v25 = vld [vmem:[%s10475_s2 + $0xf8] sm:$0xff] }
 0x286   :  { %6338 = vmatpush1.bf16.msra.mxu1 %v11099_v61  ;;  %2845 = vmatprep.mubr.f32.mxu1 %v10724_v55  ;;  %v3052_v61 = vld [vmem:[%s10475_s2 + $0x30] sm:$0xff]  ;;  %v10107_v30 = vpack.c.bf16 %v3077_v25, %v3076_v16 }
 0x287   :  { %6340 = vmatprep.subr.bf16.mxu1 %v11100_v11  ;;  %v3053_v11 = vld [vmem:[%s10475_s2 + $0x38] sm:$0xff] }
 0x28a   :  { %6342 = vmatpush1.bf16.msra.mxu1 %v11101_v46 }
 0x28b   :  { %6344 = vmatprep.subr.bf16.mxu1 %v11102_v53  ;;  %v10042_v53 = vpack.c.bf16 %v3053_v11, %v3052_v61 }
 0x28e   :  { %6346 = vmatpush1.bf16.msra.mxu1 %v11103_v28 }
 0x28f   :  { %6348 = vmatprep.subr.bf16.mxu1 %v11104_v49 }
 0x292   :  { %6350 = vmatpush1.bf16.msra.mxu1 %v11105_v27 }
 0x293   :  { %6352 = vmatprep.subr.bf16.mxu1 %v11106_v20  ;;  %v3070_v20 = vld [vmem:[%s10475_s2 + $0xc0] sm:$0xff] }
 0x296   :  { %6354 = vmatpush1.bf16.msra.mxu1 %v11107_v58  ;;  %v3071_v58 = vld [vmem:[%s10475_s2 + $0xc8] sm:$0xff] }
 0x297   :  { %v4525_v14 = vpop.f32.mrb[4].mxu0  ;;  %6356 = vmatprep.subr.bf16.mxu1 %v11108_v40  ;;  %v3054_v40 = vld [vmem:[%s10475_s2 + $0x40] sm:$0xff] }
 0x298   :  { %v4526_v63 = vpop.f32.mrb[5].mxu0 }
 0x299   :  { %v4527_v57 = vadd.f32 %v4526_v63, %v4525_v14  ;;  %v10053_v14 = vpack.c.bf16 %v3071_v58, %v3070_v20  ;;  %v3055_v63 = vld [vmem:[%s10475_s2 + $0x48] sm:$0xff] }
 0x29a   :  { %6358 = vmatpush1.bf16.msra.mxu1 %v9531_v45  ;;  %v3080_v45 = vld [vmem:[%s10475_s2 + $0x110] sm:$0xff] }
 0x29b   :  { %v9885_v7 = vadd.f32 %v4527_v57, %v4475_v50  ;;  %6360 = vmatprep.subr.bf16.mxu1 %v9535_v4  ;;  %v3081_v4 = vld [vmem:[%s10475_s2 + $0x118] sm:$0xff]  ;;  %v10061_v57 = vpack.c.bf16 %v3055_v63, %v3054_v40 }
 0x29c   :  { %v3065_v50 = vld [vmem:[%s10475_s2 + $0x98] sm:$0xff] }
 0x29d   :  { %v9996_v62 = vpack.c.bf16 %v3065_v50, %v3064_v37  ;;  %v1799_v50 = vmul.f32 %v9679_v5, %v9679_v5 }
 0x29e   :  { %6362 = vmatpush1.bf16.msra.mxu1 %v9551_v13  ;;  %v9907_v13 = vpack.c.bf16 %v3081_v4, %v3080_v45  ;;  %v3056_v45 = vld [vmem:[%s10475_s2 + $0x50] sm:$0xff]  ;;  %v3057_v4 = vld [vmem:[%s10475_s2 + $0x58] sm:$0xff] }
 0x29f   :  { %6364 = vmatprep.subr.bf16.mxu1 %v9555_v59  ;;  %v3082_v59 = vld [vmem:[%s10475_s2 + $0x120] sm:$0xff]  ;;  %6428 = vmatprep.subr.bf16.mxu0 %v9996_v62 }
 0x2a2   :  { %6366 = vmatpush1.bf16.msra.mxu1 %v9568_v31  ;;  %v3083_v31 = vld [vmem:[%s10475_s2 + $0x128] sm:$0xff] }
 0x2a3   :  { %6511 = vmatprep.subr.bf16.mxu1 %v10716_v60  ;;  %v9919_v32 = vpack.c.bf16 %v3083_v31, %v3082_v59  ;;  %v10079_v59 = vpack.c.bf16 %v3057_v4, %v3056_v45  ;;  %v3074_v31 = vld [vmem:[%s10475_s2 + $0xe0] sm:$0xff]  ;;  %v1798_v45 = vmul.f32 %v9839_v34, %v9839_v34  ;;  %v1776_v4 = vsel %vm1775_vm1, %v9836_v0, 0.0 }
 0x2a4   :  { %v10089_v18 = vpack.c.bf16 %v3075_v15, %v3074_v31  ;;  %v1783_v31 = vsel %vm1775_vm1, %v9839_v34, 0.0  ;;  %v1777_v44 = vrot.slane %v1776_v4, 4 }
 0x2a5   :  { %2846 = vmatmul.mubr.f32.vlgmr.msra.gmra.mrb[10].mxu1 %v2706_v36  ;;  %v3048_v36 = vld [vmem:[%s10475_s2 + $0x10] sm:$0xff]  ;;  %v1807_v38 = vsel %vm1775_vm1, %v1798_v45, 0.0  ;;  %v1784_v16 = vrot.slane %v1783_v31, 4 }
 0x2a6   :  { %6513 = vmatpush3.bf16.msra.mxu1 %v9897_v17  ;;  %5134 = vmatprep.mubr.msk.f32.mxu1 %vm6701_vm0, %v10724_v55  ;;  %v10012_v47 = vpack.c.bf16 %v3049_v2, %v3048_v36  ;;  %v1814_v36 = vsel %vm1775_vm1, %v1799_v50, 0.0  ;;  %v1808_v26 = vrot.slane %v1807_v38, 4  ;;  %v1778_v56 = vadd.f32 %v1777_v44, %v1776_v4 }
 0x2a7   :  { %6514 = vmatprep.subr.bf16.mxu1 %v10716_v60  ;;  %v1815_v2 = vrot.slane %v1814_v36, 4 }
 0x2a8   :  { %6430 = vmatpush3.bf16.msra.mxu0 %v10012_v47 }
 0x2a9   :  { %6432 = vmatprep.subr.bf16.mxu0 %v10015_v41  ;;  %v1816_v48 = vadd.f32 %v1815_v2, %v1814_v36 }
 0x2aa   :  { %6516 = vmatpush3.bf16.msra.mxu1 %v9907_v13 }
 0x2ab   :  { %6517 = vmatprep.subr.bf16.mxu1 %v10716_v60  ;;  %v1817_v9 = vrot.slane %v1816_v48, 2 }
 0x2ac   :  { %6434 = vmatpush3.bf16.msra.mxu0 %v10030_v33 }
 0x2ad   :  { %6436 = vmatprep.subr.bf16.mxu0 %v10033_v10 }
 0x2ae   :  { %6519 = vmatpush3.bf16.msra.mxu1 %v9919_v32 }
 0x2af   :  { %6520 = vmatprep.subr.bf16.mxu1 %v10716_v60 }
 0x2b0   :  { %6438 = vmatpush3.bf16.msra.mxu0 %v10042_v53 }
 0x2b1   :  { %6440 = vmatprep.subr.bf16.mxu0 %v10053_v14 }
 0x2b2   :  { %6522 = vmatpush3.bf16.msra.mxu1 %v9930_v51 }
 0x2b3   :  { %6523 = vmatprep.subr.bf16.mxu1 %v10716_v60 }
 0x2b4   :  { %6442 = vmatpush3.bf16.msra.mxu0 %v10061_v57 }
 0x2b6   :  { %6525 = vmatpush3.bf16.msra.mxu1 %v9940_v3 }
 0x2b7   :  { %6526 = vmatprep.subr.bf16.mxu1 %v10716_v60 }
 0x2ba   :  { %6528 = vmatpush3.bf16.msra.mxu1 %v9950_v42 }
 0x2bb   :  { %6529 = vmatprep.subr.bf16.mxu1 %v10716_v60 }
 0x2be   :  { %6531 = vmatpush3.bf16.msra.mxu1 %v9960_v29 }
 0x2bf   :  { %6532 = vmatprep.subr.bf16.mxu1 %v10716_v60 }
 0x2c2   :  { %6534 = vmatpush3.bf16.msra.mxu1 %v9969_v39 }
 0x2c3   :  { %6567 = vmatprep.subr.bf16.mxu1 %v10716_v60 }
 0x2d7   :  { %v4577_v46 = vpop.f32.mrb[6].mxu0 }
 0x2d8   :  { %v4578_v28 = vpop.f32.mrb[7].mxu0 }
 0x2d9   :  { %v4579_v49 = vadd.f32 %v4578_v28, %v4577_v46  ;;  %v1818_v46 = vadd.f32 %v1817_v9, %v1816_v48 }
 0x2db   :  { %v6652_v27 = vadd.f32 %v9885_v7, %v4579_v49  ;;  %v3072_v7 = vld [vmem:[%s10475_s2 + $0xd0] sm:$0xff]  ;;  %v1819_v20 = vrot.slane %v1818_v46, 1 }
 0x2dc   :  { %v10071_v43 = vpack.c.bf16 %v3073_v1, %v3072_v7  ;;  %v1797_v1 = vmul.f32 %v9836_v0, %v9836_v0 }
 0x2dd   :  { %v1820_v40 = vadd.f32 %v1819_v20, %v1818_v46 }
 0x2de   :  { %6444 = vmatprep.subr.bf16.mxu0 %v10071_v43  ;;  %v1800_v15 = vsel %vm1775_vm1, %v1797_v1, 0.0 }
 0x2df   :  { %6446 = vmatpush3.bf16.msra.mxu0 %v10079_v59  ;;  %v1801_v25 = vrot.slane %v1800_v15, 4 }
 0x2e0   :  { %6448 = vmatprep.subr.bf16.mxu0 %v10089_v18 }
 0x2e3   :  { %6450 = vmatpush3.bf16.msra.mxu0 %v10097_v24 }
 0x2e4   :  { %6452 = vmatprep.subr.bf16.mxu0 %v10107_v30 }
 0x2e7   :  { %6454 = vmatpush3.bf16.msra.mxu0 %v10115_v12 }
 0x2e8   :  { %6455 = vmatprep.subr.bf16.mxu0 %v10716_v60 }
 0x317   :  { %v4629_v52 = vpop.f32.mrb[8].mxu0 }
 0x318   :  { %v4630_v8 = vpop.f32.mrb[9].mxu0 }
 0x319   :  { %v4631_v54 = vadd.f32 %v4630_v8, %v4629_v52  ;;  %v1785_v52 = vadd.f32 %v1784_v16, %v1783_v31  ;;  %v1802_v8 = vadd.f32 %v1801_v25, %v1800_v15 }
 0x31b   :  { %v6653_v37 = vadd.f32 %v6652_v27, %v4631_v54  ;;  %v1809_v54 = vadd.f32 %v1808_v26, %v1807_v38  ;;  %v1786_v36 = vrot.slane %v1785_v52, 2 }
 0x337   :  { %v2988_v23 = vpop.f32.mrb[2].mxu0 }
 0x338   :  { %v10123_v35 = vadd.f32 %v6653_v37, %v2988_v23  ;;  %v5066_v22 = vpop.f32.mrb[3].mxu0  ;;  %v1779_v37 = vrot.slane %v1778_v56, 2 }
 0x339   :  { %v1803_v22 = vrot.slane %v1802_v8, 2 }
 0x33a   :  { %v3018_v6 = vmul.f32 %v10123_v35, %v10123_v35 }
 0x33b   :  { %v1804_v1 = vadd.f32 %v1803_v22, %v1802_v8 }
 0x33c   :  { %v3033_v61 = vsel %vm1775_vm1, %v3018_v6, 0.0 }
 0x33d   :  { %v3034_v11 = vrot.slane %v3033_v61, 4 }
 0x33f   :  { %v3035_v28 = vadd.f32 %v3034_v11, %v3033_v61  ;;  %v1810_v11 = vrot.slane %v1809_v54, 2 }
 0x341   :  { %v3036_v49 = vrot.slane %v3035_v28, 2  ;;  %v1811_v44 = vadd.f32 %v1810_v11, %v1809_v54 }
 0x343   :  { %v3037_v27 = vadd.f32 %v3036_v49, %v3035_v28  ;;  %v1780_v49 = vadd.f32 %v1779_v37, %v1778_v56  ;;  %v1805_v56 = vrot.slane %v1804_v1, 1 }
 0x345   :  { %v3038_v58 = vrot.slane %v3037_v27, 1  ;;  %v1781_v38 = vrot.slane %v1780_v49, 1  ;;  %v1806_v54 = vadd.f32 %v1805_v56, %v1804_v1  ;;  %v3401_v56 = vld [vmem:[%s10476_s3 + $0x78] sm:$0xff] }
 0x347   :  { %v3039_v63 = vadd.f32 %v3038_v58, %v3037_v27 }
 0x349   :  { %v3045_v7 = vadd.f32 %v3039_v63, %v1820_v40  ;;  %v1787_v40 = vadd.f32 %v1786_v36, %v1785_v52  ;;  %v1782_v36 = vadd.f32 %v1781_v38, %v1780_v49  ;;  %v1790_v49 = vsel %vm1775_vm1, %v9679_v5, 0.0 }
 0x34a   :  { %v1791_v1 = vrot.slane %v1790_v49, 4 }
 0x34b   :  { %5135 = vmatmul.mubr.f32.vlgmr.msra.gmra.mrb[14].mxu1 %v3045_v7 }
 0x34c   :  { %5169 = vmatprep.mubr.msk.f32.mxu1 %vm6701_vm0, %v10724_v55 }
 0x378   :  { %v10140_v50 = vpop.f32.mrb[10].mxu1 }
 0x379   :  { %v2995_v2 = vsel %vm1775_vm1, %v10140_v50, 0.0  ;;  %v3016_v48 = vmul.f32 %v10140_v50, %v10140_v50  ;;  %v10146_v23 = vpop.f32.mrb[11].mxu1 }
 0x37a   :  { %11109 = vst [vmem:[#allocation10_spill] sm:$0xff] %v10146_v23  ;;  %v2996_v6 = vrot.slane %v2995_v2, 4  ;;  %v3002_v9 = vsel %vm1775_vm1, %v10146_v23, 0.0  ;;  %v3017_v61 = vmul.f32 %v10146_v23, %v10146_v23  ;;  %v1788_v23 = vrot.slane %v1787_v40, 1 }
 0x37b   :  { %v3019_v46 = vsel %vm1775_vm1, %v3016_v48, 0.0  ;;  %v3003_v28 = vrot.slane %v3002_v9, 4 }
 0x37c   :  { %v2997_v27 = vadd.f32 %v2996_v6, %v2995_v2  ;;  %v3020_v20 = vrot.slane %v3019_v46, 4  ;;  %v3026_v58 = vsel %vm1775_vm1, %v3017_v61, 0.0  ;;  %v1812_v61 = vrot.slane %v1811_v44, 1 }
 0x37d   :  { %v3004_v63 = vadd.f32 %v3003_v28, %v3002_v9  ;;  %v3027_v7 = vrot.slane %v3026_v58, 4  ;;  %v1789_v22 = vadd.f32 %v1788_v23, %v1787_v40  ;;  %v3009_v23 = vsel %vm1775_vm1, %v10123_v35, 0.0 }
 0x37e   :  { %v2998_v45 = vrot.slane %v2997_v27, 2  ;;  %v3021_v4 = vadd.f32 %v3020_v20, %v3019_v46  ;;  %v3010_v40 = vrot.slane %v3009_v23, 4 }
 0x37f   :  { %v3005_v31 = vrot.slane %v3004_v63, 2  ;;  %v3028_v15 = vadd.f32 %v3027_v7, %v3026_v58  ;;  %v1813_v58 = vadd.f32 %v1812_v61, %v1811_v44 }
 0x380   :  { %v2999_v16 = vadd.f32 %v2998_v45, %v2997_v27  ;;  %v3022_v25 = vrot.slane %v3021_v4, 2 }
 0x381   :  { %v3006_v26 = vadd.f32 %v3005_v31, %v3004_v63  ;;  %v3029_v48 = vrot.slane %v3028_v15, 2 }
 0x382   :  { %v3000_v37 = vrot.slane %v2999_v16, 1  ;;  %v3023_v2 = vadd.f32 %v3022_v25, %v3021_v4  ;;  %v1792_v4 = vadd.f32 %v1791_v1, %v1790_v49  ;;  %v3412_v49 = vld [vmem:[%s10476_s3 + $0xd0] sm:$0xff]  ;;  %v3415_v1 = vld [vmem:[%s10476_s3 + $0xe8] sm:$0xff] }
 0x383   :  { %v3007_v6 = vrot.slane %v3006_v26, 1  ;;  %v3030_v52 = vadd.f32 %v3029_v48, %v3028_v15  ;;  %v3398_v48 = vld [vmem:[%s10476_s3 + $0x60] sm:$0xff] }
 0x384   :  { %v3001_v9 = vadd.f32 %v3000_v37, %v2999_v16  ;;  %v3024_v8 = vrot.slane %v3023_v2, 1  ;;  %v1793_v15 = vrot.slane %v1792_v4, 2  ;;  %v3400_v37 = vld [vmem:[%s10476_s3 + $0x70] sm:$0xff] }
 0x385   :  { %v3008_v46 = vadd.f32 %v3007_v6, %v3006_v26  ;;  %v3031_v28 = vrot.slane %v3030_v52, 1  ;;  %v3403_v6 = vld [vmem:[%s10476_s3 + $0x88] sm:$0xff] }
 0x386   :  { %v3040_v20 = vadd.f32 %v3001_v9, %v1782_v36  ;;  %v3025_v11 = vadd.f32 %v3024_v8, %v3023_v2  ;;  %v10265_v2 = vpack.c.bf16 %v3401_v56, %v3398_v48  ;;  %v10271_v61 = vpack.c.bf16 %v3403_v6, %v3400_v37  ;;  %v3405_v36 = vld [vmem:[%s10476_s3 + $0x98] sm:$0xff]  ;;  %v3408_v9 = vld [vmem:[%s10476_s3 + $0xb0] sm:$0xff] }
 0x387   :  { %v3041_v27 = vadd.f32 %v3008_v46, %v1789_v22  ;;  %v3032_v63 = vadd.f32 %v3031_v28, %v3030_v52  ;;  %v10283_v22 = vpack.c.bf16 %v3408_v9, %v3405_v36  ;;  %v3404_v46 = vld [vmem:[%s10476_s3 + $0x90] sm:$0xff]  ;;  %v3407_v28 = vld [vmem:[%s10476_s3 + $0xa8] sm:$0xff]  ;;  %v3433_v48 = vld [vmem:[%s10476_s3 + $0x178] sm:$0xff] }
 0x388   :  { %v3043_v7 = vadd.f32 %v3025_v11, %v1806_v54  ;;  %v10295_v54 = vpack.c.bf16 %v3407_v28, %v3404_v46  ;;  %v3409_v11 = vld [vmem:[%s10476_s3 + $0xb8] sm:$0xff] }
 0x389   :  { %3158 = vmatprep.mubr.f32.mxu0 %v3041_v27  ;;  %v3044_v45 = vadd.f32 %v3032_v63, %v1813_v58  ;;  %v3411_v58 = vld [vmem:[%s10476_s3 + $0xc8] sm:$0xff]  ;;  %v3414_v63 = vld [vmem:[%s10476_s3 + $0xe0] sm:$0xff] }
 0x38a   :  { %3159 = vmatmul.mubr.f32.vlgmr.msra.gmra.mrb[10].mxu0 %v3040_v20  ;;  %v3406_v20 = vld [vmem:[%s10476_s3 + $0xa0] sm:$0xff] }
 0x38b   :  { %6457 = vmatpush3.bf16.msra.mxu0 %v9897_v17  ;;  %5099 = vmatprep.mubr.msk.f32.mxu0 %vm6701_vm0, %v10724_v55  ;;  %v3011_v17 = vadd.f32 %v3010_v40, %v3009_v23  ;;  %v10301_v27 = vpack.c.bf16 %v3409_v11, %v3406_v20  ;;  %v3413_v23 = vld [vmem:[%s10476_s3 + $0xd8] sm:$0xff] }
 0x38c   :  { %6458 = vmatprep.subr.bf16.mxu0 %v10716_v60 }
 0x38d   :  { %v3012_v31 = vrot.slane %v3011_v17, 2 }
 0x38f   :  { %6460 = vmatpush3.bf16.msra.mxu0 %v9907_v13  ;;  %v3013_v44 = vadd.f32 %v3012_v31, %v3011_v17  ;;  %v1794_v13 = vadd.f32 %v1793_v15, %v1792_v4  ;;  %v10329_v17 = vpack.c.bf16 %v3415_v1, %v3412_v49  ;;  %v3417_v4 = vld [vmem:[%s10476_s3 + $0xf8] sm:$0xff]  ;;  %v3420_v31 = vld [vmem:[%s10476_s3 + $0x110] sm:$0xff] }
 0x390   :  { %6461 = vmatprep.subr.bf16.mxu0 %v10716_v60  ;;  %v10339_v15 = vpack.c.bf16 %v3420_v31, %v3417_v4 }
 0x391   :  { %v3014_v38 = vrot.slane %v3013_v44, 1 }
 0x393   :  { %6463 = vmatpush3.bf16.msra.mxu0 %v9919_v32  ;;  %v1795_v32 = vrot.slane %v1794_v13, 1 }
 0x394   :  { %6464 = vmatprep.subr.bf16.mxu0 %v10716_v60 }
 0x395   :  { %v1796_v16 = vadd.f32 %v1795_v32, %v1794_v13  ;;  %v3419_v13 = vld [vmem:[%s10476_s3 + $0x108] sm:$0xff] }
 0x397   :  { %6466 = vmatpush3.bf16.msra.mxu0 %v9930_v51  ;;  %v3015_v51 = vadd.f32 %v3014_v38, %v3013_v44  ;;  %v3416_v44 = vld [vmem:[%s10476_s3 + $0xf0] sm:$0xff]  ;;  %v3418_v38 = vld [vmem:[%s10476_s3 + $0x100] sm:$0xff] }
 0x398   :  { %6467 = vmatprep.subr.bf16.mxu0 %v10716_v60  ;;  %v10351_v32 = vpack.c.bf16 %v3419_v13, %v3416_v44 }
 0x399   :  { %v3042_v25 = vadd.f32 %v3015_v51, %v1796_v16  ;;  %v3421_v51 = vld [vmem:[%s10476_s3 + $0x118] sm:$0xff] }
 0x39a   :  { %v10357_v16 = vpack.c.bf16 %v3421_v51, %v3418_v38 }
 0x39b   :  { %6469 = vmatpush3.bf16.msra.mxu0 %v9940_v3  ;;  %v3387_v3 = vld [vmem:[%s10476_s3 + $0x8] sm:$0xff] }
 0x39c   :  { %6470 = vmatprep.subr.bf16.mxu0 %v10716_v60 }
 0x39f   :  { %6472 = vmatpush3.bf16.msra.mxu0 %v9950_v42  ;;  %v3390_v42 = vld [vmem:[%s10476_s3 + $0x20] sm:$0xff] }
 0x3a0   :  { %6473 = vmatprep.subr.bf16.mxu0 %v10716_v60 }
 0x3a3   :  { %6475 = vmatpush3.bf16.msra.mxu0 %v9960_v29  ;;  %v3386_v29 = vld [vmem:[%s10476_s3] sm:$0xff] }
 0x3a4   :  { %6476 = vmatprep.subr.bf16.mxu0 %v10716_v60 }
 0x3a7   :  { %6478 = vmatpush3.bf16.msra.mxu0 %v9969_v39  ;;  %v10201_v39 = vpack.c.bf16 %v3390_v42, %v3387_v3  ;;  %v3426_v3 = vld [vmem:[%s10476_s3 + $0x140] sm:$0xff] }
 0x3a8   :  { %6480 = vmatprep.subr.bf16.mxu0 %v9983_v21  ;;  %v3389_v21 = vld [vmem:[%s10476_s3 + $0x18] sm:$0xff]  ;;  %v3422_v42 = vld [vmem:[%s10476_s3 + $0x120] sm:$0xff] }
 0x3aa   :  { %5100 = vmatmul.mubr.f32.vlgmr.msra.gmra.mrb[12].mxu0 %v3042_v25  ;;  %v3423_v25 = vld [vmem:[%s10476_s3 + $0x128] sm:$0xff] }
 0x3ab   :  { %6482 = vmatpush3.bf16.msra.mxu0 %v9994_v19  ;;  %3298 = vmatprep.mubr.f32.mxu0 %v3044_v45  ;;  %v3388_v19 = vld [vmem:[%s10476_s3 + $0x10] sm:$0xff]  ;;  %v3410_v45 = vld [vmem:[%s10476_s3 + $0xc0] sm:$0xff] }
 0x3ac   :  { %6484 = vmatprep.subr.bf16.mxu0 %v9996_v62  ;;  %v3391_v62 = vld [vmem:[%s10476_s3 + $0x28] sm:$0xff]  ;;  %v10323_v40 = vpack.c.bf16 %v3413_v23, %v3410_v45 }
 0x3af   :  { %6486 = vmatpush3.bf16.msra.mxu0 %v10012_v47  ;;  %v10212_v47 = vpack.c.bf16 %v3389_v21, %v3386_v29  ;;  %v10369_v29 = vpack.c.bf16 %v3426_v3, %v3423_v25  ;;  %v3425_v21 = vld [vmem:[%s10476_s3 + $0x138] sm:$0xff] }
 0x3b0   :  { %6488 = vmatprep.subr.bf16.mxu0 %v10015_v41  ;;  %v10214_v41 = vpack.c.bf16 %v3391_v62, %v3388_v19  ;;  %v3424_v19 = vld [vmem:[%s10476_s3 + $0x130] sm:$0xff]  ;;  %v3427_v62 = vld [vmem:[%s10476_s3 + $0x148] sm:$0xff] }
 0x3b2   :  { %6569 = vmatpush3.bf16.msra.mxu1 %v10214_v41 }
 0x3b3   :  { %6490 = vmatpush3.bf16.msra.mxu0 %v10030_v33  ;;  %v3393_v33 = vld [vmem:[%s10476_s3 + $0x38] sm:$0xff]  ;;  %6570 = vmatprep.subr.bf16.mxu1 %v10716_v60 }
 0x3b4   :  { %6492 = vmatprep.subr.bf16.mxu0 %v10033_v10  ;;  %v3396_v10 = vld [vmem:[%s10476_s3 + $0x50] sm:$0xff] }
 0x3b7   :  { %6494 = vmatpush3.bf16.msra.mxu0 %v10042_v53  ;;  %v3392_v53 = vld [vmem:[%s10476_s3 + $0x30] sm:$0xff] }
 0x3b8   :  { %6496 = vmatprep.subr.bf16.mxu0 %v10053_v14  ;;  %v10226_v14 = vpack.c.bf16 %v3396_v10, %v3393_v33  ;;  %v10381_v33 = vpack.c.bf16 %v3425_v21, %v3422_v42  ;;  %v10383_v10 = vpack.c.bf16 %v3427_v62, %v3424_v19 }
 0x3bb   :  { %6498 = vmatpush3.bf16.msra.mxu0 %v10061_v57  ;;  %v3395_v57 = vld [vmem:[%s10476_s3 + $0x48] sm:$0xff] }
 0x3bc   :  { %6500 = vmatprep.subr.bf16.mxu0 %v10071_v43  ;;  %v3394_v43 = vld [vmem:[%s10476_s3 + $0x40] sm:$0xff] }
 0x3bf   :  { %6502 = vmatpush3.bf16.msra.mxu0 %v10079_v59  ;;  %v3397_v59 = vld [vmem:[%s10476_s3 + $0x58] sm:$0xff] }
 0x3c0   :  { %6504 = vmatprep.subr.bf16.mxu0 %v10089_v18  ;;  %v10239_v18 = vpack.c.bf16 %v3395_v57, %v3392_v53  ;;  %v3429_v53 = vld [vmem:[%s10476_s3 + $0x158] sm:$0xff]  ;;  %v3432_v57 = vld [vmem:[%s10476_s3 + $0x170] sm:$0xff] }
 0x3c3   :  { %6506 = vmatpush3.bf16.msra.mxu0 %v10097_v24  ;;  %v10241_v24 = vpack.c.bf16 %v3397_v59, %v3394_v43  ;;  %v3428_v43 = vld [vmem:[%s10476_s3 + $0x150] sm:$0xff]  ;;  %v10396_v59 = vpack.c.bf16 %v3432_v57, %v3429_v53 }
 0x3c4   :  { %6508 = vmatprep.subr.bf16.mxu0 %v10107_v30  ;;  %v3399_v30 = vld [vmem:[%s10476_s3 + $0x68] sm:$0xff] }
 0x3c5   :  { %6572 = vmatpush3.bf16.msra.mxu1 %v10241_v24 }
 0x3c6   :  { %6573 = vmatprep.subr.bf16.mxu1 %v10716_v60 }
 0x3c7   :  { %6510 = vmatpush3.bf16.msra.mxu0 %v10115_v12  ;;  %v3402_v12 = vld [vmem:[%s10476_s3 + $0x80] sm:$0xff] }
 0x3c8   :  { %6536 = vmatprep.subr.bf16.mxu0 %v10201_v39  ;;  %v10254_v26 = vpack.c.bf16 %v3402_v12, %v3399_v30  ;;  %v3431_v30 = vld [vmem:[%s10476_s3 + $0x168] sm:$0xff]  ;;  %v3430_v12 = vld [vmem:[%s10476_s3 + $0x160] sm:$0xff] }
 0x3c9   :  { %6575 = vmatpush3.bf16.msra.mxu1 %v10271_v61  ;;  %v10408_v56 = vpack.c.bf16 %v3431_v30, %v3428_v43  ;;  %v6589_v37 = vpack.c.bf16 %v3433_v48, %v3430_v12 }
 0x3ca   :  { %3299 = vmatmul.mubr.f32.vlgmr.msra.gmra.mrb[14].mxu0 %v3043_v7  ;;  %6576 = vmatprep.subr.bf16.mxu1 %v10716_v60  ;;  %v10311_v7 = vpack.c.bf16 %v3414_v63, %v3411_v58 }
 0x3cb   :  { %3498 = vmatprep.mubr.f32.mxu0 %v10724_v55  ;;  %6538 = vmatpush1.bf16.msra.mxu0 %v10212_v47 }
 0x3cc   :  { %6540 = vmatprep.subr.bf16.mxu0 %v10226_v14 }
 0x3cd   :  { %6578 = vmatpush3.bf16.msra.mxu1 %v10301_v27 }
 0x3ce   :  { %6579 = vmatprep.subr.bf16.mxu1 %v10716_v60 }
 0x3cf   :  { %6542 = vmatpush1.bf16.msra.mxu0 %v10239_v18 }
 0x3d0   :  { %6544 = vmatprep.subr.bf16.mxu0 %v10254_v26 }
 0x3d1   :  { %6581 = vmatpush3.bf16.msra.mxu1 %v10329_v17 }
 0x3d2   :  { %6582 = vmatprep.subr.bf16.mxu1 %v10716_v60 }
 0x3d3   :  { %6546 = vmatpush1.bf16.msra.mxu0 %v10265_v2 }
 0x3d4   :  { %6548 = vmatprep.subr.bf16.mxu0 %v10283_v22 }
 0x3d5   :  { %6584 = vmatpush3.bf16.msra.mxu1 %v10357_v16 }
 0x3d6   :  { %6585 = vmatprep.subr.bf16.mxu1 %v10716_v60 }
 0x3d7   :  { %6550 = vmatpush1.bf16.msra.mxu0 %v10295_v54 }
 0x3d8   :  { %6552 = vmatprep.subr.bf16.mxu0 %v10311_v7 }
 0x3d9   :  { %6587 = vmatpush3.bf16.msra.mxu1 %v10383_v10 }
 0x3da   :  { %6588 = vmatprep.subr.bf16.mxu1 %v10716_v60 }
 0x3db   :  { %6554 = vmatpush1.bf16.msra.mxu0 %v10323_v40 }
 0x3dc   :  { %6556 = vmatprep.subr.bf16.mxu0 %v10339_v15 }
 0x3dd   :  { %6590 = vmatpush3.bf16.msra.mxu1 %v6589_v37 }
 0x3de   :  { %6623 = vmatprep.subr.bf16.mxu1 %v10716_v60 }
 0x3df   :  { %6558 = vmatpush1.bf16.msra.mxu0 %v10351_v32 }
 0x3e0   :  { %6560 = vmatprep.subr.bf16.mxu0 %v10369_v29 }
 0x3e3   :  { %6562 = vmatpush1.bf16.msra.mxu0 %v10381_v33 }
 0x3e4   :  { %6564 = vmatprep.subr.bf16.mxu0 %v10396_v59 }
 0x3e7   :  { %6566 = vmatpush1.bf16.msra.mxu0 %v10408_v56 }
 0x3e8   :  { %6592 = vmatprep.subr.bf16.mxu0 %v10201_v39  ;;  %v3381_v39 = vld [vmem:[%s10477_s4] sm:$0x1] }
 0x41e   :  { %v10273_v52 = vpop.f32.mrb[14].mxu1 }
 0x41f   :  { %v5136_v8 = vpop.f32.mrb[15].mxu1 }
 0x45d   :  { %v4681_v6 = vpop.f32.mrb[10].mxu0 }
 0x45e   :  { %v4682_v36 = vpop.f32.mrb[11].mxu0 }
 0x45f   :  { %v4683_v9 = vadd.f32 %v4682_v36, %v4681_v6 }
 0x47d   :  { %v3230_v8 = vpop.f32.mrb[12].mxu0 }
 0x47e   :  { %v3231_v46 = vadd.f32 %v4683_v9, %v3230_v8  ;;  %v5101_v28 = vpop.f32.mrb[13].mxu0 }
 0x480   :  { %v3375_v58 = vmul.f32 0.055555556, %v3231_v46 }
 0x482   :  { %v3377_v23 = vmul.f32 %v3375_v58, %v3375_v58 }
 0x49d   :  { %v4733_v20 = vpop.f32.mrb[14].mxu0 }
 0x49e   :  { %v4734_v11 = vpop.f32.mrb[15].mxu0 }
 0x49f   :  { %v4735_v63 = vadd.f32 %v4734_v11, %v4733_v20 }
 0x4a1   :  { %v3371_v45 = vadd.f32 %v4735_v63, %v10273_v52 }
 0x4a3   :  { %v3376_v49 = vmul.f32 0.055555556, %v3371_v45 }
 0x4a5   :  { %v3378_v1 = vsub.f32 %v3376_v49, %v3377_v23 }
 0x4a7   :  { %v3379_v4 = vadd.f32 1e-05, %v3378_v1 }
 0x4a9   :  { %6698 = vrsqrt.f32 %v3379_v4 }
 0x4b3   :  { %v6699_v31 = vpop.eup %6698 }
 0x4b4   :  { %v3382_v44 = vmul.f32 %v6699_v31, %v3381_v39 }
 0x4b6   :  { %3499 = vmatmul.mubr.f32.vlgmr.msra.gmra.mrb[16].mxu0 %v3382_v44  ;;  %5170 = vmatmul.mubr.f32.vlgmr.msra.gmra.mrb[16].mxu1 %v3382_v44  ;;  %v3384_v13 = vmul.f32 %v3382_v44, %v3375_v58 }
 0x4b7   :  { %6594 = vmatpush1.bf16.msra.mxu0 %v10212_v47  ;;  %6625 = vmatpush3.bf16.msra.mxu1 %v10214_v41  ;;  %v3716_v41 = vlaneseq }
 0x4b8   :  { %6596 = vmatprep.subr.bf16.mxu0 %v10226_v14  ;;  %6626 = vmatprep.subr.bf16.mxu1 %v10716_v60 }
 0x4b9   :  { %3639 = vmatprep.mubr.f32.mxu0 %v10724_v55  ;;  %5204 = vmatprep.mubr.msk.f32.mxu1 %vm6701_vm0, %v10724_v55  ;;  %v3383_v55 = vld [vmem:[%s10478_s5] sm:$0x1]  ;;  %v3717_v14 = vshrl.u32 %v3716_v41, 7 }
 0x4ba   :  { %v3385_v47 = vsub.f32 %v3383_v55, %v3384_v13 }
 0x4bb   :  { %6598 = vmatpush1.bf16.msra.mxu0 %v10239_v18  ;;  %6628 = vmatpush3.bf16.msra.mxu1 %v10241_v24  ;;  %v3718_v18 = vsub.s32 0, %v3717_v14 }
 0x4bc   :  { %6600 = vmatprep.subr.bf16.mxu0 %v10254_v26  ;;  %6629 = vmatprep.subr.bf16.mxu1 %v10716_v60 }
 0x4bf   :  { %6602 = vmatpush1.bf16.msra.mxu0 %v10265_v2  ;;  %6631 = vmatpush3.bf16.msra.mxu1 %v10271_v61 }
 0x4c0   :  { %6604 = vmatprep.subr.bf16.mxu0 %v10283_v22  ;;  %6632 = vmatprep.subr.bf16.mxu1 %v10716_v60 }
 0x4c3   :  { %6606 = vmatpush1.bf16.msra.mxu0 %v10295_v54  ;;  %6634 = vmatpush3.bf16.msra.mxu1 %v10301_v27 }
 0x4c4   :  { %6608 = vmatprep.subr.bf16.mxu0 %v10311_v7  ;;  %6635 = vmatprep.subr.bf16.mxu1 %v10716_v60  ;;  %v11110_v7 = vld [vmem:[#allocation10_spill] sm:$0xff] }
 0x4c7   :  { %6610 = vmatpush1.bf16.msra.mxu0 %v10323_v40  ;;  %6637 = vmatpush3.bf16.msra.mxu1 %v10329_v17 }
 0x4c8   :  { %6612 = vmatprep.subr.bf16.mxu0 %v10339_v15  ;;  %6638 = vmatprep.subr.bf16.mxu1 %v10716_v60 }
 0x4cb   :  { %6614 = vmatpush1.bf16.msra.mxu0 %v10351_v32  ;;  %6640 = vmatpush3.bf16.msra.mxu1 %v10357_v16 }
 0x4cc   :  { %6616 = vmatprep.subr.bf16.mxu0 %v10369_v29  ;;  %6641 = vmatprep.subr.bf16.mxu1 %v10716_v60 }
 0x4cf   :  { %6618 = vmatpush1.bf16.msra.mxu0 %v10381_v33  ;;  %6643 = vmatpush3.bf16.msra.mxu1 %v10383_v10 }
 0x4d0   :  { %6620 = vmatprep.subr.bf16.mxu0 %v10396_v59  ;;  %6644 = vmatprep.subr.bf16.mxu1 %v10716_v60 }
 0x4d3   :  { %6622 = vmatpush1.bf16.msra.mxu0 %v10408_v56  ;;  %6646 = vmatpush3.bf16.msra.mxu1 %v6589_v37 }
 0x4d6   :  { %3640 = vmatmul.mubr.f32.vlgmr.msra.gmra.mrb[18].mxu0 %v3385_v47  ;;  %5205 = vmatmul.mubr.f32.vlgmr.msra.gmra.mrb[18].mxu1 %v3385_v47 }
 0x589   :  { %v3500_v24 = vpop.f32.mrb[16].mxu0  ;;  %v3571_v26 = vpop.f32.mrb[16].mxu1 }
 0x58a   :  { %v3719_v2 = vrot.slane %v3500_v24, %v3718_v18  ;;  %v3502_v61 = vpop.f32.mrb[17].mxu0  ;;  %v5171_v52 = vpop.f32.mrb[17].mxu1  ;;  %v3727_v17 = vrot.slane %v3571_v26, %v3718_v18 }
 0x58b   :  { %v3723_v22 = vrot.slane %v3502_v61, %v3718_v18 }
 0x58c   :  { %v3728_v60 = vmul.f32 %v3719_v2, %v9836_v0  ;;  %v3761_v54 = vmul.f32 %v3719_v2, %v10140_v50  ;;  %v3730_v32 = vmul.f32 %v9679_v5, %v3727_v17  ;;  %v3763_v51 = vmul.f32 %v10123_v35, %v3727_v17 }
 0x58d   :  { %v3729_v27 = vmul.f32 %v3723_v22, %v9839_v34  ;;  %v3762_v40 = vmul.f32 %v3723_v22, %v11110_v7 }
 0x5a9   :  { %v3641_v15 = vpop.f32.mrb[18].mxu0  ;;  %v3712_v38 = vpop.f32.mrb[18].mxu1 }
 0x5aa   :  { %v3734_v16 = vrot.slane %v3641_v15, %v3718_v18  ;;  %v3742_v25 = vrot.slane %v3712_v38, %v3718_v18  ;;  %v3643_v3 = vpop.f32.mrb[19].mxu0  ;;  %v5206_v42 = vpop.f32.mrb[19].mxu1 }
 0x5ab   :  { %v3738_v29 = vrot.slane %v3643_v3, %v3718_v18 }
 0x5ac   :  { %v3743_v21 = vadd.f32 %v3734_v16, %v3728_v60  ;;  %v3764_v0 = vadd.f32 %v3761_v54, %v3734_v16  ;;  %v3745_v19 = vadd.f32 %v3742_v25, %v3730_v32  ;;  %v3766_v50 = vadd.f32 %v3763_v51, %v3742_v25 }
 0x5ad   :  { %v3744_v62 = vadd.f32 %v3738_v29, %v3729_v27  ;;  %v3765_v34 = vadd.f32 %v3762_v40, %v3738_v29 }
 0x5ae   :  { %vm3746_vm2 = vcmp.ge.f32.partialorder %v3743_v21, 0.0  ;;  %v3749_v33 = vmul.f32 0.2, %v3743_v21  ;;  %vm3767_vm3 = vcmp.ge.f32.partialorder %v3764_v0, 0.0  ;;  %v3770_v10 = vmul.f32 0.2, %v3764_v0 }
 0x5af   :  { %vm3748_vm4 = vcmp.ge.f32.partialorder %v3745_v19, 0.0  ;;  %v3751_v53 = vmul.f32 0.2, %v3745_v19  ;;  %vm3769_vm5 = vcmp.ge.f32.partialorder %v3766_v50, 0.0  ;;  %v3772_v5 = vmul.f32 0.2, %v3766_v50 }
 0x5b0   :  { %v3752_v35 = vsel %vm3746_vm2, %v3743_v21, %v3749_v33  ;;  %v3773_v57 = vsel %vm3767_vm3, %v3764_v0, %v3770_v10  ;;  %vm3747_vm6 = vcmp.ge.f32.partialorder %v3744_v62, 0.0  ;;  %v3750_v43 = vmul.f32 0.2, %v3744_v62 }
 0x5b1   :  { %v3754_v59 = vsel %vm3748_vm4, %v3745_v19, %v3751_v53  ;;  %v3775_v30 = vsel %vm3769_vm5, %v3766_v50, %v3772_v5  ;;  %vm3768_vm7 = vcmp.ge.f32.partialorder %v3765_v34, 0.0  ;;  %v3771_v12 = vmul.f32 0.2, %v3765_v34 }
 0x5b2   :  { %3760 = vst [vmem:[%s10479_s6 + $0x8] sm:$0x7] %v3754_v59  ;;  %4232 = vst [vmem:[%s10479_s6 + $0x14] sm:$0x7] %v3775_v30  ;;  %v3753_v48 = vsel %vm3747_vm6, %v3744_v62, %v3750_v43 }
 0x5b3   :  { %v3757_v56 = vcombine.low %v3752_v35, %v3753_v48  ;;  %v3774_v37 = vsel %vm3768_vm7, %v3765_v34, %v3771_v12 }
 0x5b4   :  { %v3778_v6 = vcombine.low %v3773_v57, %v3774_v37 }
 0x5b5   :  { %3759 = vst [vmem:[%s10479_s6] sm:$0x77] %v3757_v56 }
 0x5b6   :  { %4231 = vst [vmem:[%s10479_s6 + $0xc] sm:$0x77] %v3778_v6 }

</bundles_post_ra>
